<compile_context>
chip_gen: v7x
topology: tpu7x:2x2x1
jax: 0.10.0
libtpu: 0.0.40
codegen_flags: <defaults>
</compile_context>

<pallas_src>
import jax
import jax.numpy as jnp
from jax import lax
from jax.experimental import pallas as pl
from jax.experimental.pallas import tpu as pltpu

EPS = 1e-5


def nn_kernel(xc_ref, sup_ref, sdn_ref, w_in_ref, r_ref, e_ref,
              g1_ref, b1_ref, g2_ref, b2_ref, g3_ref, b3_ref,
              bd1_ref, bm1_ref, bd2_ref, bm2_ref,
              w_out_ref, bout_ref, o_ref):
    BH = xc_ref.shape[0]            # B*H rows
    WM = bd1_ref.shape[0]           # W * mid_channels (packed lane width)
    Mid = r_ref.shape[1]
    W = WM // Mid
    WCo = bout_ref.shape[1]         # W * out_channels (= output lane width)
    inv_n = 1.0 / (BH * W)          # 1 / (B*H*W): elements per channel

    sup = sup_ref[...]              # (BH, BH) 0/1 "take row y+1 (same image)"
    sdn = sdn_ref[...]              # (BH, BH) 0/1 "take row y-1 (same image)"
    R = r_ref[...]                  # (WM, Mid) 0/1 fold: packed lanes -> channels
    E = e_ref[...]                  # (Mid, WM) 0/1 expand: channels -> packed lanes

    def conv3x3(t, w_big, nb):
        # t: (BH, packed_in); w_big: (packed_in, 3*nb); lane block dy in {0,1,2}
        # is the width-banded matrix of kernel row dy.  One big MXU matmul,
        # then two tiny row-shift matmuls handle the vertical (dy) offsets and
        # the top/bottom zero padding (no padded scratch needed).
        p = jnp.dot(t, w_big, preferred_element_type=jnp.float32)
        return (p[:, nb:2 * nb]
                + jnp.dot(sdn, p[:, 0:nb], preferred_element_type=jnp.float32)
                + jnp.dot(sup, p[:, 2 * nb:3 * nb], preferred_element_type=jnp.float32))

    def bn_relu(t, g, b):
        # Single-pass batch stats (biased var = E[x^2] - mean^2), applied as a
        # fused per-channel scale/shift, then ReLU.  Everything lane-dense.
        s1 = jnp.sum(t, axis=0, keepdims=True)
        s2 = jnp.sum(t * t, axis=0, keepdims=True)
        m_c = jnp.dot(s1, R, preferred_element_type=jnp.float32) * inv_n     # (1, Mid)
        e2_c = jnp.dot(s2, R, preferred_element_type=jnp.float32) * inv_n    # (1, Mid)
        var_c = e2_c - m_c * m_c
        rstd_p = jnp.dot(lax.rsqrt(var_c + EPS), E,
                         preferred_element_type=jnp.float32)                 # (1, WM)
        mean_p = jnp.dot(m_c, E, preferred_element_type=jnp.float32)         # (1, WM)
        scale = g * rstd_p
        shift = b - mean_p * scale
        return jnp.maximum(t * scale + shift, 0.0)

    # ---- in_conv: 3x3, padding=1, no bias ----------------------------------
    h = conv3x3(xc_ref[...], w_in_ref[...], WM)
    # ---- mid layer 1: BN -> ReLU -> 1x1 conv (+bias) ------------------------
    h = bn_relu(h, g1_ref[...], b1_ref[...])
    h = jnp.dot(h, bd1_ref[...], preferred_element_type=jnp.float32) + bm1_ref[...]
    # ---- mid layer 2: BN -> ReLU -> 1x1 conv (+bias) ------------------------
    h = bn_relu(h, g2_ref[...], b2_ref[...])
    h = jnp.dot(h, bd2_ref[...], preferred_element_type=jnp.float32) + bm2_ref[...]
    # ---- out_norm -> ReLU -> out_conv: 3x3, padding=1, bias -----------------
    h = bn_relu(h, g3_ref[...], b3_ref[...])
    # Single aligned, lane-dense (BH, W*Cout) store.
    o_ref[...] = conv3x3(h, w_out_ref[...], WCo) + bout_ref[...]


def _band(w_dy, ci, co, W):
    """(3, ci, co) per-dx weights -> (W*ci, W*co) width-banded matrix.

    band[x_in*ci + c, x_out*co + d] = w_dy[x_in - x_out + 1, c, d] when the tap
    is in range, else 0 (this encodes the horizontal 'SAME' padding)."""
    xi = jnp.arange(W)[:, None]
    xo = jnp.arange(W)[None, :]
    dx = xi - xo + 1
    sel = (dx >= 0) & (dx <= 2)
    blk = jnp.where(sel[:, :, None, None], w_dy[jnp.clip(dx, 0, 2)], 0.0)
    return blk.transpose(0, 2, 1, 3).reshape(W * ci, W * co)


def _row_shift_mats(B, H):
    """(BH, BH) 0/1 matrices selecting row y+1 / y-1 of the same image."""
    BH = B * H
    r = jnp.arange(BH)
    sup = ((r[None, :] == r[:, None] + 1) &
           ((r[:, None] % H) != (H - 1))).astype(jnp.float32)
    sdn = ((r[None, :] == r[:, None] - 1) &
           ((r[:, None] % H) != 0)).astype(jnp.float32)
    return sup, sdn


def nn_forward(x_nchw, cond, p):
    """x_nchw: (B, C_in, H, W); cond: (B, C_cond). Returns (B, C_out, H, W)."""
    B, _, H, W = x_nchw.shape
    Cin = p["w_in"].shape[2]          # in_channels + cond_channels
    Mid = p["w_in"].shape[3]
    Cout = p["w_out"].shape[3]
    WM, WCo = W * Mid, W * Cout

    # ---- layout glue (XLA): NCHW + cond -> lane-packed (B*H, W*Cin) ---------
    x = jnp.transpose(x_nchw, (0, 2, 3, 1)).astype(jnp.float32)
    c = jnp.broadcast_to(cond[:, None, None, :].astype(jnp.float32),
                         (B, H, W, cond.shape[-1]))
    xc = jnp.concatenate([x, c], axis=-1).reshape(B * H, W * Cin)

    # ---- parameter packing (XLA, done once per call) ------------------------
    w_in_big = jnp.concatenate([_band(p["w_in"][dy], Cin, Mid, W)
                                for dy in range(3)], axis=1)      # (W*Cin, 3*WM)
    w_out_big = jnp.concatenate([_band(p["w_out"][dy], Mid, Cout, W)
                                 for dy in range(3)], axis=1)     # (WM, 3*WCo)
    eyeW = jnp.eye(W, dtype=jnp.float32)
    bd1 = jnp.kron(eyeW, p["wm1"])                                # (WM, WM)
    bd2 = jnp.kron(eyeW, p["wm2"])                                # (WM, WM)
    eyeM = jnp.eye(Mid, dtype=jnp.float32)
    R = jnp.tile(eyeM, (W, 1))                                    # (WM, Mid)
    E = jnp.tile(eyeM, (1, W))                                    # (Mid, WM)
    tile_w = lambda v: jnp.tile(v.reshape(1, -1), (1, W))
    sup, sdn = _row_shift_mats(B, H)

    out2d = pl.pallas_call(
        nn_kernel,
        out_shape=jax.ShapeDtypeStruct((B * H, WCo), jnp.float32),
        in_specs=[pl.BlockSpec(memory_space=pltpu.MemorySpace.VMEM)] * 18,
        out_specs=pl.BlockSpec(memory_space=pltpu.MemorySpace.VMEM),
    )(xc, sup, sdn, w_in_big, R, E,
      tile_w(p["g1"]), tile_w(p["b1"]), tile_w(p["g2"]), tile_w(p["b2"]),
      tile_w(p["g3"]), tile_w(p["b3"]),
      bd1, tile_w(p["bm1"]), bd2, tile_w(p["bm2"]),
      w_out_big, tile_w(p["b_out"]))

    return jnp.transpose(out2d.reshape(B, H, W, Cout), (0, 3, 1, 2))  # NCHW


def reference(x_nchw, cond, p):
    """Pure-JAX reference of the same forward pass (for validation)."""
    B, _, H, W = x_nchw.shape
    x = jnp.transpose(x_nchw, (0, 2, 3, 1)).astype(jnp.float32)
    c = jnp.broadcast_to(cond[:, None, None, :].astype(jnp.float32),
                         (B, H, W, cond.shape[-1]))
    h = jnp.concatenate([x, c], axis=-1)
    dn = ("NHWC", "HWIO", "NHWC")
    h = lax.conv_general_dilated(h, p["w_in"], (1, 1), "SAME", dimension_numbers=dn)

    def bn(t, g, b):
        m = jnp.mean(t, axis=(0, 1, 2), keepdims=True)
        v = jnp.mean((t - m) ** 2, axis=(0, 1, 2), keepdims=True)
        return (t - m) * lax.rsqrt(v + EPS) * g.reshape(1, 1, 1, -1) + b.reshape(1, 1, 1, -1)

    h = bn(h, p["g1"], p["b1"]); h = jnp.maximum(h, 0.0)
    h = jnp.einsum("bhwc,cd->bhwd", h, p["wm1"]) + p["bm1"].reshape(1, 1, 1, -1)
    h = bn(h, p["g2"], p["b2"]); h = jnp.maximum(h, 0.0)
    h = jnp.einsum("bhwc,cd->bhwd", h, p["wm2"]) + p["bm2"].reshape(1, 1, 1, -1)
    h = bn(h, p["g3"], p["b3"]); h = jnp.maximum(h, 0.0)
    h = lax.conv_general_dilated(h, p["w_out"], (1, 1), "SAME", dimension_numbers=dn)
    h = h + p["b_out"].reshape(1, 1, 1, -1)
    return jnp.transpose(h, (0, 3, 1, 2))


def make_params(key, in_ch, cond_ch, mid, out_ch):
    ks = jax.random.split(key, 12)
    cin = in_ch + cond_ch
    # in_conv: N(0, 0.05) as in the module.  Weights stored HWIO.
    w_in = 0.05 * jax.random.normal(ks[0], (3, 3, cin, mid), jnp.float32)
    # BN affine params (PyTorch default gamma=1, beta=0; perturbed deterministically
    # so the test exercises the affine path), stored as (1, C).
    g1 = 1.0 + 0.1 * jax.random.normal(ks[1], (1, mid), jnp.float32)
    b1 = 0.1 * jax.random.normal(ks[2], (1, mid), jnp.float32)
    g2 = 1.0 + 0.1 * jax.random.normal(ks[3], (1, mid), jnp.float32)
    b2 = 0.1 * jax.random.normal(ks[4], (1, mid), jnp.float32)
    g3 = 1.0 + 0.1 * jax.random.normal(ks[5], (1, mid), jnp.float32)
    b3 = 0.1 * jax.random.normal(ks[6], (1, mid), jnp.float32)
    # 1x1 mid convs as (in, out) matmul weights + biases.
    wm1 = 0.1 * jax.random.normal(ks[7], (mid, mid), jnp.float32)
    bm1 = 0.1 * jax.random.normal(ks[8], (1, mid), jnp.float32)
    wm2 = 0.1 * jax.random.normal(ks[9], (mid, mid), jnp.float32)
    bm2 = 0.1 * jax.random.normal(ks[10], (1, mid), jnp.float32)
    # out_conv: the module zero-inits it (output would be identically zero);
    # use small deterministic values here so the kernel test is non-trivial.
    w_out = 0.05 * jax.random.normal(ks[11], (3, 3, mid, out_ch), jnp.float32)
    b_out = jnp.zeros((1, out_ch), jnp.float32)
    return dict(w_in=w_in, g1=g1, b1=b1, wm1=wm1, bm1=bm1,
                g2=g2, b2=b2, wm2=wm2, bm2=bm2,
                g3=g3, b3=b3, w_out=w_out, b_out=b_out)


if __name__ == "__main__":
    B, IN_CH, COND_CH, MID, OUT_CH, H, W = 2, 4, 4, 32, 8, 16, 16

    key = jax.random.PRNGKey(0)
    kx, kc, kp = jax.random.split(key, 3)
    x = jax.random.normal(kx, (B, IN_CH, H, W), jnp.float32)        # NCHW input
    cond = jax.random.normal(kc, (B, COND_CH), jnp.float32)
    params = make_params(kp, IN_CH, COND_CH, MID, OUT_CH)

    out = jax.jit(nn_forward)(x, cond, params)
    out = jax.block_until_ready(out)

    ref = reference(x, cond, params)
    assert out.shape == (B, OUT_CH, H, W)
    assert jnp.allclose(out, ref, atol=1e-4, rtol=1e-4), \
        float(jnp.max(jnp.abs(out - ref)))

    print("KERNEL_OK")
</pallas_src>

<mosaic_0001>
module attributes {stable_mosaic.version = 11 : i64} {
  func.func @nn_kernel(%arg0: memref<32x128xf32, #tpu.memory_space<vmem>>, %arg1: memref<32x32xf32, #tpu.memory_space<vmem>>, %arg2: memref<32x32xf32, #tpu.memory_space<vmem>>, %arg3: memref<128x1536xf32, #tpu.memory_space<vmem>>, %arg4: memref<512x32xf32, #tpu.memory_space<vmem>>, %arg5: memref<32x512xf32, #tpu.memory_space<vmem>>, %arg6: memref<1x512xf32, #tpu.memory_space<vmem>>, %arg7: memref<1x512xf32, #tpu.memory_space<vmem>>, %arg8: memref<1x512xf32, #tpu.memory_space<vmem>>, %arg9: memref<1x512xf32, #tpu.memory_space<vmem>>, %arg10: memref<1x512xf32, #tpu.memory_space<vmem>>, %arg11: memref<1x512xf32, #tpu.memory_space<vmem>>, %arg12: memref<512x512xf32, #tpu.memory_space<vmem>>, %arg13: memref<1x512xf32, #tpu.memory_space<vmem>>, %arg14: memref<512x512xf32, #tpu.memory_space<vmem>>, %arg15: memref<1x512xf32, #tpu.memory_space<vmem>>, %arg16: memref<512x384xf32, #tpu.memory_space<vmem>>, %arg17: memref<1x128xf32, #tpu.memory_space<vmem>>, %arg18: memref<32x128xf32, #tpu.memory_space<vmem>>) attributes {dimension_semantics = [], scalar_prefetch = 0 : i64, scratch_operands = 0 : i64, tpu.core_type = #tpu.core_type<tc>} {
    %c0 = arith.constant 0 : index
    %c0_0 = arith.constant 0 : index
    %0 = vector.load %arg1[%c0, %c0_0] : memref<32x32xf32, #tpu.memory_space<vmem>>, vector<32x32xf32>
    %c0_1 = arith.constant 0 : index
    %c0_2 = arith.constant 0 : index
    %1 = vector.load %arg2[%c0_1, %c0_2] : memref<32x32xf32, #tpu.memory_space<vmem>>, vector<32x32xf32>
    %c0_3 = arith.constant 0 : index
    %c0_4 = arith.constant 0 : index
    %2 = vector.load %arg4[%c0_3, %c0_4] : memref<512x32xf32, #tpu.memory_space<vmem>>, vector<512x32xf32>
    %c0_5 = arith.constant 0 : index
    %c0_6 = arith.constant 0 : index
    %3 = vector.load %arg5[%c0_5, %c0_6] : memref<32x512xf32, #tpu.memory_space<vmem>>, vector<32x512xf32>
    %c0_7 = arith.constant 0 : index
    %c0_8 = arith.constant 0 : index
    %4 = vector.load %arg0[%c0_7, %c0_8] : memref<32x128xf32, #tpu.memory_space<vmem>>, vector<32x128xf32>
    %c0_9 = arith.constant 0 : index
    %c0_10 = arith.constant 0 : index
    %5 = vector.load %arg3[%c0_9, %c0_10] : memref<128x1536xf32, #tpu.memory_space<vmem>>, vector<128x1536xf32>
    %cst = arith.constant dense<0.000000e+00> : vector<32x1536xf32>
    %6 = tpu.matmul %4, %5, %cst {dimension_numbers = #tpu.dot_dimension_numbers<[1], [0], [0], [1], [0, 0, 1, 1], [], []>} : vector<32x128xf32>, vector<128x1536xf32>, vector<32x1536xf32> -> vector<32x1536xf32>
    %7 = vector.extract_strided_slice %6 {offsets = [0, 512], sizes = [32, 512], strides = [1, 1]} : vector<32x1536xf32> to vector<32x512xf32>
    %8 = vector.extract_strided_slice %6 {offsets = [0, 0], sizes = [32, 512], strides = [1, 1]} : vector<32x1536xf32> to vector<32x512xf32>
    %cst_11 = arith.constant dense<0.000000e+00> : vector<32x512xf32>
    %9 = tpu.matmul %1, %8, %cst_11 {dimension_numbers = #tpu.dot_dimension_numbers<[1], [0], [0], [1], [0, 0, 1, 1], [], []>} : vector<32x32xf32>, vector<32x512xf32>, vector<32x512xf32> -> vector<32x512xf32>
    %10 = arith.addf %7, %9 : vector<32x512xf32>
    %11 = vector.extract_strided_slice %6 {offsets = [0, 1024], sizes = [32, 512], strides = [1, 1]} : vector<32x1536xf32> to vector<32x512xf32>
    %cst_12 = arith.constant dense<0.000000e+00> : vector<32x512xf32>
    %12 = tpu.matmul %0, %11, %cst_12 {dimension_numbers = #tpu.dot_dimension_numbers<[1], [0], [0], [1], [0, 0, 1, 1], [], []>} : vector<32x32xf32>, vector<32x512xf32>, vector<32x512xf32> -> vector<32x512xf32>
    %13 = arith.addf %10, %12 : vector<32x512xf32>
    %c0_13 = arith.constant 0 : index
    %c0_14 = arith.constant 0 : index
    %14 = vector.load %arg6[%c0_13, %c0_14] : memref<1x512xf32, #tpu.memory_space<vmem>>, vector<1x512xf32>
    %c0_15 = arith.constant 0 : index
    %c0_16 = arith.constant 0 : index
    %15 = vector.load %arg7[%c0_15, %c0_16] : memref<1x512xf32, #tpu.memory_space<vmem>>, vector<1x512xf32>
    %cst_17 = arith.constant dense<0.000000e+00> : vector<512xf32>
    %16 = vector.multi_reduction <add>, %13, %cst_17 [0] : vector<32x512xf32> to vector<512xf32>
    %17 = vector.shape_cast %16 : vector<512xf32> to vector<1x512xf32>
    %18 = arith.mulf %13, %13 : vector<32x512xf32>
    %cst_18 = arith.constant dense<0.000000e+00> : vector<512xf32>
    %19 = vector.multi_reduction <add>, %18, %cst_18 [0] : vector<32x512xf32> to vector<512xf32>
    %20 = vector.shape_cast %19 : vector<512xf32> to vector<1x512xf32>
    %cst_19 = arith.constant dense<0.000000e+00> : vector<1x32xf32>
    %21 = tpu.matmul %17, %2, %cst_19 {dimension_numbers = #tpu.dot_dimension_numbers<[1], [0], [0], [1], [0, 0, 1, 1], [], []>} : vector<1x512xf32>, vector<512x32xf32>, vector<1x32xf32> -> vector<1x32xf32>
    %cst_20 = arith.constant 0.001953125 : f32
    %22 = vector.broadcast %cst_20 : f32 to vector<1x32xf32>
    %23 = arith.mulf %21, %22 : vector<1x32xf32>
    %cst_21 = arith.constant dense<0.000000e+00> : vector<1x32xf32>
    %24 = tpu.matmul %20, %2, %cst_21 {dimension_numbers = #tpu.dot_dimension_numbers<[1], [0], [0], [1], [0, 0, 1, 1], [], []>} : vector<1x512xf32>, vector<512x32xf32>, vector<1x32xf32> -> vector<1x32xf32>
    %cst_22 = arith.constant 0.001953125 : f32
    %25 = vector.broadcast %cst_22 : f32 to vector<1x32xf32>
    %26 = arith.mulf %24, %25 : vector<1x32xf32>
    %27 = arith.mulf %23, %23 : vector<1x32xf32>
    %28 = arith.subf %26, %27 : vector<1x32xf32>
    %cst_23 = arith.constant 9.99999974E-6 : f32
    %29 = vector.broadcast %cst_23 : f32 to vector<1x32xf32>
    %30 = arith.addf %28, %29 : vector<1x32xf32>
    %31 = math.rsqrt %30 : vector<1x32xf32>
    %cst_24 = arith.constant dense<0.000000e+00> : vector<1x512xf32>
    %32 = tpu.matmul %31, %3, %cst_24 {dimension_numbers = #tpu.dot_dimension_numbers<[1], [0], [0], [1], [0, 0, 1, 1], [], []>} : vector<1x32xf32>, vector<32x512xf32>, vector<1x512xf32> -> vector<1x512xf32>
    %cst_25 = arith.constant dense<0.000000e+00> : vector<1x512xf32>
    %33 = tpu.matmul %23, %3, %cst_25 {dimension_numbers = #tpu.dot_dimension_numbers<[1], [0], [0], [1], [0, 0, 1, 1], [], []>} : vector<1x32xf32>, vector<32x512xf32>, vector<1x512xf32> -> vector<1x512xf32>
    %34 = arith.mulf %14, %32 : vector<1x512xf32>
    %35 = arith.mulf %33, %34 : vector<1x512xf32>
    %36 = arith.subf %15, %35 : vector<1x512xf32>
    %37 = vector.broadcast %34 : vector<1x512xf32> to vector<32x512xf32>
    %38 = arith.mulf %13, %37 : vector<32x512xf32>
    %39 = vector.broadcast %36 : vector<1x512xf32> to vector<32x512xf32>
    %40 = arith.addf %38, %39 : vector<32x512xf32>
    %cst_26 = arith.constant 0.000000e+00 : f32
    %41 = vector.broadcast %cst_26 : f32 to vector<32x512xf32>
    %42 = arith.maximumf %40, %41 : vector<32x512xf32>
    %c0_27 = arith.constant 0 : index
    %c0_28 = arith.constant 0 : index
    %43 = vector.load %arg12[%c0_27, %c0_28] : memref<512x512xf32, #tpu.memory_space<vmem>>, vector<512x512xf32>
    %cst_29 = arith.constant dense<0.000000e+00> : vector<32x512xf32>
    %44 = tpu.matmul %42, %43, %cst_29 {dimension_numbers = #tpu.dot_dimension_numbers<[1], [0], [0], [1], [0, 0, 1, 1], [], []>} : vector<32x512xf32>, vector<512x512xf32>, vector<32x512xf32> -> vector<32x512xf32>
    %c0_30 = arith.constant 0 : index
    %c0_31 = arith.constant 0 : index
    %45 = vector.load %arg13[%c0_30, %c0_31] : memref<1x512xf32, #tpu.memory_space<vmem>>, vector<1x512xf32>
    %46 = vector.broadcast %45 : vector<1x512xf32> to vector<32x512xf32>
    %47 = arith.addf %44, %46 : vector<32x512xf32>
    %c0_32 = arith.constant 0 : index
    %c0_33 = arith.constant 0 : index
    %48 = vector.load %arg8[%c0_32, %c0_33] : memref<1x512xf32, #tpu.memory_space<vmem>>, vector<1x512xf32>
    %c0_34 = arith.constant 0 : index
    %c0_35 = arith.constant 0 : index
    %49 = vector.load %arg9[%c0_34, %c0_35] : memref<1x512xf32, #tpu.memory_space<vmem>>, vector<1x512xf32>
    %cst_36 = arith.constant dense<0.000000e+00> : vector<512xf32>
    %50 = vector.multi_reduction <add>, %47, %cst_36 [0] : vector<32x512xf32> to vector<512xf32>
    %51 = vector.shape_cast %50 : vector<512xf32> to vector<1x512xf32>
    %52 = arith.mulf %47, %47 : vector<32x512xf32>
    %cst_37 = arith.constant dense<0.000000e+00> : vector<512xf32>
    %53 = vector.multi_reduction <add>, %52, %cst_37 [0] : vector<32x512xf32> to vector<512xf32>
    %54 = vector.shape_cast %53 : vector<512xf32> to vector<1x512xf32>
    %cst_38 = arith.constant dense<0.000000e+00> : vector<1x32xf32>
    %55 = tpu.matmul %51, %2, %cst_38 {dimension_numbers = #tpu.dot_dimension_numbers<[1], [0], [0], [1], [0, 0, 1, 1], [], []>} : vector<1x512xf32>, vector<512x32xf32>, vector<1x32xf32> -> vector<1x32xf32>
    %cst_39 = arith.constant 0.001953125 : f32
    %56 = vector.broadcast %cst_39 : f32 to vector<1x32xf32>
    %57 = arith.mulf %55, %56 : vector<1x32xf32>
    %cst_40 = arith.constant dense<0.000000e+00> : vector<1x32xf32>
    %58 = tpu.matmul %54, %2, %cst_40 {dimension_numbers = #tpu.dot_dimension_numbers<[1], [0], [0], [1], [0, 0, 1, 1], [], []>} : vector<1x512xf32>, vector<512x32xf32>, vector<1x32xf32> -> vector<1x32xf32>
    %cst_41 = arith.constant 0.001953125 : f32
    %59 = vector.broadcast %cst_41 : f32 to vector<1x32xf32>
    %60 = arith.mulf %58, %59 : vector<1x32xf32>
    %61 = arith.mulf %57, %57 : vector<1x32xf32>
    %62 = arith.subf %60, %61 : vector<1x32xf32>
    %cst_42 = arith.constant 9.99999974E-6 : f32
    %63 = vector.broadcast %cst_42 : f32 to vector<1x32xf32>
    %64 = arith.addf %62, %63 : vector<1x32xf32>
    %65 = math.rsqrt %64 : vector<1x32xf32>
    %cst_43 = arith.constant dense<0.000000e+00> : vector<1x512xf32>
    %66 = tpu.matmul %65, %3, %cst_43 {dimension_numbers = #tpu.dot_dimension_numbers<[1], [0], [0], [1], [0, 0, 1, 1], [], []>} : vector<1x32xf32>, vector<32x512xf32>, vector<1x512xf32> -> vector<1x512xf32>
    %cst_44 = arith.constant dense<0.000000e+00> : vector<1x512xf32>
    %67 = tpu.matmul %57, %3, %cst_44 {dimension_numbers = #tpu.dot_dimension_numbers<[1], [0], [0], [1], [0, 0, 1, 1], [], []>} : vector<1x32xf32>, vector<32x512xf32>, vector<1x512xf32> -> vector<1x512xf32>
    %68 = arith.mulf %48, %66 : vector<1x512xf32>
    %69 = arith.mulf %67, %68 : vector<1x512xf32>
    %70 = arith.subf %49, %69 : vector<1x512xf32>
    %71 = vector.broadcast %68 : vector<1x512xf32> to vector<32x512xf32>
    %72 = arith.mulf %47, %71 : vector<32x512xf32>
    %73 = vector.broadcast %70 : vector<1x512xf32> to vector<32x512xf32>
    %74 = arith.addf %72, %73 : vector<32x512xf32>
    %cst_45 = arith.constant 0.000000e+00 : f32
    %75 = vector.broadcast %cst_45 : f32 to vector<32x512xf32>
    %76 = arith.maximumf %74, %75 : vector<32x512xf32>
    %c0_46 = arith.constant 0 : index
    %c0_47 = arith.constant 0 : index
    %77 = vector.load %arg14[%c0_46, %c0_47] : memref<512x512xf32, #tpu.memory_space<vmem>>, vector<512x512xf32>
    %cst_48 = arith.constant dense<0.000000e+00> : vector<32x512xf32>
    %78 = tpu.matmul %76, %77, %cst_48 {dimension_numbers = #tpu.dot_dimension_numbers<[1], [0], [0], [1], [0, 0, 1, 1], [], []>} : vector<32x512xf32>, vector<512x512xf32>, vector<32x512xf32> -> vector<32x512xf32>
    %c0_49 = arith.constant 0 : index
    %c0_50 = arith.constant 0 : index
    %79 = vector.load %arg15[%c0_49, %c0_50] : memref<1x512xf32, #tpu.memory_space<vmem>>, vector<1x512xf32>
    %80 = vector.broadcast %79 : vector<1x512xf32> to vector<32x512xf32>
    %81 = arith.addf %78, %80 : vector<32x512xf32>
    %c0_51 = arith.constant 0 : index
    %c0_52 = arith.constant 0 : index
    %82 = vector.load %arg10[%c0_51, %c0_52] : memref<1x512xf32, #tpu.memory_space<vmem>>, vector<1x512xf32>
    %c0_53 = arith.constant 0 : index
    %c0_54 = arith.constant 0 : index
    %83 = vector.load %arg11[%c0_53, %c0_54] : memref<1x512xf32, #tpu.memory_space<vmem>>, vector<1x512xf32>
    %cst_55 = arith.constant dense<0.000000e+00> : vector<512xf32>
    %84 = vector.multi_reduction <add>, %81, %cst_55 [0] : vector<32x512xf32> to vector<512xf32>
    %85 = vector.shape_cast %84 : vector<512xf32> to vector<1x512xf32>
    %86 = arith.mulf %81, %81 : vector<32x512xf32>
    %cst_56 = arith.constant dense<0.000000e+00> : vector<512xf32>
    %87 = vector.multi_reduction <add>, %86, %cst_56 [0] : vector<32x512xf32> to vector<512xf32>
    %88 = vector.shape_cast %87 : vector<512xf32> to vector<1x512xf32>
    %cst_57 = arith.constant dense<0.000000e+00> : vector<1x32xf32>
    %89 = tpu.matmul %85, %2, %cst_57 {dimension_numbers = #tpu.dot_dimension_numbers<[1], [0], [0], [1], [0, 0, 1, 1], [], []>} : vector<1x512xf32>, vector<512x32xf32>, vector<1x32xf32> -> vector<1x32xf32>
    %cst_58 = arith.constant 0.001953125 : f32
    %90 = vector.broadcast %cst_58 : f32 to vector<1x32xf32>
    %91 = arith.mulf %89, %90 : vector<1x32xf32>
    %cst_59 = arith.constant dense<0.000000e+00> : vector<1x32xf32>
    %92 = tpu.matmul %88, %2, %cst_59 {dimension_numbers = #tpu.dot_dimension_numbers<[1], [0], [0], [1], [0, 0, 1, 1], [], []>} : vector<1x512xf32>, vector<512x32xf32>, vector<1x32xf32> -> vector<1x32xf32>
    %cst_60 = arith.constant 0.001953125 : f32
    %93 = vector.broadcast %cst_60 : f32 to vector<1x32xf32>
    %94 = arith.mulf %92, %93 : vector<1x32xf32>
    %95 = arith.mulf %91, %91 : vector<1x32xf32>
    %96 = arith.subf %94, %95 : vector<1x32xf32>
    %cst_61 = arith.constant 9.99999974E-6 : f32
    %97 = vector.broadcast %cst_61 : f32 to vector<1x32xf32>
    %98 = arith.addf %96, %97 : vector<1x32xf32>
    %99 = math.rsqrt %98 : vector<1x32xf32>
    %cst_62 = arith.constant dense<0.000000e+00> : vector<1x512xf32>
    %100 = tpu.matmul %99, %3, %cst_62 {dimension_numbers = #tpu.dot_dimension_numbers<[1], [0], [0], [1], [0, 0, 1, 1], [], []>} : vector<1x32xf32>, vector<32x512xf32>, vector<1x512xf32> -> vector<1x512xf32>
    %cst_63 = arith.constant dense<0.000000e+00> : vector<1x512xf32>
    %101 = tpu.matmul %91, %3, %cst_63 {dimension_numbers = #tpu.dot_dimension_numbers<[1], [0], [0], [1], [0, 0, 1, 1], [], []>} : vector<1x32xf32>, vector<32x512xf32>, vector<1x512xf32> -> vector<1x512xf32>
    %102 = arith.mulf %82, %100 : vector<1x512xf32>
    %103 = arith.mulf %101, %102 : vector<1x512xf32>
    %104 = arith.subf %83, %103 : vector<1x512xf32>
    %105 = vector.broadcast %102 : vector<1x512xf32> to vector<32x512xf32>
    %106 = arith.mulf %81, %105 : vector<32x512xf32>
    %107 = vector.broadcast %104 : vector<1x512xf32> to vector<32x512xf32>
    %108 = arith.addf %106, %107 : vector<32x512xf32>
    %cst_64 = arith.constant 0.000000e+00 : f32
    %109 = vector.broadcast %cst_64 : f32 to vector<32x512xf32>
    %110 = arith.maximumf %108, %109 : vector<32x512xf32>
    %c0_65 = arith.constant 0 : index
    %c0_66 = arith.constant 0 : index
    %111 = vector.load %arg16[%c0_65, %c0_66] : memref<512x384xf32, #tpu.memory_space<vmem>>, vector<512x384xf32>
    %cst_67 = arith.constant dense<0.000000e+00> : vector<32x384xf32>
    %112 = tpu.matmul %110, %111, %cst_67 {dimension_numbers = #tpu.dot_dimension_numbers<[1], [0], [0], [1], [0, 0, 1, 1], [], []>} : vector<32x512xf32>, vector<512x384xf32>, vector<32x384xf32> -> vector<32x384xf32>
    %113 = vector.extract_strided_slice %112 {offsets = [0, 128], sizes = [32, 128], strides = [1, 1]} : vector<32x384xf32> to vector<32x128xf32>
    %114 = vector.extract_strided_slice %112 {offsets = [0, 0], sizes = [32, 128], strides = [1, 1]} : vector<32x384xf32> to vector<32x128xf32>
    %cst_68 = arith.constant dense<0.000000e+00> : vector<32x128xf32>
    %115 = tpu.matmul %1, %114, %cst_68 {dimension_numbers = #tpu.dot_dimension_numbers<[1], [0], [0], [1], [0, 0, 1, 1], [], []>} : vector<32x32xf32>, vector<32x128xf32>, vector<32x128xf32> -> vector<32x128xf32>
    %116 = arith.addf %113, %115 : vector<32x128xf32>
    %117 = vector.extract_strided_slice %112 {offsets = [0, 256], sizes = [32, 128], strides = [1, 1]} : vector<32x384xf32> to vector<32x128xf32>
    %cst_69 = arith.constant dense<0.000000e+00> : vector<32x128xf32>
    %118 = tpu.matmul %0, %117, %cst_69 {dimension_numbers = #tpu.dot_dimension_numbers<[1], [0], [0], [1], [0, 0, 1, 1], [], []>} : vector<32x32xf32>, vector<32x128xf32>, vector<32x128xf32> -> vector<32x128xf32>
    %119 = arith.addf %116, %118 : vector<32x128xf32>
    %c0_70 = arith.constant 0 : index
    %c0_71 = arith.constant 0 : index
    %120 = vector.load %arg17[%c0_70, %c0_71] : memref<1x128xf32, #tpu.memory_space<vmem>>, vector<1x128xf32>
    %121 = vector.broadcast %120 : vector<1x128xf32> to vector<32x128xf32>
    %122 = arith.addf %119, %121 : vector<32x128xf32>
    %c0_72 = arith.constant 0 : index
    %c0_73 = arith.constant 0 : index
    %123 = vector.load %arg18[%c0_72, %c0_73] : memref<32x128xf32, #tpu.memory_space<vmem>>, vector<32x128xf32>
    tpu.vector_store %arg18[%c0_72, %c0_73], %122 {strides = array<i32>} : memref<32x128xf32, #tpu.memory_space<vmem>>, vector<32x128xf32>,
    return
  }
}

</mosaic_0001>

<bundles_post_ra>
// kernel: tile.64
= control target key start
LH: loop header
LB: loop body
LE: loop exit
PB: predicated region body
PF: predicated region fallthrough
CT: control target
= control target key end

     0   :  { %vm118_vm0 = vcmask 1043458   ;;  %s158_s6 = smov 3  ;;  %vm123_vm1 = vcmask 1045508   ;;  %vm128_vm2 = vcmask 1047558   ;;  %s161_s9 = smov 12  ;;  %vm3_vm3 = vcmask 261120   ;;  %s2648_s0 = inlined_call_operand.vmem [shape: f32[32,16,32], index: 0, kind: input, shape index: {}]   ;;  %s2649_s1 = inlined_call_operand.vmem [shape: f32[32,512], index: 1, kind: output, shape index: {}]  }
   0x1   :  { %v1268_v0 = vld [vmem:[%s2648_s0 + $0x103] ss:$16 sm:%s158_s6]   ;;  %s166_s10 = smov 48  ;;  %s171_s15 = smov 192  ;;  %v1223_v54 = vld [vmem:[%s2648_s0 + $0x80] ss:$4 sm:$0xff]  }
   0x2   :  { %v1269_v1 = vld [vmem:[%s2648_s0 + $0x103] ss:$16 sm:%s161_s9]   ;;  %s113_s16 = smov 3  ;;  %s116_s21 = smov 12  ;;  %vm132_vm4 = vcmask 1048320   ;;  %vm499_vm5 = vcmask 785920  }
   0x3   :  { %v1270_v2 = vld [vmem:[%s2648_s0 + $0x103] ss:$16 sm:%s166_s10]   ;;  %v164_v3 = vsel %vm118_vm0, %v1269_v1, %v1268_v0  ;;  %s121_s22 = smov 48  ;;  %s126_s27 = smov 192  ;;  %v1226_v0 = vld [vmem:[%s2648_s0 + $0xa0] ss:$4 sm:$0xff]  }
   0x4   :  { %v1271_v4 = vld [vmem:[%s2648_s0 + $0x103] ss:$16 sm:%s171_s15]   ;;  %v169_v6 = vsel %vm123_vm1, %v1270_v2, %v164_v3  ;;  %s181_s28 = smov 3  ;;  %s184_s4 = smov 12  ;;  %vm866_vm6 = vcmask 523520  }
   0x5   :  { %v1259_v5 = vld [vmem:[%s2648_s0 + $0x3] ss:$16 sm:%s113_s16]   ;;  %v174_v9 = vsel %vm128_vm2, %v1271_v4, %v169_v6  ;;  %s189_s5 = smov 48  ;;  %s1499_s6 = smov 96   ;;  %v1229_v6 = vld [vmem:[%s2648_s0 + $0xc0] ss:$4 sm:$0xff]  }
   0x6   :  { %v1260_v7 = vld [vmem:[%s2648_s0 + $0x3] ss:$16 sm:%s116_s21]   ;;  %175 = vrot.lane.b32.xlu1 %v174_v9, %s1499_s6  ;;  %s194_s9 = smov 192  ;;  %s135_s10 = smov 3 }
   0x7   :  { %v1261_v8 = vld [vmem:[%s2648_s0 + $0x3] ss:$16 sm:%s121_s22]   ;;  %v119_v10 = vsel %vm118_vm0, %v1260_v7, %v1259_v5  ;;  %s138_s15 = smov 12  ;;  %s143_s16 = smov 48 }
   0x8   :  { %v1262_v11 = vld [vmem:[%s2648_s0 + $0x3] ss:$16 sm:%s126_s27]   ;;  %v124_v13 = vsel %vm123_vm1, %v1261_v8, %v119_v10  ;;  %s148_s19 = smov 192  ;;  %s227_s20 = smov 3 }
   0x9   :  { %v1273_v12 = vld [vmem:[%s2648_s0 + $0x183] ss:$16 sm:%s181_s28]   ;;  %v129_v15 = vsel %vm128_vm2, %v1262_v11, %v124_v13  ;;  %s230_s25 = smov 12  ;;  %s235_s26 = smov 48  ;;  %v1283_v27 = vld [vmem:[%s2648_s0 + $0x87] ss:$16 sm:%s227_s20]  }
   0xa   :  { %v1274_v14 = vld [vmem:[%s2648_s0 + $0x183] ss:$16 sm:%s184_s4]   ;;  %130 = vrot.lane.b32.xlu0 %v129_v15, %s1499_s6  ;;  %s240_s29 = smov 192  ;;  %s204_s30 = smov 3 }
   0xb   :  { %v187_v16 = vsel %vm118_vm0, %v1274_v14, %v1273_v12  ;;  %v1275_v17 = vld [vmem:[%s2648_s0 + $0x183] ss:$16 sm:%s189_s5]   ;;  %v1284_v28 = vld [vmem:[%s2648_s0 + $0x87] ss:$16 sm:%s230_s25]   ;;  %s207_s7 = smov 12  ;;  %s212_s8 = smov 48 }
   0xc   :  { %v1276_v18 = vld [vmem:[%s2648_s0 + $0x183] ss:$16 sm:%s194_s9]   ;;  %v192_v19 = vsel %vm123_vm1, %v1275_v17, %v187_v16  ;;  %v233_v30 = vsel %vm118_vm0, %v1284_v28, %v1283_v27  ;;  %v1285_v31 = vld [vmem:[%s2648_s0 + $0x87] ss:$16 sm:%s235_s26]   ;;  %s217_s13 = smov 192  ;;  %s276_s17 = smov 12 }
   0xd   :  { %v1263_v20 = vld [vmem:[%s2648_s0 + $0x83] ss:$16 sm:%s135_s10]   ;;  %v197_v21 = vsel %vm128_vm2, %v1276_v18, %v192_v19  ;;  %v1286_v32 = vld [vmem:[%s2648_s0 + $0x87] ss:$16 sm:%s240_s29]   ;;  %v238_v33 = vsel %vm123_vm1, %v1285_v31, %v233_v30  ;;  %s281_s22 = smov 48  ;;  %s286_s23 = smov 192 }
   0xe   :  { %v1264_v22 = vld [vmem:[%s2648_s0 + $0x83] ss:$16 sm:%s138_s15]   ;;  %198 = vrot.lane.b32.xlu1 %v197_v21, %s1499_s6  ;;  %v243_v35 = vsel %vm128_vm2, %v1286_v32, %v238_v33  ;;  %s250_s26 = smov 3  ;;  %s253_s2 = smov 12  ;;  %v1232_v16 = vld [vmem:[%s2648_s0 + $0xe0] ss:$4 sm:$0xff]  }
   0xf   :  { %v1265_v23 = vld [vmem:[%s2648_s0 + $0x83] ss:$16 sm:%s143_s16]   ;;  %v141_v24 = vsel %vm118_vm0, %v1264_v22, %v1263_v20  ;;  %v1278_v34 = vld [vmem:[%s2648_s0 + $0x7] ss:$16 sm:%s204_s30]   ;;  %s273_s16 = smov 3  ;;  %s258_s3 = smov 48 }
  0x10   :  { %v1266_v25 = vld [vmem:[%s2648_s0 + $0x83] ss:$16 sm:%s148_s19]   ;;  %v146_v26 = vsel %vm123_vm1, %v1265_v23, %v141_v24  ;;  %v1279_v36 = vld [vmem:[%s2648_s0 + $0x7] ss:$16 sm:%s207_s7]   ;;  %s263_s9 = smov 192  ;;  %s319_s12 = smov 3 }
  0x11   :  { %v151_v29 = vsel %vm128_vm2, %v1266_v25, %v146_v26  ;;  %v1280_v37 = vld [vmem:[%s2648_s0 + $0x7] ss:$16 sm:%s212_s8]   ;;  %v210_v38 = vsel %vm118_vm0, %v1279_v36, %v1278_v34  ;;  %s327_s18 = smov 48  ;;  %s332_s19 = smov 192  ;;  %v1303_v56 = vld [vmem:[%s2648_s0 + $0x8b] ss:$16 sm:%s319_s12]  }
  0x12   :  { %152 = vrot.lane.b32.xlu0 %v151_v29, %s1499_s6  ;;  %244 = vrot.lane.b32.xlu1 %v243_v35, %s1499_s6  ;;  %v1281_v39 = vld [vmem:[%s2648_s0 + $0x7] ss:$16 sm:%s217_s13]   ;;  %v215_v40 = vsel %vm123_vm1, %v1280_v37, %v210_v38  ;;  %s322_s13 = smov 12  ;;  %s299_s29 = smov 12 }
  0x13   :  { %v1293_v41 = vld [vmem:[%s2648_s0 + $0x187] ss:$16 sm:%s273_s16]   ;;  %v220_v43 = vsel %vm128_vm2, %v1281_v39, %v215_v40  ;;  %v1304_v57 = vld [vmem:[%s2648_s0 + $0x8b] ss:$16 sm:%s322_s13]   ;;  %s304_s30 = smov 48  ;;  %s309_s11 = smov 192 }
  0x14   :  { %v1294_v42 = vld [vmem:[%s2648_s0 + $0x187] ss:$16 sm:%s276_s17]   ;;  %1224 = vst.msk [vmem:[%s2649_s1 + $0x20] ss:$8 sm:$0xf] %vm3_vm3, %v1223_v54   ;;  %v325_v59 = vsel %vm118_vm0, %v1304_v57, %v1303_v56  ;;  %s365_s14 = smov 3 }
  0x15   :  { %v279_v44 = vsel %vm118_vm0, %v1294_v42, %v1293_v41  ;;  %v1295_v45 = vld [vmem:[%s2648_s0 + $0x187] ss:$16 sm:%s281_s22]   ;;  %s296_s22 = smov 3  ;;  %1225 = vst.msk [vmem:[%s2649_s1 + $0x1] ss:$8 sm:$0xf0] %vm3_vm3, %v1223_v54  }
  0x16   :  { %v1296_v46 = vld [vmem:[%s2648_s0 + $0x187] ss:$16 sm:%s286_s23]   ;;  %221 = vrot.lane.b32.xlu0 %v220_v43, %s1499_s6  ;;  %v284_v47 = vsel %vm123_vm1, %v1295_v45, %v279_v44  ;;  %s368_s15 = smov 12  ;;  %s378_s23 = smov 192  ;;  %v2_v31 = vld [vmem:[%s2648_s0] ss:$4 sm:$0xff]  }
  0x17   :  { %v1288_v48 = vld [vmem:[%s2648_s0 + $0x107] ss:$16 sm:%s250_s26]   ;;  %v289_v49 = vsel %vm128_vm2, %v1296_v46, %v284_v47  ;;  %v1305_v60 = vld [vmem:[%s2648_s0 + $0x8b] ss:$16 sm:%s327_s18]   ;;  %s350_s10 = smov 48  ;;  %s396_s16 = smov 48 }
  0x18   :  { %v1289_v50 = vld [vmem:[%s2648_s0 + $0x107] ss:$16 sm:%s253_s2]   ;;  %290 = vrot.lane.b32.xlu1 %v289_v49, %s1499_s6  ;;  %v330_v62 = vsel %vm123_vm1, %v1305_v60, %v325_v59  ;;  %1227 = vst.msk [vmem:[%s2649_s1 + $0x22] ss:$8 sm:$0xf] %vm3_vm3, %v1226_v0   ;;  %s424_s2 = smov 192 }
  0x19   :  { %v1290_v51 = vld [vmem:[%s2648_s0 + $0x107] ss:$16 sm:%s258_s3]   ;;  %v256_v52 = vsel %vm118_vm0, %v1289_v50, %v1288_v48  ;;  %v1306_v61 = vld [vmem:[%s2648_s0 + $0x8b] ss:$16 sm:%s332_s19]   ;;  %s355_s19 = smov 192  ;;  %s401_s21 = smov 192 }
  0x1a   :  { %v1291_v53 = vld [vmem:[%s2648_s0 + $0x107] ss:$16 sm:%s263_s9]   ;;  %v261_v55 = vsel %vm123_vm1, %v1290_v51, %v256_v52  ;;  %v1298_v63 = vld [vmem:[%s2648_s0 + $0xb] ss:$16 sm:%s296_s22]   ;;  %v335_v1 = vsel %vm128_vm2, %v1306_v61, %v330_v62  ;;  %s373_s22 = smov 48  ;;  %s345_s9 = smov 12 }
  0x1b   :  { %v266_v58 = vsel %vm128_vm2, %v1291_v53, %v261_v55  ;;  %v1299_v2 = vld [vmem:[%s2648_s0 + $0xb] ss:$16 sm:%s299_s29]   ;;  %1228 = vst.msk [vmem:[%s2649_s1 + $0x3] ss:$8 sm:$0xf0] %vm3_vm3, %v1226_v0   ;;  %s457_s24 = smov 3 }
  0x1c   :  { %267 = vrot.lane.b32.xlu0 %v266_v58, %s1499_s6  ;;  %v1300_v3 = vld [vmem:[%s2648_s0 + $0xb] ss:$16 sm:%s304_s30]   ;;  %336 = vrot.lane.b32.xlu1 %v335_v1, %s1499_s6  ;;  %v302_v4 = vsel %vm118_vm0, %v1299_v2, %v1298_v63  ;;  %s342_s30 = smov 3  ;;  %s460_s25 = smov 12 }
  0x1d   :  { %v1301_v5 = vld [vmem:[%s2648_s0 + $0xb] ss:$16 sm:%s309_s11]   ;;  %v307_v7 = vsel %vm123_vm1, %v1300_v3, %v302_v4  ;;  %1230 = vst.msk [vmem:[%s2649_s1 + $0x24] ss:$8 sm:$0xf] %vm3_vm3, %v1229_v6   ;;  %s465_s3 = smov 48 }
  0x1e   :  { %v1313_v8 = vld [vmem:[%s2648_s0 + $0x18b] ss:$16 sm:%s365_s14]   ;;  %1231 = vst.msk [vmem:[%s2649_s1 + $0x5] ss:$8 sm:$0xf0] %vm3_vm3, %v1229_v6   ;;  %v312_v10 = vsel %vm128_vm2, %v1301_v5, %v307_v7  ;;  %s470_s4 = smov 192 }
  0x1f   :  { %v1314_v9 = vld [vmem:[%s2648_s0 + $0x18b] ss:$16 sm:%s368_s15]   ;;  %1233 = vst.msk [vmem:[%s2649_s1 + $0x26] ss:$8 sm:$0xf] %vm3_vm3, %v1232_v16   ;;  %s391_s15 = smov 12 }
  0x20   :  { %v371_v11 = vsel %vm118_vm0, %v1314_v9, %v1313_v8  ;;  %v1315_v12 = vld [vmem:[%s2648_s0 + $0x18b] ss:$16 sm:%s373_s22]   ;;  %313 = vrot.lane.b32.xlu0 %v312_v10, %s1499_s6  ;;  %s411_s22 = smov 3  ;;  %1234 = vst.msk [vmem:[%s2649_s1 + $0x7] ss:$8 sm:$0xf0] %vm3_vm3, %v1232_v16  }
  0x21   :  { %v1316_v13 = vld [vmem:[%s2648_s0 + $0x18b] ss:$16 sm:%s378_s23]   ;;  %v376_v14 = vsel %vm123_vm1, %v1315_v12, %v371_v11  ;;  %s414_s23 = smov 12  ;;  %v1323_v23 = vld [vmem:[%s2648_s0 + $0x8f] ss:$16 sm:%s411_s22]   ;;  %s434_s12 = smov 3 }
  0x22   :  { %v1308_v15 = vld [vmem:[%s2648_s0 + $0x10b] ss:$16 sm:%s342_s30]   ;;  %v381_v17 = vsel %vm128_vm2, %v1316_v13, %v376_v14  ;;  %s419_s30 = smov 48  ;;  %v1324_v24 = vld [vmem:[%s2648_s0 + $0x8f] ss:$16 sm:%s414_s23]   ;;  %s442_s20 = smov 48 }
  0x23   :  { %v1309_v18 = vld [vmem:[%s2648_s0 + $0x10b] ss:$16 sm:%s345_s9]   ;;  %382 = vrot.lane.b32.xlu1 %v381_v17, %s1499_s6  ;;  %v417_v26 = vsel %vm118_vm0, %v1324_v24, %v1323_v23  ;;  %4 = vst.msk [vmem:[%s2649_s1] ss:$8 sm:$0xf] %vm3_vm3, %v2_v31   ;;  %s447_s29 = smov 192 }
  0x24   :  { %v1310_v19 = vld [vmem:[%s2648_s0 + $0x10b] ss:$16 sm:%s350_s10]   ;;  %v348_v20 = vsel %vm118_vm0, %v1309_v18, %v1308_v15  ;;  %s388_s10 = smov 3  ;;  %v1325_v27 = vld [vmem:[%s2648_s0 + $0x8f] ss:$16 sm:%s419_s30]   ;;  %s515_s13 = smov 192 }
  0x25   :  { %v1311_v21 = vld [vmem:[%s2648_s0 + $0x10b] ss:$16 sm:%s355_s19]   ;;  %v353_v22 = vsel %vm123_vm1, %v1310_v19, %v348_v20  ;;  %v1326_v28 = vld [vmem:[%s2648_s0 + $0x8f] ss:$16 sm:%s424_s2]   ;;  %v422_v29 = vsel %vm123_vm1, %v1325_v27, %v417_v26  ;;  %s437_s19 = smov 12  ;;  %s483_s27 = smov 12 }
  0x26   :  { %v358_v25 = vsel %vm128_vm2, %v1311_v21, %v353_v22  ;;  %v1318_v30 = vld [vmem:[%s2648_s0 + $0xf] ss:$16 sm:%s388_s10]   ;;  %v427_v32 = vsel %vm128_vm2, %v1326_v28, %v422_v29  ;;  %1213 = vst.msk [vmem:[%s2649_s1 - $0x1f] ss:$8 sm:$0xf0] %vm3_vm3, %v2_v31   ;;  %s488_s28 = smov 48 }
  0x27   :  { %359 = vrot.lane.b32.xlu0 %v358_v25, %s1499_s6  ;;  %v1319_v33 = vld [vmem:[%s2648_s0 + $0xf] ss:$16 sm:%s391_s15]   ;;  %428 = vrot.lane.b32.xlu1 %v427_v32, %s1499_s6  ;;  %s493_s9 = smov 192  ;;  %s548_s11 = smov 3 }
  0x28   :  { %v1320_v34 = vld [vmem:[%s2648_s0 + $0xf] ss:$16 sm:%s396_s16]   ;;  %v394_v35 = vsel %vm118_vm0, %v1319_v33, %v1318_v30  ;;  %v1214_v37 = vld [vmem:[%s2648_s0 + $0x20] ss:$4 sm:$0xff]   ;;  %s528_s7 = smov 12  ;;  %s533_s8 = smov 48 }
  0x29   :  { %v1321_v36 = vld [vmem:[%s2648_s0 + $0xf] ss:$16 sm:%s401_s21]   ;;  %v399_v38 = vsel %vm123_vm1, %v1320_v34, %v394_v35  ;;  %1215 = vst.msk [vmem:[%s2649_s1 + $0x2] ss:$8 sm:$0xf] %vm3_vm3, %v1214_v37   ;;  %s538_s16 = smov 192 }
  0x2a   :  { %v1333_v39 = vld [vmem:[%s2648_s0 + $0x18f] ss:$16 sm:%s457_s24]   ;;  %1216 = vst.msk [vmem:[%s2649_s1 - $0x1d] ss:$8 sm:$0xf0] %vm3_vm3, %v1214_v37   ;;  %v404_v41 = vsel %vm128_vm2, %v1321_v36, %v399_v38  ;;  %s574_s14 = smov 12 }
  0x2b   :  { %v1334_v40 = vld [vmem:[%s2648_s0 + $0x18f] ss:$16 sm:%s460_s25]   ;;  %405 = vrot.lane.b32.xlu0 %v404_v41, %s1499_s6  ;;  %v1217_v47 = vld [vmem:[%s2648_s0 + $0x40] ss:$4 sm:$0xff]   ;;  %s1500_s25 = smov 64   ;;  %s579_s15 = smov 48 }
  0x2c   :  { %v463_v42 = vsel %vm118_vm0, %v1334_v40, %v1333_v39  ;;  %v1335_v43 = vld [vmem:[%s2648_s0 + $0x18f] ss:$16 sm:%s465_s3]   ;;  %s502_s3 = smov 3  ;;  %1218 = vst.msk [vmem:[%s2649_s1 + $0x4] ss:$8 sm:$0xf] %vm3_vm3, %v1217_v47  }
  0x2d   :  { %v1336_v44 = vld [vmem:[%s2648_s0 + $0x18f] ss:$16 sm:%s470_s4]   ;;  %v468_v45 = vsel %vm123_vm1, %v1335_v43, %v463_v42  ;;  %s505_s4 = smov 12  ;;  %1219 = vst.msk [vmem:[%s2649_s1 - $0x1b] ss:$8 sm:$0xf0] %vm3_vm3, %v1217_v47  }
  0x2e   :  { %v1328_v46 = vld [vmem:[%s2648_s0 + $0x10f] ss:$16 sm:%s434_s12]   ;;  %v473_v48 = vsel %vm128_vm2, %v1336_v44, %v468_v45  ;;  %s510_s12 = smov 48  ;;  %v1220_v53 = vld [vmem:[%s2648_s0 + $0x60] ss:$4 sm:$0xff]   ;;  %s584_s24 = smov 192 }
  0x2f   :  { %v1329_v49 = vld [vmem:[%s2648_s0 + $0x10f] ss:$16 sm:%s437_s19]   ;;  %474 = vrot.lane.b32.xlu1 %v473_v48, %s1499_s6  ;;  %1221 = vst.msk [vmem:[%s2649_s1 + $0x6] ss:$8 sm:$0xf] %vm3_vm3, %v1220_v53   ;;  %s556_s19 = smov 48 }
  0x30   :  { %v1330_v50 = vld [vmem:[%s2648_s0 + $0x10f] ss:$16 sm:%s442_s20]   ;;  %v440_v51 = vsel %vm118_vm0, %v1329_v49, %v1328_v46  ;;  %s480_s20 = smov 3  ;;  %v1342_v55 = vld [vmem:[%s2648_s0 + $0x82] ss:$16 sm:%s502_s3]   ;;  %s620_s22 = smov 12 }
  0x31   :  { %v1331_v52 = vld [vmem:[%s2648_s0 + $0x10f] ss:$16 sm:%s447_s29]   ;;  %v445_v54 = vsel %vm123_vm1, %v1330_v50, %v440_v51  ;;  %v1343_v56 = vld [vmem:[%s2648_s0 + $0x82] ss:$16 sm:%s505_s4]   ;;  %s607_s29 = smov 192  ;;  %s625_s23 = smov 48 }
  0x32   :  { %1222 = vst.msk [vmem:[%s2649_s1 - $0x19] ss:$8 sm:$0xf0] %vm3_vm3, %v1220_v53   ;;  %v450_v57 = vsel %vm128_vm2, %v1331_v52, %v445_v54  ;;  %v508_v58 = vsel %vm118_vm0, %v1343_v56, %v1342_v55  ;;  %v1344_v59 = vld [vmem:[%s2648_s0 + $0x82] ss:$16 sm:%s510_s12]   ;;  %s551_s12 = smov 12 }
  0x33   :  { %v1345_v60 = vld [vmem:[%s2648_s0 + $0x82] ss:$16 sm:%s515_s13]   ;;  %451 = vrot.lane.b32.xlu0 %v450_v57, %s1499_s6  ;;  %v513_v61 = vsel %vm123_vm1, %v1344_v59, %v508_v58  ;;  %v1247_v63 = vld [vmem:[%s2648_s0 + $0x180] ss:$4 sm:$0xff]   ;;  %s630_s4 = smov 192  ;;  %s666_s2 = smov 12 }
  0x34   :  { %v1338_v62 = vld [vmem:[%s2648_s0 + $0x2] ss:$16 sm:%s480_s20]   ;;  %v518_v0 = vsel %vm128_vm2, %v1345_v60, %v513_v61  ;;  %s561_s20 = smov 192  ;;  %1248 = vst.msk [vmem:[%s2649_s1 + $0x60] ss:$8 sm:$0xf] %vm3_vm3, %v1247_v63  }
  0x35   :  { %v1339_v1 = vld [vmem:[%s2648_s0 + $0x2] ss:$16 sm:%s483_s27]   ;;  %1249 = vst.msk [vmem:[%s2649_s1 + $0x41] ss:$8 sm:$0xf0] %vm3_vm3, %v1247_v63   ;;  %519 = vrot.lane.b32.xlu1 %v518_v0, %s1500_s25  ;;  %s671_s3 = smov 48 }
  0x36   :  { %v1340_v2 = vld [vmem:[%s2648_s0 + $0x2] ss:$16 sm:%s488_s28]   ;;  %v486_v3 = vsel %vm118_vm0, %v1339_v1, %v1338_v62  ;;  %s525_s28 = smov 3  ;;  %v1250_v5 = vld [vmem:[%s2648_s0 + $0x1a0] ss:$4 sm:$0xff]   ;;  %s740_s21 = smov 48 }
  0x37   :  { %v1341_v4 = vld [vmem:[%s2648_s0 + $0x2] ss:$16 sm:%s493_s9]   ;;  %v491_v6 = vsel %vm123_vm1, %v1340_v2, %v486_v3  ;;  %1251 = vst.msk [vmem:[%s2649_s1 + $0x62] ss:$8 sm:$0xf] %vm3_vm3, %v1250_v5   ;;  %s653_s9 = smov 192 }
  0x38   :  { %v1352_v7 = vld [vmem:[%s2648_s0 + $0x182] ss:$16 sm:%s548_s11]   ;;  %1252 = vst.msk [vmem:[%s2649_s1 + $0x43] ss:$8 sm:$0xf0] %vm3_vm3, %v1250_v5   ;;  %v496_v9 = vsel %vm128_vm2, %v1341_v4, %v491_v6  ;;  %s709_s26 = smov 3 }
  0x39   :  { %v1353_v8 = vld [vmem:[%s2648_s0 + $0x182] ss:$16 sm:%s551_s12]   ;;  %497 = vrot.lane.b32.xlu0 %v496_v9, %s1500_s25  ;;  %v1253_v15 = vld [vmem:[%s2648_s0 + $0x1c0] ss:$4 sm:$0xff]   ;;  %s676_s12 = smov 192  ;;  %s778_s11 = smov 3 }
  0x3a   :  { %v554_v10 = vsel %vm118_vm0, %v1353_v8, %v1352_v7  ;;  %v1354_v11 = vld [vmem:[%s2648_s0 + $0x182] ss:$16 sm:%s556_s19]   ;;  %s594_s19 = smov 3  ;;  %1254 = vst.msk [vmem:[%s2649_s1 + $0x64] ss:$8 sm:$0xf] %vm3_vm3, %v1253_v15  }
  0x3b   :  { %v1355_v12 = vld [vmem:[%s2648_s0 + $0x182] ss:$16 sm:%s561_s20]   ;;  %v559_v13 = vsel %vm123_vm1, %v1354_v11, %v554_v10  ;;  %s597_s20 = smov 12  ;;  %1255 = vst.msk [vmem:[%s2649_s1 + $0x45] ss:$8 sm:$0xf0] %vm3_vm3, %v1253_v15  }
  0x3c   :  { %v1347_v14 = vld [vmem:[%s2648_s0 + $0x102] ss:$16 sm:%s525_s28]   ;;  %v564_v16 = vsel %vm128_vm2, %v1355_v12, %v559_v13  ;;  %s602_s28 = smov 48  ;;  %v1256_v21 = vld [vmem:[%s2648_s0 + $0x1e0] ss:$4 sm:$0xff]   ;;  %s786_s17 = smov 48 }
  0x3d   :  { %v1348_v17 = vld [vmem:[%s2648_s0 + $0x102] ss:$16 sm:%s528_s7]   ;;  %565 = vrot.lane.b32.xlu1 %v564_v16, %s1500_s25  ;;  %1257 = vst.msk [vmem:[%s2649_s1 + $0x66] ss:$8 sm:$0xf] %vm3_vm3, %v1256_v21   ;;  %s791_s18 = smov 192 }
  0x3e   :  { %v1349_v18 = vld [vmem:[%s2648_s0 + $0x102] ss:$16 sm:%s533_s8]   ;;  %v531_v19 = vsel %vm118_vm0, %v1348_v17, %v1347_v14  ;;  %s571_s8 = smov 3  ;;  %v1362_v23 = vld [vmem:[%s2648_s0 + $0x86] ss:$16 sm:%s594_s19]   ;;  %s758_s27 = smov 12 }
  0x3f   :  { %v1350_v20 = vld [vmem:[%s2648_s0 + $0x102] ss:$16 sm:%s538_s16]   ;;  %v536_v22 = vsel %vm123_vm1, %v1349_v18, %v531_v19  ;;  %v1363_v24 = vld [vmem:[%s2648_s0 + $0x86] ss:$16 sm:%s597_s20]   ;;  %s699_s16 = smov 192  ;;  %s832_s13 = smov 48 }
  0x40   :  { %1258 = vst.msk [vmem:[%s2649_s1 + $0x47] ss:$8 sm:$0xf0] %vm3_vm3, %v1256_v21   ;;  %v541_v25 = vsel %vm128_vm2, %v1350_v20, %v536_v22  ;;  %v600_v26 = vsel %vm118_vm0, %v1363_v24, %v1362_v23  ;;  %v1364_v27 = vld [vmem:[%s2648_s0 + $0x86] ss:$16 sm:%s602_s28]   ;;  %s640_s28 = smov 3 }
  0x41   :  { %v1365_v28 = vld [vmem:[%s2648_s0 + $0x86] ss:$16 sm:%s607_s29]   ;;  %542 = vrot.lane.b32.xlu0 %v541_v25, %s1500_s25  ;;  %v605_v29 = vsel %vm123_vm1, %v1364_v27, %v600_v26  ;;  %s643_s29 = smov 12  ;;  %v1235_v31 = vld [vmem:[%s2648_s0 + $0x100] ss:$4 sm:$0xff]   ;;  %s877_s6 = smov 48 }
  0x42   :  { %v1357_v30 = vld [vmem:[%s2648_s0 + $0x6] ss:$16 sm:%s571_s8]   ;;  %v610_v32 = vsel %vm128_vm2, %v1365_v28, %v605_v29  ;;  %s648_s8 = smov 48  ;;  %1236 = vst.msk [vmem:[%s2649_s1 + $0x40] ss:$8 sm:$0xf] %vm3_vm3, %v1235_v31  }
  0x43   :  { %v1358_v33 = vld [vmem:[%s2648_s0 + $0x6] ss:$16 sm:%s574_s14]   ;;  %1237 = vst.msk [vmem:[%s2649_s1 + $0x21] ss:$8 sm:$0xf0] %vm3_vm3, %v1235_v31   ;;  %611 = vrot.lane.b32.xlu1 %v610_v32, %s1500_s25  ;;  %s837_s14 = smov 192 }
  0x44   :  { %v1359_v34 = vld [vmem:[%s2648_s0 + $0x6] ss:$16 sm:%s579_s15]   ;;  %v577_v35 = vsel %vm118_vm0, %v1358_v33, %v1357_v30  ;;  %s617_s15 = smov 3  ;;  %v1238_v37 = vld [vmem:[%s2648_s0 + $0x120] ss:$4 sm:$0xff]   ;;  %s882_s10 = smov 192 }
  0x45   :  { %v1360_v36 = vld [vmem:[%s2648_s0 + $0x6] ss:$16 sm:%s584_s24]   ;;  %v582_v38 = vsel %vm123_vm1, %v1359_v34, %v577_v35  ;;  %1239 = vst.msk [vmem:[%s2649_s1 + $0x42] ss:$8 sm:$0xf] %vm3_vm3, %v1238_v37   ;;  %s855_s19 = smov 48 }
  0x46   :  { %v1372_v39 = vld [vmem:[%s2648_s0 + $0x186] ss:$16 sm:%s640_s28]   ;;  %1240 = vst.msk [vmem:[%s2649_s1 + $0x23] ss:$8 sm:$0xf0] %vm3_vm3, %v1238_v37   ;;  %v587_v41 = vsel %vm128_vm2, %v1360_v36, %v582_v38  ;;  %s763_s28 = smov 48 }
  0x47   :  { %v1373_v40 = vld [vmem:[%s2648_s0 + $0x186] ss:$16 sm:%s643_s29]   ;;  %588 = vrot.lane.b32.xlu0 %v587_v41, %s1500_s25  ;;  %v1241_v47 = vld [vmem:[%s2648_s0 + $0x140] ss:$4 sm:$0xff]   ;;  %s814_s29 = smov 192  ;;  %s860_s24 = smov 192 }
  0x48   :  { %v646_v42 = vsel %vm118_vm0, %v1373_v40, %v1372_v39  ;;  %v1374_v43 = vld [vmem:[%s2648_s0 + $0x186] ss:$16 sm:%s648_s8]   ;;  %s686_s8 = smov 3  ;;  %1242 = vst.msk [vmem:[%s2649_s1 + $0x44] ss:$8 sm:$0xf] %vm3_vm3, %v1241_v47  }
  0x49   :  { %v1375_v44 = vld [vmem:[%s2648_s0 + $0x186] ss:$16 sm:%s653_s9]   ;;  %v651_v45 = vsel %vm123_vm1, %v1374_v43, %v646_v42  ;;  %s689_s9 = smov 12  ;;  %1243 = vst.msk [vmem:[%s2649_s1 + $0x25] ss:$8 sm:$0xf0] %vm3_vm3, %v1241_v47  }
  0x4a   :  { %v1367_v46 = vld [vmem:[%s2648_s0 + $0x106] ss:$16 sm:%s617_s15]   ;;  %v656_v48 = vsel %vm128_vm2, %v1375_v44, %v651_v45  ;;  %s694_s15 = smov 48  ;;  %v1244_v53 = vld [vmem:[%s2648_s0 + $0x160] ss:$4 sm:$0xff]   ;;  %s928_s5 = smov 192 }
  0x4b   :  { %v1368_v49 = vld [vmem:[%s2648_s0 + $0x106] ss:$16 sm:%s620_s22]   ;;  %657 = vrot.lane.b32.xlu1 %v656_v48, %s1500_s25  ;;  %1245 = vst.msk [vmem:[%s2649_s1 + $0x46] ss:$8 sm:$0xf] %vm3_vm3, %v1244_v53   ;;  %s745_s22 = smov 192 }
  0x4c   :  { %v1369_v50 = vld [vmem:[%s2648_s0 + $0x106] ss:$16 sm:%s625_s23]   ;;  %v623_v51 = vsel %vm118_vm0, %v1368_v49, %v1367_v46  ;;  %s663_s23 = smov 3  ;;  %v1382_v55 = vld [vmem:[%s2648_s0 + $0x8a] ss:$16 sm:%s686_s8]   ;;  %s824_s8 = smov 3 }
  0x4d   :  { %v1370_v52 = vld [vmem:[%s2648_s0 + $0x106] ss:$16 sm:%s630_s4]   ;;  %v628_v54 = vsel %vm123_vm1, %v1369_v50, %v623_v51  ;;  %v1383_v56 = vld [vmem:[%s2648_s0 + $0x8a] ss:$16 sm:%s689_s9]   ;;  %s722_s9 = smov 192  ;;  %s768_s4 = smov 192 }
  0x4e   :  { %1246 = vst.msk [vmem:[%s2649_s1 + $0x27] ss:$8 sm:$0xf0] %vm3_vm3, %v1244_v53   ;;  %v633_v57 = vsel %vm128_vm2, %v1370_v52, %v628_v54  ;;  %v692_v58 = vsel %vm118_vm0, %v1383_v56, %v1382_v55  ;;  %v1384_v59 = vld [vmem:[%s2648_s0 + $0x8a] ss:$16 sm:%s694_s15]   ;;  %s732_s15 = smov 3 }
  0x4f   :  { %v1385_v60 = vld [vmem:[%s2648_s0 + $0x8a] ss:$16 sm:%s699_s16]   ;;  %634 = vrot.lane.b32.xlu0 %v633_v57, %s1500_s25  ;;  %v697_v61 = vsel %vm123_vm1, %v1384_v59, %v692_v58  ;;  %s735_s16 = smov 12  ;;  %s1501_s7 = smov 32  }
  0x50   :  { %v1377_v62 = vld [vmem:[%s2648_s0 + $0xa] ss:$16 sm:%s663_s23]   ;;  %v702_v63 = vsel %vm128_vm2, %v1385_v60, %v697_v61  ;;  %v1402_v19 = vld [vmem:[%s2648_s0 + $0x8e] ss:$16 sm:%s778_s11]   ;;  %s809_s23 = smov 48  ;;  %s905_s20 = smov 192 }
  0x51   :  { %v1378_v0 = vld [vmem:[%s2648_s0 + $0xa] ss:$16 sm:%s666_s2]   ;;  %703 = vrot.lane.b32.xlu1 %v702_v63, %s1500_s25  ;;  %s712_s2 = smov 12  ;;  %s974_s30 = smov 192 }
  0x52   :  { %v1379_v1 = vld [vmem:[%s2648_s0 + $0xa] ss:$16 sm:%s671_s3]   ;;  %v669_v2 = vsel %vm118_vm0, %v1378_v0, %v1377_v62  ;;  %s717_s3 = smov 48  ;;  %v1404_v23 = vld [vmem:[%s2648_s0 + $0x8e] ss:$16 sm:%s786_s17]   ;;  %s801_s17 = smov 3 }
  0x53   :  { %v1380_v3 = vld [vmem:[%s2648_s0 + $0xa] ss:$16 sm:%s676_s12]   ;;  %v674_v4 = vsel %vm123_vm1, %v1379_v1, %v669_v2  ;;  %s781_s12 = smov 12  ;;  %v1405_v24 = vld [vmem:[%s2648_s0 + $0x8e] ss:$16 sm:%s791_s18]   ;;  %s850_s18 = smov 12 }
  0x54   :  { %v1392_v5 = vld [vmem:[%s2648_s0 + $0x18a] ss:$16 sm:%s732_s15]   ;;  %v679_v7 = vsel %vm128_vm2, %v1380_v3, %v674_v4  ;;  %v1403_v20 = vld [vmem:[%s2648_s0 + $0x8e] ss:$16 sm:%s781_s12]   ;;  %s900_s15 = smov 48  ;;  %s946_s11 = smov 48 }
  0x55   :  { %v1393_v6 = vld [vmem:[%s2648_s0 + $0x18a] ss:$16 sm:%s735_s16]   ;;  %680 = vrot.lane.b32.xlu0 %v679_v7, %s1500_s25  ;;  %v784_v22 = vsel %vm118_vm0, %v1403_v20, %v1402_v19  ;;  %s951_s16 = smov 192  ;;  %s997_s12 = smov 192 }
  0x56   :  { %v738_v8 = vsel %vm118_vm0, %v1393_v6, %v1392_v5  ;;  %v1394_v9 = vld [vmem:[%s2648_s0 + $0x18a] ss:$16 sm:%s740_s21]   ;;  %s755_s21 = smov 3  ;;  %v789_v25 = vsel %vm123_vm1, %v1404_v23, %v784_v22  ;;  %v1398_v28 = vld [vmem:[%s2648_s0 + $0xe] ss:$16 sm:%s758_s27]   ;;  %s915_s27 = smov 3 }
  0x57   :  { %v1395_v10 = vld [vmem:[%s2648_s0 + $0x18a] ss:$16 sm:%s745_s22]   ;;  %v743_v11 = vsel %vm123_vm1, %v1394_v9, %v738_v8  ;;  %v1397_v26 = vld [vmem:[%s2648_s0 + $0xe] ss:$16 sm:%s755_s21]   ;;  %v794_v27 = vsel %vm128_vm2, %v1405_v24, %v789_v25  ;;  %s804_s22 = smov 12  ;;  %s1061_s21 = smov 48 }
  0x58   :  { %v1387_v12 = vld [vmem:[%s2648_s0 + $0x10a] ss:$16 sm:%s709_s26]   ;;  %v748_v13 = vsel %vm128_vm2, %v1395_v10, %v743_v11  ;;  %v1399_v29 = vld [vmem:[%s2648_s0 + $0xe] ss:$16 sm:%s763_s28]   ;;  %v761_v30 = vsel %vm118_vm0, %v1398_v28, %v1397_v26  ;;  %s918_s28 = smov 12  ;;  %s1020_s26 = smov 192 }
  0x59   :  { %v1388_v14 = vld [vmem:[%s2648_s0 + $0x10a] ss:$16 sm:%s712_s2]   ;;  %749 = vrot.lane.b32.xlu1 %v748_v13, %s1500_s25  ;;  %v766_v32 = vsel %vm123_vm1, %v1399_v29, %v761_v30  ;;  %s1038_s2 = smov 48 }
  0x5a   :  { %v1389_v15 = vld [vmem:[%s2648_s0 + $0x10a] ss:$16 sm:%s717_s3]   ;;  %v715_v16 = vsel %vm118_vm0, %v1388_v14, %v1387_v12  ;;  %v1400_v31 = vld [vmem:[%s2648_s0 + $0xe] ss:$16 sm:%s768_s4]   ;;  %s869_s3 = smov 3  ;;  %s872_s4 = smov 12 }
  0x5b   :  { %v1390_v17 = vld [vmem:[%s2648_s0 + $0x10a] ss:$16 sm:%s722_s9]   ;;  %v720_v18 = vsel %vm123_vm1, %v1389_v15, %v715_v16  ;;  %s827_s9 = smov 12  ;;  %v1412_v33 = vld [vmem:[%s2648_s0 + $0x18e] ss:$16 sm:%s824_s8]   ;;  %v771_v35 = vsel %vm128_vm2, %v1400_v31, %v766_v32  ;;  %s992_s8 = smov 48 }
  0x5c   :  { %v725_v21 = vsel %vm128_vm2, %v1390_v17, %v720_v18  ;;  %v1413_v34 = vld [vmem:[%s2648_s0 + $0x18e] ss:$16 sm:%s827_s9]   ;;  %v1421_v47 = vld [vmem:[%s2648_s0 + $0x81] ss:$16 sm:%s869_s3]   ;;  %s1043_s9 = smov 192  ;;  %s1089_s3 = smov 192 }
  0x5d   :  { %726 = vrot.lane.b32.xlu0 %v725_v21, %s1500_s25  ;;  %795 = vrot.lane.b32.xlu1 %v794_v27, %s1500_s25  ;;  %v830_v36 = vsel %vm118_vm0, %v1413_v34, %v1412_v33  ;;  %v1414_v37 = vld [vmem:[%s2648_s0 + $0x18e] ss:$16 sm:%s832_s13]   ;;  %s847_s13 = smov 3 }
  0x5e   :  { %v1415_v38 = vld [vmem:[%s2648_s0 + $0x18e] ss:$16 sm:%s837_s14]   ;;  %v835_v39 = vsel %vm123_vm1, %v1414_v37, %v830_v36  ;;  %v1422_v48 = vld [vmem:[%s2648_s0 + $0x81] ss:$16 sm:%s872_s4]   ;;  %s923_s4 = smov 48  ;;  %s895_s14 = smov 12 }
  0x5f   :  { %v1407_v40 = vld [vmem:[%s2648_s0 + $0x10e] ss:$16 sm:%s801_s17]   ;;  %v840_v41 = vsel %vm128_vm2, %v1415_v38, %v835_v39  ;;  %v875_v50 = vsel %vm118_vm0, %v1422_v48, %v1421_v47  ;;  %v1423_v51 = vld [vmem:[%s2648_s0 + $0x81] ss:$16 sm:%s877_s6]   ;;  %s892_s6 = smov 3  ;;  %s1107_s17 = smov 48 }
  0x60   :  { %v1408_v42 = vld [vmem:[%s2648_s0 + $0x10e] ss:$16 sm:%s804_s22]   ;;  %v1424_v52 = vld [vmem:[%s2648_s0 + $0x81] ss:$16 sm:%s882_s10]   ;;  %v880_v53 = vsel %vm123_vm1, %v1423_v51, %v875_v50  ;;  %s941_s10 = smov 12  ;;  %s1066_s22 = smov 192 }
  0x61   :  { %772 = vrot.lane.b32.xlu0 %v771_v35, %s1500_s25  ;;  %v1409_v43 = vld [vmem:[%s2648_s0 + $0x10e] ss:$16 sm:%s809_s23]   ;;  %841 = vrot.lane.b32.xlu1 %v840_v41, %s1500_s25  ;;  %v807_v44 = vsel %vm118_vm0, %v1408_v42, %v1407_v40  ;;  %v885_v55 = vsel %vm128_vm2, %v1424_v52, %v880_v53  ;;  %s961_s23 = smov 3 }
  0x62   :  { %v1410_v45 = vld [vmem:[%s2648_s0 + $0x10e] ss:$16 sm:%s814_s29]   ;;  %v812_v46 = vsel %vm123_vm1, %v1409_v43, %v807_v44  ;;  %v1417_v54 = vld [vmem:[%s2648_s0 + $0x1] ss:$16 sm:%s847_s13]   ;;  %s969_s29 = smov 48  ;;  %s1153_s13 = smov 48 }
  0x63   :  { %v817_v49 = vsel %vm128_vm2, %v1410_v45, %v812_v46  ;;  %v1418_v56 = vld [vmem:[%s2648_s0 + $0x1] ss:$16 sm:%s850_s18]   ;;  %v1441_v11 = vld [vmem:[%s2648_s0 + $0x85] ss:$16 sm:%s961_s23]   ;;  %s1112_s18 = smov 192  ;;  %s1130_s23 = smov 48 }
  0x64   :  { %v1419_v57 = vld [vmem:[%s2648_s0 + $0x1] ss:$16 sm:%s855_s19]   ;;  %v853_v58 = vsel %vm118_vm0, %v1418_v56, %v1417_v54  ;;  %v1443_v15 = vld [vmem:[%s2648_s0 + $0x85] ss:$16 sm:%s969_s29]   ;;  %s1007_s19 = smov 3  ;;  %s984_s29 = smov 3 }
  0x65   :  { %818 = vrot.lane.b32.xlu0 %v817_v49, %s1500_s25  ;;  %886 = vrot.lane.b32.xlu1 %v885_v55, %s1501_s7  ;;  %v1420_v59 = vld [vmem:[%s2648_s0 + $0x1] ss:$16 sm:%s860_s24]   ;;  %v858_v60 = vsel %vm123_vm1, %v1419_v57, %v853_v58  ;;  %s964_s24 = smov 12  ;;  %s1015_s25 = smov 48 }
  0x66   :  { %v1431_v61 = vld [vmem:[%s2648_s0 + $0x181] ss:$16 sm:%s915_s27]   ;;  %v863_v63 = vsel %vm128_vm2, %v1420_v59, %v858_v60  ;;  %v1442_v12 = vld [vmem:[%s2648_s0 + $0x85] ss:$16 sm:%s964_s24]   ;;  %s1084_s27 = smov 48  ;;  %s1181_s24 = smov 192 }
  0x67   :  { %v1432_v62 = vld [vmem:[%s2648_s0 + $0x181] ss:$16 sm:%s918_s28]   ;;  %v967_v14 = vsel %vm118_vm0, %v1442_v12, %v1441_v11  ;;  %v1444_v16 = vld [vmem:[%s2648_s0 + $0x85] ss:$16 sm:%s974_s30]   ;;  %s1033_s30 = smov 12  ;;  %s1135_s28 = smov 192 }
  0x68   :  { %v921_v0 = vsel %vm118_vm0, %v1432_v62, %v1431_v61  ;;  %v1433_v1 = vld [vmem:[%s2648_s0 + $0x181] ss:$16 sm:%s923_s4]   ;;  %s938_s4 = smov 3  ;;  %v972_v17 = vsel %vm123_vm1, %v1443_v15, %v967_v14  ;;  %v1437_v20 = vld [vmem:[%s2648_s0 + $0x5] ss:$16 sm:%s941_s10]   ;;  %s1204_s10 = smov 192 }
  0x69   :  { %v1434_v2 = vld [vmem:[%s2648_s0 + $0x181] ss:$16 sm:%s928_s5]   ;;  %864 = vrot.lane.b32.xlu0 %v863_v63, %s1501_s7  ;;  %v926_v3 = vsel %vm123_vm1, %v1433_v1, %v921_v0  ;;  %v977_v19 = vsel %vm128_vm2, %v1444_v16, %v972_v17  ;;  %s987_s5 = smov 12 }
  0x6a   :  { %v1426_v4 = vld [vmem:[%s2648_s0 + $0x101] ss:$16 sm:%s892_s6]   ;;  %v931_v5 = vsel %vm128_vm2, %v1434_v2, %v926_v3  ;;  %v1436_v18 = vld [vmem:[%s2648_s0 + $0x5] ss:$16 sm:%s938_s4]   ;;  %s1199_s6 = smov 48 }
  0x6b   :  { %v1427_v6 = vld [vmem:[%s2648_s0 + $0x101] ss:$16 sm:%s895_s14]   ;;  %932 = vrot.lane.b32.xlu1 %v931_v5, %s1501_s7  ;;  %v944_v22 = vsel %vm118_vm0, %v1437_v20, %v1436_v18  ;;  %s1158_s14 = smov 192 }
  0x6c   :  { %v1428_v7 = vld [vmem:[%s2648_s0 + $0x101] ss:$16 sm:%s900_s15]   ;;  %v898_v8 = vsel %vm118_vm0, %v1427_v6, %v1426_v4  ;;  %v1438_v21 = vld [vmem:[%s2648_s0 + $0x5] ss:$16 sm:%s946_s11]   ;;  %s1053_s15 = smov 3  ;;  %s1099_s11 = smov 3 }
  0x6d   :  { %v1429_v9 = vld [vmem:[%s2648_s0 + $0x101] ss:$16 sm:%s905_s20]   ;;  %v903_v10 = vsel %vm123_vm1, %v1428_v7, %v898_v8  ;;  %s1010_s20 = smov 12  ;;  %v1439_v23 = vld [vmem:[%s2648_s0 + $0x5] ss:$16 sm:%s951_s16]   ;;  %v949_v24 = vsel %vm123_vm1, %v1438_v21, %v944_v22  ;;  %s1056_s16 = smov 12 }
  0x6e   :  { %v908_v13 = vsel %vm128_vm2, %v1429_v9, %v903_v10  ;;  %v1451_v25 = vld [vmem:[%s2648_s0 + $0x185] ss:$16 sm:%s1007_s19]   ;;  %v954_v27 = vsel %vm128_vm2, %v1439_v23, %v949_v24  ;;  %v1461_v39 = vld [vmem:[%s2648_s0 + $0x89] ss:$16 sm:%s1053_s15]   ;;  %s1176_s19 = smov 48 }
  0x6f   :  { %909 = vrot.lane.b32.xlu0 %v908_v13, %s1501_s7  ;;  %978 = vrot.lane.b32.xlu1 %v977_v19, %s1501_s7  ;;  %v1452_v26 = vld [vmem:[%s2648_s0 + $0x185] ss:$16 sm:%s1010_s20]  }
  0x70   :  { %v1013_v28 = vsel %vm118_vm0, %v1452_v26, %v1451_v25  ;;  %v1453_v29 = vld [vmem:[%s2648_s0 + $0x185] ss:$16 sm:%s1015_s25]   ;;  %s1030_s25 = smov 3  ;;  %v1462_v40 = vld [vmem:[%s2648_s0 + $0x89] ss:$16 sm:%s1056_s16]  }
  0x71   :  { %v1454_v30 = vld [vmem:[%s2648_s0 + $0x185] ss:$16 sm:%s1020_s26]   ;;  %v1018_v31 = vsel %vm123_vm1, %v1453_v29, %v1013_v28  ;;  %v1059_v42 = vsel %vm118_vm0, %v1462_v40, %v1461_v39  ;;  %v1463_v43 = vld [vmem:[%s2648_s0 + $0x89] ss:$16 sm:%s1061_s21]   ;;  %s1076_s21 = smov 3  ;;  %s1079_s26 = smov 12 }
  0x72   :  { %v1446_v32 = vld [vmem:[%s2648_s0 + $0x105] ss:$16 sm:%s984_s29]   ;;  %v1023_v33 = vsel %vm128_vm2, %v1454_v30, %v1018_v31  ;;  %v1464_v44 = vld [vmem:[%s2648_s0 + $0x89] ss:$16 sm:%s1066_s22]   ;;  %v1064_v45 = vsel %vm123_vm1, %v1463_v43, %v1059_v42  ;;  %s1125_s22 = smov 12 }
  0x73   :  { %955 = vrot.lane.b32.xlu0 %v954_v27, %s1501_s7  ;;  %v1447_v34 = vld [vmem:[%s2648_s0 + $0x105] ss:$16 sm:%s987_s5]   ;;  %1024 = vrot.lane.b32.xlu1 %v1023_v33, %s1501_s7  ;;  %v1069_v47 = vsel %vm128_vm2, %v1464_v44, %v1064_v45 }
  0x74   :  { %v1448_v35 = vld [vmem:[%s2648_s0 + $0x105] ss:$16 sm:%s992_s8]   ;;  %v990_v36 = vsel %vm118_vm0, %v1447_v34, %v1446_v32  ;;  %v1456_v46 = vld [vmem:[%s2648_s0 + $0x9] ss:$16 sm:%s1030_s25]   ;;  %s1145_s8 = smov 3 }
  0x75   :  { %v1449_v37 = vld [vmem:[%s2648_s0 + $0x105] ss:$16 sm:%s997_s12]   ;;  %v995_v38 = vsel %vm123_vm1, %v1448_v35, %v990_v36  ;;  %s1102_s12 = smov 12  ;;  %v1457_v48 = vld [vmem:[%s2648_s0 + $0x9] ss:$16 sm:%s1033_s30]  }
  0x76   :  { %v1000_v41 = vsel %vm128_vm2, %v1449_v37, %v995_v38  ;;  %v1458_v49 = vld [vmem:[%s2648_s0 + $0x9] ss:$16 sm:%s1038_s2]   ;;  %v1036_v50 = vsel %vm118_vm0, %v1457_v48, %v1456_v46  ;;  %v1481_v3 = vld [vmem:[%s2648_s0 + $0x8d] ss:$16 sm:%s1145_s8]   ;;  %s1191_s2 = smov 3 }
  0x77   :  { %1001 = vrot.lane.b32.xlu0 %v1000_v41, %s1501_s7  ;;  %1070 = vrot.lane.b32.xlu1 %v1069_v47, %s1501_s7  ;;  %v1459_v51 = vld [vmem:[%s2648_s0 + $0x9] ss:$16 sm:%s1043_s9]   ;;  %v1041_v52 = vsel %vm123_vm1, %v1458_v49, %v1036_v50  ;;  %s1148_s9 = smov 12 }
  0x78   :  { %v1471_v53 = vld [vmem:[%s2648_s0 + $0x189] ss:$16 sm:%s1099_s11]   ;;  %v1046_v55 = vsel %vm128_vm2, %v1459_v51, %v1041_v52  ;;  %v1482_v4 = vld [vmem:[%s2648_s0 + $0x8d] ss:$16 sm:%s1148_s9]   ;;  %v176_v30 = vpop.permute.xlu1 %175  }
  0x79   :  { %v1472_v54 = vld [vmem:[%s2648_s0 + $0x189] ss:$16 sm:%s1102_s12]   ;;  %v1151_v6 = vsel %vm118_vm0, %v1482_v4, %v1481_v3  ;;  %v1483_v7 = vld [vmem:[%s2648_s0 + $0x8d] ss:$16 sm:%s1153_s13]   ;;  %s1168_s13 = smov 3 }
  0x7a   :  { %v1105_v56 = vsel %vm118_vm0, %v1472_v54, %v1471_v53  ;;  %v1473_v57 = vld [vmem:[%s2648_s0 + $0x189] ss:$16 sm:%s1107_s17]   ;;  %s1122_s17 = smov 3  ;;  %v1484_v8 = vld [vmem:[%s2648_s0 + $0x8d] ss:$16 sm:%s1158_s14]   ;;  %v1156_v9 = vsel %vm123_vm1, %v1483_v7, %v1151_v6 }
  0x7b   :  { %v1474_v58 = vld [vmem:[%s2648_s0 + $0x189] ss:$16 sm:%s1112_s18]   ;;  %1047 = vrot.lane.b32.xlu0 %v1046_v55, %s1501_s7  ;;  %v1110_v59 = vsel %vm123_vm1, %v1473_v57, %v1105_v56  ;;  %v1161_v11 = vsel %vm128_vm2, %v1484_v8, %v1156_v9  ;;  %s1171_s18 = smov 12  ;;  %1272 = vst.msk [vmem:[%s2649_s1 + $0x40] sm:$0xff] %vm132_vm4, %v176_v30  }
  0x7c   :  { %v1466_v60 = vld [vmem:[%s2648_s0 + $0x109] ss:$16 sm:%s1076_s21]   ;;  %v1115_v61 = vsel %vm128_vm2, %v1474_v58, %v1110_v59  ;;  %v1476_v10 = vld [vmem:[%s2648_s0 + $0xd] ss:$16 sm:%s1122_s17]   ;;  %v131_v33 = vpop.permute.xlu0 %130  }
  0x7d   :  { %v1467_v62 = vld [vmem:[%s2648_s0 + $0x109] ss:$16 sm:%s1079_s26]   ;;  %1116 = vrot.lane.b32.xlu1 %v1115_v61, %s1501_s7  ;;  %133 = vst.msk [vmem:[%s2649_s1] sm:$0xff] %vm132_vm4, %v131_v33  }
  0x7e   :  { %v1468_v63 = vld [vmem:[%s2648_s0 + $0x109] ss:$16 sm:%s1084_s27]   ;;  %v1082_v0 = vsel %vm118_vm0, %v1467_v62, %v1466_v60  ;;  %v1477_v12 = vld [vmem:[%s2648_s0 + $0xd] ss:$16 sm:%s1125_s22]  }
  0x7f   :  { %v1469_v1 = vld [vmem:[%s2648_s0 + $0x109] ss:$16 sm:%s1089_s3]   ;;  %v1087_v2 = vsel %vm123_vm1, %v1468_v63, %v1082_v0  ;;  %s1194_s3 = smov 12  ;;  %v1478_v13 = vld [vmem:[%s2648_s0 + $0xd] ss:$16 sm:%s1130_s23]   ;;  %v1128_v14 = vsel %vm118_vm0, %v1477_v12, %v1476_v10 }
  0x80   :  { %v1092_v5 = vsel %vm128_vm2, %v1469_v1, %v1087_v2  ;;  %v1479_v15 = vld [vmem:[%s2648_s0 + $0xd] ss:$16 sm:%s1135_s28]   ;;  %v1133_v16 = vsel %vm123_vm1, %v1478_v13, %v1128_v14  ;;  %v199_v34 = vpop.permute.xlu1 %198  }
  0x81   :  { %1093 = vrot.lane.b32.xlu0 %v1092_v5, %s1501_s7  ;;  %1162 = vrot.lane.b32.xlu1 %v1161_v11, %s1501_s7  ;;  %v1491_v17 = vld [vmem:[%s2648_s0 + $0x18d] ss:$16 sm:%s1191_s2]   ;;  %v1138_v19 = vsel %vm128_vm2, %v1479_v15, %v1133_v16 }
  0x82   :  { %v1492_v18 = vld [vmem:[%s2648_s0 + $0x18d] ss:$16 sm:%s1194_s3]   ;;  %1277 = vst.msk [vmem:[%s2649_s1 + $0x60] sm:$0xff] %vm132_vm4, %v199_v34  }
  0x83   :  { %v1197_v20 = vsel %vm118_vm0, %v1492_v18, %v1491_v17  ;;  %v1493_v21 = vld [vmem:[%s2648_s0 + $0x18d] ss:$16 sm:%s1199_s6]  }
  0x84   :  { %v1494_v22 = vld [vmem:[%s2648_s0 + $0x18d] ss:$16 sm:%s1204_s10]   ;;  %v1202_v23 = vsel %vm123_vm1, %v1493_v21, %v1197_v20  ;;  %v153_v35 = vpop.permute.xlu0 %152   ;;  %v245_v36 = vpop.permute.xlu1 %244  }
  0x85   :  { %1139 = vrot.lane.b32.xlu0 %v1138_v19, %s1501_s7  ;;  %v1486_v24 = vld [vmem:[%s2648_s0 + $0x10d] ss:$16 sm:%s1168_s13]   ;;  %v1207_v25 = vsel %vm128_vm2, %v1494_v22, %v1202_v23  ;;  %1267 = vst.msk [vmem:[%s2649_s1 + $0x20] sm:$0xff] %vm132_vm4, %v153_v35  }
  0x86   :  { %v1487_v26 = vld [vmem:[%s2648_s0 + $0x10d] ss:$16 sm:%s1171_s18]   ;;  %1208 = vrot.lane.b32.xlu1 %v1207_v25, %s1501_s7  ;;  %1287 = vst.msk [vmem:[%s2649_s1 + $0x28] sm:$0xff] %vm132_vm4, %v245_v36  }
  0x87   :  { %v1488_v27 = vld [vmem:[%s2648_s0 + $0x10d] ss:$16 sm:%s1176_s19]   ;;  %v1174_v28 = vsel %vm118_vm0, %v1487_v26, %v1486_v24 }
  0x88   :  { %v1489_v29 = vld [vmem:[%s2648_s0 + $0x10d] ss:$16 sm:%s1181_s24]   ;;  %v1179_v31 = vsel %vm123_vm1, %v1488_v27, %v1174_v28  ;;  %v222_v37 = vpop.permute.xlu0 %221  }
  0x89   :  { %v1184_v32 = vsel %vm128_vm2, %v1489_v29, %v1179_v31  ;;  %1282 = vst.msk [vmem:[%s2649_s1 + $0x8] sm:$0xff] %vm132_vm4, %v222_v37  }
  0x8a   :  { %1185 = vrot.lane.b32.xlu0 %v1184_v32, %s1501_s7  ;;  %v291_v38 = vpop.permute.xlu1 %290  }
  0x8b   :  { %1297 = vst.msk [vmem:[%s2649_s1 + $0x68] sm:$0xff] %vm132_vm4, %v291_v38  }
  0x8e   :  { %v268_v39 = vpop.permute.xlu0 %267   ;;  %v337_v40 = vpop.permute.xlu1 %336  }
  0x8f   :  { %1292 = vst.msk [vmem:[%s2649_s1 + $0x48] sm:$0xff] %vm132_vm4, %v268_v39   ;;  %1307 = vst.msk [vmem:[%s2649_s1 + $0x30] sm:$0xff] %vm132_vm4, %v337_v40  }
  0x92   :  { %v314_v41 = vpop.permute.xlu0 %313  }
  0x93   :  { %1302 = vst.msk [vmem:[%s2649_s1 + $0x10] sm:$0xff] %vm132_vm4, %v314_v41  }
  0x95   :  { %v383_v42 = vpop.permute.xlu1 %382  }
  0x96   :  { %1317 = vst.msk [vmem:[%s2649_s1 + $0x70] sm:$0xff] %vm132_vm4, %v383_v42  }
  0x99   :  { %v360_v43 = vpop.permute.xlu0 %359   ;;  %v429_v44 = vpop.permute.xlu1 %428  }
  0x9a   :  { %1312 = vst.msk [vmem:[%s2649_s1 + $0x50] sm:$0xff] %vm132_vm4, %v360_v43   ;;  %1327 = vst.msk [vmem:[%s2649_s1 + $0x38] sm:$0xff] %vm132_vm4, %v429_v44  }
  0x9d   :  { %v406_v45 = vpop.permute.xlu0 %405  }
  0x9e   :  { %1322 = vst.msk [vmem:[%s2649_s1 + $0x18] sm:$0xff] %vm132_vm4, %v406_v45  }
  0xa1   :  { %v475_v46 = vpop.permute.xlu1 %474  }
  0xa2   :  { %1337 = vst.msk [vmem:[%s2649_s1 + $0x78] sm:$0xff] %vm132_vm4, %v475_v46  }
  0xa5   :  { %v452_v47 = vpop.permute.xlu0 %451  }
  0xa6   :  { %1332 = vst.msk [vmem:[%s2649_s1 + $0x58] sm:$0xff] %vm132_vm4, %v452_v47  }
  0xa7   :  { %v520_v48 = vpop.permute.xlu1 %519  }
  0xa8   :  { %1346 = vst.msk [vmem:[%s2649_s1 + $0x20] sm:$0xff] %vm499_vm5, %v520_v48  }
  0xab   :  { %v498_v49 = vpop.permute.xlu0 %497  }
  0xac   :  { %500 = vst.msk [vmem:[%s2649_s1] sm:$0xff] %vm499_vm5, %v498_v49  }
  0xaf   :  { %v566_v50 = vpop.permute.xlu1 %565  }
  0xb0   :  { %1356 = vst.msk [vmem:[%s2649_s1 + $0x60] sm:$0xff] %vm499_vm5, %v566_v50  }
  0xb3   :  { %v543_v51 = vpop.permute.xlu0 %542  }
  0xb4   :  { %1351 = vst.msk [vmem:[%s2649_s1 + $0x40] sm:$0xff] %vm499_vm5, %v543_v51  }
  0xb5   :  { %v612_v52 = vpop.permute.xlu1 %611  }
  0xb6   :  { %1366 = vst.msk [vmem:[%s2649_s1 + $0x28] sm:$0xff] %vm499_vm5, %v612_v52  }
  0xb9   :  { %v589_v53 = vpop.permute.xlu0 %588  }
  0xba   :  { %1361 = vst.msk [vmem:[%s2649_s1 + $0x8] sm:$0xff] %vm499_vm5, %v589_v53  }
  0xbd   :  { %v658_v54 = vpop.permute.xlu1 %657  }
  0xbe   :  { %1376 = vst.msk [vmem:[%s2649_s1 + $0x68] sm:$0xff] %vm499_vm5, %v658_v54  }
  0xc1   :  { %v635_v55 = vpop.permute.xlu0 %634  }
  0xc2   :  { %1371 = vst.msk [vmem:[%s2649_s1 + $0x48] sm:$0xff] %vm499_vm5, %v635_v55  }
  0xc3   :  { %v704_v56 = vpop.permute.xlu1 %703  }
  0xc4   :  { %1386 = vst.msk [vmem:[%s2649_s1 + $0x30] sm:$0xff] %vm499_vm5, %v704_v56  }
  0xc7   :  { %v681_v57 = vpop.permute.xlu0 %680  }
  0xc8   :  { %1381 = vst.msk [vmem:[%s2649_s1 + $0x10] sm:$0xff] %vm499_vm5, %v681_v57  }
  0xcb   :  { %v750_v58 = vpop.permute.xlu1 %749  }
  0xcc   :  { %1396 = vst.msk [vmem:[%s2649_s1 + $0x70] sm:$0xff] %vm499_vm5, %v750_v58  }
  0xcf   :  { %v727_v59 = vpop.permute.xlu0 %726   ;;  %v796_v60 = vpop.permute.xlu1 %795  }
  0xd0   :  { %1391 = vst.msk [vmem:[%s2649_s1 + $0x50] sm:$0xff] %vm499_vm5, %v727_v59   ;;  %1406 = vst.msk [vmem:[%s2649_s1 + $0x38] sm:$0xff] %vm499_vm5, %v796_v60  }
  0xd3   :  { %v773_v61 = vpop.permute.xlu0 %772   ;;  %v842_v62 = vpop.permute.xlu1 %841  }
  0xd4   :  { %1401 = vst.msk [vmem:[%s2649_s1 + $0x18] sm:$0xff] %vm499_vm5, %v773_v61   ;;  %1416 = vst.msk [vmem:[%s2649_s1 + $0x78] sm:$0xff] %vm499_vm5, %v842_v62  }
  0xd7   :  { %v819_v63 = vpop.permute.xlu0 %818   ;;  %v887_v0 = vpop.permute.xlu1 %886  }
  0xd8   :  { %1411 = vst.msk [vmem:[%s2649_s1 + $0x58] sm:$0xff] %vm499_vm5, %v819_v63  }
  0xd9   :  { %1425 = vst.msk [vmem:[%s2649_s1 + $0x20] sm:$0xff] %vm866_vm6, %v887_v0  }
  0xdb   :  { %v865_v1 = vpop.permute.xlu0 %864  }
  0xdc   :  { %867 = vst.msk [vmem:[%s2649_s1] sm:$0xff] %vm866_vm6, %v865_v1  }
  0xdd   :  { %v933_v2 = vpop.permute.xlu1 %932  }
  0xde   :  { %1435 = vst.msk [vmem:[%s2649_s1 + $0x60] sm:$0xff] %vm866_vm6, %v933_v2  }
  0xe1   :  { %v910_v3 = vpop.permute.xlu0 %909   ;;  %v979_v4 = vpop.permute.xlu1 %978  }
  0xe2   :  { %1430 = vst.msk [vmem:[%s2649_s1 + $0x40] sm:$0xff] %vm866_vm6, %v910_v3   ;;  %1445 = vst.msk [vmem:[%s2649_s1 + $0x28] sm:$0xff] %vm866_vm6, %v979_v4  }
  0xe5   :  { %v956_v5 = vpop.permute.xlu0 %955   ;;  %v1025_v6 = vpop.permute.xlu1 %1024  }
  0xe6   :  { %1440 = vst.msk [vmem:[%s2649_s1 + $0x8] sm:$0xff] %vm866_vm6, %v956_v5   ;;  %1455 = vst.msk [vmem:[%s2649_s1 + $0x68] sm:$0xff] %vm866_vm6, %v1025_v6  }
  0xe9   :  { %v1002_v7 = vpop.permute.xlu0 %1001   ;;  %v1071_v8 = vpop.permute.xlu1 %1070  }
  0xea   :  { %1450 = vst.msk [vmem:[%s2649_s1 + $0x48] sm:$0xff] %vm866_vm6, %v1002_v7   ;;  %1465 = vst.msk [vmem:[%s2649_s1 + $0x30] sm:$0xff] %vm866_vm6, %v1071_v8  }
  0xed   :  { %v1048_v9 = vpop.permute.xlu0 %1047  }
  0xee   :  { %1460 = vst.msk [vmem:[%s2649_s1 + $0x10] sm:$0xff] %vm866_vm6, %v1048_v9  }
  0xef   :  { %v1117_v10 = vpop.permute.xlu1 %1116  }
  0xf0   :  { %1475 = vst.msk [vmem:[%s2649_s1 + $0x70] sm:$0xff] %vm866_vm6, %v1117_v10  }
  0xf3   :  { %v1094_v11 = vpop.permute.xlu0 %1093   ;;  %v1163_v12 = vpop.permute.xlu1 %1162  }
  0xf4   :  { %1470 = vst.msk [vmem:[%s2649_s1 + $0x50] sm:$0xff] %vm866_vm6, %v1094_v11   ;;  %1485 = vst.msk [vmem:[%s2649_s1 + $0x38] sm:$0xff] %vm866_vm6, %v1163_v12  }
  0xf7   :  { %v1140_v13 = vpop.permute.xlu0 %1139  }
  0xf8   :  { %1480 = vst.msk [vmem:[%s2649_s1 + $0x18] sm:$0xff] %vm866_vm6, %v1140_v13   ;;  %v1209_v14 = vpop.permute.xlu1 %1208  }
  0xf9   :  { %1495 = vst.msk [vmem:[%s2649_s1 + $0x78] sm:$0xff] %vm866_vm6, %v1209_v14  }
  0xfc   :  { %v1186_v15 = vpop.permute.xlu0 %1185  }
  0xfd   :  { %1490 = vst.msk [vmem:[%s2649_s1 + $0x58] sm:$0xff] %vm866_vm6, %v1186_v15  }

// kernel: nn_forward.1
= control target key start
LH: loop header
LB: loop body
LE: loop exit
PB: predicated region body
PF: predicated region fallthrough
CT: control target
= control target key end

     0   :  { %v12008_v3 = vmov 0.0   ;;  %vm877_vm0 = vcmask 261120   ;;  %s11986_s3 = inlined_call_operand.vmem [shape: f32[128,1536], index: 3, kind: input, shape index: {}]   ;;  %s11987_s0 = inlined_call_operand.vmem [shape: f32[32,128], index: 0, kind: input, shape index: {}]   ;;  %s11988_s2 = inlined_call_operand.vmem [shape: f32[32,32], index: 2, kind: input, shape index: {}]   ;;  %s11989_s1 = inlined_call_operand.vmem [shape: f32[32,32], index: 1, kind: input, shape index: {}]   ;;  %s11990_s4 = inlined_call_operand.vmem [shape: f32[512,32], index: 4, kind: input, shape index: {}]   ;;  %s11991_s5 = inlined_call_operand.vmem [shape: f32[32,512], index: 5, kind: input, shape index: {}]   ;;  %s11992_s12 = inlined_call_operand.vmem [shape: f32[512,512], index: 12, kind: input, shape index: {}]   ;;  %s11993_s6 = inlined_call_operand.vmem [shape: f32[1,512], index: 6, kind: input, shape index: {}]   ;;  %s11994_s7 = inlined_call_operand.vmem [shape: f32[1,512], index: 7, kind: input, shape index: {}]   ;;  %s11995_s13 = inlined_call_operand.vmem [shape: f32[1,512], index: 13, kind: input, shape index: {}]   ;;  %s11996_s14 = inlined_call_operand.vmem [shape: f32[512,512], index: 14, kind: input, shape index: {}]   ;;  %s11997_s8 = inlined_call_operand.vmem [shape: f32[1,512], index: 8, kind: input, shape index: {}]   ;;  %s11998_s9 = inlined_call_operand.vmem [shape: f32[1,512], index: 9, kind: input, shape index: {}]   ;;  %s11999_s15 = inlined_call_operand.vmem [shape: f32[1,512], index: 15, kind: input, shape index: {}]   ;;  %s12000_s16 = inlined_call_operand.vmem [shape: f32[512,384], index: 16, kind: input, shape index: {}]   ;;  %s12001_s10 = inlined_call_operand.vmem [shape: f32[1,512], index: 10, kind: input, shape index: {}]   ;;  %s12002_s11 = inlined_call_operand.vmem [shape: f32[1,512], index: 11, kind: input, shape index: {}]   ;;  %s12003_s17 = inlined_call_operand.vmem [shape: f32[1,128], index: 17, kind: input, shape index: {}]   ;;  %s12004_s18 = inlined_call_operand.vmem [shape: f32[32,128], index: 18, kind: output, shape index: {}]  }
   0x1   :  { %12094 = sst [smem:[#allocation31_spill]] %s11986_s3  ;;  %407 = vmatprep.mubr.f32.mxu1 %v12008_v3  ;;  %585 = vmatprep.mubr.f32.mxu0 %v12008_v3 }
   0x2   :  { %12095 = sst [smem:[#allocation32_spill]] %s11987_s0  ;;  %s12097_s29 = sld [smem:[#allocation31_spill]] }
   0x3   :  { %12096 = sst [smem:[#allocation33_spill]] %s11988_s2  ;;  %s12098_s20 = sld [smem:[#allocation32_spill]] }
   0x4   :  { %s12099_s0 = sld [smem:[#allocation33_spill]] }
   0x8   :  { %v152_v0 = vld [vmem:[%s12097_s29 + $0x8] sm:$0xff]  ;;  %v151_v2 = vld [vmem:[%s12097_s29] sm:$0xff] }
   0x9   :  { %v164_v1 = vld [vmem:[%s12097_s29 + $0x68] sm:$0xff]  ;;  %v163_v5 = vld [vmem:[%s12097_s29 + $0x60] sm:$0xff] }
   0xa   :  { %v6344_v4 = vpack.c.bf16 %v164_v1, %v152_v0  ;;  %v176_v6 = vld [vmem:[%s12097_s29 + $0xc8] sm:$0xff]  ;;  %v6346_v8 = vpack.c.bf16 %v163_v5, %v151_v2  ;;  %v175_v10 = vld [vmem:[%s12097_s29 + $0xc0] sm:$0xff] }
   0xb   :  { %v188_v7 = vld [vmem:[%s12097_s29 + $0x128] sm:$0xff]  ;;  %v187_v11 = vld [vmem:[%s12097_s29 + $0x120] sm:$0xff] }
   0xc   :  { %v6348_v9 = vpack.c.bf16 %v188_v7, %v176_v6  ;;  %v200_v12 = vld [vmem:[%s12097_s29 + $0x188] sm:$0xff]  ;;  %6345 = vmatprep.subr.bf16.mxu1 %v6344_v4  ;;  %v6350_v16 = vpack.c.bf16 %v187_v11, %v175_v10  ;;  %v199_v18 = vld [vmem:[%s12097_s29 + $0x180] sm:$0xff] }
   0xd   :  { %v212_v13 = vld [vmem:[%s12097_s29 + $0x1e8] sm:$0xff]  ;;  %6347 = vmatpush1.bf16.msra.mxu1 %v6346_v8  ;;  %v155_v19 = vld [vmem:[%s12097_s29 + $0x20] sm:$0xff] }
   0xe   :  { %v156_v14 = vld [vmem:[%s12097_s29 + $0x28] sm:$0xff]  ;;  %6349 = vmatprep.subr.bf16.mxu1 %v6348_v9  ;;  %v6352_v20 = vpack.c.bf16 %v212_v13, %v200_v12  ;;  %v211_v21 = vld [vmem:[%s12097_s29 + $0x1e0] sm:$0xff] }
   0xf   :  { %v168_v15 = vld [vmem:[%s12097_s29 + $0x88] sm:$0xff]  ;;  %v167_v22 = vld [vmem:[%s12097_s29 + $0x80] sm:$0xff]  ;;  %v6354_v31 = vpack.c.bf16 %v211_v21, %v199_v18 }
  0x10   :  { %v6408_v17 = vpack.c.bf16 %v168_v15, %v156_v14  ;;  %v224_v23 = vld [vmem:[%s12097_s29 + $0x248] sm:$0xff]  ;;  %v6410_v24 = vpack.c.bf16 %v167_v22, %v155_v19  ;;  %v179_v29 = vld [vmem:[%s12097_s29 + $0xe0] sm:$0xff] }
  0x11   :  { %v236_v25 = vld [vmem:[%s12097_s29 + $0x2a8] sm:$0xff]  ;;  %v191_v30 = vld [vmem:[%s12097_s29 + $0x140] sm:$0xff]  ;;  %6351 = vmatpush1.bf16.msra.mxu1 %v6350_v16 }
  0x12   :  { %6409 = vmatprep.subr.bf16.mxu0 %v6408_v17  ;;  %v180_v26 = vld [vmem:[%s12097_s29 + $0xe8] sm:$0xff]  ;;  %v223_v32 = vld [vmem:[%s12097_s29 + $0x240] sm:$0xff]  ;;  %v6414_v33 = vpack.c.bf16 %v191_v30, %v179_v29  ;;  %6353 = vmatprep.subr.bf16.mxu1 %v6352_v20  ;;  %v6356_v35 = vpack.c.bf16 %v236_v25, %v224_v23  ;;  %v154_v23 = vld [vmem:[%s12097_s29 + $0x18] sm:$0xff] }
  0x13   :  { %v192_v27 = vld [vmem:[%s12097_s29 + $0x148] sm:$0xff]  ;;  %6411 = vmatpush1.bf16.msra.mxu0 %v6410_v24  ;;  %v235_v36 = vld [vmem:[%s12097_s29 + $0x2a0] sm:$0xff] }
  0x14   :  { %v6412_v28 = vpack.c.bf16 %v192_v27, %v180_v26  ;;  %v204_v34 = vld [vmem:[%s12097_s29 + $0x1a8] sm:$0xff]  ;;  %v203_v41 = vld [vmem:[%s12097_s29 + $0x1a0] sm:$0xff]  ;;  %v6358_v45 = vpack.c.bf16 %v235_v36, %v223_v32  ;;  %v166_v27 = vld [vmem:[%s12097_s29 + $0x78] sm:$0xff] }
  0x15   :  { %v248_v37 = vld [vmem:[%s12097_s29 + $0x308] sm:$0xff]  ;;  %v215_v42 = vld [vmem:[%s12097_s29 + $0x200] sm:$0xff]  ;;  %6355 = vmatpush1.bf16.msra.mxu1 %v6354_v31  ;;  %v6376_v32 = vpack.c.bf16 %v166_v27, %v154_v23 }
  0x16   :  { %6413 = vmatprep.subr.bf16.mxu0 %v6412_v28  ;;  %v216_v38 = vld [vmem:[%s12097_s29 + $0x208] sm:$0xff]  ;;  %v247_v46 = vld [vmem:[%s12097_s29 + $0x300] sm:$0xff]  ;;  %v6418_v48 = vpack.c.bf16 %v215_v42, %v203_v41  ;;  %6357 = vmatprep.subr.bf16.mxu1 %v6356_v35  ;;  %v178_v35 = vld [vmem:[%s12097_s29 + $0xd8] sm:$0xff] }
  0x17   :  { %v260_v39 = vld [vmem:[%s12097_s29 + $0x368] sm:$0xff]  ;;  %v6416_v40 = vpack.c.bf16 %v216_v38, %v204_v34  ;;  %6415 = vmatpush1.bf16.msra.mxu0 %v6414_v33  ;;  %v259_v47 = vld [vmem:[%s12097_s29 + $0x360] sm:$0xff]  ;;  %v153_v33 = vld [vmem:[%s12097_s29 + $0x10] sm:$0xff] }
  0x18   :  { %v228_v43 = vld [vmem:[%s12097_s29 + $0x268] sm:$0xff]  ;;  %v6360_v49 = vpack.c.bf16 %v260_v39, %v248_v37  ;;  %v227_v52 = vld [vmem:[%s12097_s29 + $0x260] sm:$0xff]  ;;  %v6362_v57 = vpack.c.bf16 %v259_v47, %v247_v46  ;;  %v165_v34 = vld [vmem:[%s12097_s29 + $0x70] sm:$0xff] }
  0x19   :  { %v240_v44 = vld [vmem:[%s12097_s29 + $0x2c8] sm:$0xff]  ;;  %6417 = vmatprep.subr.bf16.mxu0 %v6416_v40  ;;  %v239_v53 = vld [vmem:[%s12097_s29 + $0x2c0] sm:$0xff]  ;;  %6359 = vmatpush1.bf16.msra.mxu1 %v6358_v45  ;;  %v190_v37 = vld [vmem:[%s12097_s29 + $0x138] sm:$0xff] }
  0x1a   :  { %v272_v50 = vld [vmem:[%s12097_s29 + $0x3c8] sm:$0xff]  ;;  %v6420_v51 = vpack.c.bf16 %v240_v44, %v228_v43  ;;  %v271_v58 = vld [vmem:[%s12097_s29 + $0x3c0] sm:$0xff]  ;;  %v6422_v60 = vpack.c.bf16 %v239_v53, %v227_v52  ;;  %6361 = vmatprep.subr.bf16.mxu1 %v6360_v49  ;;  %v6378_v43 = vpack.c.bf16 %v165_v34, %v153_v33  ;;  %v6380_v44 = vpack.c.bf16 %v190_v37, %v178_v35  ;;  %v177_v45 = vld [vmem:[%s12097_s29 + $0xd0] sm:$0xff] }
  0x1b   :  { %v284_v54 = vld [vmem:[%s12097_s29 + $0x428] sm:$0xff]  ;;  %6419 = vmatpush1.bf16.msra.mxu0 %v6418_v48  ;;  %v283_v59 = vld [vmem:[%s12097_s29 + $0x420] sm:$0xff]  ;;  %v189_v46 = vld [vmem:[%s12097_s29 + $0x130] sm:$0xff] }
  0x1c   :  { %v252_v55 = vld [vmem:[%s12097_s29 + $0x328] sm:$0xff]  ;;  %v6364_v61 = vpack.c.bf16 %v284_v54, %v272_v50  ;;  %6421 = vmatprep.subr.bf16.mxu0 %v6420_v51  ;;  %v251_v0 = vld [vmem:[%s12097_s29 + $0x320] sm:$0xff]  ;;  %v6366_v6 = vpack.c.bf16 %v283_v59, %v271_v58  ;;  %v202_v48 = vld [vmem:[%s12097_s29 + $0x198] sm:$0xff] }
  0x1d   :  { %v264_v56 = vld [vmem:[%s12097_s29 + $0x388] sm:$0xff]  ;;  %v263_v1 = vld [vmem:[%s12097_s29 + $0x380] sm:$0xff]  ;;  %6363 = vmatpush1.bf16.msra.mxu1 %v6362_v57  ;;  %v214_v49 = vld [vmem:[%s12097_s29 + $0x1f8] sm:$0xff] }
  0x1e   :  { %v296_v62 = vld [vmem:[%s12097_s29 + $0x488] sm:$0xff]  ;;  %v6424_v63 = vpack.c.bf16 %v264_v56, %v252_v55  ;;  %v295_v7 = vld [vmem:[%s12097_s29 + $0x480] sm:$0xff]  ;;  %v6426_v9 = vpack.c.bf16 %v263_v1, %v251_v0  ;;  %6365 = vmatprep.subr.bf16.mxu1 %v6364_v61  ;;  %v6382_v56 = vpack.c.bf16 %v189_v46, %v177_v45  ;;  %v6384_v57 = vpack.c.bf16 %v214_v49, %v202_v48  ;;  %v201_v58 = vld [vmem:[%s12097_s29 + $0x190] sm:$0xff] }
  0x1f   :  { %v308_v2 = vld [vmem:[%s12097_s29 + $0x4e8] sm:$0xff]  ;;  %6423 = vmatpush1.bf16.msra.mxu0 %v6422_v60  ;;  %v307_v8 = vld [vmem:[%s12097_s29 + $0x4e0] sm:$0xff]  ;;  %v213_v59 = vld [vmem:[%s12097_s29 + $0x1f0] sm:$0xff] }
  0x20   :  { %v276_v4 = vld [vmem:[%s12097_s29 + $0x3e8] sm:$0xff]  ;;  %v6368_v10 = vpack.c.bf16 %v308_v2, %v296_v62  ;;  %6425 = vmatprep.subr.bf16.mxu0 %v6424_v63  ;;  %v275_v13 = vld [vmem:[%s12097_s29 + $0x3e0] sm:$0xff]  ;;  %v6370_v18 = vpack.c.bf16 %v307_v8, %v295_v7  ;;  %v226_v61 = vld [vmem:[%s12097_s29 + $0x258] sm:$0xff] }
  0x21   :  { %v288_v5 = vld [vmem:[%s12097_s29 + $0x448] sm:$0xff]  ;;  %v287_v14 = vld [vmem:[%s12097_s29 + $0x440] sm:$0xff]  ;;  %6367 = vmatpush1.bf16.msra.mxu1 %v6366_v6  ;;  %v238_v62 = vld [vmem:[%s12097_s29 + $0x2b8] sm:$0xff] }
  0x22   :  { %v320_v11 = vld [vmem:[%s12097_s29 + $0x548] sm:$0xff]  ;;  %v6428_v12 = vpack.c.bf16 %v288_v5, %v276_v4  ;;  %v319_v19 = vld [vmem:[%s12097_s29 + $0x540] sm:$0xff]  ;;  %v6430_v21 = vpack.c.bf16 %v287_v14, %v275_v13  ;;  %6369 = vmatprep.subr.bf16.mxu1 %v6368_v10  ;;  %v6386_v5 = vpack.c.bf16 %v213_v59, %v201_v58  ;;  %v8272_v6 = vld [vmem:[%s12098_s20 + $0x10] sm:$0xff]  ;;  %v6388_v7 = vpack.c.bf16 %v238_v62, %v226_v61 }
  0x23   :  { %v332_v15 = vld [vmem:[%s12097_s29 + $0x5a8] sm:$0xff]  ;;  %6427 = vmatpush1.bf16.msra.mxu0 %v6426_v9  ;;  %v331_v20 = vld [vmem:[%s12097_s29 + $0x5a0] sm:$0xff]  ;;  %v225_v8 = vld [vmem:[%s12097_s29 + $0x250] sm:$0xff] }
  0x24   :  { %v300_v16 = vld [vmem:[%s12097_s29 + $0x4a8] sm:$0xff]  ;;  %v6372_v22 = vpack.c.bf16 %v332_v15, %v320_v11  ;;  %6429 = vmatprep.subr.bf16.mxu0 %v6428_v12  ;;  %v299_v25 = vld [vmem:[%s12097_s29 + $0x4a0] sm:$0xff]  ;;  %v6374_v30 = vpack.c.bf16 %v331_v20, %v319_v19  ;;  %v237_v9 = vld [vmem:[%s12097_s29 + $0x2b0] sm:$0xff] }
  0x25   :  { %v312_v17 = vld [vmem:[%s12097_s29 + $0x508] sm:$0xff]  ;;  %v311_v26 = vld [vmem:[%s12097_s29 + $0x500] sm:$0xff]  ;;  %6371 = vmatpush1.bf16.msra.mxu1 %v6370_v18  ;;  %v250_v11 = vld [vmem:[%s12097_s29 + $0x318] sm:$0xff]  ;;  %v6390_v18 = vpack.c.bf16 %v237_v9, %v225_v8 }
  0x26   :  { %v6432_v24 = vpack.c.bf16 %v312_v17, %v300_v16  ;;  %v324_v28 = vld [vmem:[%s12097_s29 + $0x568] sm:$0xff]  ;;  %v6434_v31 = vpack.c.bf16 %v311_v26, %v299_v25  ;;  %6373 = vmatprep.subr.bf16.mxu1 %v6372_v22  ;;  %v323_v38 = vld [vmem:[%s12097_s29 + $0x560] sm:$0xff]  ;;  %v262_v12 = vld [vmem:[%s12097_s29 + $0x378] sm:$0xff] }
  0x27   :  { %v336_v29 = vld [vmem:[%s12097_s29 + $0x5c8] sm:$0xff]  ;;  %6431 = vmatpush1.bf16.msra.mxu0 %v6430_v21  ;;  %v335_v39 = vld [vmem:[%s12097_s29 + $0x5c0] sm:$0xff]  ;;  %v8305_v19 = vld [vmem:[%s12098_s20 + $0x18] sm:$0xff]  ;;  %v6392_v20 = vpack.c.bf16 %v262_v12, %v250_v11 }
  0x28   :  { %6433 = vmatprep.subr.bf16.mxu0 %v6432_v24  ;;  %v6436_v36 = vpack.c.bf16 %v336_v29, %v324_v28  ;;  %v160_v40 = vld [vmem:[%s12097_s29 + $0x48] sm:$0xff]  ;;  %v8210_v42 = vld [vmem:[%s12098_s20] sm:$0xff]  ;;  %v6438_v47 = vpack.c.bf16 %v335_v39, %v323_v38  ;;  %v249_v21 = vld [vmem:[%s12097_s29 + $0x310] sm:$0xff] }
  0x29   :  { %v172_v41 = vld [vmem:[%s12097_s29 + $0xa8] sm:$0xff]  ;;  %6375 = vmatpush1.bf16.msra.mxu1 %v6374_v30  ;;  %v159_v51 = vld [vmem:[%s12097_s29 + $0x40] sm:$0xff]  ;;  %v261_v22 = vld [vmem:[%s12097_s29 + $0x370] sm:$0xff] }
  0x2a   :  { %6377 = vmatprep.subr.bf16.mxu1 %v6376_v32  ;;  %v6472_v50 = vpack.c.bf16 %v172_v41, %v160_v40  ;;  %v171_v52 = vld [vmem:[%s12097_s29 + $0xa0] sm:$0xff]  ;;  %v184_v53 = vld [vmem:[%s12097_s29 + $0x108] sm:$0xff]  ;;  %v274_v24 = vld [vmem:[%s12097_s29 + $0x3d8] sm:$0xff] }
  0x2b   :  { %6435 = vmatpush1.bf16.msra.mxu0 %v6434_v31  ;;  %v196_v54 = vld [vmem:[%s12097_s29 + $0x168] sm:$0xff]  ;;  %v6474_v60 = vpack.c.bf16 %v171_v52, %v159_v51  ;;  %v183_v0 = vld [vmem:[%s12097_s29 + $0x100] sm:$0xff]  ;;  %v286_v25 = vld [vmem:[%s12097_s29 + $0x438] sm:$0xff]  ;;  %v6394_v31 = vpack.c.bf16 %v261_v22, %v249_v21 }
  0x2c   :  { %6437 = vmatprep.subr.bf16.mxu0 %v6436_v36  ;;  %408 = vmatmul.mubr.f32.vlgmr.msra.gmra.mrb[0].mxu1 %v8210_v42  ;;  %v8241_v55 = vld [vmem:[%s12098_s20 + $0x8] sm:$0xff]  ;;  %v6476_v63 = vpack.c.bf16 %v196_v54, %v184_v53  ;;  %v195_v1 = vld [vmem:[%s12097_s29 + $0x160] sm:$0xff]  ;;  %v6396_v32 = vpack.c.bf16 %v286_v25, %v274_v24  ;;  %v273_v33 = vld [vmem:[%s12097_s29 + $0x3d0] sm:$0xff] }
  0x2d   :  { %6379 = vmatpush1.bf16.msra.mxu1 %v6378_v43  ;;  %413 = vmatprep.mubr.f32.mxu1 %v12008_v3  ;;  %v208_v2 = vld [vmem:[%s12097_s29 + $0x1c8] sm:$0xff]  ;;  %v6478_v10 = vpack.c.bf16 %v195_v1, %v183_v0  ;;  %v207_v14 = vld [vmem:[%s12097_s29 + $0x1c0] sm:$0xff]  ;;  %v285_v34 = vld [vmem:[%s12097_s29 + $0x430] sm:$0xff] }
  0x2e   :  { %6381 = vmatprep.subr.bf16.mxu1 %v6380_v44  ;;  %v220_v4 = vld [vmem:[%s12097_s29 + $0x228] sm:$0xff]  ;;  %v219_v15 = vld [vmem:[%s12097_s29 + $0x220] sm:$0xff]  ;;  %v298_v36 = vld [vmem:[%s12097_s29 + $0x498] sm:$0xff]  ;;  %v6398_v44 = vpack.c.bf16 %v285_v34, %v273_v33 }
  0x2f   :  { %6439 = vmatpush1.bf16.msra.mxu0 %v6438_v47  ;;  %v6480_v13 = vpack.c.bf16 %v220_v4, %v208_v2  ;;  %v232_v16 = vld [vmem:[%s12097_s29 + $0x288] sm:$0xff]  ;;  %v6482_v23 = vpack.c.bf16 %v219_v15, %v207_v14  ;;  %v231_v27 = vld [vmem:[%s12097_s29 + $0x280] sm:$0xff]  ;;  %v310_v37 = vld [vmem:[%s12097_s29 + $0x4f8] sm:$0xff] }
  0x30   :  { %6473 = vmatprep.subr.bf16.mxu0 %v6472_v50  ;;  %414 = vmatmul.mubr.f32.gmra.mrb[2].mxu1 %v8241_v55  ;;  %v244_v17 = vld [vmem:[%s12097_s29 + $0x2e8] sm:$0xff]  ;;  %v243_v28 = vld [vmem:[%s12097_s29 + $0x2e0] sm:$0xff]  ;;  %v6400_v45 = vpack.c.bf16 %v310_v37, %v298_v36  ;;  %v297_v46 = vld [vmem:[%s12097_s29 + $0x490] sm:$0xff] }
  0x31   :  { %6383 = vmatpush1.bf16.msra.mxu1 %v6382_v56  ;;  %419 = vmatprep.mubr.f32.mxu1 %v12008_v3  ;;  %v6484_v26 = vpack.c.bf16 %v244_v17, %v232_v16  ;;  %v256_v29 = vld [vmem:[%s12097_s29 + $0x348] sm:$0xff]  ;;  %v6486_v35 = vpack.c.bf16 %v243_v28, %v231_v27  ;;  %v255_v39 = vld [vmem:[%s12097_s29 + $0x340] sm:$0xff]  ;;  %v309_v47 = vld [vmem:[%s12097_s29 + $0x4f0] sm:$0xff] }
  0x32   :  { %586 = vmatmul.mubr.f32.vlgmr.msra.gmra.mrb[0].mxu0 %v8210_v42  ;;  %6385 = vmatprep.subr.bf16.mxu1 %v6384_v57  ;;  %v268_v30 = vld [vmem:[%s12097_s29 + $0x3a8] sm:$0xff]  ;;  %v267_v40 = vld [vmem:[%s12097_s29 + $0x3a0] sm:$0xff]  ;;  %v322_v49 = vld [vmem:[%s12097_s29 + $0x558] sm:$0xff]  ;;  %v6402_v57 = vpack.c.bf16 %v309_v47, %v297_v46 }
  0x33   :  { %6475 = vmatpush1.bf16.msra.mxu0 %v6474_v60  ;;  %591 = vmatprep.mubr.f32.mxu0 %v12008_v3  ;;  %v6488_v38 = vpack.c.bf16 %v268_v30, %v256_v29  ;;  %v280_v41 = vld [vmem:[%s12097_s29 + $0x408] sm:$0xff]  ;;  %v6490_v48 = vpack.c.bf16 %v267_v40, %v255_v39  ;;  %v334_v50 = vld [vmem:[%s12097_s29 + $0x5b8] sm:$0xff]  ;;  %v279_v52 = vld [vmem:[%s12097_s29 + $0x400] sm:$0xff] }
  0x34   :  { %6477 = vmatprep.subr.bf16.mxu0 %v6476_v63  ;;  %420 = vmatmul.mubr.f32.gmra.mrb[4].mxu1 %v8272_v6  ;;  %v292_v43 = vld [vmem:[%s12097_s29 + $0x468] sm:$0xff]  ;;  %v291_v53 = vld [vmem:[%s12097_s29 + $0x460] sm:$0xff]  ;;  %v6404_v58 = vpack.c.bf16 %v334_v50, %v322_v49  ;;  %v321_v59 = vld [vmem:[%s12097_s29 + $0x550] sm:$0xff] }
  0x35   :  { %6387 = vmatpush1.bf16.msra.mxu1 %v6386_v5  ;;  %425 = vmatprep.mubr.f32.mxu1 %v12008_v3  ;;  %v6492_v51 = vpack.c.bf16 %v292_v43, %v280_v41  ;;  %v304_v54 = vld [vmem:[%s12097_s29 + $0x4c8] sm:$0xff]  ;;  %v333_v60 = vld [vmem:[%s12097_s29 + $0x5b0] sm:$0xff]  ;;  %v6494_v61 = vpack.c.bf16 %v291_v53, %v279_v52  ;;  %v158_v62 = vld [vmem:[%s12097_s29 + $0x38] sm:$0xff] }
  0x36   :  { %6389 = vmatprep.subr.bf16.mxu1 %v6388_v7  ;;  %592 = vmatmul.mubr.f32.gmra.mrb[2].mxu0 %v8241_v55  ;;  %v316_v56 = vld [vmem:[%s12097_s29 + $0x528] sm:$0xff]  ;;  %v170_v63 = vld [vmem:[%s12097_s29 + $0x98] sm:$0xff]  ;;  %v303_v1 = vld [vmem:[%s12097_s29 + $0x4c0] sm:$0xff]  ;;  %v6406_v7 = vpack.c.bf16 %v333_v60, %v321_v59 }
  0x37   :  { %6479 = vmatpush1.bf16.msra.mxu0 %v6478_v10  ;;  %597 = vmatprep.mubr.f32.mxu0 %v12008_v3  ;;  %v6496_v0 = vpack.c.bf16 %v316_v56, %v304_v54  ;;  %v315_v2 = vld [vmem:[%s12097_s29 + $0x520] sm:$0xff]  ;;  %v328_v4 = vld [vmem:[%s12097_s29 + $0x588] sm:$0xff]  ;;  %v6440_v8 = vpack.c.bf16 %v170_v63, %v158_v62  ;;  %v157_v9 = vld [vmem:[%s12097_s29 + $0x30] sm:$0xff] }
  0x38   :  { %6481 = vmatprep.subr.bf16.mxu0 %v6480_v13  ;;  %426 = vmatmul.mubr.f32.gmra.mrb[6].mxu1 %v8305_v19  ;;  %v340_v5 = vld [vmem:[%s12097_s29 + $0x5e8] sm:$0xff]  ;;  %v169_v10 = vld [vmem:[%s12097_s29 + $0x90] sm:$0xff]  ;;  %v6498_v11 = vpack.c.bf16 %v315_v2, %v303_v1  ;;  %v182_v12 = vld [vmem:[%s12097_s29 + $0xf8] sm:$0xff] }
  0x39   :  { %6391 = vmatpush1.bf16.msra.mxu1 %v6390_v18  ;;  %496 = vmatprep.mubr.f32.mxu1 %v12008_v3  ;;  %v194_v13 = vld [vmem:[%s12097_s29 + $0x158] sm:$0xff]  ;;  %v6500_v14 = vpack.c.bf16 %v340_v5, %v328_v4  ;;  %v327_v15 = vld [vmem:[%s12097_s29 + $0x580] sm:$0xff]  ;;  %v6442_v17 = vpack.c.bf16 %v169_v10, %v157_v9  ;;  %v193_v21 = vld [vmem:[%s12097_s29 + $0x150] sm:$0xff] }
  0x3a   :  { %6393 = vmatprep.subr.bf16.mxu1 %v6392_v20  ;;  %598 = vmatmul.mubr.f32.gmra.mrb[4].mxu0 %v8272_v6  ;;  %v339_v16 = vld [vmem:[%s12097_s29 + $0x5e0] sm:$0xff]  ;;  %v6444_v18 = vpack.c.bf16 %v194_v13, %v182_v12  ;;  %v181_v20 = vld [vmem:[%s12097_s29 + $0xf0] sm:$0xff]  ;;  %v218_v24 = vld [vmem:[%s12097_s29 + $0x218] sm:$0xff] }
  0x3b   :  { %6483 = vmatpush1.bf16.msra.mxu0 %v6482_v23  ;;  %603 = vmatprep.mubr.f32.mxu0 %v12008_v3  ;;  %v6502_v22 = vpack.c.bf16 %v339_v16, %v327_v15  ;;  %v206_v23 = vld [vmem:[%s12097_s29 + $0x1b8] sm:$0xff]  ;;  %v6446_v25 = vpack.c.bf16 %v193_v21, %v181_v20  ;;  %v205_v27 = vld [vmem:[%s12097_s29 + $0x1b0] sm:$0xff] }
  0x3c   :  { %6485 = vmatprep.subr.bf16.mxu0 %v6484_v26  ;;  %v6448_v26 = vpack.c.bf16 %v218_v24, %v206_v23  ;;  %v217_v28 = vld [vmem:[%s12097_s29 + $0x210] sm:$0xff]  ;;  %v230_v29 = vld [vmem:[%s12097_s29 + $0x278] sm:$0xff] }
  0x3d   :  { %6395 = vmatpush1.bf16.msra.mxu1 %v6394_v31  ;;  %v242_v30 = vld [vmem:[%s12097_s29 + $0x2d8] sm:$0xff]  ;;  %v6450_v31 = vpack.c.bf16 %v217_v28, %v205_v27  ;;  %v229_v33 = vld [vmem:[%s12097_s29 + $0x270] sm:$0xff] }
  0x3e   :  { %6397 = vmatprep.subr.bf16.mxu1 %v6396_v32  ;;  %604 = vmatmul.mubr.f32.gmra.mrb[6].mxu0 %v8305_v19  ;;  %v6452_v32 = vpack.c.bf16 %v242_v30, %v230_v29  ;;  %v241_v34 = vld [vmem:[%s12097_s29 + $0x2d0] sm:$0xff]  ;;  %v266_v36 = vld [vmem:[%s12097_s29 + $0x398] sm:$0xff] }
  0x3f   :  { %6487 = vmatpush1.bf16.msra.mxu0 %v6486_v35  ;;  %763 = vmatprep.mubr.f32.mxu0 %v12008_v3  ;;  %v254_v35 = vld [vmem:[%s12097_s29 + $0x338] sm:$0xff]  ;;  %v6454_v37 = vpack.c.bf16 %v241_v34, %v229_v33  ;;  %v253_v39 = vld [vmem:[%s12097_s29 + $0x330] sm:$0xff] }
  0x40   :  { %6489 = vmatprep.subr.bf16.mxu0 %v6488_v38  ;;  %v6456_v38 = vpack.c.bf16 %v266_v36, %v254_v35  ;;  %v265_v40 = vld [vmem:[%s12097_s29 + $0x390] sm:$0xff]  ;;  %v278_v41 = vld [vmem:[%s12097_s29 + $0x3f8] sm:$0xff] }
  0x41   :  { %6399 = vmatpush1.bf16.msra.mxu1 %v6398_v44  ;;  %v290_v43 = vld [vmem:[%s12097_s29 + $0x458] sm:$0xff]  ;;  %v6458_v44 = vpack.c.bf16 %v265_v40, %v253_v39  ;;  %v277_v46 = vld [vmem:[%s12097_s29 + $0x3f0] sm:$0xff] }
  0x42   :  { %6401 = vmatprep.subr.bf16.mxu1 %v6400_v45  ;;  %v6460_v45 = vpack.c.bf16 %v290_v43, %v278_v41  ;;  %v289_v47 = vld [vmem:[%s12097_s29 + $0x450] sm:$0xff]  ;;  %v314_v49 = vld [vmem:[%s12097_s29 + $0x518] sm:$0xff] }
  0x43   :  { %6491 = vmatpush1.bf16.msra.mxu0 %v6490_v48  ;;  %v302_v48 = vld [vmem:[%s12097_s29 + $0x4b8] sm:$0xff]  ;;  %v6462_v50 = vpack.c.bf16 %v289_v47, %v277_v46  ;;  %v301_v52 = vld [vmem:[%s12097_s29 + $0x4b0] sm:$0xff] }
  0x44   :  { %6493 = vmatprep.subr.bf16.mxu0 %v6492_v51  ;;  %v6464_v51 = vpack.c.bf16 %v314_v49, %v302_v48  ;;  %v313_v53 = vld [vmem:[%s12097_s29 + $0x510] sm:$0xff]  ;;  %v326_v54 = vld [vmem:[%s12097_s29 + $0x578] sm:$0xff] }
  0x45   :  { %6403 = vmatpush1.bf16.msra.mxu1 %v6402_v57  ;;  %v338_v56 = vld [vmem:[%s12097_s29 + $0x5d8] sm:$0xff]  ;;  %v6466_v57 = vpack.c.bf16 %v313_v53, %v301_v52  ;;  %v325_v59 = vld [vmem:[%s12097_s29 + $0x570] sm:$0xff] }
  0x46   :  { %6405 = vmatprep.subr.bf16.mxu1 %v6404_v58  ;;  %v6468_v58 = vpack.c.bf16 %v338_v56, %v326_v54  ;;  %v337_v60 = vld [vmem:[%s12097_s29 + $0x5d0] sm:$0xff]  ;;  %v174_v62 = vld [vmem:[%s12097_s29 + $0xb8] sm:$0xff] }
  0x47   :  { %6495 = vmatpush1.bf16.msra.mxu0 %v6494_v61  ;;  %v162_v61 = vld [vmem:[%s12097_s29 + $0x58] sm:$0xff]  ;;  %v6470_v63 = vpack.c.bf16 %v337_v60, %v325_v59  ;;  %v161_v1 = vld [vmem:[%s12097_s29 + $0x50] sm:$0xff]  ;;  %v64_v60 = vld [vmem:[%s12099_s0 + $0x8] sm:$0xff] }
  0x48   :  { %6497 = vmatprep.subr.bf16.mxu0 %v6496_v0  ;;  %v6504_v0 = vpack.c.bf16 %v174_v62, %v162_v61  ;;  %v173_v2 = vld [vmem:[%s12097_s29 + $0xb0] sm:$0xff]  ;;  %v186_v4 = vld [vmem:[%s12097_s29 + $0x118] sm:$0xff] }
  0x49   :  { %6407 = vmatpush1.bf16.msra.mxu1 %v6406_v7  ;;  %v198_v5 = vld [vmem:[%s12097_s29 + $0x178] sm:$0xff]  ;;  %v6506_v7 = vpack.c.bf16 %v173_v2, %v161_v1  ;;  %v185_v9 = vld [vmem:[%s12097_s29 + $0x110] sm:$0xff] }
  0x4a   :  { %6441 = vmatprep.subr.bf16.mxu1 %v6440_v8  ;;  %v6508_v8 = vpack.c.bf16 %v198_v5, %v186_v4  ;;  %v197_v10 = vld [vmem:[%s12097_s29 + $0x170] sm:$0xff]  ;;  %v222_v12 = vld [vmem:[%s12097_s29 + $0x238] sm:$0xff] }
  0x4b   :  { %6499 = vmatpush1.bf16.msra.mxu0 %v6498_v11  ;;  %v210_v11 = vld [vmem:[%s12097_s29 + $0x1d8] sm:$0xff]  ;;  %v6510_v13 = vpack.c.bf16 %v197_v10, %v185_v9  ;;  %v209_v15 = vld [vmem:[%s12097_s29 + $0x1d0] sm:$0xff] }
  0x4c   :  { %6501 = vmatprep.subr.bf16.mxu0 %v6500_v14  ;;  %497 = vmatmul.mubr.f32.vlgmr.msra.gmra.mrb[8].mxu1 %v8210_v42  ;;  %v6512_v14 = vpack.c.bf16 %v222_v12, %v210_v11  ;;  %v221_v16 = vld [vmem:[%s12097_s29 + $0x230] sm:$0xff]  ;;  %v258_v24 = vld [vmem:[%s12097_s29 + $0x358] sm:$0xff] }
  0x4d   :  { %6443 = vmatpush1.bf16.msra.mxu1 %v6442_v17  ;;  %502 = vmatprep.mubr.f32.mxu1 %v12008_v3  ;;  %v234_v17 = vld [vmem:[%s12097_s29 + $0x298] sm:$0xff]  ;;  %v6514_v20 = vpack.c.bf16 %v221_v16, %v209_v15  ;;  %v245_v23 = vld [vmem:[%s12097_s29 + $0x2f0] sm:$0xff] }
  0x4e   :  { %6445 = vmatprep.subr.bf16.mxu1 %v6444_v18  ;;  %v246_v18 = vld [vmem:[%s12097_s29 + $0x2f8] sm:$0xff]  ;;  %v257_v28 = vld [vmem:[%s12097_s29 + $0x350] sm:$0xff] }
  0x4f   :  { %6503 = vmatpush1.bf16.msra.mxu0 %v6502_v22  ;;  %v6516_v21 = vpack.c.bf16 %v246_v18, %v234_v17  ;;  %v233_v22 = vld [vmem:[%s12097_s29 + $0x290] sm:$0xff]  ;;  %v282_v30 = vld [vmem:[%s12097_s29 + $0x418] sm:$0xff] }
  0x50   :  { %503 = vmatmul.mubr.f32.gmra.mrb[10].mxu1 %v8241_v55  ;;  %v269_v29 = vld [vmem:[%s12097_s29 + $0x3b0] sm:$0xff]  ;;  %v306_v36 = vld [vmem:[%s12097_s29 + $0x4d8] sm:$0xff] }
  0x51   :  { %6447 = vmatpush1.bf16.msra.mxu1 %v6446_v25  ;;  %508 = vmatprep.mubr.f32.mxu1 %v12008_v3  ;;  %v270_v25 = vld [vmem:[%s12097_s29 + $0x3b8] sm:$0xff]  ;;  %v281_v34 = vld [vmem:[%s12097_s29 + $0x410] sm:$0xff] }
  0x52   :  { %6449 = vmatprep.subr.bf16.mxu1 %v6448_v26  ;;  %764 = vmatmul.mubr.f32.vlgmr.msra.gmra.mrb[8].mxu0 %v8210_v42  ;;  %v6518_v26 = vpack.c.bf16 %v245_v23, %v233_v22  ;;  %v6520_v27 = vpack.c.bf16 %v270_v25, %v258_v24  ;;  %v293_v35 = vld [vmem:[%s12097_s29 + $0x470] sm:$0xff]  ;;  %v330_v43 = vld [vmem:[%s12097_s29 + $0x598] sm:$0xff] }
  0x53   :  { %769 = vmatprep.mubr.f32.mxu0 %v12008_v3  ;;  %v305_v40 = vld [vmem:[%s12097_s29 + $0x4d0] sm:$0xff]  ;;  %v66_v62 = vld [vmem:[%s12099_s0 + $0x18] sm:$0xff] }
  0x54   :  { %509 = vmatmul.mubr.f32.gmra.mrb[12].mxu1 %v8272_v6  ;;  %v317_v41 = vld [vmem:[%s12097_s29 + $0x530] sm:$0xff] }
  0x55   :  { %6451 = vmatpush1.bf16.msra.mxu1 %v6450_v31  ;;  %514 = vmatprep.mubr.f32.mxu1 %v12008_v3  ;;  %v294_v31 = vld [vmem:[%s12097_s29 + $0x478] sm:$0xff]  ;;  %v329_v47 = vld [vmem:[%s12097_s29 + $0x590] sm:$0xff] }
  0x56   :  { %6453 = vmatprep.subr.bf16.mxu1 %v6452_v32  ;;  %770 = vmatmul.mubr.f32.gmra.mrb[10].mxu0 %v8241_v55  ;;  %v6522_v32 = vpack.c.bf16 %v269_v29, %v257_v28  ;;  %v6524_v33 = vpack.c.bf16 %v294_v31, %v282_v30  ;;  %v341_v48 = vld [vmem:[%s12097_s29 + $0x5f0] sm:$0xff] }
  0x57   :  { %775 = vmatprep.mubr.f32.mxu0 %v12008_v3  ;;  %v6534_v49 = vpack.c.bf16 %v341_v48, %v329_v47  ;;  %v65_v61 = vld [vmem:[%s12099_s0 + $0x10] sm:$0xff]  ;;  %v83_v47 = vld [vmem:[%s11990_s4 + $0x80] sm:$0xff]  ;;  %v84_v48 = vld [vmem:[%s11990_s4 + $0x88] sm:$0xff] }
  0x58   :  { %515 = vmatmul.mubr.f32.gmra.mrb[14].mxu1 %v8305_v19  ;;  %v61_v30 = vld [vmem:[%s11989_s1 + $0x10] sm:$0xff] }
  0x59   :  { %6455 = vmatpush1.bf16.msra.mxu1 %v6454_v37  ;;  %674 = vmatprep.mubr.f32.mxu1 %v12008_v3  ;;  %v318_v37 = vld [vmem:[%s12097_s29 + $0x538] sm:$0xff] }
  0x5a   :  { %6457 = vmatprep.subr.bf16.mxu1 %v6456_v38  ;;  %776 = vmatmul.mubr.f32.gmra.mrb[12].mxu0 %v8272_v6  ;;  %v6526_v38 = vpack.c.bf16 %v293_v35, %v281_v34  ;;  %v6528_v39 = vpack.c.bf16 %v318_v37, %v306_v36 }
  0x5b   :  { %781 = vmatprep.mubr.f32.mxu0 %v12008_v3 }
  0x5d   :  { %6459 = vmatpush1.bf16.msra.mxu1 %v6458_v44  ;;  %v342_v44 = vld [vmem:[%s12097_s29 + $0x5f8] sm:$0xff] }
  0x5e   :  { %6461 = vmatprep.subr.bf16.mxu1 %v6460_v45  ;;  %782 = vmatmul.mubr.f32.gmra.mrb[14].mxu0 %v8305_v19  ;;  %v6530_v45 = vpack.c.bf16 %v317_v41, %v305_v40  ;;  %v6532_v46 = vpack.c.bf16 %v342_v44, %v330_v43 }
  0x5f   :  { %954 = vmatprep.mubr.f32.mxu0 %v12008_v3 }
  0x61   :  { %6463 = vmatpush1.bf16.msra.mxu1 %v6462_v50 }
  0x62   :  { %6465 = vmatprep.subr.bf16.mxu1 %v6464_v51 }
  0x65   :  { %6467 = vmatpush1.bf16.msra.mxu1 %v6466_v57 }
  0x66   :  { %6469 = vmatprep.subr.bf16.mxu1 %v6468_v58 }
  0x69   :  { %6471 = vmatpush1.bf16.msra.mxu1 %v6470_v63 }
  0x6a   :  { %6505 = vmatprep.subr.bf16.mxu1 %v6504_v0 }
  0x6c   :  { %675 = vmatmul.mubr.f32.vlgmr.msra.gmra.mrb[16].mxu1 %v8210_v42 }
  0x6d   :  { %6507 = vmatpush1.bf16.msra.mxu1 %v6506_v7  ;;  %680 = vmatprep.mubr.f32.mxu1 %v12008_v3 }
  0x6e   :  { %6509 = vmatprep.subr.bf16.mxu1 %v6508_v8 }
  0x70   :  { %681 = vmatmul.mubr.f32.gmra.mrb[18].mxu1 %v8241_v55 }
  0x71   :  { %6511 = vmatpush1.bf16.msra.mxu1 %v6510_v13  ;;  %686 = vmatprep.mubr.f32.mxu1 %v12008_v3 }
  0x72   :  { %6513 = vmatprep.subr.bf16.mxu1 %v6512_v14 }
  0x74   :  { %687 = vmatmul.mubr.f32.gmra.mrb[20].mxu1 %v8272_v6 }
  0x75   :  { %6515 = vmatpush1.bf16.msra.mxu1 %v6514_v20  ;;  %692 = vmatprep.mubr.f32.mxu1 %v12008_v3 }
  0x76   :  { %6517 = vmatprep.subr.bf16.mxu1 %v6516_v21 }
  0x78   :  { %693 = vmatmul.mubr.f32.gmra.mrb[22].mxu1 %v8305_v19 }
  0x79   :  { %6519 = vmatpush1.bf16.msra.mxu1 %v6518_v26  ;;  %852 = vmatprep.mubr.f32.mxu1 %v12008_v3  ;;  %v59_v26 = vld [vmem:[%s11989_s1] sm:$0xff] }
  0x7a   :  { %6521 = vmatprep.subr.bf16.mxu1 %v6520_v27  ;;  %v60_v27 = vld [vmem:[%s11989_s1 + $0x8] sm:$0xff] }
  0x7d   :  { %6523 = vmatpush1.bf16.msra.mxu1 %v6522_v32  ;;  %v62_v32 = vld [vmem:[%s11989_s1 + $0x18] sm:$0xff] }
  0x7e   :  { %6525 = vmatprep.subr.bf16.mxu1 %v6524_v33 }
  0x81   :  { %6527 = vmatpush1.bf16.msra.mxu1 %v6526_v38 }
  0x82   :  { %6529 = vmatprep.subr.bf16.mxu1 %v6528_v39 }
  0x85   :  { %6531 = vmatpush1.bf16.msra.mxu1 %v6530_v45 }
  0x86   :  { %6533 = vmatprep.subr.bf16.mxu1 %v6532_v46 }
  0x89   :  { %6535 = vmatpush1.bf16.msra.mxu1 %v6534_v49  ;;  %v8703_v49 = vpack.c.bf16 %v84_v48, %v83_v47  ;;  %v119_v48 = vld [vmem:[%s11990_s4 + $0x1a0] sm:$0xff] }
  0x8b   :  { %12100 = vst [vmem:[#allocation2_spill] sm:$0xff] %v8703_v49 }
  0x8c   :  { %853 = vmatmul.mubr.f32.vlgmr.msra.gmra.mrb[24].mxu1 %v8210_v42 }
  0x8d   :  { %858 = vmatprep.mubr.f32.mxu1 %v12008_v3 }
  0x90   :  { %859 = vmatmul.mubr.f32.gmra.mrb[26].mxu1 %v8241_v55 }
  0x91   :  { %864 = vmatprep.mubr.f32.mxu1 %v12008_v3 }
  0x94   :  { %865 = vmatmul.mubr.f32.gmra.mrb[28].mxu1 %v8272_v6 }
  0x95   :  { %870 = vmatprep.mubr.f32.mxu1 %v12008_v3 }
  0x98   :  { %871 = vmatmul.mubr.f32.gmra.mrb[30].mxu1 %v8305_v19  ;;  %v63_v19 = vld [vmem:[%s12099_s0] sm:$0xff] }
  0x99   :  { %1055 = vmatprep.mubr.f32.mxu1 %v12008_v3 }
  0xff   :  { %v409_v50 = vpop.f32.mrb[0].mxu1 }
 0x100   :  { %v411_v51 = vpop.f32.mrb[1].mxu1 }
 0x103   :  { %v415_v52 = vpop.f32.mrb[2].mxu1 }
 0x104   :  { %v6538_v53 = vpack.c.bf16 %v415_v52, %v409_v50  ;;  %v417_v54 = vpop.f32.mrb[3].mxu1  ;;  %v67_v50 = vld [vmem:[%s11990_s4] sm:$0xff] }
 0x105   :  { %v6536_v42 = vpack.c.bf16 %v417_v54, %v411_v51  ;;  %v68_v51 = vld [vmem:[%s11990_s4 + $0x8] sm:$0xff]  ;;  %v86_v54 = vld [vmem:[%s11990_s4 + $0x98] sm:$0xff] }
 0x106   :  { %v8711_v52 = vpack.c.bf16 %v68_v51, %v67_v50  ;;  %v120_v50 = vld [vmem:[%s11990_s4 + $0x1a8] sm:$0xff] }
 0x107   :  { %6537 = vmatprep.subr.bf16.mxu0 %v6536_v42  ;;  %v421_v56 = vpop.f32.mrb[4].mxu1  ;;  %v8884_v51 = vpack.c.bf16 %v120_v50, %v119_v48 }
 0x108   :  { %6539 = vmatpush1.bf16.msra.mxu0 %v6538_v53  ;;  %v423_v55 = vpop.f32.mrb[5].mxu1  ;;  %v85_v53 = vld [vmem:[%s11990_s4 + $0x90] sm:$0xff] }
 0x109   :  { %v8721_v42 = vpack.c.bf16 %v86_v54, %v85_v53  ;;  %v103_v53 = vld [vmem:[%s11990_s4 + $0x120] sm:$0xff]  ;;  %v104_v54 = vld [vmem:[%s11990_s4 + $0x128] sm:$0xff] }
 0x10b   :  { %v427_v57 = vpop.f32.mrb[6].mxu1 }
 0x10c   :  { %v6542_v58 = vpack.c.bf16 %v427_v57, %v421_v56  ;;  %v429_v59 = vpop.f32.mrb[7].mxu1  ;;  %v69_v56 = vld [vmem:[%s11990_s4 + $0x10] sm:$0xff] }
 0x10d   :  { %v6540_v6 = vpack.c.bf16 %v429_v59, %v423_v55  ;;  %v70_v55 = vld [vmem:[%s11990_s4 + $0x18] sm:$0xff]  ;;  %v88_v59 = vld [vmem:[%s11990_s4 + $0xa8] sm:$0xff] }
 0x10e   :  { %v8729_v57 = vpack.c.bf16 %v70_v55, %v69_v56  ;;  %v8892_v56 = vpack.c.bf16 %v104_v54, %v103_v53  ;;  %v121_v55 = vld [vmem:[%s11990_s4 + $0x1b0] sm:$0xff] }
 0x10f   :  { %6541 = vmatprep.subr.bf16.mxu0 %v6540_v6 }
 0x110   :  { %6543 = vmatpush1.bf16.msra.mxu0 %v6542_v58  ;;  %v87_v58 = vld [vmem:[%s11990_s4 + $0xa0] sm:$0xff] }
 0x111   :  { %v8739_v6 = vpack.c.bf16 %v88_v59, %v87_v58  ;;  %v122_v58 = vld [vmem:[%s11990_s4 + $0x1b8] sm:$0xff] }
 0x112   :  { %v8902_v59 = vpack.c.bf16 %v122_v58, %v121_v55 }
 0x113   :  { %5755 = vmatmul.mubr.msk.f32.vlgmr.msra.gmra.mrb[0].mxu0 %vm877_vm0, %v63_v19 }
 0x114   :  { %960 = vmatprep.mubr.f32.mxu0 %v12008_v3 }
 0x117   :  { %5756 = vmatmul.mubr.msk.f32.gmra.mrb[2].mxu0 %vm877_vm0, %v64_v60 }
 0x118   :  { %966 = vmatprep.mubr.f32.mxu0 %v12008_v3 }
 0x11b   :  { %5757 = vmatmul.mubr.msk.f32.gmra.mrb[4].mxu0 %vm877_vm0, %v65_v61 }
 0x11c   :  { %972 = vmatprep.mubr.f32.mxu0 %v12008_v3 }
 0x11f   :  { %v498_v63 = vpop.f32.mrb[8].mxu1  ;;  %5758 = vmatmul.mubr.msk.f32.gmra.mrb[6].mxu0 %vm877_vm0, %v66_v62 }
 0x120   :  { %v500_v0 = vpop.f32.mrb[9].mxu1  ;;  %1043 = vmatprep.mubr.f32.mxu0 %v12008_v3 }
 0x123   :  { %v504_v1 = vpop.f32.mrb[10].mxu1 }
 0x124   :  { %v6546_v2 = vpack.c.bf16 %v504_v1, %v498_v63  ;;  %v506_v4 = vpop.f32.mrb[11].mxu1  ;;  %v90_v63 = vld [vmem:[%s11990_s4 + $0xb8] sm:$0xff]  ;;  %v73_v1 = vld [vmem:[%s11990_s4 + $0x30] sm:$0xff] }
 0x125   :  { %v6544_v5 = vpack.c.bf16 %v506_v4, %v500_v0  ;;  %v765_v7 = vpop.f32.mrb[8].mxu0 }
 0x126   :  { %v767_v8 = vpop.f32.mrb[9].mxu0 }
 0x127   :  { %6545 = vmatprep.subr.bf16.mxu0 %v6544_v5  ;;  %7768 = vmatprep.subr.bf16.mxu1 %v6544_v5  ;;  %v510_v9 = vpop.f32.mrb[12].mxu1  ;;  %v91_v5 = vld [vmem:[%s11990_s4 + $0xc0] sm:$0xff] }
 0x128   :  { %6547 = vmatpush1.bf16.msra.mxu0 %v6546_v2  ;;  %7770 = vmatpush1.bf16.msra.mxu1 %v6546_v2  ;;  %v512_v10 = vpop.f32.mrb[13].mxu1  ;;  %v74_v2 = vld [vmem:[%s11990_s4 + $0x38] sm:$0xff] }
 0x129   :  { %v771_v11 = vpop.f32.mrb[10].mxu0  ;;  %v8765_v4 = vpack.c.bf16 %v74_v2, %v73_v1  ;;  %v124_v1 = vld [vmem:[%s11990_s4 + $0x1c8] sm:$0xff] }
 0x12a   :  { %v6554_v12 = vpack.c.bf16 %v771_v11, %v765_v7  ;;  %v773_v13 = vpop.f32.mrb[11].mxu0  ;;  %v92_v7 = vld [vmem:[%s11990_s4 + $0xc8] sm:$0xff] }
 0x12b   :  { %v516_v14 = vpop.f32.mrb[14].mxu1  ;;  %v6552_v15 = vpack.c.bf16 %v773_v13, %v767_v8  ;;  %v8775_v8 = vpack.c.bf16 %v92_v7, %v91_v5  ;;  %v94_v13 = vld [vmem:[%s11990_s4 + $0xd8] sm:$0xff]  ;;  %v107_v5 = vld [vmem:[%s11990_s4 + $0x140] sm:$0xff]  ;;  %v108_v7 = vld [vmem:[%s11990_s4 + $0x148] sm:$0xff] }
 0x12c   :  { %v6550_v16 = vpack.c.bf16 %v516_v14, %v510_v9  ;;  %v518_v17 = vpop.f32.mrb[15].mxu1  ;;  %v75_v9 = vld [vmem:[%s11990_s4 + $0x40] sm:$0xff] }
 0x12d   :  { %v6548_v18 = vpack.c.bf16 %v518_v17, %v512_v10  ;;  %v777_v20 = vpop.f32.mrb[12].mxu0  ;;  %v76_v10 = vld [vmem:[%s11990_s4 + $0x48] sm:$0xff] }
 0x12e   :  { %v779_v21 = vpop.f32.mrb[13].mxu0  ;;  %v8783_v11 = vpack.c.bf16 %v76_v10, %v75_v9  ;;  %v8928_v9 = vpack.c.bf16 %v108_v7, %v107_v5  ;;  %v125_v10 = vld [vmem:[%s11990_s4 + $0x1d0] sm:$0xff] }
 0x12f   :  { %6549 = vmatprep.subr.bf16.mxu0 %v6548_v18  ;;  %7769 = vmatprep.subr.bf16.mxu1 %v6548_v18  ;;  %v95_v18 = vld [vmem:[%s11990_s4 + $0xe0] sm:$0xff] }
 0x130   :  { %6551 = vmatpush1.bf16.msra.mxu0 %v6550_v16  ;;  %7771 = vmatpush1.bf16.msra.mxu1 %v6550_v16  ;;  %v78_v16 = vld [vmem:[%s11990_s4 + $0x58] sm:$0xff] }
 0x131   :  { %v783_v22 = vpop.f32.mrb[14].mxu0  ;;  %6553 = vmatprep.subr.bf16.mxu0 %v6552_v15  ;;  %v77_v15 = vld [vmem:[%s11990_s4 + $0x50] sm:$0xff] }
 0x132   :  { %v6558_v23 = vpack.c.bf16 %v783_v22, %v777_v20  ;;  %v785_v24 = vpop.f32.mrb[15].mxu0  ;;  %v8801_v17 = vpack.c.bf16 %v78_v16, %v77_v15  ;;  %v96_v20 = vld [vmem:[%s11990_s4 + $0xe8] sm:$0xff]  ;;  %v79_v22 = vld [vmem:[%s11990_s4 + $0x60] sm:$0xff]  ;;  %v109_v15 = vld [vmem:[%s11990_s4 + $0x150] sm:$0xff] }
 0x133   :  { %5759 = vmatmul.mubr.msk.f32.vlgmr.msra.gmra.mrb[16].mxu0 %vm877_vm0, %v63_v19  ;;  %v6556_v25 = vpack.c.bf16 %v785_v24, %v779_v21  ;;  %5761 = vmatmul.mubr.msk.f32.vlgmr.msra.gmra.mrb[20].mxu1 %vm877_vm0, %v65_v61  ;;  %v71_v19 = vld [vmem:[%s11990_s4 + $0x20] sm:$0xff]  ;;  %v8811_v21 = vpack.c.bf16 %v96_v20, %v95_v18  ;;  %v110_v16 = vld [vmem:[%s11990_s4 + $0x158] sm:$0xff] }
 0x134   :  { %6555 = vmatpush1.bf16.msra.mxu0 %v6554_v12  ;;  %1049 = vmatprep.mubr.f32.mxu0 %v12008_v3  ;;  %v93_v12 = vld [vmem:[%s11990_s4 + $0xd0] sm:$0xff]  ;;  %12101 = vst [vmem:[#allocation3_spill] sm:$0xff] %v8801_v17  ;;  %v8946_v18 = vpack.c.bf16 %v110_v16, %v109_v15  ;;  %v127_v20 = vld [vmem:[%s11990_s4 + $0x1e0] sm:$0xff] }
 0x135   :  { %6557 = vmatprep.subr.bf16.mxu0 %v6556_v25  ;;  %1061 = vmatprep.mubr.f32.mxu1 %v12008_v3  ;;  %v8793_v14 = vpack.c.bf16 %v94_v13, %v93_v12  ;;  %12102 = vst [vmem:[#allocation4_spill] sm:$0xff] %v8811_v21  ;;  %v97_v25 = vld [vmem:[%s11990_s4 + $0xf0] sm:$0xff]  ;;  %v126_v12 = vld [vmem:[%s11990_s4 + $0x1d8] sm:$0xff] }
 0x136   :  { %v8938_v13 = vpack.c.bf16 %v126_v12, %v125_v10 }
 0x137   :  { %5760 = vmatmul.mubr.msk.f32.gmra.mrb[18].mxu0 %vm877_vm0, %v64_v60  ;;  %5762 = vmatmul.mubr.msk.f32.gmra.mrb[22].mxu1 %vm877_vm0, %v66_v62  ;;  %v72_v60 = vld [vmem:[%s11990_s4 + $0x28] sm:$0xff]  ;;  %v89_v62 = vld [vmem:[%s11990_s4 + $0xb0] sm:$0xff] }
 0x138   :  { %6559 = vmatpush1.bf16.msra.mxu0 %v6558_v23  ;;  %1160 = vmatprep.mubr.f32.mxu0 %v12008_v3  ;;  %v8747_v61 = vpack.c.bf16 %v72_v60, %v71_v19  ;;  %v8757_v0 = vpack.c.bf16 %v90_v63, %v89_v62  ;;  %v80_v23 = vld [vmem:[%s11990_s4 + $0x68] sm:$0xff]  ;;  %v105_v19 = vld [vmem:[%s11990_s4 + $0x130] sm:$0xff]  ;;  %v106_v60 = vld [vmem:[%s11990_s4 + $0x138] sm:$0xff] }
 0x139   :  { %1249 = vmatprep.mubr.f32.mxu1 %v12008_v3  ;;  %6569 = vmatprep.subr.bf16.mxu0 %v8703_v49  ;;  %v8819_v24 = vpack.c.bf16 %v80_v23, %v79_v22  ;;  %v8910_v62 = vpack.c.bf16 %v106_v60, %v105_v19  ;;  %v123_v63 = vld [vmem:[%s11990_s4 + $0x1c0] sm:$0xff]  ;;  %v128_v22 = vld [vmem:[%s11990_s4 + $0x1e8] sm:$0xff] }
 0x13a   :  { %v8920_v2 = vpack.c.bf16 %v124_v1, %v123_v63  ;;  %v8956_v23 = vpack.c.bf16 %v128_v22, %v127_v20 }
 0x13b   :  { %5763 = vmatmul.mubr.msk.f32.vlgmr.msra.gmra.mrb[0].mxu0 %vm877_vm0, %v59_v26  ;;  %12103 = vst [vmem:[#allocation5_spill] sm:$0xff] %v8819_v24 }
 0x13c   :  { %1166 = vmatprep.mubr.f32.mxu0 %v12008_v3  ;;  %6571 = vmatpush3.bf16.msra.mxu0 %v8711_v52 }
 0x13d   :  { %6573 = vmatprep.subr.bf16.mxu0 %v8721_v42 }
 0x13f   :  { %v8671_v28 = vpop.f32.mrb[16].mxu1  ;;  %5764 = vmatmul.mubr.msk.f32.gmra.mrb[2].mxu0 %vm877_vm0, %v60_v27 }
 0x140   :  { %v8674_v29 = vpop.f32.mrb[17].mxu1  ;;  %1172 = vmatprep.mubr.f32.mxu0 %v12008_v3  ;;  %6575 = vmatpush3.bf16.msra.mxu0 %v8729_v57 }
 0x141   :  { %6577 = vmatprep.subr.bf16.mxu0 %v8739_v6 }
 0x143   :  { %5765 = vmatmul.mubr.msk.f32.gmra.mrb[4].mxu0 %vm877_vm0, %v61_v30  ;;  %v8681_v31 = vpop.f32.mrb[18].mxu1 }
 0x144   :  { %1178 = vmatprep.mubr.f32.mxu0 %v12008_v3  ;;  %v8687_v33 = vpop.f32.mrb[19].mxu1  ;;  %6579 = vmatpush3.bf16.msra.mxu0 %v8747_v61 }
 0x145   :  { %6581 = vmatprep.subr.bf16.mxu0 %v8757_v0 }
 0x147   :  { %5766 = vmatmul.mubr.msk.f32.gmra.mrb[6].mxu0 %vm877_vm0, %v62_v32 }
 0x148   :  { %6583 = vmatpush3.bf16.msra.mxu0 %v8765_v4 }
 0x149   :  { %6585 = vmatprep.subr.bf16.mxu0 %v8775_v8 }
 0x14c   :  { %6587 = vmatpush3.bf16.msra.mxu0 %v8783_v11 }
 0x14d   :  { %6589 = vmatprep.subr.bf16.mxu0 %v8793_v14 }
 0x150   :  { %6591 = vmatpush3.bf16.msra.mxu0 %v8801_v17 }
 0x151   :  { %6593 = vmatprep.subr.bf16.mxu0 %v8811_v21 }
 0x154   :  { %6595 = vmatpush3.bf16.msra.mxu0 %v8819_v24 }
 0x15f   :  { %v854_v34 = vpop.f32.mrb[24].mxu1 }
 0x160   :  { %v856_v35 = vpop.f32.mrb[25].mxu1 }
 0x163   :  { %v860_v36 = vpop.f32.mrb[26].mxu1 }
 0x164   :  { %v6562_v37 = vpack.c.bf16 %v860_v36, %v854_v34  ;;  %v862_v38 = vpop.f32.mrb[27].mxu1  ;;  %v116_v36 = vld [vmem:[%s11990_s4 + $0x188] sm:$0xff] }
 0x165   :  { %v6560_v39 = vpack.c.bf16 %v862_v38, %v856_v35  ;;  %v115_v35 = vld [vmem:[%s11990_s4 + $0x180] sm:$0xff] }
 0x166   :  { %v99_v38 = vld [vmem:[%s11990_s4 + $0x100] sm:$0xff] }
 0x167   :  { %v866_v40 = vpop.f32.mrb[28].mxu1  ;;  %6561 = vmatprep.subr.bf16.mxu1 %v6560_v39  ;;  %v100_v39 = vld [vmem:[%s11990_s4 + $0x108] sm:$0xff] }
 0x168   :  { %v868_v41 = vpop.f32.mrb[29].mxu1  ;;  %6563 = vmatpush1.bf16.msra.mxu1 %v6562_v37  ;;  %v8848_v37 = vpack.c.bf16 %v116_v36, %v115_v35  ;;  %v130_v35 = vld [vmem:[%s11990_s4 + $0x1f8] sm:$0xff] }
 0x16a   :  { %12106 = vst [vmem:[#allocation8_spill] sm:$0xff] %v8848_v37 }
 0x16b   :  { %v872_v43 = vpop.f32.mrb[30].mxu1 }
 0x16c   :  { %v6566_v44 = vpack.c.bf16 %v872_v43, %v866_v40  ;;  %v874_v45 = vpop.f32.mrb[31].mxu1  ;;  %v8856_v40 = vpack.c.bf16 %v100_v39, %v99_v38  ;;  %v118_v43 = vld [vmem:[%s11990_s4 + $0x198] sm:$0xff]  ;;  %v113_v38 = vld [vmem:[%s11990_s4 + $0x170] sm:$0xff] }
 0x16d   :  { %v6564_v46 = vpack.c.bf16 %v874_v45, %v868_v41  ;;  %v117_v41 = vld [vmem:[%s11990_s4 + $0x190] sm:$0xff]  ;;  %v114_v39 = vld [vmem:[%s11990_s4 + $0x178] sm:$0xff] }
 0x16e   :  { %v101_v45 = vld [vmem:[%s11990_s4 + $0x110] sm:$0xff] }
 0x16f   :  { %6565 = vmatprep.subr.bf16.mxu1 %v6564_v46  ;;  %v102_v46 = vld [vmem:[%s11990_s4 + $0x118] sm:$0xff] }
 0x170   :  { %6567 = vmatpush1.bf16.msra.mxu1 %v6566_v44  ;;  %v8866_v44 = vpack.c.bf16 %v118_v43, %v117_v41  ;;  %v8874_v47 = vpack.c.bf16 %v102_v46, %v101_v45  ;;  %v8982_v41 = vpack.c.bf16 %v114_v39, %v113_v38 }
 0x171   :  { %6601 = vmatprep.subr.bf16.mxu1 %v8848_v37 }
 0x172   :  { %12109 = vst [vmem:[#allocation11_spill] sm:$0xff] %v8982_v41 }
 0x173   :  { %5767 = vmatmul.mubr.msk.f32.vlgmr.msra.gmra.mrb[32].mxu1 %vm877_vm0, %v59_v26  ;;  %v98_v26 = vld [vmem:[%s11990_s4 + $0xf8] sm:$0xff] }
 0x174   :  { %1255 = vmatprep.mubr.f32.mxu1 %v12008_v3  ;;  %6603 = vmatpush3.bf16.msra.mxu1 %v8856_v40 }
 0x175   :  { %6605 = vmatprep.subr.bf16.mxu1 %v8866_v44 }
 0x177   :  { %5768 = vmatmul.mubr.msk.f32.gmra.mrb[34].mxu1 %vm877_vm0, %v60_v27  ;;  %v8829_v27 = vpack.c.bf16 %v98_v26, %v97_v25  ;;  %v111_v25 = vld [vmem:[%s11990_s4 + $0x160] sm:$0xff]  ;;  %v112_v26 = vld [vmem:[%s11990_s4 + $0x168] sm:$0xff] }
 0x178   :  { %1261 = vmatprep.mubr.f32.mxu1 %v12008_v3  ;;  %6607 = vmatpush3.bf16.msra.mxu1 %v8874_v47 }
 0x179   :  { %12104 = vst [vmem:[#allocation6_spill] sm:$0xff] %v8829_v27  ;;  %6597 = vmatprep.subr.bf16.mxu0 %v8829_v27  ;;  %6609 = vmatprep.subr.bf16.mxu1 %v8884_v51 }
 0x17b   :  { %5769 = vmatmul.mubr.msk.f32.gmra.mrb[20].mxu1 %vm877_vm0, %v61_v30  ;;  %v81_v30 = vld [vmem:[%s11990_s4 + $0x70] sm:$0xff] }
 0x17c   :  { %1267 = vmatprep.mubr.f32.mxu1 %v12008_v3  ;;  %6611 = vmatpush3.bf16.msra.mxu1 %v8892_v56 }
 0x17d   :  { %6613 = vmatprep.subr.bf16.mxu1 %v8902_v59 }
 0x17f   :  { %5770 = vmatmul.mubr.msk.f32.gmra.mrb[22].mxu1 %vm877_vm0, %v62_v32  ;;  %v82_v32 = vld [vmem:[%s11990_s4 + $0x78] sm:$0xff] }
 0x180   :  { %v8837_v34 = vpack.c.bf16 %v82_v32, %v81_v30  ;;  %6615 = vmatpush3.bf16.msra.mxu1 %v8910_v62  ;;  %v8964_v30 = vpack.c.bf16 %v112_v26, %v111_v25  ;;  %v129_v32 = vld [vmem:[%s11990_s4 + $0x1f0] sm:$0xff] }
 0x181   :  { %6617 = vmatprep.subr.bf16.mxu1 %v8920_v2  ;;  %v8974_v36 = vpack.c.bf16 %v130_v35, %v129_v32 }
 0x182   :  { %12105 = vst [vmem:[#allocation7_spill] sm:$0xff] %v8837_v34  ;;  %6599 = vmatpush3.bf16.msra.mxu0 %v8837_v34  ;;  %12107 = vst [vmem:[#allocation9_spill] sm:$0xff] %v8964_v30 }
 0x183   :  { %6633 = vmatprep.subr.bf16.mxu0 %v8703_v49  ;;  %12108 = vst [vmem:[#allocation10_spill] sm:$0xff] %v8974_v36 }
 0x184   :  { %6619 = vmatpush3.bf16.msra.mxu1 %v8928_v9 }
 0x185   :  { %6621 = vmatprep.subr.bf16.mxu1 %v8938_v13 }
 0x188   :  { %6623 = vmatpush3.bf16.msra.mxu1 %v8946_v18 }
 0x189   :  { %6625 = vmatprep.subr.bf16.mxu1 %v8956_v23 }
 0x18c   :  { %6627 = vmatpush3.bf16.msra.mxu1 %v8964_v30 }
 0x18d   :  { %6629 = vmatprep.subr.bf16.mxu1 %v8974_v36 }
 0x190   :  { %6631 = vmatpush3.bf16.msra.mxu1 %v8982_v41 }
 0x191   :  { %6665 = vmatprep.subr.bf16.mxu1 %v8848_v37 }
 0x206   :  { %v1045_v43 = vpop.f32.mrb[16].mxu0 }
 0x207   :  { %v8988_v45 = vadd.f32 %v1045_v43, %v8671_v28  ;;  %v1047_v46 = vpop.f32.mrb[17].mxu0 }
 0x208   :  { %v8991_v48 = vadd.f32 %v1047_v46, %v8674_v29 }
 0x20a   :  { %v1051_v50 = vpop.f32.mrb[18].mxu0 }
 0x20b   :  { %v8994_v53 = vadd.f32 %v1051_v50, %v8681_v31  ;;  %v1053_v54 = vpop.f32.mrb[19].mxu0 }
 0x20c   :  { %v8997_v55 = vadd.f32 %v1053_v54, %v8687_v33 }
 0x20e   :  { %v8999_v58 = vpop.f32.mrb[0].mxu0 }
 0x20f   :  { %v9001_v19 = vpop.f32.mrb[1].mxu0  ;;  %v1328_v28 = vmul.f32 %v8999_v58, %v8999_v58 }
 0x210   :  { %v1329_v33 = vmul.f32 %v9001_v19, %v9001_v19 }
 0x212   :  { %v9003_v60 = vpop.f32.mrb[2].mxu0 }
 0x213   :  { %v1292_v29 = vadd.f32 %v9003_v60, %v8999_v58  ;;  %v1332_v31 = vmul.f32 %v9003_v60, %v9003_v60  ;;  %v9011_v63 = vpop.f32.mrb[3].mxu0 }
 0x214   :  { %v1301_v1 = vadd.f32 %v9011_v63, %v9001_v19  ;;  %v1333_v5 = vmul.f32 %v9011_v63, %v9011_v63 }
 0x215   :  { %v1344_v7 = vadd.f32 %v1332_v31, %v1328_v28 }
 0x216   :  { %v1353_v10 = vadd.f32 %v1333_v5, %v1329_v33  ;;  %v9019_v12 = vpop.f32.mrb[4].mxu0 }
 0x217   :  { %12110 = vst [vmem:[#allocation12_spill] sm:$0xff] %v9019_v12  ;;  %v1293_v15 = vadd.f32 %v1292_v29, %v9019_v12  ;;  %v1336_v16 = vmul.f32 %v9019_v12, %v9019_v12  ;;  %v9024_v20 = vpop.f32.mrb[5].mxu0 }
 0x218   :  { %12111 = vst [vmem:[#allocation13_spill] sm:$0xff] %v9024_v20  ;;  %v1302_v22 = vadd.f32 %v1301_v1, %v9024_v20  ;;  %v1337_v25 = vmul.f32 %v9024_v20, %v9024_v20 }
 0x219   :  { %v1345_v26 = vadd.f32 %v1344_v7, %v1336_v16 }
 0x21a   :  { %v1354_v32 = vadd.f32 %v1353_v10, %v1337_v25  ;;  %v9029_v35 = vpop.f32.mrb[6].mxu0 }
 0x21b   :  { %12112 = vst [vmem:[#allocation14_spill] sm:$0xff] %v9029_v35  ;;  %v1294_v38 = vadd.f32 %v1293_v15, %v9029_v35  ;;  %v1340_v39 = vmul.f32 %v9029_v35, %v9029_v35  ;;  %v9034_v43 = vpop.f32.mrb[7].mxu0 }
 0x21c   :  { %12113 = vst [vmem:[#allocation15_spill] sm:$0xff] %v9034_v43  ;;  %v1303_v46 = vadd.f32 %v1302_v22, %v9034_v43  ;;  %v1341_v50 = vmul.f32 %v9034_v43, %v9034_v43 }
 0x21d   :  { %v1295_v54 = vrot.slane %v1294_v38, 4  ;;  %v1346_v28 = vadd.f32 %v1345_v26, %v1340_v39 }
 0x21e   :  { %v1304_v29 = vrot.slane %v1303_v46, 4  ;;  %v1355_v31 = vadd.f32 %v1354_v32, %v1341_v50 }
 0x21f   :  { %v1296_v33 = vadd.f32 %v1295_v54, %v1294_v38  ;;  %v1347_v26 = vrot.slane %v1346_v28, 4 }
 0x220   :  { %v1305_v1 = vadd.f32 %v1304_v29, %v1303_v46  ;;  %v1356_v5 = vrot.slane %v1355_v31, 4 }
 0x221   :  { %v1297_v7 = vrot.slane %v1296_v33, 2 }
 0x222   :  { %v1306_v10 = vrot.slane %v1305_v1, 2  ;;  %v1357_v15 = vadd.f32 %v1356_v5, %v1355_v31 }
 0x223   :  { %v1298_v16 = vadd.f32 %v1297_v7, %v1296_v33 }
 0x224   :  { %v1307_v25 = vadd.f32 %v1306_v10, %v1305_v1  ;;  %v1358_v3 = vrot.slane %v1357_v15, 2 }
 0x225   :  { %v1299_v37 = vrot.slane %v1298_v16, 1 }
 0x226   :  { %v1308_v49 = vrot.slane %v1307_v25, 1  ;;  %v1359_v35 = vadd.f32 %v1358_v3, %v1357_v15  ;;  %v1348_v3 = vadd.f32 %v1347_v26, %v1346_v28  ;;  %v12114_v28 = vmov 0.0  }
 0x227   :  { %v1300_v20 = vadd.f32 %v1299_v37, %v1298_v16 }
 0x228   :  { %v1309_v22 = vadd.f32 %v1308_v49, %v1307_v25  ;;  %v1360_v12 = vrot.slane %v1359_v35, 1  ;;  %v1349_v49 = vrot.slane %v1348_v3, 2 }
 0x22a   :  { %1444 = vmatprep.mubr.f32.mxu0 %v1309_v22  ;;  %v1361_v43 = vadd.f32 %v1360_v12, %v1359_v35  ;;  %v1350_v37 = vadd.f32 %v1349_v49, %v1348_v3 }
 0x22b   :  { %1445 = vmatmul.mubr.f32.vlgmr.msra.gmra.mrb[20].mxu0 %v1300_v20 }
 0x22c   :  { %6635 = vmatpush3.bf16.msra.mxu0 %v8711_v52  ;;  %1585 = vmatprep.mubr.f32.mxu0 %v1361_v43  ;;  %v1351_v12 = vrot.slane %v1350_v37, 1 }
 0x22d   :  { %6637 = vmatprep.subr.bf16.mxu0 %v8721_v42 }
 0x22e   :  { %v1352_v39 = vadd.f32 %v1351_v12, %v1350_v37 }
 0x230   :  { %6639 = vmatpush3.bf16.msra.mxu0 %v8729_v57 }
 0x231   :  { %6641 = vmatprep.subr.bf16.mxu0 %v8739_v6 }
 0x234   :  { %6643 = vmatpush3.bf16.msra.mxu0 %v8747_v61 }
 0x235   :  { %6645 = vmatprep.subr.bf16.mxu0 %v8757_v0 }
 0x238   :  { %6647 = vmatpush3.bf16.msra.mxu0 %v8765_v4 }
 0x239   :  { %6649 = vmatprep.subr.bf16.mxu0 %v8775_v8 }
 0x23c   :  { %6651 = vmatpush3.bf16.msra.mxu0 %v8783_v11 }
 0x23d   :  { %6653 = vmatprep.subr.bf16.mxu0 %v8793_v14 }
 0x240   :  { %6655 = vmatpush3.bf16.msra.mxu0 %v8801_v17 }
 0x241   :  { %6657 = vmatprep.subr.bf16.mxu0 %v8811_v21 }
 0x244   :  { %6659 = vmatpush3.bf16.msra.mxu0 %v8819_v24 }
 0x245   :  { %6661 = vmatprep.subr.bf16.mxu0 %v8829_v27 }
 0x246   :  { %v1251_v20 = vpop.f32.mrb[32].mxu1 }
 0x247   :  { %v9054_v32 = vadd.f32 %v1251_v20, %v8988_v45  ;;  %v1253_v35 = vpop.f32.mrb[33].mxu1 }
 0x248   :  { %v9057_v38 = vadd.f32 %v1253_v35, %v8991_v48  ;;  %6663 = vmatpush3.bf16.msra.mxu0 %v8837_v34 }
 0x249   :  { %v1330_v45 = vmul.f32 %v9054_v32, %v9054_v32 }
 0x24a   :  { %v1257_v43 = vpop.f32.mrb[34].mxu1 }
 0x24b   :  { %v9061_v46 = vadd.f32 %v1257_v43, %v8994_v53  ;;  %1586 = vmatmul.mubr.f32.vlgmr.msra.gmra.mrb[22].mxu0 %v1352_v39  ;;  %v1259_v50 = vpop.f32.mrb[35].mxu1  ;;  %v1331_v53 = vmul.f32 %v9057_v38, %v9057_v38 }
 0x24c   :  { %v9064_v54 = vadd.f32 %v1259_v50, %v8997_v55  ;;  %1733 = vmatprep.mubr.f32.mxu0 %v12114_v28 }
 0x24d   :  { %v1310_v48 = vadd.f32 %v9061_v46, %v9054_v32  ;;  %v1334_v29 = vmul.f32 %v9061_v46, %v9061_v46 }
 0x24e   :  { %v1319_v31 = vadd.f32 %v9064_v54, %v9057_v38  ;;  %v1335_v55 = vmul.f32 %v9064_v54, %v9064_v54  ;;  %v9079_v33 = vpop.f32.mrb[20].mxu1 }
 0x24f   :  { %v1362_v1 = vadd.f32 %v1334_v29, %v1330_v45  ;;  %v1338_v5 = vmul.f32 %v9079_v33, %v9079_v33  ;;  %v9083_v7 = vpop.f32.mrb[21].mxu1  ;;  %v1311_v16 = vadd.f32 %v1310_v48, %v9079_v33 }
 0x250   :  { %v1371_v10 = vadd.f32 %v1335_v55, %v1331_v53  ;;  %v1339_v15 = vmul.f32 %v9083_v7, %v9083_v7  ;;  %v1320_v25 = vadd.f32 %v1319_v31, %v9083_v7 }
 0x251   :  { %v1363_v26 = vadd.f32 %v1362_v1, %v1338_v5 }
 0x252   :  { %v9089_v22 = vpop.f32.mrb[22].mxu1  ;;  %v1372_v12 = vadd.f32 %v1371_v10, %v1339_v15 }
 0x253   :  { %v1312_v3 = vadd.f32 %v1311_v16, %v9089_v22  ;;  %v1342_v49 = vmul.f32 %v9089_v22, %v9089_v22  ;;  %v9094_v37 = vpop.f32.mrb[23].mxu1 }
 0x254   :  { %v1321_v20 = vadd.f32 %v1320_v25, %v9094_v37  ;;  %v1343_v35 = vmul.f32 %v9094_v37, %v9094_v37 }
 0x255   :  { %v1313_v39 = vrot.slane %v1312_v3, 4  ;;  %v1364_v43 = vadd.f32 %v1363_v26, %v1342_v49  ;;  %v136_v49 = vld [vmem:[%s11991_s5 + $0x28] sm:$0xff] }
 0x256   :  { %v1322_v50 = vrot.slane %v1321_v20, 4  ;;  %v1373_v45 = vadd.f32 %v1372_v12, %v1343_v35  ;;  %v134_v12 = vld [vmem:[%s11991_s5 + $0x18] sm:$0xff] }
 0x257   :  { %v1314_v48 = vadd.f32 %v1313_v39, %v1312_v3  ;;  %v1365_v26 = vrot.slane %v1364_v43, 4  ;;  %v132_v3 = vld [vmem:[%s11991_s5 + $0x8] sm:$0xff]  ;;  %v138_v35 = vld [vmem:[%s11991_s5 + $0x38] sm:$0xff]  ;;  %v131_v39 = vld [vmem:[%s11991_s5] sm:$0xff] }
 0x258   :  { %v1323_v29 = vadd.f32 %v1322_v50, %v1321_v20  ;;  %v1374_v53 = vrot.slane %v1373_v45, 4  ;;  %v9124_v20 = vpack.c.bf16 %v136_v49, %v132_v3  ;;  %v9135_v50 = vpack.c.bf16 %v138_v35, %v134_v12 }
 0x259   :  { %v1315_v31 = vrot.slane %v1314_v48, 2 }
 0x25a   :  { %v1324_v55 = vrot.slane %v1323_v29, 2  ;;  %v1375_v1 = vadd.f32 %v1374_v53, %v1373_v45  ;;  %12115 = vst [vmem:[#allocation16_spill] sm:$0xff] %v9124_v20  ;;  %12116 = vst [vmem:[#allocation17_spill] sm:$0xff] %v9135_v50  ;;  %v140_v53 = vld [vmem:[%s11991_s5 + $0x48] sm:$0xff]  ;;  %6697 = vmatprep.subr.bf16.mxu0 %v9124_v20 }
 0x25b   :  { %v1316_v5 = vadd.f32 %v1315_v31, %v1314_v48  ;;  %v133_v48 = vld [vmem:[%s11991_s5 + $0x10] sm:$0xff] }
 0x25c   :  { %v1325_v16 = vadd.f32 %v1324_v55, %v1323_v29  ;;  %v1376_v34 = vrot.slane %v1375_v1, 2  ;;  %v137_v29 = vld [vmem:[%s11991_s5 + $0x30] sm:$0xff]  ;;  %v144_v55 = vld [vmem:[%s11991_s5 + $0x68] sm:$0xff] }
 0x25d   :  { %v1317_v27 = vrot.slane %v1316_v5, 1  ;;  %v9149_v31 = vpack.c.bf16 %v137_v29, %v133_v48 }
 0x25e   :  { %v1326_v10 = vrot.slane %v1325_v16, 1  ;;  %v1377_v15 = vadd.f32 %v1376_v34, %v1375_v1  ;;  %v142_v1 = vld [vmem:[%s11991_s5 + $0x58] sm:$0xff] }
 0x25f   :  { %v1318_v21 = vadd.f32 %v1317_v27, %v1316_v5  ;;  %v1366_v27 = vadd.f32 %v1365_v26, %v1364_v43  ;;  %v135_v43 = vld [vmem:[%s11991_s5 + $0x20] sm:$0xff]  ;;  %12118 = vst [vmem:[#allocation19_spill] sm:$0xff] %v9149_v31  ;;  %v146_v5 = vld [vmem:[%s11991_s5 + $0x78] sm:$0xff]  ;;  %v141_v26 = vld [vmem:[%s11991_s5 + $0x50] sm:$0xff] }
 0x260   :  { %v1327_v25 = vadd.f32 %v1326_v10, %v1325_v16  ;;  %v1378_v24 = vrot.slane %v1377_v15, 1  ;;  %v9137_v45 = vpack.c.bf16 %v135_v43, %v131_v39  ;;  %v9162_v16 = vpack.c.bf16 %v144_v55, %v140_v53 }
 0x261   :  { %v9164_v10 = vpack.c.bf16 %v146_v5, %v142_v1 }
 0x262   :  { %1514 = vmatprep.mubr.f32.mxu1 %v1327_v25  ;;  %v1379_v17 = vadd.f32 %v1378_v24, %v1377_v15  ;;  %12117 = vst [vmem:[#allocation18_spill] sm:$0xff] %v9137_v45  ;;  %6699 = vmatpush1.bf16.msra.mxu0 %v9137_v45  ;;  %12119 = vst [vmem:[#allocation20_spill] sm:$0xff] %v9162_v16  ;;  %v139_v15 = vld [vmem:[%s11991_s5 + $0x40] sm:$0xff] }
 0x263   :  { %1515 = vmatmul.mubr.f32.vlgmr.msra.gmra.mrb[36].mxu1 %v1318_v21  ;;  %v1367_v21 = vrot.slane %v1366_v27, 2  ;;  %12120 = vst [vmem:[#allocation21_spill] sm:$0xff] %v9164_v10  ;;  %v143_v25 = vld [vmem:[%s11991_s5 + $0x60] sm:$0xff]  ;;  %6701 = vmatprep.subr.bf16.mxu0 %v9162_v16 }
 0x264   :  { %6667 = vmatpush3.bf16.msra.mxu1 %v8856_v40  ;;  %1655 = vmatprep.mubr.f32.mxu1 %v1379_v17 }
 0x265   :  { %6669 = vmatprep.subr.bf16.mxu1 %v8866_v44  ;;  %v1368_v17 = vadd.f32 %v1367_v21, %v1366_v27  ;;  %v9176_v27 = vpack.c.bf16 %v143_v25, %v139_v15  ;;  %v145_v21 = vld [vmem:[%s11991_s5 + $0x70] sm:$0xff] }
 0x267   :  { %v1369_v24 = vrot.slane %v1368_v17, 1  ;;  %12121 = vst [vmem:[#allocation22_spill] sm:$0xff] %v9176_v27  ;;  %6703 = vmatpush1.bf16.msra.mxu0 %v9176_v27 }
 0x268   :  { %6671 = vmatpush3.bf16.msra.mxu1 %v8874_v47  ;;  %6713 = vmatprep.subr.bf16.mxu0 %v9124_v20 }
 0x269   :  { %6673 = vmatprep.subr.bf16.mxu1 %v8884_v51  ;;  %v1370_v34 = vadd.f32 %v1369_v24, %v1368_v17  ;;  %v9183_v17 = vpack.c.bf16 %v145_v21, %v141_v26 }
 0x26b   :  { %12122 = vst [vmem:[#allocation23_spill] sm:$0xff] %v9183_v17 }
 0x26c   :  { %6675 = vmatpush3.bf16.msra.mxu1 %v8892_v56 }
 0x26d   :  { %6677 = vmatprep.subr.bf16.mxu1 %v8902_v59 }
 0x270   :  { %6679 = vmatpush3.bf16.msra.mxu1 %v8910_v62 }
 0x271   :  { %6681 = vmatprep.subr.bf16.mxu1 %v8920_v2 }
 0x274   :  { %6683 = vmatpush3.bf16.msra.mxu1 %v8928_v9 }
 0x275   :  { %6685 = vmatprep.subr.bf16.mxu1 %v8938_v13 }
 0x278   :  { %6687 = vmatpush3.bf16.msra.mxu1 %v8946_v18 }
 0x279   :  { %6689 = vmatprep.subr.bf16.mxu1 %v8956_v23 }
 0x27c   :  { %6691 = vmatpush3.bf16.msra.mxu1 %v8964_v30 }
 0x27d   :  { %6693 = vmatprep.subr.bf16.mxu1 %v8974_v36  ;;  %v12130_v36 = vld [vmem:[#allocation15_spill] sm:$0xff] }
 0x280   :  { %6695 = vmatpush3.bf16.msra.mxu1 %v8982_v41 }
 0x281   :  { %6705 = vmatprep.subr.bf16.mxu1 %v9135_v50 }
 0x283   :  { %1656 = vmatmul.mubr.f32.vlgmr.msra.gmra.mrb[38].mxu1 %v1370_v34 }
 0x284   :  { %1804 = vmatprep.mubr.f32.mxu1 %v12114_v28  ;;  %6707 = vmatpush1.bf16.msra.mxu1 %v9149_v31 }
 0x285   :  { %6709 = vmatprep.subr.bf16.mxu1 %v9164_v10 }
 0x288   :  { %6711 = vmatpush1.bf16.msra.mxu1 %v9183_v17 }
 0x289   :  { %6721 = vmatprep.subr.bf16.mxu1 %v9135_v50  ;;  %v12129_v50 = vld [vmem:[#allocation12_spill] sm:$0xff] }
 0x2fe   :  { %v5824_v24 = vpop.f32.mrb[20].mxu0 }
 0x2ff   :  { %v5825_v34 = vpop.f32.mrb[21].mxu0 }
 0x300   :  { %v5826_v3 = vadd.f32 %v5825_v34, %v5824_v24  ;;  %v2111_v24 = vld [vmem:[%s11992_s12 + $0x8] sm:$0xff] }
 0x31e   :  { %v5894_v49 = vpop.f32.mrb[22].mxu0 }
 0x31f   :  { %v5895_v12 = vpop.f32.mrb[23].mxu0 }
 0x320   :  { %v5896_v35 = vadd.f32 %v5895_v12, %v5894_v49  ;;  %v2115_v49 = vld [vmem:[%s11992_s12 + $0x28] sm:$0xff]  ;;  %v2117_v12 = vld [vmem:[%s11992_s12 + $0x38] sm:$0xff] }
 0x336   :  { %v5859_v39 = vpop.f32.mrb[36].mxu1 }
 0x337   :  { %v5860_v43 = vpop.f32.mrb[37].mxu1 }
 0x338   :  { %v5861_v48 = vadd.f32 %v5860_v43, %v5859_v39  ;;  %v6728_v39 = vpack.c.bf16 %v2115_v49, %v2111_v24  ;;  %v2122_v24 = vld [vmem:[%s11992_s12 + $0x60] sm:$0xff] }
 0x33a   :  { %v1517_v29 = vadd.f32 %v5861_v48, %v5826_v3  ;;  %v2113_v3 = vld [vmem:[%s11992_s12 + $0x18] sm:$0xff]  ;;  %v2112_v48 = vld [vmem:[%s11992_s12 + $0x10] sm:$0xff] }
 0x33b   :  { %v6856_v43 = vpack.c.bf16 %v2117_v12, %v2113_v3  ;;  %v2120_v3 = vld [vmem:[%s11992_s12 + $0x50] sm:$0xff] }
 0x33c   :  { %v1520_v1 = vmul.f32 0.001953125, %v1517_v29  ;;  %v2116_v29 = vld [vmem:[%s11992_s12 + $0x30] sm:$0xff] }
 0x33d   :  { %v2124_v12 = vld [vmem:[%s11992_s12 + $0x70] sm:$0xff] }
 0x33e   :  { %v1662_v26 = vmul.f32 %v1520_v1, %v1520_v1 }
 0x356   :  { %v5929_v53 = vpop.f32.mrb[38].mxu1 }
 0x357   :  { %v5930_v55 = vpop.f32.mrb[39].mxu1 }
 0x358   :  { %v5931_v5 = vadd.f32 %v5930_v55, %v5929_v53  ;;  %v2119_v53 = vld [vmem:[%s11992_s12 + $0x48] sm:$0xff] }
 0x359   :  { %v2123_v55 = vld [vmem:[%s11992_s12 + $0x68] sm:$0xff] }
 0x35a   :  { %v1658_v15 = vadd.f32 %v5931_v5, %v5896_v35  ;;  %v2114_v35 = vld [vmem:[%s11992_s12 + $0x20] sm:$0xff]  ;;  %v2121_v5 = vld [vmem:[%s11992_s12 + $0x58] sm:$0xff] }
 0x35c   :  { %v1661_v25 = vmul.f32 0.001953125, %v1658_v15  ;;  %v2125_v15 = vld [vmem:[%s11992_s12 + $0x78] sm:$0xff] }
 0x35d   :  { %v6860_v49 = vpack.c.bf16 %v2125_v15, %v2121_v5 }
 0x35e   :  { %v1663_v21 = vsub.f32 %v1661_v25, %v1662_v26  ;;  %v6858_v26 = vpack.c.bf16 %v2116_v29, %v2112_v48  ;;  %v6862_v29 = vpack.c.bf16 %v2124_v12, %v2120_v3  ;;  %v2134_v12 = vld [vmem:[%s11992_s12 + $0xc0] sm:$0xff] }
 0x360   :  { %v1664_v20 = vadd.f32 1e-05, %v1663_v21  ;;  %v2118_v21 = vld [vmem:[%s11992_s12 + $0x40] sm:$0xff] }
 0x361   :  { %v6734_v48 = vpack.c.bf16 %v2122_v24, %v2118_v21  ;;  %v2139_v21 = vld [vmem:[%s11992_s12 + $0xe8] sm:$0xff]  ;;  %v2137_v24 = vld [vmem:[%s11992_s12 + $0xd8] sm:$0xff] }
 0x362   :  { %7878 = vrsqrt.f32 %v1664_v20  ;;  %v2110_v20 = vld [vmem:[%s11992_s12] sm:$0xff] }
 0x363   :  { %v6730_v25 = vpack.c.bf16 %v2114_v35, %v2110_v20  ;;  %v2127_v20 = vld [vmem:[%s11992_s12 + $0x88] sm:$0xff] }
 0x364   :  { %v2131_v35 = vld [vmem:[%s11992_s12 + $0xa8] sm:$0xff] }
 0x365   :  { %v6736_v5 = vpack.c.bf16 %v2131_v35, %v2127_v20  ;;  %v2138_v20 = vld [vmem:[%s11992_s12 + $0xe0] sm:$0xff] }
 0x36c   :  { %v7879_v34 = vpop.eup %7878 }
 0x36d   :  { %5771 = vmatmul.mubr.msk.f32.vlgmr.msra.gmra.mrb[24].mxu0 %vm877_vm0, %v7879_v34  ;;  %5772 = vmatmul.mubr.msk.f32.vlgmr.msra.gmra.mrb[40].mxu1 %vm877_vm0, %v7879_v34  ;;  %v6732_v34 = vpack.c.bf16 %v2123_v55, %v2119_v53  ;;  %v2126_v53 = vld [vmem:[%s11992_s12 + $0x80] sm:$0xff] }
 0x36e   :  { %6715 = vmatpush1.bf16.msra.mxu0 %v9137_v45  ;;  %6723 = vmatpush1.bf16.msra.mxu1 %v9149_v31  ;;  %v2130_v55 = vld [vmem:[%s11992_s12 + $0xa0] sm:$0xff]  ;;  %v12128_v31 = vld [vmem:[#allocation13_spill] sm:$0xff] }
 0x36f   :  { %6717 = vmatprep.subr.bf16.mxu0 %v9162_v16  ;;  %6725 = vmatprep.subr.bf16.mxu1 %v9164_v10 }
 0x370   :  { %1878 = vmatprep.mubr.f32.mxu0 %v12114_v28  ;;  %1949 = vmatprep.mubr.f32.mxu1 %v12114_v28 }
 0x372   :  { %6719 = vmatpush1.bf16.msra.mxu0 %v9176_v27  ;;  %6727 = vmatpush1.bf16.msra.mxu1 %v9183_v17 }
 0x373   :  { %6729 = vmatprep.subr.bf16.mxu0 %v6728_v39  ;;  %6857 = vmatprep.subr.bf16.mxu1 %v6856_v43  ;;  %v2129_v39 = vld [vmem:[%s11992_s12 + $0x98] sm:$0xff] }
 0x374   :  { %v2133_v43 = vld [vmem:[%s11992_s12 + $0xb8] sm:$0xff] }
 0x375   :  { %5773 = vmatmul.mubr.msk.f32.vlgmr.msra.gmra.mrb[26].mxu0 %vm877_vm0, %v1520_v1  ;;  %5774 = vmatmul.mubr.msk.f32.vlgmr.msra.gmra.mrb[42].mxu1 %vm877_vm0, %v1520_v1  ;;  %v6864_v15 = vpack.c.bf16 %v2133_v43, %v2129_v39  ;;  %v2128_v1 = vld [vmem:[%s11992_s12 + $0x90] sm:$0xff] }
 0x376   :  { %6731 = vmatpush1.bf16.msra.mxu0 %v6730_v25  ;;  %6859 = vmatpush1.bf16.msra.mxu1 %v6858_v26  ;;  %v2132_v25 = vld [vmem:[%s11992_s12 + $0xb0] sm:$0xff]  ;;  %v2135_v26 = vld [vmem:[%s11992_s12 + $0xc8] sm:$0xff] }
 0x377   :  { %6733 = vmatprep.subr.bf16.mxu0 %v6732_v34  ;;  %6861 = vmatprep.subr.bf16.mxu1 %v6860_v49  ;;  %v2141_v34 = vld [vmem:[%s11992_s12 + $0xf8] sm:$0xff]  ;;  %v6738_v49 = vpack.c.bf16 %v2130_v55, %v2126_v53  ;;  %v6866_v3 = vpack.c.bf16 %v2132_v25, %v2128_v1  ;;  %v6740_v35 = vpack.c.bf16 %v2139_v21, %v2135_v26  ;;  %v2136_v43 = vld [vmem:[%s11992_s12 + $0xd0] sm:$0xff]  ;;  %v2147_v53 = vld [vmem:[%s11992_s12 + $0x128] sm:$0xff] }
 0x378   :  { %v6868_v39 = vpack.c.bf16 %v2141_v34, %v2137_v24  ;;  %v2145_v55 = vld [vmem:[%s11992_s12 + $0x118] sm:$0xff]  ;;  %v2142_v25 = vld [vmem:[%s11992_s12 + $0x100] sm:$0xff]  ;;  %v2144_v34 = vld [vmem:[%s11992_s12 + $0x110] sm:$0xff] }
 0x379   :  { %v2146_v26 = vld [vmem:[%s11992_s12 + $0x120] sm:$0xff] }
 0x37a   :  { %6735 = vmatpush1.bf16.msra.mxu0 %v6734_v48  ;;  %6863 = vmatpush1.bf16.msra.mxu1 %v6862_v29  ;;  %v2140_v48 = vld [vmem:[%s11992_s12 + $0xf0] sm:$0xff]  ;;  %v2143_v29 = vld [vmem:[%s11992_s12 + $0x108] sm:$0xff] }
 0x37b   :  { %6737 = vmatprep.subr.bf16.mxu0 %v6736_v5  ;;  %6865 = vmatprep.subr.bf16.mxu1 %v6864_v15  ;;  %v2149_v5 = vld [vmem:[%s11992_s12 + $0x138] sm:$0xff]  ;;  %v6742_v15 = vpack.c.bf16 %v2138_v20, %v2134_v12  ;;  %v6870_v1 = vpack.c.bf16 %v2140_v48, %v2136_v43  ;;  %v6744_v21 = vpack.c.bf16 %v2147_v53, %v2143_v29  ;;  %v2155_v12 = vld [vmem:[%s11992_s12 + $0x168] sm:$0xff]  ;;  %v2150_v48 = vld [vmem:[%s11992_s12 + $0x140] sm:$0xff] }
 0x37c   :  { %v6872_v24 = vpack.c.bf16 %v2149_v5, %v2145_v55  ;;  %v2153_v20 = vld [vmem:[%s11992_s12 + $0x158] sm:$0xff]  ;;  %v2154_v29 = vld [vmem:[%s11992_s12 + $0x160] sm:$0xff]  ;;  %v2152_v5 = vld [vmem:[%s11992_s12 + $0x150] sm:$0xff] }
 0x37e   :  { %6739 = vmatpush1.bf16.msra.mxu0 %v6738_v49  ;;  %6867 = vmatpush1.bf16.msra.mxu1 %v6866_v3  ;;  %v2148_v49 = vld [vmem:[%s11992_s12 + $0x130] sm:$0xff]  ;;  %v2151_v3 = vld [vmem:[%s11992_s12 + $0x148] sm:$0xff] }
 0x37f   :  { %6741 = vmatprep.subr.bf16.mxu0 %v6740_v35  ;;  %6869 = vmatprep.subr.bf16.mxu1 %v6868_v39  ;;  %v2157_v35 = vld [vmem:[%s11992_s12 + $0x178] sm:$0xff]  ;;  %v6746_v39 = vpack.c.bf16 %v2146_v26, %v2142_v25  ;;  %v6874_v43 = vpack.c.bf16 %v2148_v49, %v2144_v34  ;;  %v6748_v53 = vpack.c.bf16 %v2155_v12, %v2151_v3  ;;  %v2163_v25 = vld [vmem:[%s11992_s12 + $0x1a8] sm:$0xff]  ;;  %v2158_v49 = vld [vmem:[%s11992_s12 + $0x180] sm:$0xff] }
 0x380   :  { %v6876_v55 = vpack.c.bf16 %v2157_v35, %v2153_v20  ;;  %v2161_v26 = vld [vmem:[%s11992_s12 + $0x198] sm:$0xff]  ;;  %v2162_v3 = vld [vmem:[%s11992_s12 + $0x1a0] sm:$0xff]  ;;  %v2160_v35 = vld [vmem:[%s11992_s12 + $0x190] sm:$0xff] }
 0x382   :  { %6743 = vmatpush1.bf16.msra.mxu0 %v6742_v15  ;;  %6871 = vmatpush1.bf16.msra.mxu1 %v6870_v1  ;;  %v2156_v15 = vld [vmem:[%s11992_s12 + $0x170] sm:$0xff]  ;;  %v2159_v1 = vld [vmem:[%s11992_s12 + $0x188] sm:$0xff] }
 0x383   :  { %6745 = vmatprep.subr.bf16.mxu0 %v6744_v21  ;;  %6873 = vmatprep.subr.bf16.mxu1 %v6872_v24  ;;  %v2165_v21 = vld [vmem:[%s11992_s12 + $0x1b8] sm:$0xff]  ;;  %v6750_v24 = vpack.c.bf16 %v2154_v29, %v2150_v48  ;;  %v6878_v34 = vpack.c.bf16 %v2156_v15, %v2152_v5  ;;  %v6752_v12 = vpack.c.bf16 %v2163_v25, %v2159_v1  ;;  %v2171_v48 = vld [vmem:[%s11992_s12 + $0x1e8] sm:$0xff]  ;;  %v2166_v15 = vld [vmem:[%s11992_s12 + $0x1c0] sm:$0xff] }
 0x384   :  { %v6880_v20 = vpack.c.bf16 %v2165_v21, %v2161_v26  ;;  %v2169_v29 = vld [vmem:[%s11992_s12 + $0x1d8] sm:$0xff]  ;;  %v2170_v26 = vld [vmem:[%s11992_s12 + $0x1e0] sm:$0xff]  ;;  %v2168_v21 = vld [vmem:[%s11992_s12 + $0x1d0] sm:$0xff] }
 0x386   :  { %6747 = vmatpush1.bf16.msra.mxu0 %v6746_v39  ;;  %6875 = vmatpush1.bf16.msra.mxu1 %v6874_v43  ;;  %v2164_v39 = vld [vmem:[%s11992_s12 + $0x1b0] sm:$0xff]  ;;  %v2167_v43 = vld [vmem:[%s11992_s12 + $0x1c8] sm:$0xff] }
 0x387   :  { %6749 = vmatprep.subr.bf16.mxu0 %v6748_v53  ;;  %6877 = vmatprep.subr.bf16.mxu1 %v6876_v55  ;;  %v2173_v53 = vld [vmem:[%s11992_s12 + $0x1f8] sm:$0xff]  ;;  %v6754_v55 = vpack.c.bf16 %v2162_v3, %v2158_v49  ;;  %v6882_v5 = vpack.c.bf16 %v2164_v39, %v2160_v35  ;;  %v6756_v1 = vpack.c.bf16 %v2171_v48, %v2167_v43  ;;  %v2175_v3 = vld [vmem:[%s11992_s12 + $0x208] sm:$0xff]  ;;  %v2174_v43 = vld [vmem:[%s11992_s12 + $0x200] sm:$0xff] }
 0x388   :  { %v6884_v25 = vpack.c.bf16 %v2173_v53, %v2169_v29  ;;  %v2181_v39 = vld [vmem:[%s11992_s12 + $0x238] sm:$0xff]  ;;  %v2178_v48 = vld [vmem:[%s11992_s12 + $0x220] sm:$0xff] }
 0x389   :  { %v6762_v53 = vpack.c.bf16 %v2178_v48, %v2174_v43  ;;  %v2191_v43 = vld [vmem:[%s11992_s12 + $0x288] sm:$0xff] }
 0x38a   :  { %6751 = vmatpush1.bf16.msra.mxu0 %v6750_v24  ;;  %6879 = vmatpush1.bf16.msra.mxu1 %v6878_v34  ;;  %v2172_v24 = vld [vmem:[%s11992_s12 + $0x1f0] sm:$0xff]  ;;  %v6758_v34 = vpack.c.bf16 %v2170_v26, %v2166_v15  ;;  %v2185_v26 = vld [vmem:[%s11992_s12 + $0x258] sm:$0xff]  ;;  %v2195_v48 = vld [vmem:[%s11992_s12 + $0x2a8] sm:$0xff] }
 0x38b   :  { %6753 = vmatprep.subr.bf16.mxu0 %v6752_v12  ;;  %6881 = vmatprep.subr.bf16.mxu1 %v6880_v20  ;;  %v6886_v49 = vpack.c.bf16 %v2172_v24, %v2168_v21  ;;  %v2179_v12 = vld [vmem:[%s11992_s12 + $0x228] sm:$0xff]  ;;  %v2177_v20 = vld [vmem:[%s11992_s12 + $0x218] sm:$0xff] }
 0x38c   :  { %v6760_v35 = vpack.c.bf16 %v2179_v12, %v2175_v3  ;;  %v6888_v29 = vpack.c.bf16 %v2181_v39, %v2177_v20  ;;  %v2189_v24 = vld [vmem:[%s11992_s12 + $0x278] sm:$0xff]  ;;  %v2184_v20 = vld [vmem:[%s11992_s12 + $0x250] sm:$0xff] }
 0x38d   :  { %v6892_v3 = vpack.c.bf16 %v2189_v24, %v2185_v26  ;;  %v2192_v26 = vld [vmem:[%s11992_s12 + $0x290] sm:$0xff] }
 0x38e   :  { %6755 = vmatpush1.bf16.msra.mxu0 %v6754_v55  ;;  %6883 = vmatpush1.bf16.msra.mxu1 %v6882_v5  ;;  %v2176_v55 = vld [vmem:[%s11992_s12 + $0x210] sm:$0xff] }
 0x38f   :  { %6757 = vmatprep.subr.bf16.mxu0 %v6756_v1  ;;  %6885 = vmatprep.subr.bf16.mxu1 %v6884_v25  ;;  %v2180_v5 = vld [vmem:[%s11992_s12 + $0x230] sm:$0xff]  ;;  %v2183_v1 = vld [vmem:[%s11992_s12 + $0x248] sm:$0xff] }
 0x390   :  { %v6890_v15 = vpack.c.bf16 %v2180_v5, %v2176_v55  ;;  %v2187_v25 = vld [vmem:[%s11992_s12 + $0x268] sm:$0xff]  ;;  %v2197_v55 = vld [vmem:[%s11992_s12 + $0x2b8] sm:$0xff]  ;;  %v2190_v5 = vld [vmem:[%s11992_s12 + $0x280] sm:$0xff] }
 0x391   :  { %v6764_v21 = vpack.c.bf16 %v2187_v25, %v2183_v1 }
 0x392   :  { %6759 = vmatpush1.bf16.msra.mxu0 %v6758_v34  ;;  %6887 = vmatpush1.bf16.msra.mxu1 %v6886_v49  ;;  %v2182_v34 = vld [vmem:[%s11992_s12 + $0x240] sm:$0xff] }
 0x393   :  { %6761 = vmatprep.subr.bf16.mxu0 %v6760_v35  ;;  %6889 = vmatprep.subr.bf16.mxu1 %v6888_v29  ;;  %v2186_v49 = vld [vmem:[%s11992_s12 + $0x260] sm:$0xff]  ;;  %v2188_v35 = vld [vmem:[%s11992_s12 + $0x270] sm:$0xff]  ;;  %v2193_v29 = vld [vmem:[%s11992_s12 + $0x298] sm:$0xff] }
 0x394   :  { %v6766_v12 = vpack.c.bf16 %v2186_v49, %v2182_v34  ;;  %v6894_v39 = vpack.c.bf16 %v2188_v35, %v2184_v20  ;;  %v6896_v1 = vpack.c.bf16 %v2197_v55, %v2193_v29  ;;  %v2199_v34 = vld [vmem:[%s11992_s12 + $0x2c8] sm:$0xff]  ;;  %v2205_v20 = vld [vmem:[%s11992_s12 + $0x2f8] sm:$0xff]  ;;  %v2198_v35 = vld [vmem:[%s11992_s12 + $0x2c0] sm:$0xff] }
 0x395   :  { %v2203_v49 = vld [vmem:[%s11992_s12 + $0x2e8] sm:$0xff]  ;;  %v2200_v29 = vld [vmem:[%s11992_s12 + $0x2d0] sm:$0xff] }
 0x396   :  { %6763 = vmatpush1.bf16.msra.mxu0 %v6762_v53  ;;  %6891 = vmatpush1.bf16.msra.mxu1 %v6890_v15  ;;  %v6768_v53 = vpack.c.bf16 %v2195_v48, %v2191_v43  ;;  %v2194_v15 = vld [vmem:[%s11992_s12 + $0x2a0] sm:$0xff] }
 0x397   :  { %6765 = vmatprep.subr.bf16.mxu0 %v6764_v21  ;;  %6893 = vmatprep.subr.bf16.mxu1 %v6892_v3  ;;  %v6770_v25 = vpack.c.bf16 %v2194_v15, %v2190_v5  ;;  %v2196_v21 = vld [vmem:[%s11992_s12 + $0x2b0] sm:$0xff]  ;;  %v2201_v3 = vld [vmem:[%s11992_s12 + $0x2d8] sm:$0xff]  ;;  %v2207_v5 = vld [vmem:[%s11992_s12 + $0x308] sm:$0xff] }
 0x398   :  { %v6898_v24 = vpack.c.bf16 %v2196_v21, %v2192_v26  ;;  %v6900_v43 = vpack.c.bf16 %v2205_v20, %v2201_v3  ;;  %v2211_v15 = vld [vmem:[%s11992_s12 + $0x328] sm:$0xff]  ;;  %v2213_v26 = vld [vmem:[%s11992_s12 + $0x338] sm:$0xff]  ;;  %v2206_v21 = vld [vmem:[%s11992_s12 + $0x300] sm:$0xff] }
 0x399   :  { %v2208_v3 = vld [vmem:[%s11992_s12 + $0x310] sm:$0xff] }
 0x39a   :  { %6767 = vmatpush1.bf16.msra.mxu0 %v6766_v12  ;;  %6895 = vmatpush1.bf16.msra.mxu1 %v6894_v39  ;;  %v6772_v12 = vpack.c.bf16 %v2203_v49, %v2199_v34  ;;  %v2202_v39 = vld [vmem:[%s11992_s12 + $0x2e0] sm:$0xff] }
 0x39b   :  { %6769 = vmatprep.subr.bf16.mxu0 %v6768_v53  ;;  %6897 = vmatprep.subr.bf16.mxu1 %v6896_v1  ;;  %v6774_v48 = vpack.c.bf16 %v2202_v39, %v2198_v35  ;;  %v2204_v53 = vld [vmem:[%s11992_s12 + $0x2f0] sm:$0xff]  ;;  %v2209_v1 = vld [vmem:[%s11992_s12 + $0x318] sm:$0xff]  ;;  %v2215_v35 = vld [vmem:[%s11992_s12 + $0x348] sm:$0xff] }
 0x39c   :  { %v6902_v55 = vpack.c.bf16 %v2204_v53, %v2200_v29  ;;  %v6904_v34 = vpack.c.bf16 %v2213_v26, %v2209_v1  ;;  %v2219_v39 = vld [vmem:[%s11992_s12 + $0x368] sm:$0xff]  ;;  %v2221_v29 = vld [vmem:[%s11992_s12 + $0x378] sm:$0xff]  ;;  %v2214_v53 = vld [vmem:[%s11992_s12 + $0x340] sm:$0xff] }
 0x39d   :  { %v2220_v1 = vld [vmem:[%s11992_s12 + $0x370] sm:$0xff] }
 0x39e   :  { %6771 = vmatpush1.bf16.msra.mxu0 %v6770_v25  ;;  %6899 = vmatpush1.bf16.msra.mxu1 %v6898_v24  ;;  %v6776_v25 = vpack.c.bf16 %v2211_v15, %v2207_v5  ;;  %v2210_v24 = vld [vmem:[%s11992_s12 + $0x320] sm:$0xff]  ;;  %v2216_v15 = vld [vmem:[%s11992_s12 + $0x350] sm:$0xff] }
 0x39f   :  { %6773 = vmatprep.subr.bf16.mxu0 %v6772_v12  ;;  %6901 = vmatprep.subr.bf16.mxu1 %v6900_v43  ;;  %v6778_v49 = vpack.c.bf16 %v2210_v24, %v2206_v21  ;;  %v2212_v12 = vld [vmem:[%s11992_s12 + $0x330] sm:$0xff]  ;;  %v2217_v43 = vld [vmem:[%s11992_s12 + $0x358] sm:$0xff]  ;;  %v2218_v5 = vld [vmem:[%s11992_s12 + $0x360] sm:$0xff]  ;;  %v6910_v26 = vpack.c.bf16 %v2220_v1, %v2216_v15 }
 0x3a0   :  { %v6906_v20 = vpack.c.bf16 %v2212_v12, %v2208_v3  ;;  %v2223_v21 = vld [vmem:[%s11992_s12 + $0x388] sm:$0xff]  ;;  %v2229_v3 = vld [vmem:[%s11992_s12 + $0x3b8] sm:$0xff]  ;;  %v2222_v12 = vld [vmem:[%s11992_s12 + $0x380] sm:$0xff] }
 0x3a1   :  { %v2227_v24 = vld [vmem:[%s11992_s12 + $0x3a8] sm:$0xff]  ;;  %v2237_v1 = vld [vmem:[%s11992_s12 + $0x3f8] sm:$0xff] }
 0x3a2   :  { %6775 = vmatpush1.bf16.msra.mxu0 %v6774_v48  ;;  %6903 = vmatpush1.bf16.msra.mxu1 %v6902_v55  ;;  %v6780_v48 = vpack.c.bf16 %v2219_v39, %v2215_v35  ;;  %v6908_v55 = vpack.c.bf16 %v2221_v29, %v2217_v43  ;;  %v2224_v43 = vld [vmem:[%s11992_s12 + $0x390] sm:$0xff] }
 0x3a3   :  { %6777 = vmatprep.subr.bf16.mxu0 %v6776_v25  ;;  %6905 = vmatprep.subr.bf16.mxu1 %v6904_v34  ;;  %v6782_v25 = vpack.c.bf16 %v2218_v5, %v2214_v53  ;;  %v2225_v34 = vld [vmem:[%s11992_s12 + $0x398] sm:$0xff]  ;;  %v2231_v53 = vld [vmem:[%s11992_s12 + $0x3c8] sm:$0xff] }
 0x3a4   :  { %v6912_v35 = vpack.c.bf16 %v2229_v3, %v2225_v34  ;;  %v2233_v5 = vld [vmem:[%s11992_s12 + $0x3d8] sm:$0xff]  ;;  %v2232_v34 = vld [vmem:[%s11992_s12 + $0x3d0] sm:$0xff] }
 0x3a6   :  { %6779 = vmatpush1.bf16.msra.mxu0 %v6778_v49  ;;  %6907 = vmatpush1.bf16.msra.mxu1 %v6906_v20  ;;  %v6784_v49 = vpack.c.bf16 %v2227_v24, %v2223_v21  ;;  %v2226_v20 = vld [vmem:[%s11992_s12 + $0x3a0] sm:$0xff]  ;;  %v6916_v21 = vpack.c.bf16 %v2237_v1, %v2233_v5 }
 0x3a7   :  { %6781 = vmatprep.subr.bf16.mxu0 %v6780_v48  ;;  %6909 = vmatprep.subr.bf16.mxu1 %v6908_v55  ;;  %v6786_v39 = vpack.c.bf16 %v2226_v20, %v2222_v12  ;;  %v2228_v48 = vld [vmem:[%s11992_s12 + $0x3b0] sm:$0xff]  ;;  %v2235_v55 = vld [vmem:[%s11992_s12 + $0x3e8] sm:$0xff] }
 0x3a8   :  { %v6914_v29 = vpack.c.bf16 %v2228_v48, %v2224_v43  ;;  %v6788_v15 = vpack.c.bf16 %v2235_v55, %v2231_v53  ;;  %v2239_v12 = vld [vmem:[%s11992_s12 + $0x408] sm:$0xff]  ;;  %v2245_v43 = vld [vmem:[%s11992_s12 + $0x438] sm:$0xff]  ;;  %v1965_v55 = vlaneseq }
 0x3a9   :  { %v2243_v20 = vld [vmem:[%s11992_s12 + $0x428] sm:$0xff] }
 0x3aa   :  { %6783 = vmatpush1.bf16.msra.mxu0 %v6782_v25  ;;  %6911 = vmatpush1.bf16.msra.mxu1 %v6910_v26  ;;  %v2230_v25 = vld [vmem:[%s11992_s12 + $0x3c0] sm:$0xff] }
 0x3ab   :  { %6785 = vmatprep.subr.bf16.mxu0 %v6784_v49  ;;  %6913 = vmatprep.subr.bf16.mxu1 %v6912_v35  ;;  %v2234_v26 = vld [vmem:[%s11992_s12 + $0x3e0] sm:$0xff]  ;;  %v2236_v49 = vld [vmem:[%s11992_s12 + $0x3f0] sm:$0xff]  ;;  %v2241_v35 = vld [vmem:[%s11992_s12 + $0x418] sm:$0xff] }
 0x3ac   :  { %v6790_v24 = vpack.c.bf16 %v2234_v26, %v2230_v25  ;;  %v6918_v3 = vpack.c.bf16 %v2236_v49, %v2232_v34  ;;  %v6920_v48 = vpack.c.bf16 %v2245_v43, %v2241_v35  ;;  %v1290_v35 = vld [vmem:[%s11993_s6] sm:$0xf] }
 0x3ae   :  { %6787 = vmatpush1.bf16.msra.mxu0 %v6786_v39  ;;  %6915 = vmatpush1.bf16.msra.mxu1 %v6914_v29  ;;  %v6792_v39 = vpack.c.bf16 %v2243_v20, %v2239_v12  ;;  %v7893_v29 = vmov 1966171168  }
 0x3af   :  { %6789 = vmatprep.subr.bf16.mxu0 %v6788_v15  ;;  %6917 = vmatprep.subr.bf16.mxu1 %v6916_v21  ;;  %v1963_v53 = vunpack.c.l.s4 %v7893_v29  ;;  %v1966_v15 = vshrl.u32 %v1965_v55, 7 }
 0x3b1   :  { %v1964_v5 = vunpack.c.0.s8 %v1963_v53  ;;  %v9607_v53 = vsub.s32 2, %v1966_v15  ;;  %v9609_v55 = vsub.s32 1, %v1966_v15 }
 0x3b2   :  { %6791 = vmatpush1.bf16.msra.mxu0 %v6790_v24  ;;  %6919 = vmatpush1.bf16.msra.mxu1 %v6918_v3 }
 0x3b3   :  { %6793 = vmatprep.subr.bf16.mxu0 %v6792_v39  ;;  %6921 = vmatprep.subr.bf16.mxu1 %v6920_v48  ;;  %v9597_v26 = vsub.s32 %v1964_v5, %v1966_v15  ;;  %v9604_v39 = vsub.s32 0, %v1966_v15  ;;  %12125 = vst [vmem:[#allocation26_spill] sm:$0xff] %v9607_v53  ;;  %12126 = vst [vmem:[#allocation27_spill] sm:$0xff] %v9609_v55  ;;  %v9611_v5 = vsub.s32 3, %v1966_v15 }
 0x3b5   :  { %12123 = vst [vmem:[#allocation24_spill] sm:$0xff] %v9597_v26  ;;  %12124 = vst [vmem:[#allocation25_spill] sm:$0xff] %v9604_v39 }
 0x3b6   :  { %12127 = vst [vmem:[#allocation28_spill] sm:$0xff] %v9611_v5 }
 0x440   :  { %v1735_v1 = vpop.f32.mrb[24].mxu0  ;;  %v1806_v25 = vpop.f32.mrb[40].mxu1 }
 0x441   :  { %v1737_v21 = vpop.f32.mrb[25].mxu0  ;;  %v1808_v24 = vpop.f32.mrb[41].mxu1 }
 0x442   :  { %v1960_v34 = vcombine.low %v1735_v1, %v1737_v21  ;;  %v1961_v49 = vcombine.low %v1806_v25, %v1808_v24 }
 0x444   :  { %v1968_v3 = vrot.slane %v1960_v34, %v9597_v26  ;;  %v1975_v12 = vrot.slane %v1961_v49, %v9597_v26 }
 0x446   :  { %v1976_v20 = vcombine.low %v1968_v3, %v1975_v12 }
 0x448   :  { %v1983_v43 = vrot.slane %v1976_v20, %v9597_v26  ;;  %v1880_v48 = vpop.f32.mrb[26].mxu0  ;;  %v1951_v29 = vpop.f32.mrb[42].mxu1 }
 0x449   :  { %v1882_v1 = vpop.f32.mrb[27].mxu0  ;;  %v1953_v25 = vpop.f32.mrb[43].mxu1 }
 0x44a   :  { %v1985_v21 = vmul.f32 %v1983_v43, %v1290_v35 }
 0x44c   :  { %v1990_v24 = vrot.slane %v1985_v21, %v9604_v39  ;;  %v1998_v34 = vrot.slane %v1985_v21, %v9607_v53  ;;  %v1994_v49 = vrot.slane %v1985_v21, %v9609_v55  ;;  %v2002_v3 = vrot.slane %v1985_v21, %v9611_v5 }
 0x44e   :  { %v2007_v12 = vmul.f32 %v1990_v24, %v1880_v48  ;;  %v2009_v20 = vmul.f32 %v1998_v34, %v1951_v29  ;;  %v2008_v17 = vmul.f32 %v1994_v49, %v1882_v1  ;;  %v2010_v27 = vmul.f32 %v2002_v3, %v1953_v25  ;;  %v12131_v48 = vld [vmem:[#allocation14_spill] sm:$0xff] }
 0x44f   :  { %v2042_v28 = vmul.f32 %v1994_v49, %v9001_v19  ;;  %v2041_v15 = vmul.f32 %v1990_v24, %v8999_v58  ;;  %v2046_v10 = vmul.f32 %v1994_v49, %v9011_v63  ;;  %v2045_v35 = vmul.f32 %v1990_v24, %v9003_v60 }
 0x450   :  { %v2015_v43 = vcombine.low %v2007_v12, %v2008_v17  ;;  %v2016_v16 = vcombine.low %v2009_v20, %v2010_v27  ;;  %v2050_v45 = vmul.f32 %v1994_v49, %v12128_v31  ;;  %v2049_v41 = vmul.f32 %v1990_v24, %v12129_v50  ;;  %v2247_v20 = vld [vmem:[%s11992_s12 + $0x448] sm:$0xff] }
 0x451   :  { %v2054_v21 = vmul.f32 %v1994_v49, %v12130_v36  ;;  %v2053_v29 = vmul.f32 %v1990_v24, %v12131_v48  ;;  %v2052_v58 = vmul.f32 %v2002_v3, %v9083_v7  ;;  %v2051_v63 = vmul.f32 %v1998_v34, %v9079_v33  ;;  %v1291_v36 = vld [vmem:[%s11994_s7] sm:$0xf] }
 0x452   :  { %v2023_v1 = vrot.slane %v2015_v43, %v9597_v26  ;;  %v2030_v19 = vrot.slane %v2016_v16, %v9597_v26  ;;  %v2056_v60 = vmul.f32 %v2002_v3, %v9094_v37  ;;  %v9631_v27 = vmul.f32 %v1998_v34, %v9089_v22  ;;  %v2238_v16 = vld [vmem:[%s11992_s12 + $0x400] sm:$0xff]  ;;  %v2240_v22 = vld [vmem:[%s11992_s12 + $0x410] sm:$0xff] }
 0x453   :  { %v2242_v33 = vld [vmem:[%s11992_s12 + $0x420] sm:$0xff]  ;;  %v2244_v37 = vld [vmem:[%s11992_s12 + $0x430] sm:$0xff]  ;;  %v2044_v43 = vmul.f32 %v2002_v3, %v9057_v38 }
 0x454   :  { %v2031_v31 = vcombine.low %v2023_v1, %v2030_v19  ;;  %v6794_v24 = vpack.c.bf16 %v2242_v33, %v2238_v16  ;;  %v6922_v12 = vpack.c.bf16 %v2244_v37, %v2240_v22  ;;  %v2253_v16 = vld [vmem:[%s11992_s12 + $0x478] sm:$0xff]  ;;  %v2246_v37 = vld [vmem:[%s11992_s12 + $0x440] sm:$0xff] }
 0x456   :  { %v2038_v50 = vrot.slane %v2031_v31, %v9597_v26  ;;  %v2043_v26 = vmul.f32 %v1998_v34, %v9054_v32  ;;  %v2255_v32 = vld [vmem:[%s11992_s12 + $0x488] sm:$0xff] }
 0x458   :  { %v2040_v7 = vsub.f32 %v1291_v36, %v2038_v50  ;;  %v2251_v36 = vld [vmem:[%s11992_s12 + $0x468] sm:$0xff]  ;;  %v2249_v50 = vld [vmem:[%s11992_s12 + $0x458] sm:$0xff] }
 0x45a   :  { %v2065_v17 = vrot.slane %v2040_v7, %v9609_v55  ;;  %v2061_v25 = vrot.slane %v2040_v7, %v9604_v39  ;;  %v2069_v49 = vrot.slane %v2040_v7, %v9607_v53  ;;  %v2073_v48 = vrot.slane %v2040_v7, %v9611_v5 }
 0x45b   :  { %v2048_v53 = vmul.f32 %v2002_v3, %v9064_v54  ;;  %v6796_v39 = vpack.c.bf16 %v2251_v36, %v2247_v20  ;;  %v6924_v5 = vpack.c.bf16 %v2253_v16, %v2249_v50  ;;  %v2263_v50 = vld [vmem:[%s11992_s12 + $0x4c8] sm:$0xff] }
 0x45c   :  { %v2079_v1 = vadd.f32 %v2065_v17, %v2042_v28  ;;  %v2078_v19 = vadd.f32 %v2061_v25, %v2041_v15  ;;  %v2083_v31 = vadd.f32 %v2065_v17, %v2046_v10  ;;  %v2082_v33 = vadd.f32 %v2061_v25, %v2045_v35  ;;  %v2252_v35 = vld [vmem:[%s11992_s12 + $0x470] sm:$0xff] }
 0x45d   :  { %v2087_v22 = vadd.f32 %v2065_v17, %v2050_v45  ;;  %v9666_v38 = vadd.f32 %v2061_v25, %v2049_v41  ;;  %v9668_v7 = vadd.f32 %v2065_v17, %v2054_v21  ;;  %v9670_v28 = vadd.f32 %v2061_v25, %v2053_v29  ;;  %v2250_v41 = vld [vmem:[%s11992_s12 + $0x460] sm:$0xff]  ;;  %v2248_v45 = vld [vmem:[%s11992_s12 + $0x450] sm:$0xff]  ;;  %v2259_v25 = vld [vmem:[%s11992_s12 + $0x4a8] sm:$0xff] }
 0x45e   :  { %v2095_v10 = vmax.f32 %v2079_v1, 0.0  ;;  %v2094_v15 = vmax.f32 %v2078_v19, 0.0  ;;  %v2047_v21 = vmul.f32 %v1998_v34, %v9061_v46  ;;  %v9690_v54 = vadd.f32 %v2073_v48, %v2044_v43  ;;  %v2257_v46 = vld [vmem:[%s11992_s12 + $0x498] sm:$0xff]  ;;  %v2254_v19 = vld [vmem:[%s11992_s12 + $0x480] sm:$0xff] }
 0x45f   :  { %v9692_v3 = vadd.f32 %v2069_v49, %v2043_v26  ;;  %v9694_v29 = vadd.f32 %v2073_v48, %v2048_v53  ;;  %v2099_v17 = vmax.f32 %v2083_v31, 0.0  ;;  %v2261_v34 = vld [vmem:[%s11992_s12 + $0x4b8] sm:$0xff]  ;;  %v9707_v26 = vadd.f32 %v2073_v48, %v2052_v58  ;;  %v2258_v58 = vld [vmem:[%s11992_s12 + $0x4a0] sm:$0xff] }
 0x460   :  { %2452 = vmatprep.mubr.f32.mxu0 %v2095_v10  ;;  %2630 = vmatprep.mubr.f32.mxu1 %v2095_v10  ;;  %v9705_v20 = vadd.f32 %v2069_v49, %v2047_v21  ;;  %v9709_v53 = vadd.f32 %v2069_v49, %v2051_v63  ;;  %v6798_v43 = vpack.c.bf16 %v2250_v41, %v2246_v37  ;;  %v2098_v36 = vmax.f32 %v2082_v33, 0.0  ;;  %v2256_v63 = vld [vmem:[%s11992_s12 + $0x490] sm:$0xff]  ;;  %v2267_v33 = vld [vmem:[%s11992_s12 + $0x4e8] sm:$0xff] }
 0x461   :  { %2453 = vmatmul.mubr.f32.vlgmr.msra.gmra.mrb[28].mxu0 %v2094_v15  ;;  %2631 = vmatmul.mubr.f32.vlgmr.msra.gmra.mrb[44].mxu1 %v2094_v15  ;;  %v6926_v1 = vpack.c.bf16 %v2252_v35, %v2248_v45  ;;  %v9714_v31 = vadd.f32 %v2073_v48, %v2056_v60  ;;  %v6800_v60 = vpack.c.bf16 %v2259_v25, %v2255_v32  ;;  %v2103_v16 = vmax.f32 %v2087_v22, 0.0  ;;  %v2262_v22 = vld [vmem:[%s11992_s12 + $0x4c0] sm:$0xff]  ;;  %v2264_v37 = vld [vmem:[%s11992_s12 + $0x4d0] sm:$0xff]  ;;  %v2275_v32 = vld [vmem:[%s11992_s12 + $0x528] sm:$0xff] }
 0x462   :  { %6795 = vmatpush1.bf16.msra.mxu0 %v6794_v24  ;;  %6923 = vmatpush1.bf16.msra.mxu1 %v6922_v12  ;;  %v2260_v24 = vld [vmem:[%s11992_s12 + $0x4b0] sm:$0xff]  ;;  %v9726_v12 = vadd.f32 %v2069_v49, %v9631_v27  ;;  %v6928_v48 = vpack.c.bf16 %v2261_v34, %v2257_v46  ;;  %v2265_v27 = vld [vmem:[%s11992_s12 + $0x4d8] sm:$0xff]  ;;  %v2102_v10 = vmax.f32 %v9666_v38, 0.0  ;;  %v2266_v15 = vld [vmem:[%s11992_s12 + $0x4e0] sm:$0xff]  ;;  %v6804_v45 = vpack.c.bf16 %v2267_v33, %v2263_v50 }
 0x463   :  { %2458 = vmatprep.mubr.f32.mxu0 %v2099_v17  ;;  %2636 = vmatprep.mubr.f32.mxu1 %v2099_v17  ;;  %v6930_v49 = vpack.c.bf16 %v2260_v24, %v2256_v63  ;;  %v2268_v41 = vld [vmem:[%s11992_s12 + $0x4f0] sm:$0xff]  ;;  %v2271_v38 = vld [vmem:[%s11992_s12 + $0x508] sm:$0xff]  ;;  %v2107_v21 = vmax.f32 %v9668_v7, 0.0  ;;  %v2273_v17 = vld [vmem:[%s11992_s12 + $0x518] sm:$0xff]  ;;  %v6806_v46 = vpack.c.bf16 %v2266_v15, %v2262_v22  ;;  %v2097_v50 = vmax.f32 %v9690_v54, 0.0 }
 0x464   :  { %6797 = vmatprep.subr.bf16.mxu0 %v6796_v39  ;;  %6925 = vmatprep.subr.bf16.mxu1 %v6924_v5  ;;  %v2269_v39 = vld [vmem:[%s11992_s12 + $0x4f8] sm:$0xff]  ;;  %v6802_v5 = vpack.c.bf16 %v2258_v58, %v2254_v19  ;;  %v6934_v34 = vpack.c.bf16 %v2268_v41, %v2264_v37  ;;  %v2270_v7 = vld [vmem:[%s11992_s12 + $0x500] sm:$0xff]  ;;  %v2272_v19 = vld [vmem:[%s11992_s12 + $0x510] sm:$0xff]  ;;  %v6808_v63 = vpack.c.bf16 %v2275_v32, %v2271_v38 }
 0x465   :  { %2459 = vmatmul.mubr.f32.gmra.mrb[30].mxu0 %v2098_v36  ;;  %2637 = vmatmul.mubr.f32.gmra.mrb[46].mxu1 %v2098_v36  ;;  %v6932_v35 = vpack.c.bf16 %v2269_v39, %v2265_v27  ;;  %v2277_v25 = vld [vmem:[%s11992_s12 + $0x538] sm:$0xff]  ;;  %v2276_v36 = vld [vmem:[%s11992_s12 + $0x530] sm:$0xff]  ;;  %v2279_v58 = vld [vmem:[%s11992_s12 + $0x548] sm:$0xff] }
 0x466   :  { %6799 = vmatpush1.bf16.msra.mxu0 %v6798_v43  ;;  %6927 = vmatpush1.bf16.msra.mxu1 %v6926_v1  ;;  %v2274_v43 = vld [vmem:[%s11992_s12 + $0x520] sm:$0xff]  ;;  %v2106_v1 = vmax.f32 %v9670_v28, 0.0  ;;  %v6936_v24 = vpack.c.bf16 %v2277_v25, %v2273_v17  ;;  %v2283_v28 = vld [vmem:[%s11992_s12 + $0x568] sm:$0xff]  ;;  %v6938_v33 = vpack.c.bf16 %v2276_v36, %v2272_v19  ;;  %v2280_v54 = vld [vmem:[%s11992_s12 + $0x550] sm:$0xff] }
 0x467   :  { %2464 = vmatprep.mubr.f32.mxu0 %v2103_v16  ;;  %2642 = vmatprep.mubr.f32.mxu1 %v2103_v16  ;;  %v6810_v16 = vpack.c.bf16 %v2274_v43, %v2270_v7  ;;  %v2278_v27 = vld [vmem:[%s11992_s12 + $0x540] sm:$0xff]  ;;  %v2284_v22 = vld [vmem:[%s11992_s12 + $0x570] sm:$0xff]  ;;  %v2291_v15 = vld [vmem:[%s11992_s12 + $0x5a8] sm:$0xff] }
 0x468   :  { %6801 = vmatprep.subr.bf16.mxu0 %v6800_v60  ;;  %6929 = vmatprep.subr.bf16.mxu1 %v6928_v48  ;;  %v2281_v60 = vld [vmem:[%s11992_s12 + $0x558] sm:$0xff]  ;;  %v2282_v39 = vld [vmem:[%s11992_s12 + $0x560] sm:$0xff]  ;;  %v2288_v25 = vld [vmem:[%s11992_s12 + $0x590] sm:$0xff] }
 0x469   :  { %2465 = vmatmul.mubr.f32.gmra.mrb[32].mxu0 %v2102_v10  ;;  %2643 = vmatmul.mubr.f32.gmra.mrb[48].mxu1 %v2102_v10  ;;  %v2285_v48 = vld [vmem:[%s11992_s12 + $0x578] sm:$0xff]  ;;  %v2287_v10 = vld [vmem:[%s11992_s12 + $0x588] sm:$0xff]  ;;  %v2286_v38 = vld [vmem:[%s11992_s12 + $0x580] sm:$0xff] }
 0x46a   :  { %6803 = vmatpush1.bf16.msra.mxu0 %v6802_v5  ;;  %6931 = vmatpush1.bf16.msra.mxu1 %v6930_v49  ;;  %v6812_v5 = vpack.c.bf16 %v2283_v28, %v2279_v58  ;;  %v6940_v49 = vpack.c.bf16 %v2285_v48, %v2281_v60  ;;  %v2289_v37 = vld [vmem:[%s11992_s12 + $0x598] sm:$0xff]  ;;  %v6816_v32 = vpack.c.bf16 %v2291_v15, %v2287_v10  ;;  %v2299_v7 = vld [vmem:[%s11992_s12 + $0x5e8] sm:$0xff]  ;;  %v2294_v58 = vld [vmem:[%s11992_s12 + $0x5c0] sm:$0xff] }
 0x46b   :  { %2470 = vmatprep.mubr.f32.mxu0 %v2107_v21  ;;  %2648 = vmatprep.mubr.f32.mxu1 %v2107_v21  ;;  %v2293_v41 = vld [vmem:[%s11992_s12 + $0x5b8] sm:$0xff]  ;;  %v2290_v21 = vld [vmem:[%s11992_s12 + $0x5a0] sm:$0xff]  ;;  %v2296_v60 = vld [vmem:[%s11992_s12 + $0x5d0] sm:$0xff] }
 0x46c   :  { %6805 = vmatprep.subr.bf16.mxu0 %v6804_v45  ;;  %6933 = vmatprep.subr.bf16.mxu1 %v6932_v35  ;;  %v6814_v45 = vpack.c.bf16 %v2282_v39, %v2278_v27  ;;  %v6942_v35 = vpack.c.bf16 %v2284_v22, %v2280_v54  ;;  %v6944_v17 = vpack.c.bf16 %v2293_v41, %v2289_v37  ;;  %v2297_v43 = vld [vmem:[%s11992_s12 + $0x5d8] sm:$0xff]  ;;  %v2300_v48 = vld [vmem:[%s11992_s12 + $0x5f0] sm:$0xff]  ;;  %v2306_v54 = vld [vmem:[%s11992_s12 + $0x620] sm:$0xff] }
 0x46d   :  { %2471 = vmatmul.mubr.f32.gmra.mrb[34].mxu0 %v2106_v1  ;;  %2649 = vmatmul.mubr.f32.gmra.mrb[50].mxu1 %v2106_v1  ;;  %v2301_v1 = vld [vmem:[%s11992_s12 + $0x5f8] sm:$0xff]  ;;  %v6818_v19 = vpack.c.bf16 %v2290_v21, %v2286_v38  ;;  %v2304_v15 = vld [vmem:[%s11992_s12 + $0x610] sm:$0xff]  ;;  %v2311_v41 = vld [vmem:[%s11992_s12 + $0x648] sm:$0xff] }
 0x46e   :  { %6807 = vmatpush1.bf16.msra.mxu0 %v6806_v46  ;;  %6935 = vmatpush1.bf16.msra.mxu1 %v6934_v34  ;;  %v2292_v46 = vld [vmem:[%s11992_s12 + $0x5b0] sm:$0xff]  ;;  %v2295_v34 = vld [vmem:[%s11992_s12 + $0x5c8] sm:$0xff]  ;;  %v6948_v28 = vpack.c.bf16 %v2301_v1, %v2297_v43  ;;  %v2309_v27 = vld [vmem:[%s11992_s12 + $0x638] sm:$0xff] }
 0x46f   :  { %2541 = vmatprep.mubr.f32.mxu0 %v2097_v50  ;;  %2719 = vmatprep.mubr.f32.mxu1 %v2097_v50  ;;  %v6946_v36 = vpack.c.bf16 %v2292_v46, %v2288_v25  ;;  %v2303_v50 = vld [vmem:[%s11992_s12 + $0x608] sm:$0xff]  ;;  %v2308_v37 = vld [vmem:[%s11992_s12 + $0x630] sm:$0xff]  ;;  %v2317_v38 = vld [vmem:[%s11992_s12 + $0x678] sm:$0xff] }
 0x470   :  { %6809 = vmatprep.subr.bf16.mxu0 %v6808_v63  ;;  %6937 = vmatprep.subr.bf16.mxu1 %v6936_v24  ;;  %v2298_v63 = vld [vmem:[%s11992_s12 + $0x5e0] sm:$0xff]  ;;  %v6820_v24 = vpack.c.bf16 %v2299_v7, %v2295_v34  ;;  %v2312_v7 = vld [vmem:[%s11992_s12 + $0x650] sm:$0xff]  ;;  %v2319_v1 = vld [vmem:[%s11992_s12 + $0x688] sm:$0xff] }
 0x471   :  { %v6822_v39 = vpack.c.bf16 %v2298_v63, %v2294_v58  ;;  %v2314_v25 = vld [vmem:[%s11992_s12 + $0x660] sm:$0xff]  ;;  %v2316_v43 = vld [vmem:[%s11992_s12 + $0x670] sm:$0xff]  ;;  %v2325_v58 = vld [vmem:[%s11992_s12 + $0x6b8] sm:$0xff] }
 0x472   :  { %6811 = vmatpush1.bf16.msra.mxu0 %v6810_v16  ;;  %6939 = vmatpush1.bf16.msra.mxu1 %v6938_v33  ;;  %v2307_v16 = vld [vmem:[%s11992_s12 + $0x628] sm:$0xff]  ;;  %v2305_v33 = vld [vmem:[%s11992_s12 + $0x618] sm:$0xff] }
 0x473   :  { %6813 = vmatprep.subr.bf16.mxu0 %v6812_v5  ;;  %6941 = vmatprep.subr.bf16.mxu1 %v6940_v49  ;;  %v6950_v5 = vpack.c.bf16 %v2300_v48, %v2296_v60  ;;  %v2302_v49 = vld [vmem:[%s11992_s12 + $0x600] sm:$0xff]  ;;  %v6824_v22 = vpack.c.bf16 %v2307_v16, %v2303_v50  ;;  %v6952_v10 = vpack.c.bf16 %v2309_v27, %v2305_v33  ;;  %v2320_v16 = vld [vmem:[%s11992_s12 + $0x690] sm:$0xff]  ;;  %v2327_v27 = vld [vmem:[%s11992_s12 + $0x6c8] sm:$0xff] }
 0x474   :  { %v6826_v21 = vpack.c.bf16 %v2306_v54, %v2302_v49  ;;  %v2322_v60 = vld [vmem:[%s11992_s12 + $0x6a0] sm:$0xff]  ;;  %v2324_v33 = vld [vmem:[%s11992_s12 + $0x6b0] sm:$0xff]  ;;  %v2333_v49 = vld [vmem:[%s11992_s12 + $0x6f8] sm:$0xff] }
 0x476   :  { %6815 = vmatpush1.bf16.msra.mxu0 %v6814_v45  ;;  %6943 = vmatpush1.bf16.msra.mxu1 %v6942_v35  ;;  %v2315_v45 = vld [vmem:[%s11992_s12 + $0x668] sm:$0xff]  ;;  %v2313_v35 = vld [vmem:[%s11992_s12 + $0x658] sm:$0xff] }
 0x477   :  { %6817 = vmatprep.subr.bf16.mxu0 %v6816_v32  ;;  %6945 = vmatprep.subr.bf16.mxu1 %v6944_v17  ;;  %v6954_v32 = vpack.c.bf16 %v2308_v37, %v2304_v15  ;;  %v2310_v17 = vld [vmem:[%s11992_s12 + $0x640] sm:$0xff]  ;;  %v6828_v46 = vpack.c.bf16 %v2315_v45, %v2311_v41  ;;  %v6956_v34 = vpack.c.bf16 %v2317_v38, %v2313_v35  ;;  %v2328_v45 = vld [vmem:[%s11992_s12 + $0x6d0] sm:$0xff]  ;;  %v2335_v38 = vld [vmem:[%s11992_s12 + $0x708] sm:$0xff] }
 0x478   :  { %v6830_v63 = vpack.c.bf16 %v2314_v25, %v2310_v17  ;;  %v2330_v15 = vld [vmem:[%s11992_s12 + $0x6e0] sm:$0xff]  ;;  %v2332_v35 = vld [vmem:[%s11992_s12 + $0x6f0] sm:$0xff]  ;;  %v2341_v17 = vld [vmem:[%s11992_s12 + $0x738] sm:$0xff] }
 0x47a   :  { %6819 = vmatpush1.bf16.msra.mxu0 %v6818_v19  ;;  %6947 = vmatpush1.bf16.msra.mxu1 %v6946_v36  ;;  %v2323_v19 = vld [vmem:[%s11992_s12 + $0x6a8] sm:$0xff]  ;;  %v2321_v36 = vld [vmem:[%s11992_s12 + $0x698] sm:$0xff] }
 0x47b   :  { %6821 = vmatprep.subr.bf16.mxu0 %v6820_v24  ;;  %6949 = vmatprep.subr.bf16.mxu1 %v6948_v28  ;;  %v6958_v24 = vpack.c.bf16 %v2316_v43, %v2312_v7  ;;  %v2318_v28 = vld [vmem:[%s11992_s12 + $0x680] sm:$0xff]  ;;  %v6832_v48 = vpack.c.bf16 %v2323_v19, %v2319_v1  ;;  %v6960_v50 = vpack.c.bf16 %v2325_v58, %v2321_v36  ;;  %v2336_v19 = vld [vmem:[%s11992_s12 + $0x710] sm:$0xff]  ;;  %v2343_v58 = vld [vmem:[%s11992_s12 + $0x748] sm:$0xff] }
 0x47c   :  { %v6834_v54 = vpack.c.bf16 %v2322_v60, %v2318_v28  ;;  %v2338_v7 = vld [vmem:[%s11992_s12 + $0x720] sm:$0xff]  ;;  %v2340_v36 = vld [vmem:[%s11992_s12 + $0x730] sm:$0xff]  ;;  %v2349_v28 = vld [vmem:[%s11992_s12 + $0x778] sm:$0xff] }
 0x47e   :  { %6823 = vmatpush1.bf16.msra.mxu0 %v6822_v39  ;;  %6951 = vmatpush1.bf16.msra.mxu1 %v6950_v5  ;;  %v2331_v39 = vld [vmem:[%s11992_s12 + $0x6e8] sm:$0xff]  ;;  %v2329_v5 = vld [vmem:[%s11992_s12 + $0x6d8] sm:$0xff] }
 0x47f   :  { %6825 = vmatprep.subr.bf16.mxu0 %v6824_v22  ;;  %6953 = vmatprep.subr.bf16.mxu1 %v6952_v10  ;;  %v6962_v22 = vpack.c.bf16 %v2324_v33, %v2320_v16  ;;  %v2326_v10 = vld [vmem:[%s11992_s12 + $0x6c0] sm:$0xff]  ;;  %v6836_v37 = vpack.c.bf16 %v2331_v39, %v2327_v27  ;;  %v6964_v41 = vpack.c.bf16 %v2333_v49, %v2329_v5  ;;  %v2344_v39 = vld [vmem:[%s11992_s12 + $0x750] sm:$0xff]  ;;  %v2351_v49 = vld [vmem:[%s11992_s12 + $0x788] sm:$0xff] }
 0x480   :  { %v6838_v25 = vpack.c.bf16 %v2330_v15, %v2326_v10  ;;  %v2346_v16 = vld [vmem:[%s11992_s12 + $0x760] sm:$0xff]  ;;  %v2348_v5 = vld [vmem:[%s11992_s12 + $0x770] sm:$0xff]  ;;  %v2357_v10 = vld [vmem:[%s11992_s12 + $0x7b8] sm:$0xff] }
 0x482   :  { %6827 = vmatpush1.bf16.msra.mxu0 %v6826_v21  ;;  %6955 = vmatpush1.bf16.msra.mxu1 %v6954_v32  ;;  %v2339_v21 = vld [vmem:[%s11992_s12 + $0x728] sm:$0xff]  ;;  %v2337_v32 = vld [vmem:[%s11992_s12 + $0x718] sm:$0xff] }
 0x483   :  { %6829 = vmatprep.subr.bf16.mxu0 %v6828_v46  ;;  %6957 = vmatprep.subr.bf16.mxu1 %v6956_v34  ;;  %v6966_v46 = vpack.c.bf16 %v2332_v35, %v2328_v45  ;;  %v2334_v34 = vld [vmem:[%s11992_s12 + $0x700] sm:$0xff]  ;;  %v6840_v43 = vpack.c.bf16 %v2339_v21, %v2335_v38  ;;  %v6968_v1 = vpack.c.bf16 %v2341_v17, %v2337_v32  ;;  %v2352_v21 = vld [vmem:[%s11992_s12 + $0x790] sm:$0xff]  ;;  %v2359_v17 = vld [vmem:[%s11992_s12 + $0x7c8] sm:$0xff] }
 0x484   :  { %v6842_v60 = vpack.c.bf16 %v2338_v7, %v2334_v34  ;;  %v2354_v45 = vld [vmem:[%s11992_s12 + $0x7a0] sm:$0xff]  ;;  %v2356_v32 = vld [vmem:[%s11992_s12 + $0x7b0] sm:$0xff]  ;;  %v2365_v34 = vld [vmem:[%s11992_s12 + $0x7f8] sm:$0xff] }
 0x486   :  { %6831 = vmatpush1.bf16.msra.mxu0 %v6830_v63  ;;  %6959 = vmatpush1.bf16.msra.mxu1 %v6958_v24  ;;  %v2347_v63 = vld [vmem:[%s11992_s12 + $0x768] sm:$0xff]  ;;  %v2345_v24 = vld [vmem:[%s11992_s12 + $0x758] sm:$0xff] }
 0x487   :  { %6833 = vmatprep.subr.bf16.mxu0 %v6832_v48  ;;  %6961 = vmatprep.subr.bf16.mxu1 %v6960_v50  ;;  %v6970_v48 = vpack.c.bf16 %v2340_v36, %v2336_v19  ;;  %v2342_v50 = vld [vmem:[%s11992_s12 + $0x740] sm:$0xff]  ;;  %v6844_v33 = vpack.c.bf16 %v2347_v63, %v2343_v58  ;;  %v6972_v27 = vpack.c.bf16 %v2349_v28, %v2345_v24  ;;  %v2360_v63 = vld [vmem:[%s11992_s12 + $0x7d0] sm:$0xff] }
 0x488   :  { %v6846_v15 = vpack.c.bf16 %v2346_v16, %v2342_v50  ;;  %v2362_v58 = vld [vmem:[%s11992_s12 + $0x7e0] sm:$0xff]  ;;  %v2364_v24 = vld [vmem:[%s11992_s12 + $0x7f0] sm:$0xff] }
 0x489   :  { %v12132_v50 = vld [vmem:[#allocation2_spill] sm:$0xff]  ;;  %v12133_v16 = vld [vmem:[#allocation8_spill] sm:$0xff] }
 0x48a   :  { %6835 = vmatpush1.bf16.msra.mxu0 %v6834_v54  ;;  %6963 = vmatpush1.bf16.msra.mxu1 %v6962_v22  ;;  %v2355_v54 = vld [vmem:[%s11992_s12 + $0x7a8] sm:$0xff]  ;;  %v2353_v22 = vld [vmem:[%s11992_s12 + $0x798] sm:$0xff] }
 0x48b   :  { %6837 = vmatprep.subr.bf16.mxu0 %v6836_v37  ;;  %6965 = vmatprep.subr.bf16.mxu1 %v6964_v41  ;;  %v6974_v37 = vpack.c.bf16 %v2348_v5, %v2344_v39  ;;  %v2350_v41 = vld [vmem:[%s11992_s12 + $0x780] sm:$0xff]  ;;  %v6848_v35 = vpack.c.bf16 %v2355_v54, %v2351_v49  ;;  %v6976_v38 = vpack.c.bf16 %v2357_v10, %v2353_v22  ;;  %v2105_v39 = vmax.f32 %v9707_v26, 0.0  ;;  %v12134_v26 = vld [vmem:[#allocation3_spill] sm:$0xff] }
 0x48c   :  { %v6850_v7 = vpack.c.bf16 %v2354_v45, %v2350_v41  ;;  %v12138_v5 = vld [vmem:[#allocation10_spill] sm:$0xff]  ;;  %v12139_v49 = vld [vmem:[#allocation7_spill] sm:$0xff] }
 0x48d   :  { %v12140_v54 = vld [vmem:[#allocation11_spill] sm:$0xff]  ;;  %v2366_v22 = vld [vmem:[%s11995_s13] sm:$0xf] }
 0x48e   :  { %6839 = vmatpush1.bf16.msra.mxu0 %v6838_v25  ;;  %6967 = vmatpush1.bf16.msra.mxu1 %v6966_v46  ;;  %v2363_v25 = vld [vmem:[%s11992_s12 + $0x7e8] sm:$0xff]  ;;  %v2361_v46 = vld [vmem:[%s11992_s12 + $0x7d8] sm:$0xff]  ;;  %v2375_v45 = vrot.slane %v2366_v22, %v9609_v55 }
 0x48f   :  { %6841 = vmatprep.subr.bf16.mxu0 %v6840_v43  ;;  %6969 = vmatprep.subr.bf16.mxu1 %v6968_v1  ;;  %v6978_v43 = vpack.c.bf16 %v2356_v32, %v2352_v21  ;;  %v2358_v1 = vld [vmem:[%s11992_s12 + $0x7c0] sm:$0xff]  ;;  %v6852_v19 = vpack.c.bf16 %v2363_v25, %v2359_v17  ;;  %v6980_v36 = vpack.c.bf16 %v2365_v34, %v2361_v46  ;;  %v12142_v17 = vld [vmem:[#allocation25_spill] sm:$0xff] }
 0x490   :  { %v6854_v28 = vpack.c.bf16 %v2362_v58, %v2358_v1  ;;  %v2371_v25 = vrot.slane %v2366_v22, %v12142_v17  ;;  %v12143_v46 = vld [vmem:[#allocation26_spill] sm:$0xff] }
 0x491   :  { %v2379_v34 = vrot.slane %v2366_v22, %v12143_v46 }
 0x492   :  { %6843 = vmatpush1.bf16.msra.mxu0 %v6842_v60  ;;  %6971 = vmatpush1.bf16.msra.mxu1 %v6970_v48  ;;  %v6982_v60 = vpack.c.bf16 %v2364_v24, %v2360_v63  ;;  %v2096_v48 = vmax.f32 %v9692_v3, 0.0  ;;  %v2104_v3 = vmax.f32 %v9709_v53, 0.0  ;;  %v12135_v53 = vld [vmem:[#allocation4_spill] sm:$0xff] }
 0x493   :  { %6845 = vmatprep.subr.bf16.mxu0 %v6844_v33  ;;  %6973 = vmatprep.subr.bf16.mxu1 %v6972_v27  ;;  %v2101_v33 = vmax.f32 %v9694_v29, 0.0  ;;  %v2100_v27 = vmax.f32 %v9705_v20, 0.0  ;;  %v2109_v29 = vmax.f32 %v9714_v31, 0.0  ;;  %v2108_v20 = vmax.f32 %v9726_v12, 0.0  ;;  %v12136_v31 = vld [vmem:[#allocation5_spill] sm:$0xff]  ;;  %v12137_v12 = vld [vmem:[#allocation6_spill] sm:$0xff] }
 0x496   :  { %6847 = vmatpush1.bf16.msra.mxu0 %v6846_v15  ;;  %6975 = vmatpush1.bf16.msra.mxu1 %v6974_v37 }
 0x497   :  { %6849 = vmatprep.subr.bf16.mxu0 %v6848_v35  ;;  %6977 = vmatprep.subr.bf16.mxu1 %v6976_v38  ;;  %v12141_v35 = vld [vmem:[#allocation28_spill] sm:$0xff] }
 0x498   :  { %v2383_v38 = vrot.slane %v2366_v22, %v12141_v35 }
 0x49a   :  { %6851 = vmatpush1.bf16.msra.mxu0 %v6850_v7  ;;  %6979 = vmatpush1.bf16.msra.mxu1 %v6978_v43 }
 0x49b   :  { %6853 = vmatprep.subr.bf16.mxu0 %v6852_v19  ;;  %6981 = vmatprep.subr.bf16.mxu1 %v6980_v36 }
 0x49e   :  { %6855 = vmatpush1.bf16.msra.mxu0 %v6854_v28  ;;  %6983 = vmatpush1.bf16.msra.mxu1 %v6982_v60 }
 0x49f   :  { %6985 = vmatprep.subr.bf16.mxu0 %v12132_v50  ;;  %7017 = vmatprep.subr.bf16.mxu1 %v12133_v16 }
 0x4a1   :  { %2542 = vmatmul.mubr.f32.vlgmr.msra.gmra.mrb[28].mxu0 %v2096_v48  ;;  %2720 = vmatmul.mubr.f32.vlgmr.msra.gmra.mrb[44].mxu1 %v2096_v48 }
 0x4a2   :  { %2547 = vmatprep.mubr.f32.mxu0 %v2101_v33  ;;  %2725 = vmatprep.mubr.f32.mxu1 %v2101_v33 }
 0x4a3   :  { %6987 = vmatpush3.bf16.msra.mxu0 %v8711_v52  ;;  %7019 = vmatpush3.bf16.msra.mxu1 %v8856_v40 }
 0x4a4   :  { %6989 = vmatprep.subr.bf16.mxu0 %v8721_v42  ;;  %7021 = vmatprep.subr.bf16.mxu1 %v8866_v44 }
 0x4a5   :  { %2548 = vmatmul.mubr.f32.gmra.mrb[30].mxu0 %v2100_v27  ;;  %2726 = vmatmul.mubr.f32.gmra.mrb[46].mxu1 %v2100_v27 }
 0x4a6   :  { %2553 = vmatprep.mubr.f32.mxu0 %v2105_v39  ;;  %2731 = vmatprep.mubr.f32.mxu1 %v2105_v39 }
 0x4a7   :  { %6991 = vmatpush3.bf16.msra.mxu0 %v8729_v57  ;;  %7023 = vmatpush3.bf16.msra.mxu1 %v8874_v47 }
 0x4a8   :  { %6993 = vmatprep.subr.bf16.mxu0 %v8739_v6  ;;  %7025 = vmatprep.subr.bf16.mxu1 %v8884_v51 }
 0x4a9   :  { %2554 = vmatmul.mubr.f32.gmra.mrb[32].mxu0 %v2104_v3  ;;  %2732 = vmatmul.mubr.f32.gmra.mrb[48].mxu1 %v2104_v3 }
 0x4aa   :  { %2559 = vmatprep.mubr.f32.mxu0 %v2109_v29  ;;  %2737 = vmatprep.mubr.f32.mxu1 %v2109_v29 }
 0x4ab   :  { %6995 = vmatpush3.bf16.msra.mxu0 %v8747_v61  ;;  %7027 = vmatpush3.bf16.msra.mxu1 %v8892_v56 }
 0x4ac   :  { %6997 = vmatprep.subr.bf16.mxu0 %v8757_v0  ;;  %7029 = vmatprep.subr.bf16.mxu1 %v8902_v59 }
 0x4ad   :  { %2560 = vmatmul.mubr.f32.gmra.mrb[34].mxu0 %v2108_v20  ;;  %2738 = vmatmul.mubr.f32.gmra.mrb[50].mxu1 %v2108_v20 }
 0x4af   :  { %6999 = vmatpush3.bf16.msra.mxu0 %v8765_v4  ;;  %7031 = vmatpush3.bf16.msra.mxu1 %v8910_v62 }
 0x4b0   :  { %7001 = vmatprep.subr.bf16.mxu0 %v8775_v8  ;;  %7033 = vmatprep.subr.bf16.mxu1 %v8920_v2 }
 0x4b3   :  { %7003 = vmatpush3.bf16.msra.mxu0 %v8783_v11  ;;  %7035 = vmatpush3.bf16.msra.mxu1 %v8928_v9 }
 0x4b4   :  { %7005 = vmatprep.subr.bf16.mxu0 %v8793_v14  ;;  %7037 = vmatprep.subr.bf16.mxu1 %v8938_v13 }
 0x4b7   :  { %7007 = vmatpush3.bf16.msra.mxu0 %v12134_v26  ;;  %7039 = vmatpush3.bf16.msra.mxu1 %v8946_v18 }
 0x4b8   :  { %7009 = vmatprep.subr.bf16.mxu0 %v12135_v53  ;;  %7041 = vmatprep.subr.bf16.mxu1 %v8956_v23 }
 0x4bb   :  { %7011 = vmatpush3.bf16.msra.mxu0 %v12136_v31  ;;  %7043 = vmatpush3.bf16.msra.mxu1 %v8964_v30 }
 0x4bc   :  { %7013 = vmatprep.subr.bf16.mxu0 %v12137_v12  ;;  %7045 = vmatprep.subr.bf16.mxu1 %v12138_v5 }
 0x4bf   :  { %7015 = vmatpush3.bf16.msra.mxu0 %v12139_v49  ;;  %7047 = vmatpush3.bf16.msra.mxu1 %v12140_v54 }
 0x4c0   :  { %7049 = vmatprep.subr.bf16.mxu0 %v12132_v50  ;;  %7081 = vmatprep.subr.bf16.mxu1 %v12133_v16 }
 0x574   :  { %v2543_v10 = vpop.f32.mrb[28].mxu0  ;;  %v2721_v15 = vpop.f32.mrb[44].mxu1 }
 0x575   :  { %v2545_v37 = vpop.f32.mrb[29].mxu0  ;;  %v2723_v41 = vpop.f32.mrb[45].mxu1  ;;  %v10108_v27 = vadd.f32 %v2543_v10, %v2371_v25  ;;  %v10110_v39 = vadd.f32 %v2721_v15, %v2379_v34 }
 0x576   :  { %v10092_v1 = vadd.f32 %v2545_v37, %v2375_v45  ;;  %v10094_v19 = vadd.f32 %v2723_v41, %v2383_v38 }
 0x578   :  { %v2549_v21 = vpop.f32.mrb[30].mxu0  ;;  %v2727_v32 = vpop.f32.mrb[46].mxu1  ;;  %12144 = vst [vmem:[#allocation13_spill] sm:$0xff] %v10092_v1  ;;  %12145 = vst [vmem:[#allocation12_spill] sm:$0xff] %v10094_v19  ;;  %v2783_v37 = vmul.f32 %v10092_v1, %v10092_v1  ;;  %v2785_v41 = vmul.f32 %v10094_v19, %v10094_v19 }
 0x579   :  { %v2551_v7 = vpop.f32.mrb[31].mxu0  ;;  %v2729_v43 = vpop.f32.mrb[47].mxu1  ;;  %v10100_v63 = vadd.f32 %v2549_v21, %v2371_v25  ;;  %v10102_v24 = vadd.f32 %v2727_v32, %v2379_v34 }
 0x57a   :  { %v10096_v36 = vadd.f32 %v2551_v7, %v2375_v45  ;;  %v10098_v58 = vadd.f32 %v2729_v43, %v2383_v38 }
 0x57b   :  { %v2746_v10 = vadd.f32 %v10100_v63, %v10108_v27  ;;  %v2764_v15 = vadd.f32 %v10102_v24, %v10110_v39 }
 0x57c   :  { %12146 = vst [vmem:[#allocation15_spill] sm:$0xff] %v10096_v36  ;;  %12147 = vst [vmem:[#allocation14_spill] sm:$0xff] %v10098_v58  ;;  %v2787_v28 = vmul.f32 %v10096_v36, %v10096_v36  ;;  %v2789_v60 = vmul.f32 %v10098_v58, %v10098_v58  ;;  %v2555_v48 = vpop.f32.mrb[32].mxu0  ;;  %v2733_v33 = vpop.f32.mrb[48].mxu1  ;;  %v2755_v7 = vadd.f32 %v10096_v36, %v10092_v1 }
 0x57d   :  { %v10112_v3 = vadd.f32 %v2555_v48, %v2371_v25  ;;  %v10114_v29 = vadd.f32 %v2733_v33, %v2379_v34  ;;  %v2557_v20 = vpop.f32.mrb[33].mxu0  ;;  %v2735_v22 = vpop.f32.mrb[49].mxu1  ;;  %v2773_v43 = vadd.f32 %v10098_v58, %v10094_v19 }
 0x57e   :  { %v10120_v21 = vadd.f32 %v2557_v20, %v2375_v45  ;;  %v10122_v32 = vadd.f32 %v2735_v22, %v2383_v38  ;;  %v2807_v48 = vadd.f32 %v2787_v28, %v2783_v37  ;;  %v2825_v33 = vadd.f32 %v2789_v60, %v2785_v41 }
 0x57f   :  { %v2747_v35 = vadd.f32 %v10112_v3, %v2746_v10  ;;  %v2765_v55 = vadd.f32 %v10114_v29, %v2764_v15 }
 0x580   :  { %12148 = vst [vmem:[#allocation3_spill] sm:$0xff] %v10120_v21  ;;  %12149 = vst [vmem:[#allocation4_spill] sm:$0xff] %v10122_v32  ;;  %v2791_v20 = vmul.f32 %v10120_v21, %v10120_v21  ;;  %v2793_v22 = vmul.f32 %v10122_v32, %v10122_v32  ;;  %v2561_v16 = vpop.f32.mrb[34].mxu0  ;;  %v2739_v50 = vpop.f32.mrb[50].mxu1  ;;  %v2756_v28 = vadd.f32 %v10120_v21, %v2755_v7 }
 0x581   :  { %v10138_v46 = vadd.f32 %v2561_v16, %v2371_v25  ;;  %v10140_v36 = vadd.f32 %v2739_v50, %v2379_v34  ;;  %v2563_v1 = vpop.f32.mrb[35].mxu0  ;;  %v2741_v58 = vpop.f32.mrb[51].mxu1  ;;  %v2774_v60 = vadd.f32 %v10122_v32, %v2773_v43 }
 0x582   :  { %v10144_v37 = vadd.f32 %v2563_v1, %v2375_v45  ;;  %v10146_v41 = vadd.f32 %v2741_v58, %v2383_v38  ;;  %v2808_v19 = vadd.f32 %v2807_v48, %v2791_v20  ;;  %v2826_v17 = vadd.f32 %v2825_v33, %v2793_v22 }
 0x583   :  { %v2748_v10 = vadd.f32 %v10138_v46, %v2747_v35  ;;  %v2766_v15 = vadd.f32 %v10140_v36, %v2765_v55 }
 0x584   :  { %12150 = vst [vmem:[#allocation29_spill] sm:$0xff] %v10144_v37  ;;  %12151 = vst [vmem:[#allocation30_spill] sm:$0xff] %v10146_v41  ;;  %v2757_v16 = vadd.f32 %v10144_v37, %v2756_v28  ;;  %v2795_v50 = vmul.f32 %v10144_v37, %v10144_v37  ;;  %v2775_v25 = vadd.f32 %v10146_v41, %v2774_v60 }
 0x585   :  { %v2797_v34 = vmul.f32 %v10146_v41, %v10146_v41  ;;  %v2749_v45 = vrot.slane %v2748_v10, 4  ;;  %v2767_v1 = vrot.slane %v2766_v15, 4 }
 0x586   :  { %v2758_v38 = vrot.slane %v2757_v16, 4  ;;  %v2809_v58 = vadd.f32 %v2808_v19, %v2795_v50  ;;  %v2776_v7 = vrot.slane %v2775_v25, 4 }
 0x587   :  { %v2827_v43 = vadd.f32 %v2826_v17, %v2797_v34  ;;  %v2750_v48 = vadd.f32 %v2749_v45, %v2748_v10  ;;  %v2768_v35 = vadd.f32 %v2767_v1, %v2766_v15 }
 0x588   :  { %v2759_v33 = vadd.f32 %v2758_v38, %v2757_v16  ;;  %v2810_v55 = vrot.slane %v2809_v58, 4  ;;  %v2777_v20 = vadd.f32 %v2776_v7, %v2775_v25  ;;  %v2786_v25 = vmul.f32 %v10100_v63, %v10100_v63 }
 0x589   :  { %v2828_v22 = vrot.slane %v2827_v43, 4  ;;  %v2751_v28 = vrot.slane %v2750_v48, 2  ;;  %v2769_v32 = vrot.slane %v2768_v35, 2  ;;  %v2782_v7 = vmul.f32 %v10108_v27, %v10108_v27 }
 0x58a   :  { %v2760_v37 = vrot.slane %v2759_v33, 2  ;;  %v2778_v21 = vrot.slane %v2777_v20, 2  ;;  %v2811_v60 = vadd.f32 %v2810_v55, %v2809_v58 }
 0x58b   :  { %v2829_v54 = vadd.f32 %v2828_v22, %v2827_v43  ;;  %v2752_v49 = vadd.f32 %v2751_v28, %v2750_v48  ;;  %v2770_v41 = vadd.f32 %v2769_v32, %v2768_v35  ;;  %v2788_v32 = vmul.f32 %v10102_v24, %v10102_v24 }
 0x58c   :  { %v2761_v5 = vadd.f32 %v2760_v37, %v2759_v33  ;;  %v2779_v12 = vadd.f32 %v2778_v21, %v2777_v20  ;;  %v2812_v30 = vrot.slane %v2811_v60, 2  ;;  %v2794_v48 = vmul.f32 %v10138_v46, %v10138_v46 }
 0x58d   :  { %v2830_v19 = vrot.slane %v2829_v54, 2  ;;  %v2753_v50 = vrot.slane %v2752_v49, 1  ;;  %v2771_v17 = vrot.slane %v2770_v41, 1  ;;  %v2796_v35 = vmul.f32 %v10140_v36, %v10140_v36 }
 0x58e   :  { %v2762_v10 = vrot.slane %v2761_v5, 1  ;;  %v2780_v15 = vrot.slane %v2779_v12, 1  ;;  %v2813_v16 = vadd.f32 %v2812_v30, %v2811_v60 }
 0x58f   :  { %v2831_v34 = vadd.f32 %v2830_v19, %v2829_v54  ;;  %v2754_v37 = vadd.f32 %v2753_v50, %v2752_v49  ;;  %v2772_v21 = vadd.f32 %v2771_v17, %v2770_v41  ;;  %v2784_v54 = vmul.f32 %v10110_v39, %v10110_v39 }
 0x590   :  { %v2763_v45 = vadd.f32 %v2762_v10, %v2761_v5  ;;  %v2781_v1 = vadd.f32 %v2780_v15, %v2779_v12  ;;  %v2814_v38 = vrot.slane %v2813_v16, 1  ;;  %v2790_v12 = vmul.f32 %v10112_v3, %v10112_v3 }
 0x591   :  { %v2832_v58 = vrot.slane %v2831_v34, 1  ;;  %v2792_v5 = vmul.f32 %v10114_v29, %v10114_v29  ;;  %v2798_v49 = vadd.f32 %v2786_v25, %v2782_v7  ;;  %v2816_v41 = vadd.f32 %v2788_v32, %v2784_v54  ;;  %v12153_v25 = vld [vmem:[#allocation6_spill] sm:$0xff]  ;;  %v12156_v32 = vld [vmem:[#allocation11_spill] sm:$0xff]  ;;  %v12157_v7 = vld [vmem:[#allocation16_spill] sm:$0xff] }
 0x592   :  { %2898 = vmatprep.mubr.f32.mxu0 %v2763_v45  ;;  %2968 = vmatprep.mubr.f32.mxu1 %v2781_v1  ;;  %v2815_v43 = vadd.f32 %v2814_v38, %v2813_v16  ;;  %v12154_v45 = vld [vmem:[#allocation10_spill] sm:$0xff]  ;;  %v12160_v54 = vld [vmem:[#allocation19_spill] sm:$0xff] }
 0x593   :  { %v2833_v30 = vadd.f32 %v2832_v58, %v2831_v34  ;;  %2899 = vmatmul.mubr.f32.vlgmr.msra.gmra.mrb[36].mxu0 %v2754_v37  ;;  %2969 = vmatmul.mubr.f32.vlgmr.msra.gmra.mrb[52].mxu1 %v2772_v21  ;;  %v2799_v33 = vadd.f32 %v2798_v49, %v2790_v12  ;;  %v2817_v55 = vadd.f32 %v2816_v41, %v2792_v5  ;;  %v12152_v34 = vld [vmem:[#allocation9_spill] sm:$0xff]  ;;  %v12155_v58 = vld [vmem:[#allocation7_spill] sm:$0xff]  ;;  %v12161_v12 = vld [vmem:[#allocation20_spill] sm:$0xff]  ;;  %v12163_v49 = vmov 0.0  }
 0x594   :  { %7051 = vmatpush3.bf16.msra.mxu0 %v8711_v52  ;;  %7083 = vmatpush3.bf16.msra.mxu1 %v8856_v40  ;;  %v12162_v5 = vld [vmem:[#allocation21_spill] sm:$0xff]  ;;  %v12164_v41 = vld [vmem:[#allocation22_spill] sm:$0xff] }
 0x595   :  { %3039 = vmatprep.mubr.f32.mxu0 %v2815_v43  ;;  %3109 = vmatprep.mubr.f32.mxu1 %v2833_v30  ;;  %v2800_v20 = vadd.f32 %v2799_v33, %v2794_v48  ;;  %v2818_v22 = vadd.f32 %v2817_v55, %v2796_v35  ;;  %v12158_v43 = vld [vmem:[#allocation17_spill] sm:$0xff]  ;;  %v12159_v30 = vld [vmem:[#allocation18_spill] sm:$0xff]  ;;  %v12165_v48 = vld [vmem:[#allocation23_spill] sm:$0xff] }
 0x596   :  { %7053 = vmatprep.subr.bf16.mxu0 %v8721_v42  ;;  %7085 = vmatprep.subr.bf16.mxu1 %v8866_v44 }
 0x597   :  { %v2801_v28 = vrot.slane %v2800_v20, 4  ;;  %v2819_v60 = vrot.slane %v2818_v22, 4 }
 0x598   :  { %7055 = vmatpush3.bf16.msra.mxu0 %v8729_v57  ;;  %7087 = vmatpush3.bf16.msra.mxu1 %v8874_v47 }
 0x599   :  { %7057 = vmatprep.subr.bf16.mxu0 %v8739_v6  ;;  %7089 = vmatprep.subr.bf16.mxu1 %v8884_v51  ;;  %v2802_v19 = vadd.f32 %v2801_v28, %v2800_v20  ;;  %v2820_v50 = vadd.f32 %v2819_v60, %v2818_v22 }
 0x59b   :  { %v2803_v17 = vrot.slane %v2802_v19, 2  ;;  %v2821_v10 = vrot.slane %v2820_v50, 2 }
 0x59c   :  { %7059 = vmatpush3.bf16.msra.mxu0 %v8747_v61  ;;  %7091 = vmatpush3.bf16.msra.mxu1 %v8892_v56 }
 0x59d   :  { %7061 = vmatprep.subr.bf16.mxu0 %v8757_v0  ;;  %7093 = vmatprep.subr.bf16.mxu1 %v8902_v59  ;;  %v2804_v15 = vadd.f32 %v2803_v17, %v2802_v19  ;;  %v2822_v16 = vadd.f32 %v2821_v10, %v2820_v50 }
 0x59f   :  { %v2805_v1 = vrot.slane %v2804_v15, 1  ;;  %v2823_v38 = vrot.slane %v2822_v16, 1 }
 0x5a0   :  { %7063 = vmatpush3.bf16.msra.mxu0 %v8765_v4  ;;  %7095 = vmatpush3.bf16.msra.mxu1 %v8910_v62 }
 0x5a1   :  { %7065 = vmatprep.subr.bf16.mxu0 %v8775_v8  ;;  %7097 = vmatprep.subr.bf16.mxu1 %v8920_v2  ;;  %v2806_v37 = vadd.f32 %v2805_v1, %v2804_v15  ;;  %v2824_v21 = vadd.f32 %v2823_v38, %v2822_v16 }
 0x5a4   :  { %7067 = vmatpush3.bf16.msra.mxu0 %v8783_v11  ;;  %7099 = vmatpush3.bf16.msra.mxu1 %v8928_v9 }
 0x5a5   :  { %7069 = vmatprep.subr.bf16.mxu0 %v8793_v14  ;;  %7101 = vmatprep.subr.bf16.mxu1 %v8938_v13 }
 0x5a8   :  { %7071 = vmatpush3.bf16.msra.mxu0 %v12134_v26  ;;  %7103 = vmatpush3.bf16.msra.mxu1 %v8946_v18 }
 0x5a9   :  { %7073 = vmatprep.subr.bf16.mxu0 %v12135_v53  ;;  %7105 = vmatprep.subr.bf16.mxu1 %v8956_v23 }
 0x5ac   :  { %7075 = vmatpush3.bf16.msra.mxu0 %v12136_v31  ;;  %7107 = vmatpush3.bf16.msra.mxu1 %v12152_v34 }
 0x5ad   :  { %7077 = vmatprep.subr.bf16.mxu0 %v12153_v25  ;;  %7109 = vmatprep.subr.bf16.mxu1 %v12154_v45  ;;  %v12172_v45 = vld [vmem:[#allocation15_spill] sm:$0xff] }
 0x5b0   :  { %7079 = vmatpush3.bf16.msra.mxu0 %v12155_v58  ;;  %7111 = vmatpush3.bf16.msra.mxu1 %v12156_v32 }
 0x5b1   :  { %7113 = vmatprep.subr.bf16.mxu0 %v12157_v7  ;;  %7121 = vmatprep.subr.bf16.mxu1 %v12158_v43 }
 0x5b3   :  { %3040 = vmatmul.mubr.f32.vlgmr.msra.gmra.mrb[38].mxu0 %v2806_v37  ;;  %3110 = vmatmul.mubr.f32.vlgmr.msra.gmra.mrb[54].mxu1 %v2824_v21 }
 0x5b4   :  { %7115 = vmatpush1.bf16.msra.mxu0 %v12159_v30  ;;  %7123 = vmatpush1.bf16.msra.mxu1 %v12160_v54 }
 0x5b5   :  { %7117 = vmatprep.subr.bf16.mxu0 %v12161_v12  ;;  %7125 = vmatprep.subr.bf16.mxu1 %v12162_v5 }
 0x5b6   :  { %3187 = vmatprep.mubr.f32.mxu0 %v12163_v49  ;;  %3258 = vmatprep.mubr.f32.mxu1 %v12163_v49 }
 0x5b8   :  { %7119 = vmatpush1.bf16.msra.mxu0 %v12164_v41  ;;  %7127 = vmatpush1.bf16.msra.mxu1 %v12165_v48 }
 0x5b9   :  { %7129 = vmatprep.subr.bf16.mxu0 %v12157_v7  ;;  %7137 = vmatprep.subr.bf16.mxu1 %v12158_v43  ;;  %v3565_v43 = vld [vmem:[%s11996_s14 + $0x8] sm:$0xff] }
 0x666   :  { %v5964_v35 = vpop.f32.mrb[36].mxu0  ;;  %v5999_v33 = vpop.f32.mrb[52].mxu1 }
 0x667   :  { %v5965_v55 = vpop.f32.mrb[37].mxu0  ;;  %v6000_v20 = vpop.f32.mrb[53].mxu1 }
 0x668   :  { %v5966_v22 = vadd.f32 %v5965_v55, %v5964_v35  ;;  %v6001_v28 = vadd.f32 %v6000_v20, %v5999_v33  ;;  %v3569_v33 = vld [vmem:[%s11996_s14 + $0x28] sm:$0xff]  ;;  %v3567_v55 = vld [vmem:[%s11996_s14 + $0x18] sm:$0xff] }
 0x669   :  { %v3571_v20 = vld [vmem:[%s11996_s14 + $0x38] sm:$0xff] }
 0x66a   :  { %v2971_v60 = vadd.f32 %v6001_v28, %v5966_v22  ;;  %v7144_v22 = vpack.c.bf16 %v3569_v33, %v3565_v43  ;;  %v7272_v28 = vpack.c.bf16 %v3571_v20, %v3567_v55  ;;  %v3577_v43 = vld [vmem:[%s11996_s14 + $0x68] sm:$0xff]  ;;  %v3574_v33 = vld [vmem:[%s11996_s14 + $0x50] sm:$0xff] }
 0x66b   :  { %v3578_v55 = vld [vmem:[%s11996_s14 + $0x70] sm:$0xff]  ;;  %v3581_v20 = vld [vmem:[%s11996_s14 + $0x88] sm:$0xff] }
 0x66c   :  { %v2974_v15 = vmul.f32 0.001953125, %v2971_v60  ;;  %v3566_v60 = vld [vmem:[%s11996_s14 + $0x10] sm:$0xff] }
 0x66e   :  { %v3116_v21 = vmul.f32 %v2974_v15, %v2974_v15 }
 0x686   :  { %v6034_v19 = vpop.f32.mrb[38].mxu0  ;;  %v6069_v50 = vpop.f32.mrb[54].mxu1 }
 0x687   :  { %v6035_v17 = vpop.f32.mrb[39].mxu0  ;;  %v6070_v10 = vpop.f32.mrb[55].mxu1 }
 0x688   :  { %v6036_v16 = vadd.f32 %v6035_v17, %v6034_v19  ;;  %v6071_v1 = vadd.f32 %v6070_v10, %v6069_v50  ;;  %v3570_v19 = vld [vmem:[%s11996_s14 + $0x30] sm:$0xff]  ;;  %v3573_v50 = vld [vmem:[%s11996_s14 + $0x48] sm:$0xff]  ;;  %v3575_v17 = vld [vmem:[%s11996_s14 + $0x58] sm:$0xff] }
 0x689   :  { %v3579_v10 = vld [vmem:[%s11996_s14 + $0x78] sm:$0xff] }
 0x68a   :  { %v3112_v38 = vadd.f32 %v6071_v1, %v6036_v16  ;;  %v7274_v1 = vpack.c.bf16 %v3570_v19, %v3566_v60  ;;  %v7278_v60 = vpack.c.bf16 %v3578_v55, %v3574_v33  ;;  %v3580_v19 = vld [vmem:[%s11996_s14 + $0x80] sm:$0xff] }
 0x68b   :  { %v3588_v33 = vld [vmem:[%s11996_s14 + $0xc0] sm:$0xff] }
 0x68c   :  { %v3115_v37 = vmul.f32 0.001953125, %v3112_v38  ;;  %v3572_v38 = vld [vmem:[%s11996_s14 + $0x40] sm:$0xff] }
 0x68d   :  { %v3592_v55 = vld [vmem:[%s11996_s14 + $0xe0] sm:$0xff] }
 0x68e   :  { %v3117_v7 = vsub.f32 %v3115_v37, %v3116_v21  ;;  %v3576_v37 = vld [vmem:[%s11996_s14 + $0x60] sm:$0xff]  ;;  %v7148_v21 = vpack.c.bf16 %v3577_v43, %v3573_v50 }
 0x68f   :  { %v3584_v50 = vld [vmem:[%s11996_s14 + $0xa0] sm:$0xff] }
 0x690   :  { %v3118_v32 = vadd.f32 1e-05, %v3117_v7  ;;  %v3568_v7 = vld [vmem:[%s11996_s14 + $0x20] sm:$0xff] }
 0x692   :  { %7880 = vrsqrt.f32 %v3118_v32  ;;  %v3564_v32 = vld [vmem:[%s11996_s14] sm:$0xff] }
 0x693   :  { %v7146_v16 = vpack.c.bf16 %v3568_v7, %v3564_v32  ;;  %v3585_v32 = vld [vmem:[%s11996_s14 + $0xa8] sm:$0xff]  ;;  %v3583_v7 = vld [vmem:[%s11996_s14 + $0x98] sm:$0xff] }
 0x694   :  { %v7152_v43 = vpack.c.bf16 %v3585_v32, %v3581_v20 }
 0x69c   :  { %v7881_v35 = vpop.eup %7880 }
 0x69d   :  { %5775 = vmatmul.mubr.msk.f32.vlgmr.msra.gmra.mrb[40].mxu0 %vm877_vm0, %v7881_v35  ;;  %5776 = vmatmul.mubr.msk.f32.vlgmr.msra.gmra.mrb[56].mxu1 %vm877_vm0, %v7881_v35  ;;  %v7276_v35 = vpack.c.bf16 %v3579_v10, %v3575_v17  ;;  %v3586_v10 = vld [vmem:[%s11996_s14 + $0xb0] sm:$0xff] }
 0x69e   :  { %7131 = vmatpush1.bf16.msra.mxu0 %v12159_v30  ;;  %7139 = vmatpush1.bf16.msra.mxu1 %v12160_v54 }
 0x69f   :  { %7133 = vmatprep.subr.bf16.mxu0 %v12161_v12  ;;  %7141 = vmatprep.subr.bf16.mxu1 %v12162_v5  ;;  %v12171_v12 = vld [vmem:[#allocation13_spill] sm:$0xff] }
 0x6a0   :  { %3332 = vmatprep.mubr.f32.mxu0 %v12163_v49  ;;  %3403 = vmatprep.mubr.f32.mxu1 %v12163_v49 }
 0x6a2   :  { %7135 = vmatpush1.bf16.msra.mxu0 %v12164_v41  ;;  %7143 = vmatpush1.bf16.msra.mxu1 %v12165_v48 }
 0x6a3   :  { %7145 = vmatprep.subr.bf16.mxu0 %v7144_v22  ;;  %7273 = vmatprep.subr.bf16.mxu1 %v7272_v28  ;;  %v3587_v22 = vld [vmem:[%s11996_s14 + $0xb8] sm:$0xff]  ;;  %v7150_v28 = vpack.c.bf16 %v3576_v37, %v3572_v38 }
 0x6a4   :  { %v7280_v17 = vpack.c.bf16 %v3587_v22, %v3583_v7  ;;  %v3591_v38 = vld [vmem:[%s11996_s14 + $0xd8] sm:$0xff]  ;;  %v3590_v7 = vld [vmem:[%s11996_s14 + $0xd0] sm:$0xff] }
 0x6a5   :  { %5777 = vmatmul.mubr.msk.f32.vlgmr.msra.gmra.mrb[42].mxu0 %vm877_vm0, %v2974_v15  ;;  %5778 = vmatmul.mubr.msk.f32.vlgmr.msra.gmra.mrb[58].mxu1 %vm877_vm0, %v2974_v15  ;;  %v3582_v15 = vld [vmem:[%s11996_s14 + $0x90] sm:$0xff]  ;;  %v3595_v37 = vld [vmem:[%s11996_s14 + $0xf8] sm:$0xff] }
 0x6a6   :  { %7147 = vmatpush1.bf16.msra.mxu0 %v7146_v16  ;;  %7275 = vmatpush1.bf16.msra.mxu1 %v7274_v1  ;;  %v3589_v16 = vld [vmem:[%s11996_s14 + $0xc8] sm:$0xff]  ;;  %v7284_v32 = vpack.c.bf16 %v3595_v37, %v3591_v38  ;;  %v3594_v22 = vld [vmem:[%s11996_s14 + $0xf0] sm:$0xff] }
 0x6a7   :  { %7149 = vmatprep.subr.bf16.mxu0 %v7148_v21  ;;  %7277 = vmatprep.subr.bf16.mxu1 %v7276_v35  ;;  %v3593_v1 = vld [vmem:[%s11996_s14 + $0xe8] sm:$0xff]  ;;  %v7154_v21 = vpack.c.bf16 %v3584_v50, %v3580_v19  ;;  %v7282_v35 = vpack.c.bf16 %v3586_v10, %v3582_v15  ;;  %v3599_v19 = vld [vmem:[%s11996_s14 + $0x118] sm:$0xff]  ;;  %v3596_v15 = vld [vmem:[%s11996_s14 + $0x100] sm:$0xff] }
 0x6a8   :  { %v7156_v20 = vpack.c.bf16 %v3593_v1, %v3589_v16  ;;  %v3603_v50 = vld [vmem:[%s11996_s14 + $0x138] sm:$0xff]  ;;  %v3600_v10 = vld [vmem:[%s11996_s14 + $0x120] sm:$0xff]  ;;  %v3598_v38 = vld [vmem:[%s11996_s14 + $0x110] sm:$0xff] }
 0x6a9   :  { %v7288_v1 = vpack.c.bf16 %v3603_v50, %v3599_v19  ;;  %v3602_v37 = vld [vmem:[%s11996_s14 + $0x130] sm:$0xff] }
 0x6aa   :  { %7151 = vmatpush1.bf16.msra.mxu0 %v7150_v28  ;;  %7279 = vmatpush1.bf16.msra.mxu1 %v7278_v60  ;;  %v3597_v28 = vld [vmem:[%s11996_s14 + $0x108] sm:$0xff]  ;;  %v3606_v19 = vld [vmem:[%s11996_s14 + $0x150] sm:$0xff] }
 0x6ab   :  { %7153 = vmatprep.subr.bf16.mxu0 %v7152_v43  ;;  %7281 = vmatprep.subr.bf16.mxu1 %v7280_v17  ;;  %v3601_v60 = vld [vmem:[%s11996_s14 + $0x128] sm:$0xff]  ;;  %v7158_v43 = vpack.c.bf16 %v3592_v55, %v3588_v33  ;;  %v7286_v17 = vpack.c.bf16 %v3594_v22, %v3590_v7  ;;  %v3607_v33 = vld [vmem:[%s11996_s14 + $0x158] sm:$0xff]  ;;  %v3604_v7 = vld [vmem:[%s11996_s14 + $0x140] sm:$0xff] }
 0x6ac   :  { %v7160_v16 = vpack.c.bf16 %v3601_v60, %v3597_v28  ;;  %v3611_v55 = vld [vmem:[%s11996_s14 + $0x178] sm:$0xff]  ;;  %v3608_v22 = vld [vmem:[%s11996_s14 + $0x160] sm:$0xff]  ;;  %v3610_v50 = vld [vmem:[%s11996_s14 + $0x170] sm:$0xff] }
 0x6ad   :  { %v7292_v60 = vpack.c.bf16 %v3611_v55, %v3607_v33  ;;  %v3614_v33 = vld [vmem:[%s11996_s14 + $0x190] sm:$0xff] }
 0x6ae   :  { %7155 = vmatpush1.bf16.msra.mxu0 %v7154_v21  ;;  %7283 = vmatpush1.bf16.msra.mxu1 %v7282_v35  ;;  %v3605_v21 = vld [vmem:[%s11996_s14 + $0x148] sm:$0xff]  ;;  %v3618_v55 = vld [vmem:[%s11996_s14 + $0x1b0] sm:$0xff] }
 0x6af   :  { %7157 = vmatprep.subr.bf16.mxu0 %v7156_v20  ;;  %7285 = vmatprep.subr.bf16.mxu1 %v7284_v32  ;;  %v3609_v35 = vld [vmem:[%s11996_s14 + $0x168] sm:$0xff]  ;;  %v7162_v20 = vpack.c.bf16 %v3600_v10, %v3596_v15  ;;  %v7290_v32 = vpack.c.bf16 %v3602_v37, %v3598_v38  ;;  %v3615_v15 = vld [vmem:[%s11996_s14 + $0x198] sm:$0xff]  ;;  %v3612_v38 = vld [vmem:[%s11996_s14 + $0x180] sm:$0xff] }
 0x6b0   :  { %v7164_v28 = vpack.c.bf16 %v3609_v35, %v3605_v21  ;;  %v3619_v10 = vld [vmem:[%s11996_s14 + $0x1b8] sm:$0xff]  ;;  %v3616_v37 = vld [vmem:[%s11996_s14 + $0x1a0] sm:$0xff] }
 0x6b1   :  { %v7296_v35 = vpack.c.bf16 %v3619_v10, %v3615_v15  ;;  %v3622_v15 = vld [vmem:[%s11996_s14 + $0x1d0] sm:$0xff] }
 0x6b2   :  { %7159 = vmatpush1.bf16.msra.mxu0 %v7158_v43  ;;  %7287 = vmatpush1.bf16.msra.mxu1 %v7286_v17  ;;  %v3613_v43 = vld [vmem:[%s11996_s14 + $0x188] sm:$0xff]  ;;  %v3626_v10 = vld [vmem:[%s11996_s14 + $0x1f0] sm:$0xff] }
 0x6b3   :  { %7161 = vmatprep.subr.bf16.mxu0 %v7160_v16  ;;  %7289 = vmatprep.subr.bf16.mxu1 %v7288_v1  ;;  %v3617_v17 = vld [vmem:[%s11996_s14 + $0x1a8] sm:$0xff]  ;;  %v7166_v16 = vpack.c.bf16 %v3608_v22, %v3604_v7  ;;  %v7294_v1 = vpack.c.bf16 %v3610_v50, %v3606_v19  ;;  %v3623_v7 = vld [vmem:[%s11996_s14 + $0x1d8] sm:$0xff]  ;;  %v3620_v19 = vld [vmem:[%s11996_s14 + $0x1c0] sm:$0xff] }
 0x6b4   :  { %v7168_v21 = vpack.c.bf16 %v3617_v17, %v3613_v43  ;;  %v3627_v22 = vld [vmem:[%s11996_s14 + $0x1f8] sm:$0xff]  ;;  %v3624_v17 = vld [vmem:[%s11996_s14 + $0x1e0] sm:$0xff] }
 0x6b5   :  { %v7300_v43 = vpack.c.bf16 %v3627_v22, %v3623_v7  ;;  %v3630_v7 = vld [vmem:[%s11996_s14 + $0x210] sm:$0xff] }
 0x6b6   :  { %7163 = vmatpush1.bf16.msra.mxu0 %v7162_v20  ;;  %7291 = vmatpush1.bf16.msra.mxu1 %v7290_v32  ;;  %v3621_v20 = vld [vmem:[%s11996_s14 + $0x1c8] sm:$0xff] }
 0x6b7   :  { %7165 = vmatprep.subr.bf16.mxu0 %v7164_v28  ;;  %7293 = vmatprep.subr.bf16.mxu1 %v7292_v60  ;;  %v3625_v32 = vld [vmem:[%s11996_s14 + $0x1e8] sm:$0xff]  ;;  %v7170_v28 = vpack.c.bf16 %v3616_v37, %v3612_v38  ;;  %v7298_v60 = vpack.c.bf16 %v3618_v55, %v3614_v33  ;;  %v3635_v33 = vld [vmem:[%s11996_s14 + $0x238] sm:$0xff] }
 0x6b8   :  { %v7172_v50 = vpack.c.bf16 %v3625_v32, %v3621_v20  ;;  %v3629_v38 = vld [vmem:[%s11996_s14 + $0x208] sm:$0xff]  ;;  %v3628_v20 = vld [vmem:[%s11996_s14 + $0x200] sm:$0xff] }
 0x6b9   :  { %v3633_v37 = vld [vmem:[%s11996_s14 + $0x228] sm:$0xff]  ;;  %v3632_v32 = vld [vmem:[%s11996_s14 + $0x220] sm:$0xff] }
 0x6ba   :  { %7167 = vmatpush1.bf16.msra.mxu0 %v7166_v16  ;;  %7295 = vmatpush1.bf16.msra.mxu1 %v7294_v1  ;;  %v7174_v16 = vpack.c.bf16 %v3624_v17, %v3620_v19  ;;  %v7302_v1 = vpack.c.bf16 %v3626_v10, %v3622_v15  ;;  %v7178_v22 = vpack.c.bf16 %v3632_v32, %v3628_v20  ;;  %v3637_v19 = vld [vmem:[%s11996_s14 + $0x248] sm:$0xff]  ;;  %v3643_v15 = vld [vmem:[%s11996_s14 + $0x278] sm:$0xff]  ;;  %v3636_v10 = vld [vmem:[%s11996_s14 + $0x240] sm:$0xff] }
 0x6bb   :  { %7169 = vmatprep.subr.bf16.mxu0 %v7168_v21  ;;  %7297 = vmatprep.subr.bf16.mxu1 %v7296_v35  ;;  %v3631_v21 = vld [vmem:[%s11996_s14 + $0x218] sm:$0xff]  ;;  %v7176_v35 = vpack.c.bf16 %v3633_v37, %v3629_v38  ;;  %v3638_v37 = vld [vmem:[%s11996_s14 + $0x250] sm:$0xff] }
 0x6bc   :  { %v7304_v55 = vpack.c.bf16 %v3635_v33, %v3631_v21  ;;  %v3642_v21 = vld [vmem:[%s11996_s14 + $0x270] sm:$0xff]  ;;  %v3645_v33 = vld [vmem:[%s11996_s14 + $0x288] sm:$0xff]  ;;  %v3647_v20 = vld [vmem:[%s11996_s14 + $0x298] sm:$0xff] }
 0x6be   :  { %7171 = vmatpush1.bf16.msra.mxu0 %v7170_v28  ;;  %7299 = vmatpush1.bf16.msra.mxu1 %v7298_v60  ;;  %v3634_v28 = vld [vmem:[%s11996_s14 + $0x230] sm:$0xff] }
 0x6bf   :  { %7173 = vmatprep.subr.bf16.mxu0 %v7172_v50  ;;  %7301 = vmatprep.subr.bf16.mxu1 %v7300_v43  ;;  %v7306_v60 = vpack.c.bf16 %v3634_v28, %v3630_v7  ;;  %v3641_v50 = vld [vmem:[%s11996_s14 + $0x268] sm:$0xff]  ;;  %v3639_v43 = vld [vmem:[%s11996_s14 + $0x258] sm:$0xff]  ;;  %v3648_v28 = vld [vmem:[%s11996_s14 + $0x2a0] sm:$0xff] }
 0x6c0   :  { %v7180_v17 = vpack.c.bf16 %v3641_v50, %v3637_v19  ;;  %v3651_v7 = vld [vmem:[%s11996_s14 + $0x2b8] sm:$0xff]  ;;  %v3646_v50 = vld [vmem:[%s11996_s14 + $0x290] sm:$0xff] }
 0x6c2   :  { %7175 = vmatpush1.bf16.msra.mxu0 %v7174_v16  ;;  %7303 = vmatpush1.bf16.msra.mxu1 %v7302_v1  ;;  %v3640_v16 = vld [vmem:[%s11996_s14 + $0x260] sm:$0xff]  ;;  %v7308_v1 = vpack.c.bf16 %v3643_v15, %v3639_v43  ;;  %v3650_v43 = vld [vmem:[%s11996_s14 + $0x2b0] sm:$0xff]  ;;  %v3653_v15 = vld [vmem:[%s11996_s14 + $0x2c8] sm:$0xff] }
 0x6c3   :  { %7177 = vmatprep.subr.bf16.mxu0 %v7176_v35  ;;  %7305 = vmatprep.subr.bf16.mxu1 %v7304_v55  ;;  %v7182_v38 = vpack.c.bf16 %v3640_v16, %v3636_v10  ;;  %v7310_v35 = vpack.c.bf16 %v3642_v21, %v3638_v37  ;;  %v3649_v55 = vld [vmem:[%s11996_s14 + $0x2a8] sm:$0xff]  ;;  %v3655_v16 = vld [vmem:[%s11996_s14 + $0x2d8] sm:$0xff]  ;;  %v3652_v37 = vld [vmem:[%s11996_s14 + $0x2c0] sm:$0xff] }
 0x6c4   :  { %v7184_v32 = vpack.c.bf16 %v3649_v55, %v3645_v33  ;;  %v3657_v10 = vld [vmem:[%s11996_s14 + $0x2e8] sm:$0xff]  ;;  %v3656_v21 = vld [vmem:[%s11996_s14 + $0x2e0] sm:$0xff]  ;;  %v3654_v55 = vld [vmem:[%s11996_s14 + $0x2d0] sm:$0xff] }
 0x6c5   :  { %v7190_v33 = vpack.c.bf16 %v3656_v21, %v3652_v37  ;;  %v3673_v37 = vld [vmem:[%s11996_s14 + $0x368] sm:$0xff]  ;;  %v3671_v21 = vld [vmem:[%s11996_s14 + $0x358] sm:$0xff] }
 0x6c6   :  { %7179 = vmatpush1.bf16.msra.mxu0 %v7178_v22  ;;  %7307 = vmatpush1.bf16.msra.mxu1 %v7306_v60  ;;  %v3644_v22 = vld [vmem:[%s11996_s14 + $0x280] sm:$0xff]  ;;  %v7312_v60 = vpack.c.bf16 %v3651_v7, %v3647_v20  ;;  %v3658_v20 = vld [vmem:[%s11996_s14 + $0x2f0] sm:$0xff]  ;;  %v3661_v7 = vld [vmem:[%s11996_s14 + $0x308] sm:$0xff] }
 0x6c7   :  { %7181 = vmatprep.subr.bf16.mxu0 %v7180_v17  ;;  %7309 = vmatprep.subr.bf16.mxu1 %v7308_v1  ;;  %v7186_v19 = vpack.c.bf16 %v3648_v28, %v3644_v22  ;;  %v7314_v17 = vpack.c.bf16 %v3650_v43, %v3646_v50  ;;  %v7188_v1 = vpack.c.bf16 %v3657_v10, %v3653_v15  ;;  %v3665_v22 = vld [vmem:[%s11996_s14 + $0x328] sm:$0xff]  ;;  %v3663_v28 = vld [vmem:[%s11996_s14 + $0x318] sm:$0xff]  ;;  %v3660_v50 = vld [vmem:[%s11996_s14 + $0x300] sm:$0xff] }
 0x6c8   :  { %v3662_v15 = vld [vmem:[%s11996_s14 + $0x310] sm:$0xff] }
 0x6c9   :  { %v3666_v10 = vld [vmem:[%s11996_s14 + $0x330] sm:$0xff] }
 0x6ca   :  { %7183 = vmatpush1.bf16.msra.mxu0 %v7182_v38  ;;  %7311 = vmatpush1.bf16.msra.mxu1 %v7310_v35  ;;  %v3659_v38 = vld [vmem:[%s11996_s14 + $0x2f8] sm:$0xff] }
 0x6cb   :  { %7185 = vmatprep.subr.bf16.mxu0 %v7184_v32  ;;  %7313 = vmatprep.subr.bf16.mxu1 %v7312_v60  ;;  %v7316_v35 = vpack.c.bf16 %v3659_v38, %v3655_v16  ;;  %v7318_v32 = vpack.c.bf16 %v3658_v20, %v3654_v55  ;;  %v7192_v60 = vpack.c.bf16 %v3665_v22, %v3661_v7  ;;  %v3669_v38 = vld [vmem:[%s11996_s14 + $0x348] sm:$0xff]  ;;  %v3668_v55 = vld [vmem:[%s11996_s14 + $0x340] sm:$0xff]  ;;  %v3670_v22 = vld [vmem:[%s11996_s14 + $0x350] sm:$0xff] }
 0x6cc   :  { %v3672_v20 = vld [vmem:[%s11996_s14 + $0x360] sm:$0xff] }
 0x6cd   :  { %v7198_v7 = vpack.c.bf16 %v3672_v20, %v3668_v55  ;;  %v3689_v55 = vld [vmem:[%s11996_s14 + $0x3e8] sm:$0xff]  ;;  %v3687_v20 = vld [vmem:[%s11996_s14 + $0x3d8] sm:$0xff] }
 0x6ce   :  { %7187 = vmatpush1.bf16.msra.mxu0 %v7186_v19  ;;  %7315 = vmatpush1.bf16.msra.mxu1 %v7314_v17  ;;  %v3667_v19 = vld [vmem:[%s11996_s14 + $0x338] sm:$0xff]  ;;  %v3664_v17 = vld [vmem:[%s11996_s14 + $0x320] sm:$0xff] }
 0x6cf   :  { %7189 = vmatprep.subr.bf16.mxu0 %v7188_v1  ;;  %7317 = vmatprep.subr.bf16.mxu1 %v7316_v35  ;;  %v7320_v43 = vpack.c.bf16 %v3667_v19, %v3663_v28  ;;  %v7194_v16 = vpack.c.bf16 %v3664_v17, %v3660_v50  ;;  %v7322_v1 = vpack.c.bf16 %v3666_v10, %v3662_v15  ;;  %v3674_v28 = vld [vmem:[%s11996_s14 + $0x370] sm:$0xff]  ;;  %v3677_v19 = vld [vmem:[%s11996_s14 + $0x388] sm:$0xff]  ;;  %v3683_v15 = vld [vmem:[%s11996_s14 + $0x3b8] sm:$0xff] }
 0x6d0   :  { %v7196_v35 = vpack.c.bf16 %v3673_v37, %v3669_v38  ;;  %v3681_v50 = vld [vmem:[%s11996_s14 + $0x3a8] sm:$0xff]  ;;  %v3676_v10 = vld [vmem:[%s11996_s14 + $0x380] sm:$0xff]  ;;  %v3678_v37 = vld [vmem:[%s11996_s14 + $0x390] sm:$0xff] }
 0x6d1   :  { %v7200_v17 = vpack.c.bf16 %v3681_v50, %v3677_v19  ;;  %v3686_v19 = vld [vmem:[%s11996_s14 + $0x3d0] sm:$0xff] }
 0x6d2   :  { %7191 = vmatpush1.bf16.msra.mxu0 %v7190_v33  ;;  %7319 = vmatpush1.bf16.msra.mxu1 %v7318_v32  ;;  %v3675_v33 = vld [vmem:[%s11996_s14 + $0x378] sm:$0xff] }
 0x6d3   :  { %7193 = vmatprep.subr.bf16.mxu0 %v7192_v60  ;;  %7321 = vmatprep.subr.bf16.mxu1 %v7320_v43  ;;  %v7324_v32 = vpack.c.bf16 %v3675_v33, %v3671_v21  ;;  %v7326_v60 = vpack.c.bf16 %v3674_v28, %v3670_v22  ;;  %v3679_v43 = vld [vmem:[%s11996_s14 + $0x398] sm:$0xff]  ;;  %v3682_v21 = vld [vmem:[%s11996_s14 + $0x3b0] sm:$0xff]  ;;  %v3684_v28 = vld [vmem:[%s11996_s14 + $0x3c0] sm:$0xff] }
 0x6d4   :  { %v7330_v33 = vpack.c.bf16 %v3682_v21, %v3678_v37 }
 0x6d6   :  { %7195 = vmatpush1.bf16.msra.mxu0 %v7194_v16  ;;  %7323 = vmatpush1.bf16.msra.mxu1 %v7322_v1  ;;  %v3680_v16 = vld [vmem:[%s11996_s14 + $0x3a0] sm:$0xff]  ;;  %v7328_v1 = vpack.c.bf16 %v3683_v15, %v3679_v43  ;;  %v3690_v43 = vld [vmem:[%s11996_s14 + $0x3f0] sm:$0xff]  ;;  %v3693_v15 = vld [vmem:[%s11996_s14 + $0x408] sm:$0xff] }
 0x6d7   :  { %7197 = vmatprep.subr.bf16.mxu0 %v7196_v35  ;;  %7325 = vmatprep.subr.bf16.mxu1 %v7324_v32  ;;  %v7202_v38 = vpack.c.bf16 %v3680_v16, %v3676_v10  ;;  %v3685_v35 = vld [vmem:[%s11996_s14 + $0x3c8] sm:$0xff]  ;;  %v3691_v32 = vld [vmem:[%s11996_s14 + $0x3f8] sm:$0xff] }
 0x6d8   :  { %v7332_v22 = vpack.c.bf16 %v3691_v32, %v3687_v20  ;;  %v3697_v10 = vld [vmem:[%s11996_s14 + $0x428] sm:$0xff]  ;;  %v3695_v16 = vld [vmem:[%s11996_s14 + $0x418] sm:$0xff] }
 0x6da   :  { %7199 = vmatpush1.bf16.msra.mxu0 %v7198_v7  ;;  %7327 = vmatpush1.bf16.msra.mxu1 %v7326_v60  ;;  %v7204_v7 = vpack.c.bf16 %v3689_v55, %v3685_v35  ;;  %v3688_v60 = vld [vmem:[%s11996_s14 + $0x3e0] sm:$0xff] }
 0x6db   :  { %7201 = vmatprep.subr.bf16.mxu0 %v7200_v17  ;;  %7329 = vmatprep.subr.bf16.mxu1 %v7328_v1  ;;  %v7206_v50 = vpack.c.bf16 %v3688_v60, %v3684_v28  ;;  %v7334_v17 = vpack.c.bf16 %v3690_v43, %v3686_v19  ;;  %v7208_v1 = vpack.c.bf16 %v3697_v10, %v3693_v15  ;;  %v2744_v19 = vld [vmem:[%s11997_s8] sm:$0xf] }
 0x6de   :  { %7203 = vmatpush1.bf16.msra.mxu0 %v7202_v38  ;;  %7331 = vmatpush1.bf16.msra.mxu1 %v7330_v33  ;;  %v3699_v38 = vld [vmem:[%s11996_s14 + $0x438] sm:$0xff] }
 0x6df   :  { %7205 = vmatprep.subr.bf16.mxu0 %v7204_v7  ;;  %7333 = vmatprep.subr.bf16.mxu1 %v7332_v22  ;;  %v7336_v37 = vpack.c.bf16 %v3699_v38, %v3695_v16  ;;  %v12166_v7 = vld [vmem:[#allocation24_spill] sm:$0xff] }
 0x6e2   :  { %7207 = vmatpush1.bf16.msra.mxu0 %v7206_v50  ;;  %7335 = vmatpush1.bf16.msra.mxu1 %v7334_v17 }
 0x6e3   :  { %7209 = vmatprep.subr.bf16.mxu0 %v7208_v1  ;;  %7337 = vmatprep.subr.bf16.mxu1 %v7336_v37  ;;  %v12167_v1 = vld [vmem:[#allocation25_spill] sm:$0xff]  ;;  %v12168_v37 = vld [vmem:[#allocation26_spill] sm:$0xff] }
 0x770   :  { %v3189_v21 = vpop.f32.mrb[40].mxu0  ;;  %v3260_v35 = vpop.f32.mrb[56].mxu1 }
 0x771   :  { %v3191_v33 = vpop.f32.mrb[41].mxu0  ;;  %v3262_v55 = vpop.f32.mrb[57].mxu1 }
 0x772   :  { %v3414_v20 = vcombine.low %v3189_v21, %v3191_v33  ;;  %v3415_v32 = vcombine.low %v3260_v35, %v3262_v55  ;;  %v12169_v35 = vld [vmem:[#allocation27_spill] sm:$0xff]  ;;  %v12170_v55 = vld [vmem:[#allocation28_spill] sm:$0xff] }
 0x774   :  { %v3422_v22 = vrot.slane %v3414_v20, %v12166_v7  ;;  %v3429_v28 = vrot.slane %v3415_v32, %v12166_v7 }
 0x776   :  { %v3430_v60 = vcombine.low %v3422_v22, %v3429_v28 }
 0x778   :  { %v3437_v50 = vrot.slane %v3430_v60, %v12166_v7  ;;  %v3334_v43 = vpop.f32.mrb[42].mxu0  ;;  %v3405_v17 = vpop.f32.mrb[58].mxu1 }
 0x779   :  { %v3336_v15 = vpop.f32.mrb[43].mxu0  ;;  %v3407_v10 = vpop.f32.mrb[59].mxu1 }
 0x77a   :  { %v3439_v16 = vmul.f32 %v3437_v50, %v2744_v19  ;;  %v10637_v19 = vld [vmem:[%s11996_s14 + $0x400] sm:$0xff] }
 0x77b   :  { %v10642_v50 = vld [vmem:[%s11996_s14 + $0x420] sm:$0xff] }
 0x77c   :  { %v3444_v38 = vrot.slane %v3439_v16, %v12167_v1  ;;  %v3452_v21 = vrot.slane %v3439_v16, %v12168_v37  ;;  %v3448_v33 = vrot.slane %v3439_v16, %v12169_v35  ;;  %v3456_v20 = vrot.slane %v3439_v16, %v12170_v55 }
 0x77e   :  { %v3461_v32 = vmul.f32 %v3444_v38, %v3334_v43  ;;  %v3463_v22 = vmul.f32 %v3452_v21, %v3405_v17  ;;  %v3462_v28 = vmul.f32 %v3448_v33, %v3336_v15  ;;  %v3464_v48 = vmul.f32 %v3456_v20, %v3407_v10  ;;  %v10647_v43 = vld [vmem:[%s11996_s14 + $0x410] sm:$0xff]  ;;  %v10660_v17 = vld [vmem:[%s11996_s14 + $0x468] sm:$0xff]  ;;  %v2745_v15 = vld [vmem:[%s11998_s9] sm:$0xf] }
 0x77f   :  { %v10673_v10 = vld [vmem:[%s11996_s14 + $0x478] sm:$0xff]  ;;  %v3496_v54 = vmul.f32 %v12171_v12, %v3448_v33  ;;  %v3495_v30 = vmul.f32 %v10108_v27, %v3444_v38  ;;  %v3500_v25 = vmul.f32 %v12172_v45, %v3448_v33  ;;  %v3507_v12 = vmul.f32 %v10138_v46, %v3444_v38 }
 0x780   :  { %v3469_v41 = vcombine.low %v3461_v32, %v3462_v28  ;;  %v3470_v49 = vcombine.low %v3463_v22, %v3464_v48  ;;  %v7210_v32 = vpack.c.bf16 %v10642_v50, %v10637_v19  ;;  %v3503_v19 = vmul.f32 %v10112_v3, %v3444_v38 }
 0x782   :  { %v3477_v60 = vrot.slane %v3469_v41, %v12166_v7  ;;  %v3484_v5 = vrot.slane %v3470_v49, %v12166_v7  ;;  %v3698_v49 = vld [vmem:[%s11996_s14 + $0x430] sm:$0xff]  ;;  %v10655_v41 = vld [vmem:[%s11996_s14 + $0x448] sm:$0xff] }
 0x783   :  { %v7338_v22 = vpack.c.bf16 %v3698_v49, %v10647_v43  ;;  %v12174_v49 = vld [vmem:[#allocation29_spill] sm:$0xff] }
 0x784   :  { %v3485_v48 = vcombine.low %v3477_v60, %v3484_v5  ;;  %v10668_v5 = vld [vmem:[%s11996_s14 + $0x458] sm:$0xff] }
 0x785   :  { %v7340_v58 = vpack.c.bf16 %v10673_v10, %v10668_v5 }
 0x786   :  { %v3492_v16 = vrot.slane %v3485_v48, %v12166_v7  ;;  %v3499_v48 = vmul.f32 %v10100_v63, %v3444_v38  ;;  %v12173_v7 = vld [vmem:[#allocation3_spill] sm:$0xff]  ;;  %v3497_v63 = vmul.f32 %v10110_v39, %v3452_v21  ;;  %v3501_v39 = vmul.f32 %v10102_v24, %v3452_v21 }
 0x787   :  { %v3504_v34 = vmul.f32 %v12173_v7, %v3448_v33  ;;  %v3509_v24 = vmul.f32 %v10140_v36, %v3452_v21  ;;  %v3711_v36 = vld [vmem:[%s11996_s14 + $0x498] sm:$0xff] }
 0x788   :  { %v3494_v60 = vsub.f32 %v2745_v15, %v3492_v16  ;;  %v3508_v15 = vmul.f32 %v12174_v49, %v3448_v33  ;;  %v12175_v16 = vld [vmem:[#allocation12_spill] sm:$0xff]  ;;  %v3700_v49 = vld [vmem:[%s11996_s14 + $0x440] sm:$0xff] }
 0x789   :  { %v3498_v5 = vmul.f32 %v12175_v16, %v3456_v20 }
 0x78a   :  { %v3519_v50 = vrot.slane %v3494_v60, %v12169_v35  ;;  %v3515_v43 = vrot.slane %v3494_v60, %v12167_v1  ;;  %v3523_v27 = vrot.slane %v3494_v60, %v12168_v37  ;;  %v3527_v45 = vrot.slane %v3494_v60, %v12170_v55  ;;  %v12176_v60 = vld [vmem:[#allocation14_spill] sm:$0xff] }
 0x78b   :  { %v3502_v16 = vmul.f32 %v12176_v60, %v3456_v20 }
 0x78c   :  { %v3533_v10 = vadd.f32 %v3519_v50, %v3496_v54  ;;  %v3532_v7 = vadd.f32 %v3515_v43, %v3495_v30  ;;  %v3537_v28 = vadd.f32 %v3519_v50, %v3500_v25  ;;  %v3536_v3 = vadd.f32 %v3515_v43, %v3499_v48  ;;  %v3702_v25 = vld [vmem:[%s11996_s14 + $0x450] sm:$0xff] }
 0x78d   :  { %v3541_v31 = vadd.f32 %v3519_v50, %v3504_v34  ;;  %v10697_v35 = vadd.f32 %v3515_v43, %v3503_v19  ;;  %v10699_v1 = vadd.f32 %v3519_v50, %v3508_v15  ;;  %v10701_v33 = vadd.f32 %v3515_v43, %v3507_v12  ;;  %v3704_v34 = vld [vmem:[%s11996_s14 + $0x460] sm:$0xff]  ;;  %v3706_v30 = vld [vmem:[%s11996_s14 + $0x470] sm:$0xff]  ;;  %v3709_v15 = vld [vmem:[%s11996_s14 + $0x488] sm:$0xff] }
 0x78e   :  { %v3549_v46 = vmax.f32 %v3533_v10, 0.0  ;;  %v3548_v38 = vmax.f32 %v3532_v7, 0.0  ;;  %v12177_v54 = vld [vmem:[#allocation4_spill] sm:$0xff]  ;;  %v3505_v19 = vmul.f32 %v10114_v29, %v3452_v21  ;;  %v12178_v50 = vld [vmem:[#allocation30_spill] sm:$0xff]  ;;  %v10724_v12 = vadd.f32 %v3527_v45, %v3498_v5  ;;  %v3713_v29 = vld [vmem:[%s11996_s14 + $0x4a8] sm:$0xff] }
 0x78f   :  { %v3506_v48 = vmul.f32 %v12177_v54, %v3456_v20  ;;  %v3510_v43 = vmul.f32 %v12178_v50, %v3456_v20  ;;  %v10726_v10 = vadd.f32 %v3523_v27, %v3497_v63  ;;  %v10728_v7 = vadd.f32 %v3527_v45, %v3502_v16  ;;  %v3715_v21 = vld [vmem:[%s11996_s14 + $0x4b8] sm:$0xff]  ;;  %v3720_v50 = vld [vmem:[%s11996_s14 + $0x4e0] sm:$0xff] }
 0x790   :  { %3906 = vmatprep.mubr.f32.mxu0 %v3549_v46  ;;  %4084 = vmatprep.mubr.f32.mxu1 %v3549_v46  ;;  %v3553_v60 = vmax.f32 %v3537_v28, 0.0  ;;  %v10739_v20 = vadd.f32 %v3523_v27, %v3501_v39  ;;  %v10743_v63 = vadd.f32 %v3523_v27, %v3505_v19  ;;  %v7214_v28 = vpack.c.bf16 %v3704_v34, %v3700_v49  ;;  %v3712_v39 = vld [vmem:[%s11996_s14 + $0x4a0] sm:$0xff] }
 0x791   :  { %3907 = vmatmul.mubr.f32.vlgmr.msra.gmra.mrb[44].mxu0 %v3548_v38  ;;  %4085 = vmatmul.mubr.f32.vlgmr.msra.gmra.mrb[60].mxu1 %v3548_v38  ;;  %v10741_v5 = vadd.f32 %v3527_v45, %v3506_v48  ;;  %v7342_v46 = vpack.c.bf16 %v3706_v30, %v3702_v25  ;;  %v3708_v38 = vld [vmem:[%s11996_s14 + $0x480] sm:$0xff]  ;;  %v10748_v16 = vadd.f32 %v3527_v45, %v3510_v43  ;;  %v3552_v54 = vmax.f32 %v3536_v3, 0.0  ;;  %v3717_v25 = vld [vmem:[%s11996_s14 + $0x4c8] sm:$0xff]  ;;  %v3718_v43 = vld [vmem:[%s11996_s14 + $0x4d0] sm:$0xff] }
 0x792   :  { %7211 = vmatpush1.bf16.msra.mxu0 %v7210_v32  ;;  %7339 = vmatpush1.bf16.msra.mxu1 %v7338_v22  ;;  %v3710_v32 = vld [vmem:[%s11996_s14 + $0x490] sm:$0xff]  ;;  %v10759_v49 = vadd.f32 %v3523_v27, %v3509_v24  ;;  %v12179_v45 = vpack.c.bf16 %v10660_v17, %v10655_v41  ;;  %v7216_v3 = vpack.c.bf16 %v3713_v29, %v3709_v15  ;;  %v3557_v30 = vmax.f32 %v3541_v31, 0.0  ;;  %v3721_v48 = vld [vmem:[%s11996_s14 + $0x4e8] sm:$0xff]  ;;  %v3719_v27 = vld [vmem:[%s11996_s14 + $0x4d8] sm:$0xff] }
 0x793   :  { %3912 = vmatprep.mubr.f32.mxu0 %v3553_v60  ;;  %4090 = vmatprep.mubr.f32.mxu1 %v3553_v60  ;;  %v3714_v22 = vld [vmem:[%s11996_s14 + $0x4b0] sm:$0xff]  ;;  %v7344_v34 = vpack.c.bf16 %v3715_v21, %v3711_v36  ;;  %v7218_v41 = vpack.c.bf16 %v3712_v39, %v3708_v38  ;;  %v3716_v31 = vld [vmem:[%s11996_s14 + $0x4c0] sm:$0xff]  ;;  %v3556_v19 = vmax.f32 %v10697_v35, 0.0  ;;  %v7220_v15 = vpack.c.bf16 %v3721_v48, %v3717_v25  ;;  %v3725_v35 = vld [vmem:[%s11996_s14 + $0x508] sm:$0xff] }
 0x794   :  { %7213 = vmatprep.subr.bf16.mxu0 %v12179_v45  ;;  %7341 = vmatprep.subr.bf16.mxu1 %v7340_v58  ;;  %v3723_v58 = vld [vmem:[%s11996_s14 + $0x4f8] sm:$0xff]  ;;  %v7346_v17 = vpack.c.bf16 %v3714_v22, %v3710_v32  ;;  %v3722_v24 = vld [vmem:[%s11996_s14 + $0x4f0] sm:$0xff]  ;;  %v3561_v29 = vmax.f32 %v10699_v1, 0.0  ;;  %v3729_v36 = vld [vmem:[%s11996_s14 + $0x528] sm:$0xff]  ;;  %v3560_v39 = vmax.f32 %v10701_v33, 0.0  ;;  %v3551_v48 = vmax.f32 %v10724_v12, 0.0 }
 0x795   :  { %3913 = vmatmul.mubr.f32.gmra.mrb[46].mxu0 %v3552_v54  ;;  %4091 = vmatmul.mubr.f32.gmra.mrb[62].mxu1 %v3552_v54  ;;  %v7348_v60 = vpack.c.bf16 %v3723_v58, %v3719_v27  ;;  %v3727_v21 = vld [vmem:[%s11996_s14 + $0x518] sm:$0xff]  ;;  %v7350_v38 = vpack.c.bf16 %v3722_v24, %v3718_v43  ;;  %v3724_v1 = vld [vmem:[%s11996_s14 + $0x500] sm:$0xff]  ;;  %v3726_v32 = vld [vmem:[%s11996_s14 + $0x510] sm:$0xff] }
 0x796   :  { %7215 = vmatpush1.bf16.msra.mxu0 %v7214_v28  ;;  %7343 = vmatpush1.bf16.msra.mxu1 %v7342_v46  ;;  %v3731_v28 = vld [vmem:[%s11996_s14 + $0x538] sm:$0xff]  ;;  %v7222_v46 = vpack.c.bf16 %v3720_v50, %v3716_v31  ;;  %v3728_v54 = vld [vmem:[%s11996_s14 + $0x520] sm:$0xff]  ;;  %v3730_v22 = vld [vmem:[%s11996_s14 + $0x530] sm:$0xff] }
 0x797   :  { %3918 = vmatprep.mubr.f32.mxu0 %v3557_v30  ;;  %4096 = vmatprep.mubr.f32.mxu1 %v3557_v30  ;;  %v3733_v45 = vld [vmem:[%s11996_s14 + $0x548] sm:$0xff]  ;;  %v3735_v25 = vld [vmem:[%s11996_s14 + $0x558] sm:$0xff]  ;;  %v7226_v27 = vpack.c.bf16 %v3728_v54, %v3724_v1  ;;  %v7354_v58 = vpack.c.bf16 %v3730_v22, %v3726_v32  ;;  %v3734_v12 = vld [vmem:[%s11996_s14 + $0x550] sm:$0xff] }
 0x798   :  { %7217 = vmatprep.subr.bf16.mxu0 %v7216_v3  ;;  %7345 = vmatprep.subr.bf16.mxu1 %v7344_v34  ;;  %v7224_v3 = vpack.c.bf16 %v3729_v36, %v3725_v35  ;;  %v7352_v34 = vpack.c.bf16 %v3731_v28, %v3727_v21  ;;  %v3737_v33 = vld [vmem:[%s11996_s14 + $0x568] sm:$0xff]  ;;  %v3739_v30 = vld [vmem:[%s11996_s14 + $0x578] sm:$0xff]  ;;  %v3738_v50 = vld [vmem:[%s11996_s14 + $0x570] sm:$0xff] }
 0x799   :  { %3919 = vmatmul.mubr.f32.gmra.mrb[48].mxu0 %v3556_v19  ;;  %4097 = vmatmul.mubr.f32.gmra.mrb[64].mxu1 %v3556_v19  ;;  %v7228_v31 = vpack.c.bf16 %v3737_v33, %v3733_v45  ;;  %v7356_v19 = vpack.c.bf16 %v3739_v30, %v3735_v25  ;;  %v3741_v43 = vld [vmem:[%s11996_s14 + $0x588] sm:$0xff]  ;;  %v3740_v36 = vld [vmem:[%s11996_s14 + $0x580] sm:$0xff]  ;;  %v3746_v1 = vld [vmem:[%s11996_s14 + $0x5b0] sm:$0xff] }
 0x79a   :  { %7219 = vmatpush1.bf16.msra.mxu0 %v7218_v41  ;;  %7347 = vmatpush1.bf16.msra.mxu1 %v7346_v17  ;;  %v3732_v41 = vld [vmem:[%s11996_s14 + $0x540] sm:$0xff]  ;;  %v3745_v24 = vld [vmem:[%s11996_s14 + $0x5a8] sm:$0xff]  ;;  %v3751_v32 = vld [vmem:[%s11996_s14 + $0x5d8] sm:$0xff] }
 0x79b   :  { %3924 = vmatprep.mubr.f32.mxu0 %v3561_v29  ;;  %4102 = vmatprep.mubr.f32.mxu1 %v3561_v29  ;;  %v3736_v17 = vld [vmem:[%s11996_s14 + $0x560] sm:$0xff]  ;;  %v7358_v29 = vpack.c.bf16 %v3738_v50, %v3734_v12  ;;  %v7232_v28 = vpack.c.bf16 %v3745_v24, %v3741_v43  ;;  %v3749_v54 = vld [vmem:[%s11996_s14 + $0x5c8] sm:$0xff]  ;;  %v3755_v22 = vld [vmem:[%s11996_s14 + $0x5f8] sm:$0xff] }
 0x79c   :  { %7221 = vmatprep.subr.bf16.mxu0 %v7220_v15  ;;  %7349 = vmatprep.subr.bf16.mxu1 %v7348_v60  ;;  %v3743_v15 = vld [vmem:[%s11996_s14 + $0x598] sm:$0xff]  ;;  %v7230_v35 = vpack.c.bf16 %v3736_v17, %v3732_v41  ;;  %v3744_v21 = vld [vmem:[%s11996_s14 + $0x5a0] sm:$0xff]  ;;  %v7364_v30 = vpack.c.bf16 %v3755_v22, %v3751_v32  ;;  %v3761_v41 = vld [vmem:[%s11996_s14 + $0x628] sm:$0xff] }
 0x79d   :  { %3925 = vmatmul.mubr.f32.gmra.mrb[50].mxu0 %v3560_v39  ;;  %4103 = vmatmul.mubr.f32.gmra.mrb[66].mxu1 %v3560_v39  ;;  %v3747_v60 = vld [vmem:[%s11996_s14 + $0x5b8] sm:$0xff]  ;;  %v3753_v39 = vld [vmem:[%s11996_s14 + $0x5e8] sm:$0xff]  ;;  %v7234_v45 = vpack.c.bf16 %v3744_v21, %v3740_v36  ;;  %v3752_v33 = vld [vmem:[%s11996_s14 + $0x5e0] sm:$0xff] }
 0x79e   :  { %7223 = vmatpush1.bf16.msra.mxu0 %v7222_v46  ;;  %7351 = vmatpush1.bf16.msra.mxu1 %v7350_v38  ;;  %v7360_v46 = vpack.c.bf16 %v3747_v60, %v3743_v15  ;;  %v3742_v38 = vld [vmem:[%s11996_s14 + $0x590] sm:$0xff]  ;;  %v7236_v25 = vpack.c.bf16 %v3753_v39, %v3749_v54  ;;  %v3759_v17 = vld [vmem:[%s11996_s14 + $0x618] sm:$0xff]  ;;  %v3756_v50 = vld [vmem:[%s11996_s14 + $0x600] sm:$0xff] }
 0x79f   :  { %3995 = vmatprep.mubr.f32.mxu0 %v3551_v48  ;;  %4173 = vmatprep.mubr.f32.mxu1 %v3551_v48  ;;  %v3750_v48 = vld [vmem:[%s11996_s14 + $0x5d0] sm:$0xff]  ;;  %v3760_v43 = vld [vmem:[%s11996_s14 + $0x620] sm:$0xff]  ;;  %v3769_v36 = vld [vmem:[%s11996_s14 + $0x668] sm:$0xff] }
 0x7a0   :  { %7225 = vmatprep.subr.bf16.mxu0 %v7224_v3  ;;  %7353 = vmatprep.subr.bf16.mxu1 %v7352_v34  ;;  %v7362_v3 = vpack.c.bf16 %v3746_v1, %v3742_v38  ;;  %v3748_v34 = vld [vmem:[%s11996_s14 + $0x5c0] sm:$0xff]  ;;  %v3758_v60 = vld [vmem:[%s11996_s14 + $0x610] sm:$0xff]  ;;  %v3767_v21 = vld [vmem:[%s11996_s14 + $0x658] sm:$0xff] }
 0x7a1   :  { %v3764_v1 = vld [vmem:[%s11996_s14 + $0x640] sm:$0xff]  ;;  %v3766_v22 = vld [vmem:[%s11996_s14 + $0x650] sm:$0xff] }
 0x7a2   :  { %7227 = vmatpush1.bf16.msra.mxu0 %v7226_v27  ;;  %7355 = vmatpush1.bf16.msra.mxu1 %v7354_v58  ;;  %v3754_v27 = vld [vmem:[%s11996_s14 + $0x5f0] sm:$0xff]  ;;  %v3757_v58 = vld [vmem:[%s11996_s14 + $0x608] sm:$0xff]  ;;  %v3768_v54 = vld [vmem:[%s11996_s14 + $0x660] sm:$0xff] }
 0x7a3   :  { %7229 = vmatprep.subr.bf16.mxu0 %v7228_v31  ;;  %7357 = vmatprep.subr.bf16.mxu1 %v7356_v19  ;;  %v3763_v31 = vld [vmem:[%s11996_s14 + $0x638] sm:$0xff]  ;;  %v7238_v19 = vpack.c.bf16 %v3752_v33, %v3748_v34  ;;  %v7366_v12 = vpack.c.bf16 %v3754_v27, %v3750_v48  ;;  %v7240_v24 = vpack.c.bf16 %v3761_v41, %v3757_v58  ;;  %v3777_v34 = vld [vmem:[%s11996_s14 + $0x6a8] sm:$0xff]  ;;  %v3772_v27 = vld [vmem:[%s11996_s14 + $0x680] sm:$0xff] }
 0x7a4   :  { %v7368_v15 = vpack.c.bf16 %v3763_v31, %v3759_v17  ;;  %v3775_v33 = vld [vmem:[%s11996_s14 + $0x698] sm:$0xff]  ;;  %v3776_v58 = vld [vmem:[%s11996_s14 + $0x6a0] sm:$0xff]  ;;  %v3774_v31 = vld [vmem:[%s11996_s14 + $0x690] sm:$0xff] }
 0x7a6   :  { %7231 = vmatpush1.bf16.msra.mxu0 %v7230_v35  ;;  %7359 = vmatpush1.bf16.msra.mxu1 %v7358_v29  ;;  %v3762_v35 = vld [vmem:[%s11996_s14 + $0x630] sm:$0xff]  ;;  %v3765_v29 = vld [vmem:[%s11996_s14 + $0x648] sm:$0xff] }
 0x7a7   :  { %7233 = vmatprep.subr.bf16.mxu0 %v7232_v28  ;;  %7361 = vmatprep.subr.bf16.mxu1 %v7360_v46  ;;  %v3771_v28 = vld [vmem:[%s11996_s14 + $0x678] sm:$0xff]  ;;  %v7242_v46 = vpack.c.bf16 %v3760_v43, %v3756_v50  ;;  %v7370_v38 = vpack.c.bf16 %v3762_v35, %v3758_v60  ;;  %v7244_v39 = vpack.c.bf16 %v3769_v36, %v3765_v29  ;;  %v3785_v50 = vld [vmem:[%s11996_s14 + $0x6e8] sm:$0xff]  ;;  %v3780_v35 = vld [vmem:[%s11996_s14 + $0x6c0] sm:$0xff] }
 0x7a8   :  { %v7372_v32 = vpack.c.bf16 %v3771_v28, %v3767_v21  ;;  %v3783_v43 = vld [vmem:[%s11996_s14 + $0x6d8] sm:$0xff]  ;;  %v3784_v29 = vld [vmem:[%s11996_s14 + $0x6e0] sm:$0xff]  ;;  %v3782_v28 = vld [vmem:[%s11996_s14 + $0x6d0] sm:$0xff] }
 0x7aa   :  { %7235 = vmatpush1.bf16.msra.mxu0 %v7234_v45  ;;  %7363 = vmatpush1.bf16.msra.mxu1 %v7362_v3  ;;  %v3770_v45 = vld [vmem:[%s11996_s14 + $0x670] sm:$0xff]  ;;  %v3773_v3 = vld [vmem:[%s11996_s14 + $0x688] sm:$0xff] }
 0x7ab   :  { %7237 = vmatprep.subr.bf16.mxu0 %v7236_v25  ;;  %7365 = vmatprep.subr.bf16.mxu1 %v7364_v30  ;;  %v3779_v25 = vld [vmem:[%s11996_s14 + $0x6b8] sm:$0xff]  ;;  %v7246_v30 = vpack.c.bf16 %v3768_v54, %v3764_v1  ;;  %v7374_v48 = vpack.c.bf16 %v3770_v45, %v3766_v22  ;;  %v7248_v41 = vpack.c.bf16 %v3777_v34, %v3773_v3  ;;  %v3793_v1 = vld [vmem:[%s11996_s14 + $0x728] sm:$0xff]  ;;  %v3788_v45 = vld [vmem:[%s11996_s14 + $0x700] sm:$0xff] }
 0x7ac   :  { %v7376_v17 = vpack.c.bf16 %v3779_v25, %v3775_v33  ;;  %v3791_v54 = vld [vmem:[%s11996_s14 + $0x718] sm:$0xff]  ;;  %v3792_v3 = vld [vmem:[%s11996_s14 + $0x720] sm:$0xff]  ;;  %v3790_v25 = vld [vmem:[%s11996_s14 + $0x710] sm:$0xff] }
 0x7ae   :  { %7239 = vmatpush1.bf16.msra.mxu0 %v7238_v19  ;;  %7367 = vmatpush1.bf16.msra.mxu1 %v7366_v12  ;;  %v3778_v19 = vld [vmem:[%s11996_s14 + $0x6b0] sm:$0xff]  ;;  %v3781_v12 = vld [vmem:[%s11996_s14 + $0x6c8] sm:$0xff] }
 0x7af   :  { %7241 = vmatprep.subr.bf16.mxu0 %v7240_v24  ;;  %7369 = vmatprep.subr.bf16.mxu1 %v7368_v15  ;;  %v3787_v24 = vld [vmem:[%s11996_s14 + $0x6f8] sm:$0xff]  ;;  %v7250_v15 = vpack.c.bf16 %v3776_v58, %v3772_v27  ;;  %v7378_v60 = vpack.c.bf16 %v3778_v19, %v3774_v31  ;;  %v7252_v36 = vpack.c.bf16 %v3785_v50, %v3781_v12  ;;  %v3801_v27 = vld [vmem:[%s11996_s14 + $0x768] sm:$0xff]  ;;  %v3796_v19 = vld [vmem:[%s11996_s14 + $0x740] sm:$0xff] }
 0x7b0   :  { %v7380_v21 = vpack.c.bf16 %v3787_v24, %v3783_v43  ;;  %v3799_v58 = vld [vmem:[%s11996_s14 + $0x758] sm:$0xff]  ;;  %v3800_v12 = vld [vmem:[%s11996_s14 + $0x760] sm:$0xff]  ;;  %v3798_v24 = vld [vmem:[%s11996_s14 + $0x750] sm:$0xff] }
 0x7b2   :  { %7243 = vmatpush1.bf16.msra.mxu0 %v7242_v46  ;;  %7371 = vmatpush1.bf16.msra.mxu1 %v7370_v38  ;;  %v3786_v46 = vld [vmem:[%s11996_s14 + $0x6f0] sm:$0xff]  ;;  %v3789_v38 = vld [vmem:[%s11996_s14 + $0x708] sm:$0xff] }
 0x7b3   :  { %7245 = vmatprep.subr.bf16.mxu0 %v7244_v39  ;;  %7373 = vmatprep.subr.bf16.mxu1 %v7372_v32  ;;  %v3795_v39 = vld [vmem:[%s11996_s14 + $0x738] sm:$0xff]  ;;  %v7254_v32 = vpack.c.bf16 %v3784_v29, %v3780_v35  ;;  %v7382_v22 = vpack.c.bf16 %v3786_v46, %v3782_v28  ;;  %v7256_v34 = vpack.c.bf16 %v3793_v1, %v3789_v38  ;;  %v3809_v35 = vld [vmem:[%s11996_s14 + $0x7a8] sm:$0xff]  ;;  %v3804_v46 = vld [vmem:[%s11996_s14 + $0x780] sm:$0xff] }
 0x7b4   :  { %v7384_v33 = vpack.c.bf16 %v3795_v39, %v3791_v54  ;;  %v3807_v29 = vld [vmem:[%s11996_s14 + $0x798] sm:$0xff]  ;;  %v3808_v38 = vld [vmem:[%s11996_s14 + $0x7a0] sm:$0xff]  ;;  %v3806_v39 = vld [vmem:[%s11996_s14 + $0x790] sm:$0xff] }
 0x7b6   :  { %7247 = vmatpush1.bf16.msra.mxu0 %v7246_v30  ;;  %7375 = vmatpush1.bf16.msra.mxu1 %v7374_v48  ;;  %v3794_v30 = vld [vmem:[%s11996_s14 + $0x730] sm:$0xff]  ;;  %v3797_v48 = vld [vmem:[%s11996_s14 + $0x748] sm:$0xff] }
 0x7b7   :  { %7249 = vmatprep.subr.bf16.mxu0 %v7248_v41  ;;  %7377 = vmatprep.subr.bf16.mxu1 %v7376_v17  ;;  %v3803_v41 = vld [vmem:[%s11996_s14 + $0x778] sm:$0xff]  ;;  %v7258_v17 = vpack.c.bf16 %v3792_v3, %v3788_v45  ;;  %v7386_v31 = vpack.c.bf16 %v3794_v30, %v3790_v25  ;;  %v7260_v50 = vpack.c.bf16 %v3801_v27, %v3797_v48  ;;  %v3817_v45 = vld [vmem:[%s11996_s14 + $0x7e8] sm:$0xff]  ;;  %v3812_v30 = vld [vmem:[%s11996_s14 + $0x7c0] sm:$0xff] }
 0x7b8   :  { %v7388_v43 = vpack.c.bf16 %v3803_v41, %v3799_v58  ;;  %v3815_v3 = vld [vmem:[%s11996_s14 + $0x7d8] sm:$0xff]  ;;  %v3816_v58 = vld [vmem:[%s11996_s14 + $0x7e0] sm:$0xff]  ;;  %v3814_v41 = vld [vmem:[%s11996_s14 + $0x7d0] sm:$0xff] }
 0x7ba   :  { %7251 = vmatpush1.bf16.msra.mxu0 %v7250_v15  ;;  %7379 = vmatpush1.bf16.msra.mxu1 %v7378_v60  ;;  %v3802_v15 = vld [vmem:[%s11996_s14 + $0x770] sm:$0xff]  ;;  %v3805_v60 = vld [vmem:[%s11996_s14 + $0x788] sm:$0xff] }
 0x7bb   :  { %7253 = vmatprep.subr.bf16.mxu0 %v7252_v36  ;;  %7381 = vmatprep.subr.bf16.mxu1 %v7380_v21  ;;  %v3811_v36 = vld [vmem:[%s11996_s14 + $0x7b8] sm:$0xff]  ;;  %v7262_v21 = vpack.c.bf16 %v3800_v12, %v3796_v19  ;;  %v7390_v28 = vpack.c.bf16 %v3802_v15, %v3798_v24  ;;  %v7264_v1 = vpack.c.bf16 %v3809_v35, %v3805_v60  ;;  %v3550_v12 = vmax.f32 %v10726_v10, 0.0  ;;  %v12186_v35 = vld [vmem:[#allocation7_spill] sm:$0xff] }
 0x7bc   :  { %v7392_v54 = vpack.c.bf16 %v3811_v36, %v3807_v29  ;;  %v3555_v24 = vmax.f32 %v10728_v7, 0.0  ;;  %v3554_v15 = vmax.f32 %v10739_v20, 0.0  ;;  %v3559_v60 = vmax.f32 %v10741_v5, 0.0  ;;  %v12182_v5 = vld [vmem:[#allocation5_spill] sm:$0xff]  ;;  %v12187_v29 = vld [vmem:[#allocation11_spill] sm:$0xff] }
 0x7bd   :  { %v3558_v10 = vmax.f32 %v10743_v63, 0.0  ;;  %v3563_v7 = vmax.f32 %v10748_v16, 0.0  ;;  %v3562_v20 = vmax.f32 %v10759_v49, 0.0  ;;  %v12183_v63 = vld [vmem:[#allocation9_spill] sm:$0xff]  ;;  %v12184_v16 = vld [vmem:[#allocation6_spill] sm:$0xff] }
 0x7be   :  { %7255 = vmatpush1.bf16.msra.mxu0 %v7254_v32  ;;  %7383 = vmatpush1.bf16.msra.mxu1 %v7382_v22  ;;  %v3810_v32 = vld [vmem:[%s11996_s14 + $0x7b0] sm:$0xff]  ;;  %v3813_v22 = vld [vmem:[%s11996_s14 + $0x7c8] sm:$0xff]  ;;  %v12185_v49 = vld [vmem:[#allocation10_spill] sm:$0xff] }
 0x7bf   :  { %7257 = vmatprep.subr.bf16.mxu0 %v7256_v34  ;;  %7385 = vmatprep.subr.bf16.mxu1 %v7384_v33  ;;  %v3819_v34 = vld [vmem:[%s11996_s14 + $0x7f8] sm:$0xff]  ;;  %v7266_v33 = vpack.c.bf16 %v3808_v38, %v3804_v46  ;;  %v7394_v25 = vpack.c.bf16 %v3810_v32, %v3806_v39  ;;  %v7268_v48 = vpack.c.bf16 %v3817_v45, %v3813_v22  ;;  %v3820_v36 = vld [vmem:[%s11999_s15] sm:$0xf] }
 0x7c0   :  { %v7396_v27 = vpack.c.bf16 %v3819_v34, %v3815_v3  ;;  %v3837_v39 = vrot.slane %v3820_v36, %v12170_v55  ;;  %v12189_v45 = vld [vmem:[#allocation25_spill] sm:$0xff]  ;;  %v3833_v34 = vrot.slane %v3820_v36, %v12168_v37 }
 0x7c1   :  { %v3825_v3 = vrot.slane %v3820_v36, %v12189_v45 }
 0x7c2   :  { %7259 = vmatpush1.bf16.msra.mxu0 %v7258_v17  ;;  %7387 = vmatpush1.bf16.msra.mxu1 %v7386_v31  ;;  %v3818_v17 = vld [vmem:[%s11996_s14 + $0x7f0] sm:$0xff]  ;;  %v7270_v31 = vpack.c.bf16 %v3816_v58, %v3812_v30 }
 0x7c3   :  { %7261 = vmatprep.subr.bf16.mxu0 %v7260_v50  ;;  %7389 = vmatprep.subr.bf16.mxu1 %v7388_v43  ;;  %v7398_v19 = vpack.c.bf16 %v3818_v17, %v3814_v41  ;;  %v12180_v50 = vld [vmem:[#allocation2_spill] sm:$0xff]  ;;  %v12181_v43 = vld [vmem:[#allocation8_spill] sm:$0xff] }
 0x7c6   :  { %7263 = vmatpush1.bf16.msra.mxu0 %v7262_v21  ;;  %7391 = vmatpush1.bf16.msra.mxu1 %v7390_v28 }
 0x7c7   :  { %7265 = vmatprep.subr.bf16.mxu0 %v7264_v1  ;;  %7393 = vmatprep.subr.bf16.mxu1 %v7392_v54  ;;  %v12188_v1 = vld [vmem:[#allocation27_spill] sm:$0xff] }
 0x7c8   :  { %v3829_v54 = vrot.slane %v3820_v36, %v12188_v1 }
 0x7ca   :  { %7267 = vmatpush1.bf16.msra.mxu0 %v7266_v33  ;;  %7395 = vmatpush1.bf16.msra.mxu1 %v7394_v25 }
 0x7cb   :  { %7269 = vmatprep.subr.bf16.mxu0 %v7268_v48  ;;  %7397 = vmatprep.subr.bf16.mxu1 %v7396_v27 }
 0x7ce   :  { %7271 = vmatpush1.bf16.msra.mxu0 %v7270_v31  ;;  %7399 = vmatpush1.bf16.msra.mxu1 %v7398_v19 }
 0x7cf   :  { %7401 = vmatprep.subr.bf16.mxu0 %v12180_v50  ;;  %7433 = vmatprep.subr.bf16.mxu1 %v12181_v43 }
 0x7d1   :  { %3996 = vmatmul.mubr.f32.vlgmr.msra.gmra.mrb[44].mxu0 %v3550_v12  ;;  %4174 = vmatmul.mubr.f32.vlgmr.msra.gmra.mrb[60].mxu1 %v3550_v12 }
 0x7d2   :  { %4001 = vmatprep.mubr.f32.mxu0 %v3555_v24  ;;  %4179 = vmatprep.mubr.f32.mxu1 %v3555_v24 }
 0x7d3   :  { %7403 = vmatpush3.bf16.msra.mxu0 %v8711_v52  ;;  %7435 = vmatpush3.bf16.msra.mxu1 %v8856_v40 }
 0x7d4   :  { %7405 = vmatprep.subr.bf16.mxu0 %v8721_v42  ;;  %7437 = vmatprep.subr.bf16.mxu1 %v8866_v44 }
 0x7d5   :  { %4002 = vmatmul.mubr.f32.gmra.mrb[46].mxu0 %v3554_v15  ;;  %4180 = vmatmul.mubr.f32.gmra.mrb[62].mxu1 %v3554_v15 }
 0x7d6   :  { %4007 = vmatprep.mubr.f32.mxu0 %v3559_v60  ;;  %4185 = vmatprep.mubr.f32.mxu1 %v3559_v60 }
 0x7d7   :  { %7407 = vmatpush3.bf16.msra.mxu0 %v8729_v57  ;;  %7439 = vmatpush3.bf16.msra.mxu1 %v8874_v47 }
 0x7d8   :  { %7409 = vmatprep.subr.bf16.mxu0 %v8739_v6  ;;  %7441 = vmatprep.subr.bf16.mxu1 %v8884_v51 }
 0x7d9   :  { %4008 = vmatmul.mubr.f32.gmra.mrb[48].mxu0 %v3558_v10  ;;  %4186 = vmatmul.mubr.f32.gmra.mrb[64].mxu1 %v3558_v10 }
 0x7da   :  { %4013 = vmatprep.mubr.f32.mxu0 %v3563_v7  ;;  %4191 = vmatprep.mubr.f32.mxu1 %v3563_v7 }
 0x7db   :  { %7411 = vmatpush3.bf16.msra.mxu0 %v8747_v61  ;;  %7443 = vmatpush3.bf16.msra.mxu1 %v8892_v56 }
 0x7dc   :  { %7413 = vmatprep.subr.bf16.mxu0 %v8757_v0  ;;  %7445 = vmatprep.subr.bf16.mxu1 %v8902_v59 }
 0x7dd   :  { %4014 = vmatmul.mubr.f32.gmra.mrb[50].mxu0 %v3562_v20  ;;  %4192 = vmatmul.mubr.f32.gmra.mrb[66].mxu1 %v3562_v20 }
 0x7df   :  { %7415 = vmatpush3.bf16.msra.mxu0 %v8765_v4  ;;  %7447 = vmatpush3.bf16.msra.mxu1 %v8910_v62 }
 0x7e0   :  { %7417 = vmatprep.subr.bf16.mxu0 %v8775_v8  ;;  %7449 = vmatprep.subr.bf16.mxu1 %v8920_v2 }
 0x7e3   :  { %7419 = vmatpush3.bf16.msra.mxu0 %v8783_v11  ;;  %7451 = vmatpush3.bf16.msra.mxu1 %v8928_v9 }
 0x7e4   :  { %7421 = vmatprep.subr.bf16.mxu0 %v8793_v14  ;;  %7453 = vmatprep.subr.bf16.mxu1 %v8938_v13 }
 0x7e7   :  { %7423 = vmatpush3.bf16.msra.mxu0 %v12134_v26  ;;  %7455 = vmatpush3.bf16.msra.mxu1 %v8946_v18 }
 0x7e8   :  { %7425 = vmatprep.subr.bf16.mxu0 %v12135_v53  ;;  %7457 = vmatprep.subr.bf16.mxu1 %v8956_v23 }
 0x7eb   :  { %7427 = vmatpush3.bf16.msra.mxu0 %v12182_v5  ;;  %7459 = vmatpush3.bf16.msra.mxu1 %v12183_v63 }
 0x7ec   :  { %7429 = vmatprep.subr.bf16.mxu0 %v12184_v16  ;;  %7461 = vmatprep.subr.bf16.mxu1 %v12185_v49 }
 0x7ef   :  { %7431 = vmatpush3.bf16.msra.mxu0 %v12186_v35  ;;  %7463 = vmatpush3.bf16.msra.mxu1 %v12187_v29 }
 0x7f0   :  { %7465 = vmatprep.subr.bf16.mxu0 %v12180_v50  ;;  %7497 = vmatprep.subr.bf16.mxu1 %v12181_v43 }
 0x8a4   :  { %v3997_v21 = vpop.f32.mrb[44].mxu0  ;;  %v4175_v28 = vpop.f32.mrb[60].mxu1 }
 0x8a5   :  { %v3999_v46 = vpop.f32.mrb[45].mxu0  ;;  %v4177_v38 = vpop.f32.mrb[61].mxu1  ;;  %v11144_v43 = vadd.f32 %v3997_v21, %v3825_v3  ;;  %v11146_v24 = vadd.f32 %v4175_v28, %v3833_v34 }
 0x8a6   :  { %v11128_v30 = vadd.f32 %v3999_v46, %v3829_v54  ;;  %v11130_v48 = vadd.f32 %v4177_v38, %v3837_v39 }
 0x8a8   :  { %v4003_v32 = vpop.f32.mrb[46].mxu0  ;;  %v4181_v22 = vpop.f32.mrb[62].mxu1  ;;  %12190 = vst [vmem:[#allocation13_spill] sm:$0xff] %v11128_v30  ;;  %12191 = vst [vmem:[#allocation15_spill] sm:$0xff] %v11130_v48  ;;  %v4237_v20 = vmul.f32 %v11128_v30, %v11128_v30  ;;  %v4239_v36 = vmul.f32 %v11130_v48, %v11130_v48 }
 0x8a9   :  { %v4005_v33 = vpop.f32.mrb[47].mxu0  ;;  %v4183_v25 = vpop.f32.mrb[63].mxu1  ;;  %v11136_v41 = vadd.f32 %v4003_v32, %v3825_v3  ;;  %v11138_v17 = vadd.f32 %v4181_v22, %v3833_v34 }
 0x8aa   :  { %v11132_v27 = vadd.f32 %v4005_v33, %v3829_v54  ;;  %v11134_v58 = vadd.f32 %v4183_v25, %v3837_v39 }
 0x8ab   :  { %v4200_v21 = vadd.f32 %v11136_v41, %v11144_v43  ;;  %v4218_v28 = vadd.f32 %v11138_v17, %v11146_v24 }
 0x8ac   :  { %12192 = vst [vmem:[#allocation3_spill] sm:$0xff] %v11132_v27  ;;  %12193 = vst [vmem:[#allocation29_spill] sm:$0xff] %v11134_v58  ;;  %v4241_v31 = vmul.f32 %v11132_v27, %v11132_v27  ;;  %v4243_v19 = vmul.f32 %v11134_v58, %v11134_v58  ;;  %v4009_v12 = vpop.f32.mrb[48].mxu0  ;;  %v4187_v50 = vpop.f32.mrb[64].mxu1  ;;  %v4209_v32 = vadd.f32 %v11132_v27, %v11128_v30 }
 0x8ad   :  { %v11148_v15 = vadd.f32 %v4009_v12, %v3825_v3  ;;  %v11150_v60 = vadd.f32 %v4187_v50, %v3833_v34  ;;  %v4011_v10 = vpop.f32.mrb[49].mxu0  ;;  %v4189_v7 = vpop.f32.mrb[65].mxu1  ;;  %v4227_v22 = vadd.f32 %v11134_v58, %v11130_v48 }
 0x8ae   :  { %v11156_v46 = vadd.f32 %v4011_v10, %v3829_v54  ;;  %v11158_v38 = vadd.f32 %v4189_v7, %v3837_v39  ;;  %v4261_v33 = vadd.f32 %v4241_v31, %v4237_v20  ;;  %v4279_v25 = vadd.f32 %v4243_v19, %v4239_v36 }
 0x8af   :  { %v4201_v55 = vadd.f32 %v11148_v15, %v4200_v21  ;;  %v4219_v1 = vadd.f32 %v11150_v60, %v4218_v28 }
 0x8b0   :  { %12194 = vst [vmem:[#allocation12_spill] sm:$0xff] %v11156_v46  ;;  %12195 = vst [vmem:[#allocation14_spill] sm:$0xff] %v11158_v38  ;;  %v4245_v12 = vmul.f32 %v11156_v46, %v11156_v46  ;;  %v4247_v50 = vmul.f32 %v11158_v38, %v11158_v38  ;;  %v4015_v10 = vpop.f32.mrb[50].mxu0  ;;  %v4193_v7 = vpop.f32.mrb[66].mxu1  ;;  %v4210_v31 = vadd.f32 %v11156_v46, %v4209_v32 }
 0x8b1   :  { %v11174_v37 = vadd.f32 %v4015_v10, %v3825_v3  ;;  %v11176_v27 = vadd.f32 %v4193_v7, %v3833_v34  ;;  %v4017_v30 = vpop.f32.mrb[51].mxu0  ;;  %v4195_v58 = vpop.f32.mrb[67].mxu1  ;;  %v4228_v19 = vadd.f32 %v11158_v38, %v4227_v22 }
 0x8b2   :  { %v11180_v20 = vadd.f32 %v4017_v30, %v3829_v54  ;;  %v11182_v36 = vadd.f32 %v4195_v58, %v3837_v39  ;;  %v4262_v48 = vadd.f32 %v4261_v33, %v4245_v12  ;;  %v4280_v45 = vadd.f32 %v4279_v25, %v4247_v50 }
 0x8b3   :  { %v4202_v21 = vadd.f32 %v11174_v37, %v4201_v55  ;;  %v4220_v28 = vadd.f32 %v11176_v27, %v4219_v1 }
 0x8b4   :  { %12196 = vst [vmem:[#allocation4_spill] sm:$0xff] %v11180_v20  ;;  %12197 = vst [vmem:[#allocation30_spill] sm:$0xff] %v11182_v36  ;;  %v4211_v3 = vadd.f32 %v11180_v20, %v4210_v31  ;;  %v4249_v34 = vmul.f32 %v11180_v20, %v11180_v20  ;;  %v4229_v10 = vadd.f32 %v11182_v36, %v4228_v19 }
 0x8b5   :  { %v4251_v32 = vmul.f32 %v11182_v36, %v11182_v36  ;;  %v4203_v54 = vrot.slane %v4202_v21, 4  ;;  %v4221_v30 = vrot.slane %v4220_v28, 4 }
 0x8b6   :  { %v4212_v39 = vrot.slane %v4211_v3, 4  ;;  %v4263_v58 = vadd.f32 %v4262_v48, %v4249_v34  ;;  %v4230_v22 = vrot.slane %v4229_v10, 4 }
 0x8b7   :  { %v4281_v33 = vadd.f32 %v4280_v45, %v4251_v32  ;;  %v4204_v25 = vadd.f32 %v4203_v54, %v4202_v21  ;;  %v4222_v55 = vadd.f32 %v4221_v30, %v4220_v28 }
 0x8b8   :  { %v4213_v12 = vadd.f32 %v4212_v39, %v4211_v3  ;;  %v4264_v1 = vrot.slane %v4263_v58, 4  ;;  %v4231_v50 = vadd.f32 %v4230_v22, %v4229_v10  ;;  %v4240_v10 = vmul.f32 %v11136_v41, %v11136_v41 }
 0x8b9   :  { %v4282_v7 = vrot.slane %v4281_v33, 4  ;;  %v4205_v31 = vrot.slane %v4204_v25, 2  ;;  %v4223_v38 = vrot.slane %v4222_v55, 2  ;;  %v4236_v22 = vmul.f32 %v11144_v43, %v11144_v43 }
 0x8ba   :  { %v4214_v20 = vrot.slane %v4213_v12, 2  ;;  %v4232_v46 = vrot.slane %v4231_v50, 2  ;;  %v4265_v19 = vadd.f32 %v4264_v1, %v4263_v58 }
 0x8bb   :  { %v4283_v29 = vadd.f32 %v4282_v7, %v4281_v33  ;;  %v4206_v35 = vadd.f32 %v4205_v31, %v4204_v25  ;;  %v4224_v36 = vadd.f32 %v4223_v38, %v4222_v55  ;;  %v4242_v38 = vmul.f32 %v11138_v17, %v11138_v17  ;;  %v12210_v7 = vld [vmem:[#allocation22_spill] sm:$0xff]  ;;  %v12211_v31 = vld [vmem:[#allocation23_spill] sm:$0xff] }
 0x8bc   :  { %v4215_v49 = vadd.f32 %v4214_v20, %v4213_v12  ;;  %v4233_v16 = vadd.f32 %v4232_v46, %v4231_v50  ;;  %v4266_v63 = vrot.slane %v4265_v19, 2  ;;  %v4248_v25 = vmul.f32 %v11174_v37, %v11174_v37 }
 0x8bd   :  { %v4284_v48 = vrot.slane %v4283_v29, 2  ;;  %v4207_v34 = vrot.slane %v4206_v35, 1  ;;  %v4225_v45 = vrot.slane %v4224_v36, 1  ;;  %v4250_v55 = vmul.f32 %v11176_v27, %v11176_v27 }
 0x8be   :  { %v4216_v21 = vrot.slane %v4215_v49, 1  ;;  %v4234_v28 = vrot.slane %v4233_v16, 1  ;;  %v4267_v3 = vadd.f32 %v4266_v63, %v4265_v19 }
 0x8bf   :  { %v4285_v32 = vadd.f32 %v4284_v48, %v4283_v29  ;;  %v4208_v20 = vadd.f32 %v4207_v34, %v4206_v35  ;;  %v4226_v46 = vadd.f32 %v4225_v45, %v4224_v36  ;;  %v4238_v29 = vmul.f32 %v11146_v24, %v11146_v24 }
 0x8c0   :  { %v4217_v54 = vadd.f32 %v4216_v21, %v4215_v49  ;;  %v4235_v30 = vadd.f32 %v4234_v28, %v4233_v16  ;;  %v4268_v39 = vrot.slane %v4267_v3, 1  ;;  %v4244_v16 = vmul.f32 %v11148_v15, %v11148_v15 }
 0x8c1   :  { %v4286_v58 = vrot.slane %v4285_v32, 1  ;;  %v4246_v49 = vmul.f32 %v11150_v60, %v11150_v60  ;;  %v4252_v35 = vadd.f32 %v4240_v10, %v4236_v22  ;;  %v4270_v36 = vadd.f32 %v4242_v38, %v4238_v29 }
 0x8c2   :  { %4352 = vmatprep.mubr.f32.mxu0 %v4217_v54  ;;  %4422 = vmatprep.mubr.f32.mxu1 %v4235_v30  ;;  %v4269_v33 = vadd.f32 %v4268_v39, %v4267_v3 }
 0x8c3   :  { %v4287_v63 = vadd.f32 %v4286_v58, %v4285_v32  ;;  %4353 = vmatmul.mubr.f32.vlgmr.msra.gmra.mrb[52].mxu0 %v4208_v20  ;;  %4423 = vmatmul.mubr.f32.vlgmr.msra.gmra.mrb[68].mxu1 %v4226_v46  ;;  %v4253_v12 = vadd.f32 %v4252_v35, %v4244_v16  ;;  %v4271_v1 = vadd.f32 %v4270_v36, %v4246_v49  ;;  %v5019_v16 = vld [vmem:[%s12000_s16 + $0x8] sm:$0xff]  ;;  %v5022_v49 = vld [vmem:[%s12000_s16 + $0x20] sm:$0xff] }
 0x8c4   :  { %7467 = vmatpush3.bf16.msra.mxu0 %v8711_v52  ;;  %7499 = vmatpush3.bf16.msra.mxu1 %v8856_v40  ;;  %v7560_v35 = vpack.c.bf16 %v5022_v49, %v5019_v16  ;;  %v5018_v36 = vld [vmem:[%s12000_s16] sm:$0xff]  ;;  %v5020_v16 = vld [vmem:[%s12000_s16 + $0x10] sm:$0xff] }
 0x8c5   :  { %4493 = vmatprep.mubr.f32.mxu0 %v4269_v33  ;;  %4563 = vmatprep.mubr.f32.mxu1 %v4287_v63  ;;  %v4254_v52 = vadd.f32 %v4253_v12, %v4248_v25  ;;  %v4272_v40 = vadd.f32 %v4271_v1, %v4250_v55  ;;  %v5021_v25 = vld [vmem:[%s12000_s16 + $0x18] sm:$0xff]  ;;  %v5028_v12 = vld [vmem:[%s12000_s16 + $0x50] sm:$0xff] }
 0x8c6   :  { %7469 = vmatprep.subr.bf16.mxu0 %v8721_v42  ;;  %7501 = vmatprep.subr.bf16.mxu1 %v8866_v44  ;;  %v5025_v55 = vld [vmem:[%s12000_s16 + $0x38] sm:$0xff]  ;;  %v7562_v1 = vpack.c.bf16 %v5021_v25, %v5018_v36 }
 0x8c7   :  { %v4255_v50 = vrot.slane %v4254_v52, 4  ;;  %v4273_v42 = vrot.slane %v4272_v40, 4  ;;  %v5073_v25 = vld [vmem:[%s12000_s16 + $0x1b8] sm:$0xff] }
 0x8c8   :  { %7471 = vmatpush3.bf16.msra.mxu0 %v8729_v57  ;;  %7503 = vmatpush3.bf16.msra.mxu1 %v8874_v47  ;;  %v12200_v47 = vld [vmem:[#allocation10_spill] sm:$0xff] }
 0x8c9   :  { %7473 = vmatprep.subr.bf16.mxu0 %v8739_v6  ;;  %7505 = vmatprep.subr.bf16.mxu1 %v8884_v51  ;;  %v4256_v57 = vadd.f32 %v4255_v50, %v4254_v52  ;;  %v4274_v44 = vadd.f32 %v4273_v42, %v4272_v40  ;;  %v7564_v52 = vpack.c.bf16 %v5028_v12, %v5025_v55  ;;  %v5024_v40 = vld [vmem:[%s12000_s16 + $0x30] sm:$0xff]  ;;  %v5027_v50 = vld [vmem:[%s12000_s16 + $0x48] sm:$0xff]  ;;  %v5074_v12 = vld [vmem:[%s12000_s16 + $0x1c0] sm:$0xff] }
 0x8ca   :  { %v5031_v42 = vld [vmem:[%s12000_s16 + $0x68] sm:$0xff]  ;;  %v5076_v55 = vld [vmem:[%s12000_s16 + $0x1d0] sm:$0xff] }
 0x8cb   :  { %v4257_v6 = vrot.slane %v4256_v57, 2 }
 0x8cc   :  { %7475 = vmatpush3.bf16.msra.mxu0 %v8747_v61  ;;  %7507 = vmatpush3.bf16.msra.mxu1 %v8892_v56  ;;  %v4275_v61 = vrot.slane %v4274_v44, 2  ;;  %v12201_v56 = vld [vmem:[#allocation7_spill] sm:$0xff] }
 0x8cd   :  { %7477 = vmatprep.subr.bf16.mxu0 %v8757_v0  ;;  %7509 = vmatprep.subr.bf16.mxu1 %v8902_v59  ;;  %v4258_v0 = vadd.f32 %v4257_v6, %v4256_v57  ;;  %v12202_v59 = vld [vmem:[#allocation11_spill] sm:$0xff]  ;;  %v5034_v57 = vld [vmem:[%s12000_s16 + $0x80] sm:$0xff] }
 0x8ce   :  { %v7568_v6 = vpack.c.bf16 %v5034_v57, %v5031_v42 }
 0x8d0   :  { %7479 = vmatpush3.bf16.msra.mxu0 %v8765_v4  ;;  %7511 = vmatpush3.bf16.msra.mxu1 %v8910_v62  ;;  %v4276_v4 = vadd.f32 %v4275_v61, %v4274_v44  ;;  %v7566_v44 = vpack.c.bf16 %v5027_v50, %v5024_v40  ;;  %v5030_v61 = vld [vmem:[%s12000_s16 + $0x60] sm:$0xff]  ;;  %v5072_v40 = vld [vmem:[%s12000_s16 + $0x1b0] sm:$0xff]  ;;  %v5075_v50 = vld [vmem:[%s12000_s16 + $0x1c8] sm:$0xff] }
 0x8d1   :  { %7481 = vmatprep.subr.bf16.mxu0 %v8775_v8  ;;  %7513 = vmatprep.subr.bf16.mxu1 %v8920_v2  ;;  %v12198_v8 = vld [vmem:[#allocation9_spill] sm:$0xff]  ;;  %v7598_v57 = vpack.c.bf16 %v5075_v50, %v5072_v40  ;;  %v5106_v40 = vld [vmem:[%s12000_s16 + $0x2c0] sm:$0xff]  ;;  %v5104_v50 = vld [vmem:[%s12000_s16 + $0x2b0] sm:$0xff] }
 0x8d2   :  { %v4277_v51 = vrot.slane %v4276_v4, 1 }
 0x8d4   :  { %7483 = vmatpush3.bf16.msra.mxu0 %v8783_v11  ;;  %7515 = vmatpush3.bf16.msra.mxu1 %v8928_v9  ;;  %v12199_v11 = vld [vmem:[#allocation6_spill] sm:$0xff]  ;;  %v4278_v2 = vadd.f32 %v4277_v51, %v4276_v4  ;;  %v12203_v9 = vld [vmem:[#allocation16_spill] sm:$0xff]  ;;  %v5037_v4 = vld [vmem:[%s12000_s16 + $0x98] sm:$0xff] }
 0x8d5   :  { %7485 = vmatprep.subr.bf16.mxu0 %v8793_v14  ;;  %7517 = vmatprep.subr.bf16.mxu1 %v8938_v13  ;;  %v4259_v14 = vrot.slane %v4258_v0, 1  ;;  %v12204_v13 = vld [vmem:[#allocation17_spill] sm:$0xff]  ;;  %v5039_v51 = vld [vmem:[%s12000_s16 + $0xa8] sm:$0xff] }
 0x8d7   :  { %v4260_v62 = vadd.f32 %v4259_v14, %v4258_v0  ;;  %v5033_v0 = vld [vmem:[%s12000_s16 + $0x78] sm:$0xff]  ;;  %v5036_v14 = vld [vmem:[%s12000_s16 + $0x90] sm:$0xff] }
 0x8d8   :  { %7487 = vmatpush3.bf16.msra.mxu0 %v12134_v26  ;;  %7519 = vmatpush3.bf16.msra.mxu1 %v8946_v18  ;;  %v12205_v18 = vld [vmem:[#allocation18_spill] sm:$0xff]  ;;  %v12207_v26 = vld [vmem:[#allocation20_spill] sm:$0xff] }
 0x8d9   :  { %7489 = vmatprep.subr.bf16.mxu0 %v12135_v53  ;;  %7521 = vmatprep.subr.bf16.mxu1 %v8956_v23  ;;  %v12206_v23 = vld [vmem:[#allocation19_spill] sm:$0xff]  ;;  %v12208_v53 = vld [vmem:[#allocation21_spill] sm:$0xff] }
 0x8dc   :  { %7491 = vmatpush3.bf16.msra.mxu0 %v12182_v5  ;;  %7523 = vmatpush3.bf16.msra.mxu1 %v12198_v8  ;;  %v12209_v5 = vmov 0.0   ;;  %v5040_v8 = vld [vmem:[%s12000_s16 + $0xb0] sm:$0xff] }
 0x8dd   :  { %7493 = vmatprep.subr.bf16.mxu0 %v12199_v11  ;;  %7525 = vmatprep.subr.bf16.mxu1 %v12200_v47  ;;  %v7570_v11 = vpack.c.bf16 %v5033_v0, %v5030_v61  ;;  %v7572_v47 = vpack.c.bf16 %v5040_v8, %v5037_v4  ;;  %v5079_v0 = vld [vmem:[%s12000_s16 + $0x1e8] sm:$0xff]  ;;  %v5082_v4 = vld [vmem:[%s12000_s16 + $0x200] sm:$0xff]  ;;  %v5080_v8 = vld [vmem:[%s12000_s16 + $0x1f0] sm:$0xff] }
 0x8e0   :  { %7495 = vmatpush3.bf16.msra.mxu0 %v12201_v56  ;;  %7527 = vmatpush3.bf16.msra.mxu1 %v12202_v59  ;;  %v5043_v56 = vld [vmem:[%s12000_s16 + $0xc8] sm:$0xff]  ;;  %v5046_v59 = vld [vmem:[%s12000_s16 + $0xe0] sm:$0xff] }
 0x8e1   :  { %7529 = vmatprep.subr.bf16.mxu0 %v12203_v9  ;;  %7537 = vmatprep.subr.bf16.mxu1 %v12204_v13 }
 0x8e3   :  { %4494 = vmatmul.mubr.f32.vlgmr.msra.gmra.mrb[54].mxu0 %v4260_v62  ;;  %4564 = vmatmul.mubr.f32.vlgmr.msra.gmra.mrb[70].mxu1 %v4278_v2  ;;  %v7574_v62 = vpack.c.bf16 %v5039_v51, %v5036_v14  ;;  %v7576_v2 = vpack.c.bf16 %v5046_v59, %v5043_v56  ;;  %v5078_v14 = vld [vmem:[%s12000_s16 + $0x1e0] sm:$0xff]  ;;  %v5081_v51 = vld [vmem:[%s12000_s16 + $0x1f8] sm:$0xff] }
 0x8e4   :  { %7531 = vmatpush1.bf16.msra.mxu0 %v12205_v18  ;;  %7539 = vmatpush1.bf16.msra.mxu1 %v12206_v23  ;;  %v7602_v59 = vpack.c.bf16 %v5081_v51, %v5078_v14  ;;  %v5112_v14 = vld [vmem:[%s12000_s16 + $0x2f0] sm:$0xff]  ;;  %v5110_v51 = vld [vmem:[%s12000_s16 + $0x2e0] sm:$0xff] }
 0x8e5   :  { %7533 = vmatprep.subr.bf16.mxu0 %v12207_v26  ;;  %7541 = vmatprep.subr.bf16.mxu1 %v12208_v53 }
 0x8e6   :  { %4641 = vmatprep.mubr.f32.mxu0 %v12209_v5  ;;  %4712 = vmatprep.mubr.f32.mxu1 %v12209_v5 }
 0x8e8   :  { %7535 = vmatpush1.bf16.msra.mxu0 %v12210_v7  ;;  %7543 = vmatpush1.bf16.msra.mxu1 %v12211_v31 }
 0x8e9   :  { %7545 = vmatprep.subr.bf16.mxu0 %v12203_v9  ;;  %7553 = vmatprep.subr.bf16.mxu1 %v12204_v13  ;;  %v5042_v9 = vld [vmem:[%s12000_s16 + $0xc0] sm:$0xff]  ;;  %v5045_v13 = vld [vmem:[%s12000_s16 + $0xd8] sm:$0xff] }
 0x996   :  { %v6104_v19 = vpop.f32.mrb[52].mxu0  ;;  %v6139_v48 = vpop.f32.mrb[68].mxu1 }
 0x997   :  { %v6105_v34 = vpop.f32.mrb[53].mxu0  ;;  %v6140_v45 = vpop.f32.mrb[69].mxu1 }
 0x998   :  { %v6106_v21 = vadd.f32 %v6105_v34, %v6104_v19  ;;  %v6141_v28 = vadd.f32 %v6140_v45, %v6139_v48  ;;  %v5058_v19 = vld [vmem:[%s12000_s16 + $0x140] sm:$0xff] }
 0x999   :  { %v5054_v45 = vld [vmem:[%s12000_s16 + $0x120] sm:$0xff] }
 0x99a   :  { %v4425_v3 = vadd.f32 %v6141_v28, %v6106_v21  ;;  %v5057_v21 = vld [vmem:[%s12000_s16 + $0x138] sm:$0xff] }
 0x99b   :  { %v5061_v28 = vld [vmem:[%s12000_s16 + $0x158] sm:$0xff] }
 0x99c   :  { %v4428_v39 = vmul.f32 0.001953125, %v4425_v3  ;;  %v5064_v3 = vld [vmem:[%s12000_s16 + $0x170] sm:$0xff] }
 0x99e   :  { %v4570_v22 = vmul.f32 %v4428_v39, %v4428_v39 }
 0x9b6   :  { %v6174_v32 = vpop.f32.mrb[54].mxu0  ;;  %v6209_v10 = vpop.f32.mrb[70].mxu1 }
 0x9b7   :  { %v6175_v54 = vpop.f32.mrb[55].mxu0  ;;  %v6210_v30 = vpop.f32.mrb[71].mxu1 }
 0x9b8   :  { %v6176_v58 = vadd.f32 %v6175_v54, %v6174_v32  ;;  %v6211_v38 = vadd.f32 %v6210_v30, %v6209_v10  ;;  %v7586_v32 = vpack.c.bf16 %v5057_v21, %v5054_v45  ;;  %v7588_v10 = vpack.c.bf16 %v5064_v3, %v5061_v28  ;;  %v5060_v54 = vld [vmem:[%s12000_s16 + $0x150] sm:$0xff]  ;;  %v5063_v30 = vld [vmem:[%s12000_s16 + $0x168] sm:$0xff]  ;;  %v5094_v28 = vld [vmem:[%s12000_s16 + $0x260] sm:$0xff] }
 0x9b9   :  { %v5091_v21 = vld [vmem:[%s12000_s16 + $0x248] sm:$0xff]  ;;  %v5092_v3 = vld [vmem:[%s12000_s16 + $0x250] sm:$0xff] }
 0x9ba   :  { %v4566_v20 = vadd.f32 %v6211_v38, %v6176_v58  ;;  %v5067_v58 = vld [vmem:[%s12000_s16 + $0x188] sm:$0xff]  ;;  %v5070_v38 = vld [vmem:[%s12000_s16 + $0x1a0] sm:$0xff] }
 0x9bc   :  { %v4569_v46 = vmul.f32 0.001953125, %v4566_v20  ;;  %v5068_v20 = vld [vmem:[%s12000_s16 + $0x190] sm:$0xff] }
 0x9be   :  { %v4571_v33 = vsub.f32 %v4569_v46, %v4570_v22  ;;  %v7592_v46 = vpack.c.bf16 %v5070_v38, %v5067_v58  ;;  %v5071_v22 = vld [vmem:[%s12000_s16 + $0x1a8] sm:$0xff]  ;;  %v5044_v58 = vld [vmem:[%s12000_s16 + $0xd0] sm:$0xff] }
 0x9bf   :  { %v5047_v38 = vld [vmem:[%s12000_s16 + $0xe8] sm:$0xff] }
 0x9c0   :  { %v4572_v63 = vadd.f32 1e-05, %v4571_v33  ;;  %v7688_v33 = vpack.c.bf16 %v5071_v22, %v5068_v20  ;;  %v5097_v22 = vld [vmem:[%s12000_s16 + $0x278] sm:$0xff] }
 0x9c2   :  { %7882 = vrsqrt.f32 %v4572_v63  ;;  %v5066_v63 = vld [vmem:[%s12000_s16 + $0x180] sm:$0xff] }
 0x9cc   :  { %v7883_v29 = vpop.eup %7882 }
 0x9cd   :  { %5779 = vmatmul.mubr.msk.f32.vlgmr.msra.gmra.mrb[56].mxu0 %vm877_vm0, %v7883_v29  ;;  %5780 = vmatmul.mubr.msk.f32.vlgmr.msra.gmra.mrb[72].mxu1 %vm877_vm0, %v7883_v29  ;;  %v5069_v29 = vld [vmem:[%s12000_s16 + $0x198] sm:$0xff] }
 0x9ce   :  { %7547 = vmatpush1.bf16.msra.mxu0 %v12205_v18  ;;  %7555 = vmatpush1.bf16.msra.mxu1 %v12206_v23  ;;  %v5049_v18 = vld [vmem:[%s12000_s16 + $0xf8] sm:$0xff]  ;;  %v5052_v23 = vld [vmem:[%s12000_s16 + $0x110] sm:$0xff]  ;;  %v7594_v49 = vpack.c.bf16 %v5069_v29, %v5066_v63  ;;  %v5098_v63 = vld [vmem:[%s12000_s16 + $0x280] sm:$0xff] }
 0x9cf   :  { %7549 = vmatprep.subr.bf16.mxu0 %v12207_v26  ;;  %7557 = vmatprep.subr.bf16.mxu1 %v12208_v53  ;;  %v7578_v26 = vpack.c.bf16 %v5045_v13, %v5042_v9  ;;  %v7580_v53 = vpack.c.bf16 %v5052_v23, %v5049_v18  ;;  %v5085_v13 = vld [vmem:[%s12000_s16 + $0x218] sm:$0xff]  ;;  %v5088_v18 = vld [vmem:[%s12000_s16 + $0x230] sm:$0xff]  ;;  %v5086_v23 = vld [vmem:[%s12000_s16 + $0x220] sm:$0xff] }
 0x9d0   :  { %4786 = vmatprep.mubr.f32.mxu0 %v12209_v5  ;;  %4857 = vmatprep.mubr.f32.mxu1 %v12209_v5  ;;  %v5048_v5 = vld [vmem:[%s12000_s16 + $0xf0] sm:$0xff] }
 0x9d2   :  { %7551 = vmatpush1.bf16.msra.mxu0 %v12210_v7  ;;  %7559 = vmatpush1.bf16.msra.mxu1 %v12211_v31  ;;  %v5051_v7 = vld [vmem:[%s12000_s16 + $0x108] sm:$0xff] }
 0x9d3   :  { %7561 = vmatprep.subr.bf16.mxu0 %v7560_v35  ;;  %v5055_v31 = vld [vmem:[%s12000_s16 + $0x128] sm:$0xff]  ;;  %v7582_v48 = vpack.c.bf16 %v5051_v7, %v5048_v5  ;;  %7689 = vmatprep.subr.bf16.mxu1 %v7688_v33  ;;  %v5084_v5 = vld [vmem:[%s12000_s16 + $0x210] sm:$0xff] }
 0x9d4   :  { %v7584_v34 = vpack.c.bf16 %v5058_v19, %v5055_v31  ;;  %v5023_v35 = vld [vmem:[%s12000_s16 + $0x28] sm:$0xff]  ;;  %v5100_v33 = vld [vmem:[%s12000_s16 + $0x290] sm:$0xff] }
 0x9d5   :  { %5781 = vmatmul.mubr.msk.f32.vlgmr.msra.gmra.mrb[58].mxu0 %vm877_vm0, %v4428_v39  ;;  %5782 = vmatmul.mubr.msk.f32.vlgmr.msra.gmra.mrb[74].mxu1 %vm877_vm0, %v4428_v39  ;;  %v7590_v39 = vpack.c.bf16 %v5063_v30, %v5060_v54  ;;  %v7690_v36 = vpack.c.bf16 %v5023_v35, %v5020_v16  ;;  %v5087_v7 = vld [vmem:[%s12000_s16 + $0x228] sm:$0xff]  ;;  %v5090_v54 = vld [vmem:[%s12000_s16 + $0x240] sm:$0xff]  ;;  %v7612_v29 = vpack.c.bf16 %v5100_v33, %v5097_v22  ;;  %v5101_v16 = vld [vmem:[%s12000_s16 + $0x298] sm:$0xff] }
 0x9d6   :  { %7563 = vmatpush1.bf16.msra.mxu0 %v7562_v1  ;;  %v7596_v1 = vpack.c.bf16 %v5076_v55, %v5073_v25  ;;  %v7606_v19 = vpack.c.bf16 %v5087_v7, %v5084_v5  ;;  %v5099_v35 = vld [vmem:[%s12000_s16 + $0x288] sm:$0xff]  ;;  %v5050_v55 = vld [vmem:[%s12000_s16 + $0x100] sm:$0xff]  ;;  %v5164_v7 = vld [vmem:[%s12000_s16 + $0x490] sm:$0xff] }
 0x9d7   :  { %7565 = vmatprep.subr.bf16.mxu0 %v7564_v52  ;;  %7691 = vmatpush3.bf16.msra.mxu1 %v7690_v36  ;;  %v5077_v52 = vld [vmem:[%s12000_s16 + $0x1d8] sm:$0xff]  ;;  %v7708_v36 = vpack.c.bf16 %v5101_v16, %v5098_v63  ;;  %v5118_v5 = vld [vmem:[%s12000_s16 + $0x320] sm:$0xff] }
 0x9d8   :  { %v7692_v42 = vpack.c.bf16 %v5077_v52, %v5074_v12  ;;  %v5053_v12 = vld [vmem:[%s12000_s16 + $0x118] sm:$0xff]  ;;  %v5103_v52 = vld [vmem:[%s12000_s16 + $0x2a8] sm:$0xff] }
 0x9da   :  { %7567 = vmatpush1.bf16.msra.mxu0 %v7566_v44  ;;  %v5026_v44 = vld [vmem:[%s12000_s16 + $0x40] sm:$0xff]  ;;  %7693 = vmatprep.subr.bf16.mxu1 %v7692_v42  ;;  %v7616_v42 = vpack.c.bf16 %v5106_v40, %v5103_v52 }
 0x9db   :  { %7569 = vmatprep.subr.bf16.mxu0 %v7568_v6  ;;  %v5029_v6 = vld [vmem:[%s12000_s16 + $0x58] sm:$0xff] }
 0x9dc   :  { %v7694_v61 = vpack.c.bf16 %v5029_v6, %v5026_v44  ;;  %v5102_v44 = vld [vmem:[%s12000_s16 + $0x2a0] sm:$0xff]  ;;  %v5105_v6 = vld [vmem:[%s12000_s16 + $0x2b8] sm:$0xff] }
 0x9de   :  { %7571 = vmatpush1.bf16.msra.mxu0 %v7570_v11  ;;  %7695 = vmatpush3.bf16.msra.mxu1 %v7694_v61  ;;  %v7600_v11 = vpack.c.bf16 %v5082_v4, %v5079_v0  ;;  %v7618_v0 = vpack.c.bf16 %v5105_v6, %v5102_v44  ;;  %v5056_v4 = vld [vmem:[%s12000_s16 + $0x130] sm:$0xff] }
 0x9df   :  { %7573 = vmatprep.subr.bf16.mxu0 %v7572_v47  ;;  %v5083_v47 = vld [vmem:[%s12000_s16 + $0x208] sm:$0xff] }
 0x9e0   :  { %v7696_v56 = vpack.c.bf16 %v5083_v47, %v5080_v8  ;;  %v5059_v8 = vld [vmem:[%s12000_s16 + $0x148] sm:$0xff] }
 0x9e1   :  { %v7714_v47 = vpack.c.bf16 %v5059_v8, %v5056_v4  ;;  %v11587_v4 = vld [vmem:[%s12000_s16 + $0x310] sm:$0xff] }
 0x9e2   :  { %7575 = vmatpush1.bf16.msra.mxu0 %v7574_v62  ;;  %v5032_v62 = vld [vmem:[%s12000_s16 + $0x70] sm:$0xff]  ;;  %7697 = vmatprep.subr.bf16.mxu1 %v7696_v56  ;;  %v5113_v56 = vld [vmem:[%s12000_s16 + $0x2f8] sm:$0xff] }
 0x9e3   :  { %7577 = vmatprep.subr.bf16.mxu0 %v7576_v2  ;;  %v5035_v2 = vld [vmem:[%s12000_s16 + $0x88] sm:$0xff] }
 0x9e4   :  { %v7698_v9 = vpack.c.bf16 %v5035_v2, %v5032_v62  ;;  %v7716_v62 = vpack.c.bf16 %v5113_v56, %v5110_v51  ;;  %v5108_v2 = vld [vmem:[%s12000_s16 + $0x2d0] sm:$0xff]  ;;  %v4199_v51 = vld [vmem:[%s12002_s11] sm:$0xf] }
 0x9e5   :  { %v11608_v56 = vld [vmem:[%s12000_s16 + $0x4c0] sm:$0xff] }
 0x9e6   :  { %7579 = vmatpush1.bf16.msra.mxu0 %v7578_v26  ;;  %7699 = vmatpush3.bf16.msra.mxu1 %v7698_v9  ;;  %v7604_v26 = vpack.c.bf16 %v5088_v18, %v5085_v13  ;;  %v5111_v9 = vld [vmem:[%s12000_s16 + $0x2e8] sm:$0xff]  ;;  %v5062_v13 = vld [vmem:[%s12000_s16 + $0x160] sm:$0xff] }
 0x9e7   :  { %7581 = vmatprep.subr.bf16.mxu0 %v7580_v53  ;;  %v5089_v53 = vld [vmem:[%s12000_s16 + $0x238] sm:$0xff]  ;;  %v7622_v18 = vpack.c.bf16 %v5111_v9, %v5108_v2 }
 0x9e8   :  { %v7700_v31 = vpack.c.bf16 %v5089_v53, %v5086_v23  ;;  %v5065_v23 = vld [vmem:[%s12000_s16 + $0x178] sm:$0xff]  ;;  %v5115_v53 = vld [vmem:[%s12000_s16 + $0x308] sm:$0xff] }
 0x9ea   :  { %7583 = vmatpush1.bf16.msra.mxu0 %v7582_v48  ;;  %v5038_v48 = vld [vmem:[%s12000_s16 + $0xa0] sm:$0xff]  ;;  %7701 = vmatprep.subr.bf16.mxu1 %v7700_v31  ;;  %v7624_v31 = vpack.c.bf16 %v5118_v5, %v5115_v53 }
 0x9eb   :  { %7585 = vmatprep.subr.bf16.mxu0 %v7584_v34  ;;  %v5041_v34 = vld [vmem:[%s12000_s16 + $0xb8] sm:$0xff] }
 0x9ec   :  { %v7702_v45 = vpack.c.bf16 %v5041_v34, %v5038_v48 }
 0x9ee   :  { %7587 = vmatpush1.bf16.msra.mxu0 %v7586_v32  ;;  %7703 = vmatpush3.bf16.msra.mxu1 %v7702_v45  ;;  %v7608_v32 = vpack.c.bf16 %v5094_v28, %v5091_v21 }
 0x9ef   :  { %7589 = vmatprep.subr.bf16.mxu0 %v7588_v10  ;;  %v5095_v10 = vld [vmem:[%s12000_s16 + $0x268] sm:$0xff] }
 0x9f0   :  { %v7704_v30 = vpack.c.bf16 %v5095_v10, %v5092_v3  ;;  %v12212_v10 = vld [vmem:[#allocation24_spill] sm:$0xff] }
 0x9f2   :  { %7591 = vmatpush1.bf16.msra.mxu0 %v7590_v39  ;;  %v5093_v39 = vld [vmem:[%s12000_s16 + $0x258] sm:$0xff]  ;;  %7705 = vmatprep.subr.bf16.mxu1 %v7704_v30 }
 0x9f3   :  { %7593 = vmatprep.subr.bf16.mxu0 %v7592_v46  ;;  %v7610_v20 = vpack.c.bf16 %v5093_v39, %v5090_v54  ;;  %v7706_v46 = vpack.c.bf16 %v5047_v38, %v5044_v58  ;;  %v4198_v58 = vld [vmem:[%s12001_s10] sm:$0xf] }
 0x9f5   :  { %7707 = vmatpush3.bf16.msra.mxu1 %v7706_v46 }
 0x9f6   :  { %7595 = vmatpush1.bf16.msra.mxu0 %v7594_v49  ;;  %v5096_v49 = vld [vmem:[%s12000_s16 + $0x270] sm:$0xff]  ;;  %7709 = vmatprep.subr.bf16.mxu1 %v7708_v36  ;;  %v12215_v36 = vld [vmem:[#allocation27_spill] sm:$0xff] }
 0x9f7   :  { %7597 = vmatprep.subr.bf16.mxu0 %v7596_v1  ;;  %v7614_v25 = vpack.c.bf16 %v5099_v35, %v5096_v49  ;;  %v7710_v1 = vpack.c.bf16 %v5053_v12, %v5050_v55  ;;  %v12214_v49 = vld [vmem:[#allocation26_spill] sm:$0xff]  ;;  %v12216_v55 = vld [vmem:[#allocation28_spill] sm:$0xff] }
 0x9f9   :  { %7711 = vmatpush3.bf16.msra.mxu1 %v7710_v1 }
 0x9fa   :  { %7599 = vmatpush1.bf16.msra.mxu0 %v7598_v57  ;;  %v5107_v57 = vld [vmem:[%s12000_s16 + $0x2c8] sm:$0xff] }
 0x9fb   :  { %7601 = vmatprep.subr.bf16.mxu0 %v7600_v11  ;;  %v7712_v61 = vpack.c.bf16 %v5107_v57, %v5104_v50  ;;  %v5109_v11 = vld [vmem:[%s12000_s16 + $0x2d8] sm:$0xff] }
 0x9fd   :  { %7713 = vmatprep.subr.bf16.mxu1 %v7712_v61  ;;  %v11577_v61 = vld [vmem:[%s12000_s16 + $0x300] sm:$0xff] }
 0x9fe   :  { %7603 = vmatpush1.bf16.msra.mxu0 %v7602_v59  ;;  %v7620_v59 = vpack.c.bf16 %v5112_v14, %v5109_v11  ;;  %7715 = vmatpush3.bf16.msra.mxu1 %v7714_v47  ;;  %v5119_v11 = vld [vmem:[%s12000_s16 + $0x328] sm:$0xff]  ;;  %v11595_v47 = vld [vmem:[%s12000_s16 + $0x338] sm:$0xff]  ;;  %v11600_v14 = vld [vmem:[%s12000_s16 + $0x350] sm:$0xff] }
 0x9ff   :  { %7605 = vmatprep.subr.bf16.mxu0 %v7604_v26  ;;  %7717 = vmatprep.subr.bf16.mxu1 %v7716_v62  ;;  %v7718_v26 = vpack.c.bf16 %v5065_v23, %v5062_v13  ;;  %v7722_v9 = vpack.c.bf16 %v5119_v11, %v11587_v4  ;;  %v7628_v13 = vpack.c.bf16 %v11600_v14, %v11595_v47  ;;  %v12217_v23 = vld [vmem:[#allocation13_spill] sm:$0xff] }
 0xa00   :  { %v5185_v47 = vld [vmem:[%s12000_s16 + $0x538] sm:$0xff] }
 0xa02   :  { %7607 = vmatpush1.bf16.msra.mxu0 %v7606_v19  ;;  %v5167_v19 = vld [vmem:[%s12000_s16 + $0x4a8] sm:$0xff]  ;;  %7719 = vmatpush3.bf16.msra.mxu1 %v7718_v26 }
 0xa03   :  { %7609 = vmatprep.subr.bf16.mxu0 %v7608_v32  ;;  %v7720_v48 = vpack.c.bf16 %v5167_v19, %v5164_v7  ;;  %v12218_v7 = vld [vmem:[#allocation3_spill] sm:$0xff] }
 0xa05   :  { %7721 = vmatprep.subr.bf16.mxu1 %v7720_v48  ;;  %v12219_v48 = vld [vmem:[#allocation12_spill] sm:$0xff] }
 0xa06   :  { %7611 = vmatpush1.bf16.msra.mxu0 %v7610_v20 }
 0xa07   :  { %7613 = vmatprep.subr.bf16.mxu0 %v7612_v29  ;;  %v12213_v29 = vld [vmem:[#allocation25_spill] sm:$0xff] }
 0xa0a   :  { %7615 = vmatpush1.bf16.msra.mxu0 %v7614_v25 }
 0xa0b   :  { %7617 = vmatprep.subr.bf16.mxu0 %v7616_v42 }
 0xa0e   :  { %7619 = vmatpush1.bf16.msra.mxu0 %v7618_v0  ;;  %v11582_v0 = vld [vmem:[%s12000_s16 + $0x318] sm:$0xff] }
 0xa0f   :  { %7621 = vmatprep.subr.bf16.mxu0 %v7620_v59  ;;  %v11613_v59 = vld [vmem:[%s12000_s16 + $0x4d8] sm:$0xff]  ;;  %v7626_v2 = vpack.c.bf16 %v11582_v0, %v11577_v61 }
 0xa10   :  { %v7724_v5 = vpack.c.bf16 %v11613_v59, %v11608_v56  ;;  %v5126_v59 = vld [vmem:[%s12000_s16 + $0x360] sm:$0xff] }
 0xa12   :  { %7623 = vmatpush1.bf16.msra.mxu0 %v7622_v18 }
 0xa13   :  { %7625 = vmatprep.subr.bf16.mxu0 %v7624_v31 }
 0xaa0   :  { %v4643_v34 = vpop.f32.mrb[56].mxu0  ;;  %v4714_v45 = vpop.f32.mrb[72].mxu1 }
 0xaa1   :  { %v4645_v21 = vpop.f32.mrb[57].mxu0  ;;  %v4716_v28 = vpop.f32.mrb[73].mxu1 }
 0xaa2   :  { %v4868_v3 = vcombine.low %v4643_v34, %v4645_v21  ;;  %v4869_v32 = vcombine.low %v4714_v45, %v4716_v28 }
 0xaa4   :  { %v4876_v54 = vrot.slane %v4868_v3, %v12212_v10  ;;  %v4883_v30 = vrot.slane %v4869_v32, %v12212_v10  ;;  %v12220_v3 = vld [vmem:[#allocation4_spill] sm:$0xff] }
 0xaa6   :  { %v4884_v39 = vcombine.low %v4876_v54, %v4883_v30  ;;  %v12221_v54 = vld [vmem:[#allocation15_spill] sm:$0xff] }
 0xaa8   :  { %v4891_v38 = vrot.slane %v4884_v39, %v12212_v10  ;;  %v4788_v20 = vpop.f32.mrb[58].mxu0  ;;  %v4859_v46 = vpop.f32.mrb[74].mxu1 }
 0xaa9   :  { %v4790_v22 = vpop.f32.mrb[59].mxu0  ;;  %v4861_v33 = vpop.f32.mrb[75].mxu1 }
 0xaaa   :  { %v4893_v63 = vmul.f32 %v4891_v38, %v4198_v58 }
 0xaac   :  { %v4898_v16 = vrot.slane %v4893_v63, %v12213_v29  ;;  %v4906_v35 = vrot.slane %v4893_v63, %v12214_v49  ;;  %v4902_v25 = vrot.slane %v4893_v63, %v12215_v36  ;;  %v4910_v12 = vrot.slane %v4893_v63, %v12216_v55 }
 0xaae   :  { %v4915_v1 = vmul.f32 %v4898_v16, %v4788_v20  ;;  %v4917_v52 = vmul.f32 %v4906_v35, %v4859_v46  ;;  %v4916_v40 = vmul.f32 %v4902_v25, %v4790_v22  ;;  %v4918_v50 = vmul.f32 %v4910_v12, %v4861_v33 }
 0xaaf   :  { %v4950_v26 = vmul.f32 %v12217_v23, %v4902_v25  ;;  %v4949_v53 = vmul.f32 %v11144_v43, %v4898_v16  ;;  %v4954_v31 = vmul.f32 %v12218_v7, %v4902_v25  ;;  %v4953_v19 = vmul.f32 %v11136_v41, %v4898_v16  ;;  %v5129_v23 = vld [vmem:[%s12000_s16 + $0x378] sm:$0xff] }
 0xab0   :  { %v4923_v42 = vcombine.low %v4915_v1, %v4916_v40  ;;  %v4924_v57 = vcombine.low %v4917_v52, %v4918_v50  ;;  %v4958_v34 = vmul.f32 %v12219_v48, %v4902_v25  ;;  %v4957_v45 = vmul.f32 %v11148_v15, %v4898_v16  ;;  %v5125_v1 = vld [vmem:[%s12000_s16 + $0x358] sm:$0xff]  ;;  %v12223_v52 = vld [vmem:[#allocation14_spill] sm:$0xff]  ;;  %v5136_v48 = vld [vmem:[%s12000_s16 + $0x3b0] sm:$0xff] }
 0xab1   :  { %v4962_v32 = vmul.f32 %v12220_v3, %v4902_v25  ;;  %v4952_v30 = vmul.f32 %v12221_v54, %v4910_v12  ;;  %v4951_v41 = vmul.f32 %v11146_v24, %v4906_v35  ;;  %v4955_v24 = vmul.f32 %v11138_v17, %v4906_v35  ;;  %v5123_v25 = vld [vmem:[%s12000_s16 + $0x348] sm:$0xff]  ;;  %v5137_v3 = vld [vmem:[%s12000_s16 + $0x3b8] sm:$0xff] }
 0xab2   :  { %v4931_v44 = vrot.slane %v4923_v42, %v12212_v10  ;;  %v4938_v6 = vrot.slane %v4924_v57, %v12212_v10  ;;  %v4960_v40 = vmul.f32 %v12223_v52, %v4910_v12  ;;  %v4959_v50 = vmul.f32 %v11150_v60, %v4906_v35  ;;  %v12224_v42 = vld [vmem:[#allocation30_spill] sm:$0xff]  ;;  %v5147_v52 = vld [vmem:[%s12000_s16 + $0x408] sm:$0xff] }
 0xab3   :  { %v4964_v57 = vmul.f32 %v12224_v42, %v4910_v12  ;;  %v4963_v17 = vmul.f32 %v11176_v27, %v4906_v35  ;;  %v5130_v60 = vld [vmem:[%s12000_s16 + $0x380] sm:$0xff]  ;;  %v5176_v27 = vld [vmem:[%s12000_s16 + $0x4f0] sm:$0xff]  ;;  %v5179_v35 = vld [vmem:[%s12000_s16 + $0x508] sm:$0xff]  ;;  %v7634_v14 = vpack.c.bf16 %v5129_v23, %v5126_v59 }
 0xab4   :  { %v4939_v8 = vcombine.low %v4931_v44, %v4938_v6  ;;  %v5127_v44 = vld [vmem:[%s12000_s16 + $0x368] sm:$0xff]  ;;  %v7728_v7 = vpack.c.bf16 %v5179_v35, %v5176_v27  ;;  %v5146_v42 = vld [vmem:[%s12000_s16 + $0x400] sm:$0xff] }
 0xab5   :  { %v5150_v35 = vld [vmem:[%s12000_s16 + $0x420] sm:$0xff]  ;;  %v5155_v23 = vld [vmem:[%s12000_s16 + $0x448] sm:$0xff] }
 0xab6   :  { %v4946_v62 = vrot.slane %v4939_v8, %v12212_v10  ;;  %v4961_v10 = vmul.f32 %v11174_v37, %v4898_v16  ;;  %v5120_v16 = vld [vmem:[%s12000_s16 + $0x330] sm:$0xff] }
 0xab8   :  { %v4948_v18 = vsub.f32 %v4199_v51, %v4946_v62  ;;  %v7630_v51 = vpack.c.bf16 %v5123_v25, %v5120_v16 }
 0xaba   :  { %v4973_v21 = vrot.slane %v4948_v18, %v12215_v36  ;;  %v4969_v28 = vrot.slane %v4948_v18, %v12213_v29  ;;  %v4977_v43 = vrot.slane %v4948_v18, %v12214_v49  ;;  %v4981_v39 = vrot.slane %v4948_v18, %v12216_v55  ;;  %v12222_v49 = vld [vmem:[#allocation29_spill] sm:$0xff]  ;;  %v5122_v55 = vld [vmem:[%s12000_s16 + $0x340] sm:$0xff] }
 0xabb   :  { %v4956_v36 = vmul.f32 %v12222_v49, %v4910_v12  ;;  %v7726_v56 = vpack.c.bf16 %v5125_v1, %v5122_v55  ;;  %v5194_v49 = vld [vmem:[%s12000_s16 + $0x580] sm:$0xff]  ;;  %v5144_v1 = vld [vmem:[%s12000_s16 + $0x3f0] sm:$0xff] }
 0xabc   :  { %v4987_v58 = vadd.f32 %v4973_v21, %v4950_v26  ;;  %v4986_v38 = vadd.f32 %v4969_v28, %v4949_v53  ;;  %v4991_v20 = vadd.f32 %v4973_v21, %v4954_v31  ;;  %v4990_v15 = vadd.f32 %v4969_v28, %v4953_v19  ;;  %v5133_v31 = vld [vmem:[%s12000_s16 + $0x398] sm:$0xff] }
 0xabd   :  { %v4995_v46 = vadd.f32 %v4973_v21, %v4958_v34  ;;  %v11637_v22 = vadd.f32 %v4969_v28, %v4957_v45  ;;  %v11639_v33 = vadd.f32 %v4973_v21, %v4962_v32  ;;  %v11641_v63 = vadd.f32 %v4969_v28, %v4961_v10  ;;  %v5182_v34 = vld [vmem:[%s12000_s16 + $0x520] sm:$0xff]  ;;  %v5135_v21 = vld [vmem:[%s12000_s16 + $0x3a8] sm:$0xff] }
 0xabe   :  { %v5003_v37 = vmax.f32 %v4987_v58, 0.0  ;;  %v5002_v29 = vmax.f32 %v4986_v38, 0.0  ;;  %v11664_v6 = vadd.f32 %v4981_v39, %v4952_v30  ;;  %v11666_v61 = vadd.f32 %v4977_v43, %v4951_v41  ;;  %v5134_v28 = vld [vmem:[%s12000_s16 + $0x3a0] sm:$0xff]  ;;  %v5191_v41 = vld [vmem:[%s12000_s16 + $0x568] sm:$0xff] }
 0xabf   :  { %v11668_v0 = vadd.f32 %v4981_v39, %v4956_v36  ;;  %v5007_v4 = vmax.f32 %v4991_v20, 0.0  ;;  %v11679_v12 = vadd.f32 %v4977_v43, %v4955_v24  ;;  %v11681_v8 = vadd.f32 %v4981_v39, %v4960_v40  ;;  %v5142_v30 = vld [vmem:[%s12000_s16 + $0x3e0] sm:$0xff]  ;;  %v5197_v36 = vld [vmem:[%s12000_s16 + $0x598] sm:$0xff] }
 0xac0   :  { %5274 = vmatprep.mubr.f32.mxu0 %v5003_v37  ;;  %5452 = vmatprep.mubr.f32.mxu1 %v5003_v37  ;;  %v11683_v11 = vadd.f32 %v4977_v43, %v4959_v50  ;;  %v11688_v62 = vadd.f32 %v4981_v39, %v4964_v57  ;;  %v5006_v18 = vmax.f32 %v4990_v15, 0.0  ;;  %v11699_v26 = vadd.f32 %v4977_v43, %v4963_v17  ;;  %v5139_v43 = vld [vmem:[%s12000_s16 + $0x3c8] sm:$0xff]  ;;  %v5188_v39 = vld [vmem:[%s12000_s16 + $0x550] sm:$0xff]  ;;  %v5138_v20 = vld [vmem:[%s12000_s16 + $0x3c0] sm:$0xff] }
 0xac1   :  { %5275 = vmatmul.mubr.f32.vlgmr.msra.gmra.mrb[60].mxu0 %v5002_v29  ;;  %5453 = vmatmul.mubr.f32.vlgmr.msra.gmra.mrb[76].mxu1 %v5002_v29  ;;  %v7632_v53 = vpack.c.bf16 %v5130_v60, %v5127_v44  ;;  %v5011_v19 = vmax.f32 %v4995_v46, 0.0  ;;  %v5010_v45 = vmax.f32 %v11637_v22, 0.0  ;;  %v7636_v32 = vpack.c.bf16 %v5136_v48, %v5133_v31  ;;  %v5141_v15 = vld [vmem:[%s12000_s16 + $0x3d8] sm:$0xff]  ;;  %v5140_v22 = vld [vmem:[%s12000_s16 + $0x3d0] sm:$0xff]  ;;  %v5151_v17 = vld [vmem:[%s12000_s16 + $0x428] sm:$0xff] }
 0xac2   :  { %7627 = vmatpush1.bf16.msra.mxu0 %v7626_v2  ;;  %7723 = vmatpush3.bf16.msra.mxu1 %v7722_v9  ;;  %v5128_v2 = vld [vmem:[%s12000_s16 + $0x370] sm:$0xff]  ;;  %v5131_v9 = vld [vmem:[%s12000_s16 + $0x388] sm:$0xff]  ;;  %v7732_v10 = vpack.c.bf16 %v5185_v47, %v5182_v34  ;;  %v5015_v54 = vmax.f32 %v11639_v33, 0.0  ;;  %v7734_v38 = vpack.c.bf16 %v5137_v3, %v5134_v28  ;;  %v5014_v46 = vmax.f32 %v11641_v63, 0.0  ;;  %v5145_v37 = vld [vmem:[%s12000_s16 + $0x3f8] sm:$0xff] }
 0xac3   :  { %5280 = vmatprep.mubr.f32.mxu0 %v5007_v4  ;;  %5457 = vmatprep.mubr.f32.mxu1 %v5007_v4  ;;  %v5143_v33 = vld [vmem:[%s12000_s16 + $0x3e8] sm:$0xff]  ;;  %v7640_v29 = vpack.c.bf16 %v5142_v30, %v5139_v43  ;;  %v7736_v16 = vpack.c.bf16 %v5191_v41, %v5188_v39  ;;  %v5148_v63 = vld [vmem:[%s12000_s16 + $0x410] sm:$0xff]  ;;  %v5005_v24 = vmax.f32 %v11664_v6, 0.0  ;;  %v7642_v25 = vpack.c.bf16 %v5141_v15, %v5138_v20  ;;  %v5149_v57 = vld [vmem:[%s12000_s16 + $0x418] sm:$0xff] }
 0xac4   :  { %7629 = vmatprep.subr.bf16.mxu0 %v7628_v13  ;;  %7725 = vmatprep.subr.bf16.mxu1 %v7724_v5  ;;  %v7730_v13 = vpack.c.bf16 %v5131_v9, %v5128_v2  ;;  %v5132_v5 = vld [vmem:[%s12000_s16 + $0x390] sm:$0xff]  ;;  %v7738_v55 = vpack.c.bf16 %v5143_v33, %v5140_v22  ;;  %v7644_v40 = vpack.c.bf16 %v5148_v63, %v5145_v37  ;;  %v5154_v44 = vld [vmem:[%s12000_s16 + $0x440] sm:$0xff]  ;;  %v5203_v4 = vld [vmem:[%s12000_s16 + $0x5c8] sm:$0xff]  ;;  %v5004_v41 = vmax.f32 %v11666_v61, 0.0 }
 0xac5   :  { %5281 = vmatmul.mubr.f32.gmra.mrb[62].mxu0 %v5006_v18  ;;  %5458 = vmatmul.mubr.f32.gmra.mrb[78].mxu1 %v5006_v18  ;;  %v7638_v58 = vpack.c.bf16 %v5135_v21, %v5132_v5  ;;  %v7740_v50 = vpack.c.bf16 %v5197_v36, %v5194_v49  ;;  %v5200_v6 = vld [vmem:[%s12000_s16 + $0x5b0] sm:$0xff]  ;;  %v7646_v60 = vpack.c.bf16 %v5147_v52, %v5144_v1  ;;  %v5157_v2 = vld [vmem:[%s12000_s16 + $0x458] sm:$0xff]  ;;  %v5166_v21 = vld [vmem:[%s12000_s16 + $0x4a0] sm:$0xff]  ;;  %v5009_v15 = vmax.f32 %v11668_v0, 0.0 }
 0xac6   :  { %7631 = vmatpush1.bf16.msra.mxu0 %v7630_v51  ;;  %7727 = vmatpush3.bf16.msra.mxu1 %v7726_v56  ;;  %v7742_v27 = vpack.c.bf16 %v5149_v57, %v5146_v42  ;;  %v5153_v51 = vld [vmem:[%s12000_s16 + $0x438] sm:$0xff]  ;;  %v7648_v56 = vpack.c.bf16 %v5154_v44, %v5151_v17  ;;  %v7744_v59 = vpack.c.bf16 %v5203_v4, %v5200_v6  ;;  %v5152_v18 = vld [vmem:[%s12000_s16 + $0x430] sm:$0xff]  ;;  %v5171_v20 = vld [vmem:[%s12000_s16 + $0x4c8] sm:$0xff]  ;;  %v5008_v37 = vmax.f32 %v11679_v12, 0.0 }
 0xac7   :  { %5286 = vmatprep.mubr.f32.mxu0 %v5011_v19  ;;  %5462 = vmatprep.mubr.f32.mxu1 %v5011_v19  ;;  %v5160_v9 = vld [vmem:[%s12000_s16 + $0x470] sm:$0xff]  ;;  %v7650_v31 = vpack.c.bf16 %v5153_v51, %v5150_v35  ;;  %v7746_v19 = vpack.c.bf16 %v5155_v23, %v5152_v18  ;;  %v5161_v5 = vld [vmem:[%s12000_s16 + $0x478] sm:$0xff]  ;;  %v5178_v22 = vld [vmem:[%s12000_s16 + $0x500] sm:$0xff]  ;;  %v5013_v49 = vmax.f32 %v11681_v8, 0.0  ;;  %v5017_v52 = vmax.f32 %v11688_v62, 0.0 }
 0xac8   :  { %7633 = vmatprep.subr.bf16.mxu0 %v7632_v53  ;;  %7729 = vmatprep.subr.bf16.mxu1 %v7728_v7  ;;  %v5206_v53 = vld [vmem:[%s12000_s16 + $0x5e0] sm:$0xff]  ;;  %v5209_v7 = vld [vmem:[%s12000_s16 + $0x5f8] sm:$0xff]  ;;  %v5156_v48 = vld [vmem:[%s12000_s16 + $0x450] sm:$0xff]  ;;  %v7652_v34 = vpack.c.bf16 %v5160_v9, %v5157_v2  ;;  %v5016_v42 = vmax.f32 %v11699_v26, 0.0 }
 0xac9   :  { %5287 = vmatmul.mubr.f32.gmra.mrb[64].mxu0 %v5010_v45  ;;  %5463 = vmatmul.mubr.f32.gmra.mrb[80].mxu1 %v5010_v45  ;;  %v7748_v47 = vpack.c.bf16 %v5209_v7, %v5206_v53  ;;  %v5163_v45 = vld [vmem:[%s12000_s16 + $0x488] sm:$0xff]  ;;  %v5165_v43 = vld [vmem:[%s12000_s16 + $0x498] sm:$0xff]  ;;  %v5172_v30 = vld [vmem:[%s12000_s16 + $0x4d0] sm:$0xff] }
 0xaca   :  { %7635 = vmatpush1.bf16.msra.mxu0 %v7634_v14  ;;  %7731 = vmatpush3.bf16.msra.mxu1 %v7730_v13  ;;  %v5159_v14 = vld [vmem:[%s12000_s16 + $0x468] sm:$0xff]  ;;  %v5158_v13 = vld [vmem:[%s12000_s16 + $0x460] sm:$0xff]  ;;  %v5177_v63 = vld [vmem:[%s12000_s16 + $0x4f8] sm:$0xff] }
 0xacb   :  { %5292 = vmatprep.mubr.f32.mxu0 %v5015_v54  ;;  %5467 = vmatprep.mubr.f32.mxu1 %v5015_v54  ;;  %v7654_v28 = vpack.c.bf16 %v5159_v14, %v5156_v48  ;;  %v7750_v3 = vpack.c.bf16 %v5161_v5, %v5158_v13  ;;  %v5169_v54 = vld [vmem:[%s12000_s16 + $0x4b8] sm:$0xff]  ;;  %v5180_v8 = vld [vmem:[%s12000_s16 + $0x510] sm:$0xff]  ;;  %v5183_v1 = vld [vmem:[%s12000_s16 + $0x528] sm:$0xff] }
 0xacc   :  { %7637 = vmatprep.subr.bf16.mxu0 %v7636_v32  ;;  %7733 = vmatprep.subr.bf16.mxu1 %v7732_v10  ;;  %v7656_v32 = vpack.c.bf16 %v5166_v21, %v5163_v45  ;;  %v5162_v10 = vld [vmem:[%s12000_s16 + $0x480] sm:$0xff]  ;;  %v5181_v36 = vld [vmem:[%s12000_s16 + $0x518] sm:$0xff]  ;;  %v5196_v6 = vld [vmem:[%s12000_s16 + $0x590] sm:$0xff] }
 0xacd   :  { %5293 = vmatmul.mubr.f32.gmra.mrb[66].mxu0 %v5014_v46  ;;  %5468 = vmatmul.mubr.f32.gmra.mrb[82].mxu1 %v5014_v46  ;;  %v7658_v39 = vpack.c.bf16 %v5165_v43, %v5162_v10  ;;  %v5175_v46 = vld [vmem:[%s12000_s16 + $0x4e8] sm:$0xff]  ;;  %v5186_v62 = vld [vmem:[%s12000_s16 + $0x540] sm:$0xff]  ;;  %v5189_v17 = vld [vmem:[%s12000_s16 + $0x558] sm:$0xff] }
 0xace   :  { %7639 = vmatpush1.bf16.msra.mxu0 %v7638_v58  ;;  %7735 = vmatpush3.bf16.msra.mxu1 %v7734_v38  ;;  %v7660_v58 = vpack.c.bf16 %v5172_v30, %v5169_v54  ;;  %v5168_v38 = vld [vmem:[%s12000_s16 + $0x4b0] sm:$0xff]  ;;  %v5193_v44 = vld [vmem:[%s12000_s16 + $0x578] sm:$0xff]  ;;  %v7674_v26 = vpack.c.bf16 %v5189_v17, %v5186_v62  ;;  %v7884_v4 = vld [vmem:[%s12099_s0] sm:$0xff] }
 0xacf   :  { %5363 = vmatprep.mubr.f32.mxu0 %v5005_v24  ;;  %5537 = vmatprep.mubr.f32.mxu1 %v5005_v24  ;;  %v7662_v33 = vpack.c.bf16 %v5171_v20, %v5168_v38  ;;  %v5184_v24 = vld [vmem:[%s12000_s16 + $0x530] sm:$0xff]  ;;  %v5195_v35 = vld [vmem:[%s12000_s16 + $0x588] sm:$0xff]  ;;  %v5198_v23 = vld [vmem:[%s12000_s16 + $0x5a0] sm:$0xff] }
 0xad0   :  { %7641 = vmatprep.subr.bf16.mxu0 %v7640_v29  ;;  %7737 = vmatprep.subr.bf16.mxu1 %v7736_v16  ;;  %v7664_v29 = vpack.c.bf16 %v5178_v22, %v5175_v46  ;;  %v5174_v16 = vld [vmem:[%s12000_s16 + $0x4e0] sm:$0xff]  ;;  %v5199_v51 = vld [vmem:[%s12000_s16 + $0x5a8] sm:$0xff]  ;;  %v5201_v2 = vld [vmem:[%s12000_s16 + $0x5b8] sm:$0xff] }
 0xad1   :  { %v7666_v12 = vpack.c.bf16 %v5177_v63, %v5174_v16  ;;  %v5205_v9 = vld [vmem:[%s12000_s16 + $0x5d8] sm:$0xff]  ;;  %v5208_v53 = vld [vmem:[%s12000_s16 + $0x5f0] sm:$0xff]  ;;  %v7682_v7 = vpack.c.bf16 %v5201_v2, %v5198_v23  ;;  %v5207_v48 = vld [vmem:[%s12000_s16 + $0x5e8] sm:$0xff] }
 0xad2   :  { %7643 = vmatpush1.bf16.msra.mxu0 %v7642_v25  ;;  %7739 = vmatpush3.bf16.msra.mxu1 %v7738_v55  ;;  %v5012_v25 = vmax.f32 %v11683_v11, 0.0  ;;  %v7668_v55 = vpack.c.bf16 %v5184_v24, %v5181_v36  ;;  %v7670_v11 = vpack.c.bf16 %v5183_v1, %v5180_v8  ;;  %v7887_v62 = vld [vmem:[%s12099_s0 + $0x18] sm:$0xff]  ;;  %v7888_v17 = vld [vmem:[%s11989_s1] sm:$0xff] }
 0xad3   :  { %7645 = vmatprep.subr.bf16.mxu0 %v7644_v40  ;;  %7741 = vmatprep.subr.bf16.mxu1 %v7740_v50  ;;  %v5187_v40 = vld [vmem:[%s12000_s16 + $0x548] sm:$0xff]  ;;  %v5190_v50 = vld [vmem:[%s12000_s16 + $0x560] sm:$0xff] }
 0xad4   :  { %v7672_v57 = vpack.c.bf16 %v5190_v50, %v5187_v40  ;;  %v5791_v2 = vld [vmem:[%s12003_s17] ss:$0 sm:$0xff] }
 0xad6   :  { %7647 = vmatpush1.bf16.msra.mxu0 %v7646_v60  ;;  %7743 = vmatpush3.bf16.msra.mxu1 %v7742_v27  ;;  %v7676_v60 = vpack.c.bf16 %v5196_v6, %v5193_v44  ;;  %v5192_v27 = vld [vmem:[%s12000_s16 + $0x570] sm:$0xff]  ;;  %v7889_v44 = vld [vmem:[%s11989_s1 + $0x8] sm:$0xff] }
 0xad7   :  { %7649 = vmatprep.subr.bf16.mxu0 %v7648_v56  ;;  %7745 = vmatprep.subr.bf16.mxu1 %v7744_v59  ;;  %v5202_v56 = vld [vmem:[%s12000_s16 + $0x5c0] sm:$0xff]  ;;  %v7678_v59 = vpack.c.bf16 %v5195_v35, %v5192_v27  ;;  %v7890_v6 = vld [vmem:[%s11989_s1 + $0x10] sm:$0xff] }
 0xad8   :  { %v7680_v18 = vpack.c.bf16 %v5202_v56, %v5199_v51 }
 0xada   :  { %7651 = vmatpush1.bf16.msra.mxu0 %v7650_v31  ;;  %7747 = vmatpush3.bf16.msra.mxu1 %v7746_v19  ;;  %v7684_v31 = vpack.c.bf16 %v5208_v53, %v5205_v9  ;;  %v5204_v19 = vld [vmem:[%s12000_s16 + $0x5d0] sm:$0xff] }
 0xadb   :  { %7653 = vmatprep.subr.bf16.mxu0 %v7652_v34  ;;  %7749 = vmatprep.subr.bf16.mxu1 %v7748_v47  ;;  %v7686_v34 = vpack.c.bf16 %v5207_v48, %v5204_v19 }
 0xade   :  { %7655 = vmatpush1.bf16.msra.mxu0 %v7654_v28  ;;  %7751 = vmatpush3.bf16.msra.mxu1 %v7750_v3 }
 0xadf   :  { %7657 = vmatprep.subr.bf16.mxu0 %v7656_v32 }
 0xae1   :  { %5538 = vmatmul.mubr.f32.vlgmr.msra.gmra.mrb[84].mxu1 %v5004_v41 }
 0xae2   :  { %7659 = vmatpush1.bf16.msra.mxu0 %v7658_v39  ;;  %5542 = vmatprep.mubr.f32.mxu1 %v5009_v15 }
 0xae3   :  { %7661 = vmatprep.subr.bf16.mxu0 %v7660_v58 }
 0xae5   :  { %5543 = vmatmul.mubr.f32.gmra.mrb[86].mxu1 %v5008_v37 }
 0xae6   :  { %7663 = vmatpush1.bf16.msra.mxu0 %v7662_v33  ;;  %5547 = vmatprep.mubr.f32.mxu1 %v5013_v49 }
 0xae7   :  { %7665 = vmatprep.subr.bf16.mxu0 %v7664_v29 }
 0xae9   :  { %5548 = vmatmul.mubr.f32.gmra.mrb[88].mxu1 %v5012_v25 }
 0xaea   :  { %7667 = vmatpush1.bf16.msra.mxu0 %v7666_v12  ;;  %5552 = vmatprep.mubr.f32.mxu1 %v5017_v52 }
 0xaeb   :  { %7669 = vmatprep.subr.bf16.mxu0 %v7668_v55 }
 0xaed   :  { %5553 = vmatmul.mubr.f32.gmra.mrb[90].mxu1 %v5016_v42 }
 0xaee   :  { %7671 = vmatpush1.bf16.msra.mxu0 %v7670_v11  ;;  %6324 = vmatprep.mubr.msk.f32.mxu1 %vm877_vm0, %v7884_v4 }
 0xaef   :  { %7673 = vmatprep.subr.bf16.mxu0 %v7672_v57  ;;  %v7886_v57 = vld [vmem:[%s12099_s0 + $0x10] sm:$0xff] }
 0xaf2   :  { %7675 = vmatpush1.bf16.msra.mxu0 %v7674_v26  ;;  %v7891_v26 = vld [vmem:[%s11989_s1 + $0x18] sm:$0xff] }
 0xaf3   :  { %7677 = vmatprep.subr.bf16.mxu0 %v7676_v60 }
 0xaf6   :  { %7679 = vmatpush1.bf16.msra.mxu0 %v7678_v59 }
 0xaf7   :  { %7681 = vmatprep.subr.bf16.mxu0 %v7680_v18 }
 0xafa   :  { %7683 = vmatpush1.bf16.msra.mxu0 %v7682_v7 }
 0xafb   :  { %7685 = vmatprep.subr.bf16.mxu0 %v7684_v31 }
 0xafe   :  { %7687 = vmatpush1.bf16.msra.mxu0 %v7686_v34 }
 0xb01   :  { %5364 = vmatmul.mubr.f32.vlgmr.msra.gmra.mrb[60].mxu0 %v5004_v41 }
 0xb02   :  { %5369 = vmatprep.mubr.f32.mxu0 %v5009_v15 }
 0xb05   :  { %5370 = vmatmul.mubr.f32.gmra.mrb[62].mxu0 %v5008_v37 }
 0xb06   :  { %5375 = vmatprep.mubr.f32.mxu0 %v5013_v49 }
 0xb09   :  { %5376 = vmatmul.mubr.f32.gmra.mrb[64].mxu0 %v5012_v25 }
 0xb0a   :  { %5381 = vmatprep.mubr.f32.mxu0 %v5017_v52 }
 0xb0d   :  { %5382 = vmatmul.mubr.f32.gmra.mrb[66].mxu0 %v5016_v42  ;;  %v7885_v42 = vld [vmem:[%s12099_s0 + $0x8] sm:$0xff] }
 0xb94   :  { %v6244_v47 = vpop.f32.mrb[76].mxu1 }
 0xb95   :  { %v6245_v14 = vpop.f32.mrb[77].mxu1 }
 0xb96   :  { %v6246_v13 = vadd.f32 %v6245_v14, %v6244_v47 }
 0xb98   :  { %v6247_v5 = vpop.f32.mrb[78].mxu1 }
 0xb99   :  { %v6248_v45 = vpop.f32.mrb[79].mxu1 }
 0xb9a   :  { %v6249_v21 = vadd.f32 %v6248_v45, %v6247_v5 }
 0xb9c   :  { %v6250_v28 = vpop.f32.mrb[80].mxu1 }
 0xb9d   :  { %v6251_v3 = vpop.f32.mrb[81].mxu1 }
 0xb9e   :  { %v6252_v32 = vadd.f32 %v6251_v3, %v6250_v28 }
 0xba0   :  { %v6253_v10 = vpop.f32.mrb[82].mxu1 }
 0xba1   :  { %v6254_v61 = vpop.f32.mrb[83].mxu1 }
 0xba2   :  { %v6255_v43 = vadd.f32 %v6254_v61, %v6253_v10 }
 0xbb4   :  { %v6288_v54 = vpop.f32.mrb[84].mxu1 }
 0xbb5   :  { %v6289_v0 = vpop.f32.mrb[85].mxu1 }
 0xbb6   :  { %v6290_v30 = vadd.f32 %v6289_v0, %v6288_v54 }
 0xbb8   :  { %v5540_v39 = vadd.f32 %v6290_v30, %v6246_v13  ;;  %v6291_v41 = vpop.f32.mrb[86].mxu1 }
 0xbb9   :  { %v6292_v58 = vpop.f32.mrb[87].mxu1 }
 0xbba   :  { %v6293_v38 = vadd.f32 %v6292_v58, %v6291_v41 }
 0xbbc   :  { %v5545_v20 = vadd.f32 %v6293_v38, %v6249_v21  ;;  %v6294_v15 = vpop.f32.mrb[88].mxu1 }
 0xbbd   :  { %v6295_v46 = vpop.f32.mrb[89].mxu1 }
 0xbbe   :  { %v6296_v22 = vadd.f32 %v6295_v46, %v6294_v15  ;;  %v7760_v33 = vpack.c.bf16 %v5545_v20, %v5540_v39 }
 0xbc0   :  { %v5550_v37 = vadd.f32 %v6296_v22, %v6252_v32  ;;  %v6297_v29 = vpop.f32.mrb[90].mxu1 }
 0xbc1   :  { %v6298_v16 = vpop.f32.mrb[91].mxu1 }
 0xbc2   :  { %v6299_v63 = vadd.f32 %v6298_v16, %v6297_v29 }
 0xbc4   :  { %v5555_v49 = vadd.f32 %v6299_v63, %v6255_v43 }
 0xbc6   :  { %v7764_v36 = vpack.c.bf16 %v5555_v49, %v5550_v37 }
 0xbd4   :  { %v5365_v24 = vpop.f32.mrb[60].mxu0 }
 0xbd5   :  { %v5367_v12 = vpop.f32.mrb[61].mxu0 }
 0xbd8   :  { %v5371_v25 = vpop.f32.mrb[62].mxu0 }
 0xbd9   :  { %v7752_v55 = vpack.c.bf16 %v5371_v25, %v5365_v24  ;;  %v5373_v8 = vpop.f32.mrb[63].mxu0 }
 0xbdb   :  { %7753 = vmatprep.subr.bf16.mxu1 %v7752_v55 }
 0xbdc   :  { %v5377_v1 = vpop.f32.mrb[64].mxu0  ;;  %7755 = vmatpush3.bf16.msra.mxu1 %v7752_v55 }
 0xbdd   :  { %v5379_v52 = vpop.f32.mrb[65].mxu0 }
 0xbe0   :  { %v5383_v40 = vpop.f32.mrb[66].mxu0 }
 0xbe1   :  { %v7756_v50 = vpack.c.bf16 %v5383_v40, %v5377_v1  ;;  %v5385_v11 = vpop.f32.mrb[67].mxu0 }
 0xbe3   :  { %7757 = vmatprep.subr.bf16.mxu1 %v7756_v50 }
 0xbe4   :  { %7759 = vmatpush3.bf16.msra.mxu1 %v7756_v50 }
 0xbe5   :  { %7761 = vmatprep.subr.bf16.mxu1 %v7760_v33 }
 0xbe7   :  { %6325 = vmatmul.mubr.msk.f32.vlgmr.msra.gmra.mrb[92].mxu1 %vm877_vm0, %v7885_v42 }
 0xbe8   :  { %7763 = vmatpush3.bf16.msra.mxu1 %v7760_v33  ;;  %6327 = vmatprep.mubr.msk.f32.mxu1 %vm877_vm0, %v7886_v57 }
 0xbe9   :  { %7765 = vmatprep.subr.bf16.mxu1 %v7764_v36 }
 0xbeb   :  { %6328 = vmatmul.mubr.msk.f32.gmra.mrb[94].mxu1 %vm877_vm0, %v7887_v62 }
 0xbec   :  { %7767 = vmatpush3.bf16.msra.mxu1 %v7764_v36  ;;  %6338 = vmatprep.mubr.msk.f32.mxu1 %vm877_vm0, %v7888_v17 }
 0xbef   :  { %6339 = vmatmul.mubr.msk.f32.vlgmr.msra.gmra.mrb[96].mxu1 %vm877_vm0, %v7889_v44 }
 0xbf0   :  { %6341 = vmatprep.mubr.msk.f32.mxu1 %vm877_vm0, %v7890_v6 }
 0xbf3   :  { %6342 = vmatmul.mubr.msk.f32.gmra.mrb[98].mxu1 %vm877_vm0, %v7891_v26 }
 0xcba   :  { %v6326_v4 = vpop.f32.mrb[92].mxu1 }
 0xcbb   :  { %v5644_v60 = vadd.f32 %v6326_v4, %v5373_v8  ;;  %v5624_v27 = vpop.f32.mrb[93].mxu1 }
 0xcbc   :  { %v5643_v35 = vadd.f32 %v5624_v27, %v5367_v12 }
 0xcbe   :  { %v6329_v51 = vpop.f32.mrb[94].mxu1 }
 0xcbf   :  { %v5646_v56 = vadd.f32 %v6329_v51, %v5385_v11  ;;  %v5634_v59 = vpop.f32.mrb[95].mxu1 }
 0xcc0   :  { %v5645_v18 = vadd.f32 %v5634_v59, %v5379_v52 }
 0xcc2   :  { %v6340_v23 = vpop.f32.mrb[96].mxu1 }
 0xcc3   :  { %v5733_v9 = vadd.f32 %v6340_v23, %v5644_v60  ;;  %v5713_v53 = vpop.f32.mrb[97].mxu1 }
 0xcc4   :  { %v5732_v7 = vadd.f32 %v5713_v53, %v5643_v35 }
 0xcc5   :  { %v5744_v31 = vadd.f32 %v5791_v2, %v5733_v9 }
 0xcc6   :  { %v5743_v19 = vadd.f32 %v5791_v2, %v5732_v7  ;;  %v6343_v48 = vpop.f32.mrb[98].mxu1 }
 0xcc7   :  { %5748 = vst [vmem:[%s12004_s18 + $0x8] sm:$0xff] %v5744_v31  ;;  %v5735_v34 = vadd.f32 %v6343_v48, %v5646_v56  ;;  %v5723_v47 = vpop.f32.mrb[99].mxu1 }
 0xcc8   :  { %5747 = vst [vmem:[%s12004_s18] sm:$0xff] %v5743_v19  ;;  %v5734_v14 = vadd.f32 %v5723_v47, %v5645_v18 }
 0xcc9   :  { %v5746_v13 = vadd.f32 %v5791_v2, %v5735_v34 }
 0xcca   :  { %v5745_v5 = vadd.f32 %v5791_v2, %v5734_v14 }
 0xccb   :  { %5750 = vst [vmem:[%s12004_s18 + $0x18] sm:$0xff] %v5746_v13 }
 0xccc   :  { %5749 = vst [vmem:[%s12004_s18 + $0x10] sm:$0xff] %v5745_v5 }

</bundles_post_ra>
